<compile_context>
chip_gen: v7x
topology: tpu7x:2x2x1
jax: 0.10.0
libtpu: 0.0.40
codegen_flags: <defaults>
</compile_context>

<pallas_src>
import functools

import jax
import jax.numpy as jnp
from jax.experimental import pallas as pl
from jax.experimental.pallas import tpu as pltpu


def _round_up(x, m):
    return ((x + m - 1) // m) * m


def _default_vmem_budget():
    """Per-generation VMEM budget with ~25% headroom for compiler scratch."""
    try:
        cap = pltpu.get_tpu_info().vmem_capacity_bytes
    except Exception:
        cap = 64 << 20  # assume the smallest (v7x per-TC) VMEM if the query fails
    return int(cap * 3 // 4)


def _pick_batch_tile(B):
    """Batch tile: multiple of 8 (or the full batch when B < 8), up to 128 rows,
    with >= 2 grid points on the parallel axis whenever B allows (v7x: 2 TCs)."""
    if B <= 8:
        return B
    half = (B // 2) // 8 * 8
    return max(8, min(128, half if half > 0 else 8))


def _pick_spatial_tile(HW, per_lane_bytes, avail_bytes):
    """Largest 128-multiple spatial tile whose double-buffered x block fits
    `avail_bytes` (per_lane_bytes = 2 * tb * C * itemsize). Tiles never exceed HW
    (partial last block is masked in-kernel); full-extent tile when HW < 128."""
    if HW < 128:
        return HW
    max_thw = min((HW // 128) * 128, 64 * 128)  # cap the unrolled chunk count
    thw = (max(avail_bytes, 0) // max(per_lane_bytes, 1)) // 128 * 128
    return int(max(128, min(thw, max_thw)))


def _head_kernel(x_ref, w1_ref, b1_ref, w2_ref, b2_ref, out_ref, pooled_acc,
                 *, hw_rem, inv_hw):
    k = pl.program_id(1)
    n_k = pl.num_programs(1)
    thw = x_ref.shape[-1]
    acc_lanes = pooled_acc.shape[-1]

    @pl.when(k == 0)
    def _init():
        pooled_acc[...] = jnp.zeros_like(pooled_acc)

    def accumulate(valid_lanes):
        # Sum `valid_lanes` spatial positions of this block into the lane-aligned
        # f32 accumulator using only elementwise (VPU) adds of 128-lane slabs.
        acc = pooled_acc[...]
        n_full = valid_lanes // acc_lanes
        for c in range(n_full):
            acc = acc + x_ref[:, :, c * acc_lanes:(c + 1) * acc_lanes].astype(
                jnp.float32)
        tail = valid_lanes % acc_lanes
        if tail:
            slab = x_ref[:, :, n_full * acc_lanes:(n_full + 1) * acc_lanes].astype(
                jnp.float32)
            lane = jax.lax.broadcasted_iota(jnp.int32, slab.shape, 2)
            acc = acc + jnp.where(lane < tail, slab, 0.0)
        pooled_acc[...] = acc

    if hw_rem == 0:
        accumulate(thw)
    else:
        # Last spatial block is partial: mask the out-of-range (stale) lanes so
        # they never contaminate the pooled sum.
        @pl.when(k != n_k - 1)
        def _full_block():
            accumulate(thw)

        @pl.when(k == n_k - 1)
        def _partial_block():
            accumulate(hw_rem)

    @pl.when(k == n_k - 1)
    def _finalize():
        # One cross-lane reduce + relayout per batch tile, then bf16 MXU matmuls
        # with f32 accumulation and f32 bias adds.
        pooled = jnp.sum(pooled_acc[...], axis=-1) * inv_hw          # (tb, C) f32
        h = jnp.dot(pooled.astype(w1_ref.dtype), w1_ref[...],
                    preferred_element_type=jnp.float32) + b1_ref[...]
        h = jnp.maximum(h, 0.0)
        out = jnp.dot(h.astype(w2_ref.dtype), w2_ref[...],
                      preferred_element_type=jnp.float32) + b2_ref[...]
        out_ref[...] = out.astype(out_ref.dtype)


def head_forward(x_nchw, w1, b1, w2, b2):
    """Forward pass of `Head` (pool_dim=1, double_layer=True).

    x_nchw: (B, C, H, W) activations (f32 or bf16).
    w1: (C, C) torch Linear weight (out, in);   b1: (C,)
    w2: (num_classes, C) torch Linear weight;   b2: (num_classes,)
    Returns (B, num_classes) float32 logits.
    """
    B, C, H, W = x_nchw.shape
    HW = H * W
    num_classes = w2.shape[0]
    ncp = _round_up(num_classes, 128)

    # Free reshape (identical HBM layout): NCHW -> (B, C, HW). No extra pass over x.
    x_r = x_nchw.reshape(B, C, HW)
    x_item = x_r.dtype.itemsize

    # Weight glue only: torch (out, in) -> (in, out), bf16 for the MXU; f32 biases.
    w1_t = jnp.transpose(w1).astype(jnp.bfloat16)                   # (C, C)
    w2_t = jnp.transpose(w2).astype(jnp.bfloat16)                   # (C, NC)
    b1_r = b1.astype(jnp.float32).reshape(1, C)
    b2_r = b2.astype(jnp.float32)
    if ncp != num_classes:
        w2_t = jnp.pad(w2_t, ((0, 0), (0, ncp - num_classes)))
        b2_r = jnp.pad(b2_r, (0, ncp - num_classes))
    b2_r = b2_r.reshape(1, ncp)

    vmem_budget = _default_vmem_budget()
    acc_lanes = 128 if HW >= 128 else HW

    def fixed_vmem_bytes(tb):
        # Conservative accounting: weights/biases at 2 buffers (the fallback
        # path), pooled-sum scratch, double-buffered output block.
        weight_b = 2 * ((C * C + C * ncp) * 2 + (C + ncp) * 4)
        scratch_b = tb * C * acc_lanes * 4
        out_b = 2 * tb * ncp * 4
        return weight_b + scratch_b + out_b

    tb = _pick_batch_tile(B)
    min_thw = min(HW, 128)
    while tb > 8 and fixed_vmem_bytes(tb) + 2 * tb * C * min_thw * x_item > vmem_budget:
        tb = max(8, (tb // 2) // 8 * 8)

    avail = vmem_budget - fixed_vmem_bytes(tb)
    thw = _pick_spatial_tile(HW, 2 * tb * C * x_item, avail)

    kernel = functools.partial(_head_kernel, hw_rem=HW % thw, inv_hw=1.0 / HW)
    grid = (pl.cdiv(B, tb), pl.cdiv(HW, thw))

    def build(single_buffer_weights):
        wkw = dict(pipeline_mode=pl.Buffered(1)) if single_buffer_weights else {}
        return pl.pallas_call(
            kernel,
            out_shape=jax.ShapeDtypeStruct((B, ncp), jnp.float32),
            grid=grid,
            in_specs=[
                # Dominant activation: tiled over batch (i) and spatial reduction (k).
                pl.BlockSpec((tb, C, thw), lambda i, k: (i, 0, k)),
                # Weights / biases: constant index -> VMEM-resident across the grid.
                pl.BlockSpec((C, C), lambda i, k: (0, 0), **wkw),
                pl.BlockSpec((1, C), lambda i, k: (0, 0), **wkw),
                pl.BlockSpec((C, ncp), lambda i, k: (0, 0), **wkw),
                pl.BlockSpec((1, ncp), lambda i, k: (0, 0), **wkw),
            ],
            out_specs=pl.BlockSpec((tb, ncp), lambda i, k: (i, 0)),
            scratch_shapes=[pltpu.VMEM((tb, C, acc_lanes), jnp.float32)],
            compiler_params=pltpu.CompilerParams(
                dimension_semantics=("parallel", "arbitrary"),
                vmem_limit_bytes=int(vmem_budget),
            ),
        )

    args = (x_r, w1_t, b1_r, w2_t, b2_r)
    try:
        out_padded = jax.block_until_ready(build(True)(*args))
    except Exception:
        # This jax/Mosaic version rejects single-buffered (pl.Buffered(1))
        # resident weights; fall back to default double buffering (already
        # covered by the conservative VMEM accounting above).
        out_padded = build(False)(*args)

    return out_padded[:, :num_classes] if ncp != num_classes else out_padded


if __name__ == "__main__":
    key = jax.random.PRNGKey(0)

    def reference(x, w1, b1, w2, b2):
        xf = x.astype(jnp.float32)
        pooled = jnp.mean(xf, axis=(2, 3))                      # (B, C)
        h = jnp.maximum(pooled @ w1.T + b1, 0.0)                # (B, C)
        return h @ w2.T + b2                                    # (B, NC)

    def run_case(k, B, C, H, W, NC, x_dtype):
        kx, kw1, kb1, kw2, kb2 = jax.random.split(k, 5)
        x = jax.random.normal(kx, (B, C, H, W), dtype=jnp.float32).astype(x_dtype)
        w1 = jax.random.normal(kw1, (C, C), dtype=jnp.float32) / jnp.sqrt(C)
        b1 = jax.random.normal(kb1, (C,), dtype=jnp.float32) * 0.01
        w2 = jax.random.normal(kw2, (NC, C), dtype=jnp.float32) / jnp.sqrt(C)
        b2 = jax.random.normal(kb2, (NC,), dtype=jnp.float32) * 0.01

        out = jax.block_until_ready(head_forward(x, w1, b1, w2, b2))
        ref = reference(x, w1, b1, w2, b2)
        assert out.shape == (B, NC)
        # bf16 weights inside the kernel vs f32 reference -> ~1e-3 level error.
        assert jnp.allclose(out, ref, atol=5e-3, rtol=5e-3), (
            float(jnp.max(jnp.abs(out - ref))))

    k1, k2, k3 = jax.random.split(key, 3)
    # HW=225 (not a multiple of 128): multi-step spatial reduction with a masked
    # partial last block; 2 parallel batch tiles; padded num_classes.
    run_case(k1, B=16, C=128, H=15, W=15, NC=200, x_dtype=jnp.bfloat16)
    # HW=256: single unmasked spatial step.
    run_case(k2, B=16, C=128, H=16, W=16, NC=200, x_dtype=jnp.bfloat16)
    # Tiny shapes: HW<128 (full-extent spatial block), B<8 (full-batch tile), f32 input.
    run_case(k3, B=4, C=32, H=5, W=5, NC=10, x_dtype=jnp.float32)

    print("KERNEL_OK")
</pallas_src>

<mosaic_0001>
module attributes {stable_mosaic.version = 11 : i64} {
  func.func @_head_kernel(%arg0: i32, %arg1: i32, %arg2: memref<8x128x128xbf16, #tpu.memory_space<vmem>>, %arg3: memref<128x128xbf16, #tpu.memory_space<vmem>>, %arg4: memref<1x128xf32, #tpu.memory_space<vmem>>, %arg5: memref<128x256xbf16, #tpu.memory_space<vmem>>, %arg6: memref<1x256xf32, #tpu.memory_space<vmem>>, %arg7: memref<8x256xf32, #tpu.memory_space<vmem>>, %arg8: memref<8x128x128xf32, #tpu.memory_space<vmem>>) attributes {dimension_semantics = [#tpu.dimension_semantics<parallel>, #tpu.dimension_semantics<arbitrary>], iteration_bounds = array<i64: 2, 2>, scalar_prefetch = 0 : i64, scratch_operands = 1 : i64, tpu.core_type = #tpu.core_type<tc>, window_params = [{transform_indices = @transform_0, window_bounds = array<i64: 8, 128, 128>}, {pipeline_mode = #tpu.pipeline_mode<synchronous>, transform_indices = @transform_1, window_bounds = array<i64: 128, 128>}, {pipeline_mode = #tpu.pipeline_mode<synchronous>, transform_indices = @transform_2, window_bounds = array<i64: 1, 128>}, {pipeline_mode = #tpu.pipeline_mode<synchronous>, transform_indices = @transform_3, window_bounds = array<i64: 128, 256>}, {pipeline_mode = #tpu.pipeline_mode<synchronous>, transform_indices = @transform_4, window_bounds = array<i64: 1, 256>}, {transform_indices = @transform_5, window_bounds = array<i64: 8, 256>}]} {
    %c0_i32 = arith.constant 0 : i32
    %0 = arith.cmpi eq, %arg1, %c0_i32 : i32
    %1 = arith.extui %0 : i1 to i32
    %c0_i32_0 = arith.constant 0 : i32
    %2 = arith.cmpi ne, %1, %c0_i32_0 : i32
    scf.if %2 {
      %cst = arith.constant 0.000000e+00 : f32
      %12 = vector.broadcast %cst : f32 to vector<8x128x128xf32>
      %c0 = arith.constant 0 : index
      %c0_6 = arith.constant 0 : index
      %c0_7 = arith.constant 0 : index
      %13 = vector.load %arg8[%c0, %c0_6, %c0_7] : memref<8x128x128xf32, #tpu.memory_space<vmem>>, vector<8x128x128xf32>
      tpu.vector_store %arg8[%c0, %c0_6, %c0_7], %12 {strides = array<i32>} : memref<8x128x128xf32, #tpu.memory_space<vmem>>, vector<8x128x128xf32>,
    } else {
    }
    %c1_i32 = arith.constant 1 : i32
    %3 = arith.cmpi ne, %arg1, %c1_i32 : i32
    %4 = arith.extui %3 : i1 to i32
    %c0_i32_1 = arith.constant 0 : i32
    %5 = arith.cmpi ne, %4, %c0_i32_1 : i32
    scf.if %5 {
      %c0 = arith.constant 0 : index
      %c0_6 = arith.constant 0 : index
      %c0_7 = arith.constant 0 : index
      %12 = vector.load %arg8[%c0, %c0_6, %c0_7] : memref<8x128x128xf32, #tpu.memory_space<vmem>>, vector<8x128x128xf32>
      %c0_8 = arith.constant 0 : index
      %c0_9 = arith.constant 0 : index
      %c0_10 = arith.constant 0 : index
      %13 = vector.load %arg2[%c0_8, %c0_9, %c0_10] : memref<8x128x128xbf16, #tpu.memory_space<vmem>>, vector<8x128x128xbf16>
      %14 = arith.extf %13 : vector<8x128x128xbf16> to vector<8x128x128xf32>
      %15 = arith.addf %12, %14 : vector<8x128x128xf32>
      %c0_11 = arith.constant 0 : index
      %c0_12 = arith.constant 0 : index
      %c0_13 = arith.constant 0 : index
      %16 = vector.load %arg8[%c0_11, %c0_12, %c0_13] : memref<8x128x128xf32, #tpu.memory_space<vmem>>, vector<8x128x128xf32>
      tpu.vector_store %arg8[%c0_11, %c0_12, %c0_13], %15 {strides = array<i32>} : memref<8x128x128xf32, #tpu.memory_space<vmem>>, vector<8x128x128xf32>,
    } else {
    }
    %c1_i32_2 = arith.constant 1 : i32
    %6 = arith.cmpi eq, %arg1, %c1_i32_2 : i32
    %7 = arith.extui %6 : i1 to i32
    %c0_i32_3 = arith.constant 0 : i32
    %8 = arith.cmpi ne, %7, %c0_i32_3 : i32
    scf.if %8 {
      %c0 = arith.constant 0 : index
      %c0_6 = arith.constant 0 : index
      %c0_7 = arith.constant 0 : index
      %12 = vector.load %arg8[%c0, %c0_6, %c0_7] : memref<8x128x128xf32, #tpu.memory_space<vmem>>, vector<8x128x128xf32>
      %c0_8 = arith.constant 0 : index
      %c0_9 = arith.constant 0 : index
      %c0_10 = arith.constant 0 : index
      %13 = vector.load %arg2[%c0_8, %c0_9, %c0_10] : memref<8x128x128xbf16, #tpu.memory_space<vmem>>, vector<8x128x128xbf16>
      %14 = arith.extf %13 : vector<8x128x128xbf16> to vector<8x128x128xf32>
      %15 = tpu.iota {dimensions = array<i32: 2>} : vector<8x128x128xi32>
      %c97_i32 = arith.constant 97 : i32
      %16 = vector.broadcast %c97_i32 : i32 to vector<8x128x128xi32>
      %17 = arith.cmpi slt, %15, %16 : vector<8x128x128xi32>
      %cst = arith.constant 0.000000e+00 : f32
      %18 = vector.broadcast %cst : f32 to vector<8x128x128xf32>
      %19 = arith.select %17, %14, %18 : vector<8x128x128xi1>, vector<8x128x128xf32>
      %20 = arith.addf %12, %19 : vector<8x128x128xf32>
      %c0_11 = arith.constant 0 : index
      %c0_12 = arith.constant 0 : index
      %c0_13 = arith.constant 0 : index
      %21 = vector.load %arg8[%c0_11, %c0_12, %c0_13] : memref<8x128x128xf32, #tpu.memory_space<vmem>>, vector<8x128x128xf32>
      tpu.vector_store %arg8[%c0_11, %c0_12, %c0_13], %20 {strides = array<i32>} : memref<8x128x128xf32, #tpu.memory_space<vmem>>, vector<8x128x128xf32>,
    } else {
    }
    %c1_i32_4 = arith.constant 1 : i32
    %9 = arith.cmpi eq, %arg1, %c1_i32_4 : i32
    %10 = arith.extui %9 : i1 to i32
    %c0_i32_5 = arith.constant 0 : i32
    %11 = arith.cmpi ne, %10, %c0_i32_5 : i32
    scf.if %11 {
      %c0 = arith.constant 0 : index
      %c0_6 = arith.constant 0 : index
      %c0_7 = arith.constant 0 : index
      %12 = vector.load %arg8[%c0, %c0_6, %c0_7] : memref<8x128x128xf32, #tpu.memory_space<vmem>>, vector<8x128x128xf32>
      %cst = arith.constant dense<0.000000e+00> : vector<8x128xf32>
      %13 = vector.multi_reduction <add>, %12, %cst [2] : vector<8x128x128xf32> to vector<8x128xf32>
      %cst_8 = arith.constant 0.00444444455 : f32
      %14 = vector.broadcast %cst_8 : f32 to vector<8x128xf32>
      %15 = arith.mulf %13, %14 : vector<8x128xf32>
      %16 = arith.truncf %15 : vector<8x128xf32> to vector<8x128xbf16>
      %c0_9 = arith.constant 0 : index
      %c0_10 = arith.constant 0 : index
      %17 = vector.load %arg3[%c0_9, %c0_10] : memref<128x128xbf16, #tpu.memory_space<vmem>>, vector<128x128xbf16>
      %cst_11 = arith.constant dense<0.000000e+00> : vector<8x128xf32>
      %18 = tpu.matmul %16, %17, %cst_11 {dimension_numbers = #tpu.dot_dimension_numbers<[1], [0], [0], [1], [0, 0, 1, 1], [], []>} : vector<8x128xbf16>, vector<128x128xbf16>, vector<8x128xf32> -> vector<8x128xf32>
      %c0_12 = arith.constant 0 : index
      %c0_13 = arith.constant 0 : index
      %19 = vector.load %arg4[%c0_12, %c0_13] : memref<1x128xf32, #tpu.memory_space<vmem>>, vector<1x128xf32>
      %20 = vector.broadcast %19 : vector<1x128xf32> to vector<8x128xf32>
      %21 = arith.addf %18, %20 : vector<8x128xf32>
      %cst_14 = arith.constant 0.000000e+00 : f32
      %22 = vector.broadcast %cst_14 : f32 to vector<8x128xf32>
      %23 = arith.maximumf %21, %22 : vector<8x128xf32>
      %24 = arith.truncf %23 : vector<8x128xf32> to vector<8x128xbf16>
      %c0_15 = arith.constant 0 : index
      %c0_16 = arith.constant 0 : index
      %25 = vector.load %arg5[%c0_15, %c0_16] : memref<128x256xbf16, #tpu.memory_space<vmem>>, vector<128x256xbf16>
      %cst_17 = arith.constant dense<0.000000e+00> : vector<8x256xf32>
      %26 = tpu.matmul %24, %25, %cst_17 {dimension_numbers = #tpu.dot_dimension_numbers<[1], [0], [0], [1], [0, 0, 1, 1], [], []>} : vector<8x128xbf16>, vector<128x256xbf16>, vector<8x256xf32> -> vector<8x256xf32>
      %c0_18 = arith.constant 0 : index
      %c0_19 = arith.constant 0 : index
      %27 = vector.load %arg6[%c0_18, %c0_19] : memref<1x256xf32, #tpu.memory_space<vmem>>, vector<1x256xf32>
      %28 = vector.broadcast %27 : vector<1x256xf32> to vector<8x256xf32>
      %29 = arith.addf %26, %28 : vector<8x256xf32>
      %c0_20 = arith.constant 0 : index
      %c0_21 = arith.constant 0 : index
      %30 = vector.load %arg7[%c0_20, %c0_21] : memref<8x256xf32, #tpu.memory_space<vmem>>, vector<8x256xf32>
      tpu.vector_store %arg7[%c0_20, %c0_21], %29 {strides = array<i32>} : memref<8x256xf32, #tpu.memory_space<vmem>>, vector<8x256xf32>,
    } else {
    }
    return
  }
  func.func @transform_0(%arg0: i32, %arg1: i32) -> (i32, i32, i32) {
    %c0_i32 = arith.constant 0 : i32
    %c0_i32_0 = arith.constant 0 : i32
    return %arg0, %c0_i32, %arg1 : i32, i32, i32
  }
  func.func @transform_1(%arg0: i32, %arg1: i32) -> (i32, i32) {
    %c0_i32 = arith.constant 0 : i32
    %c0_i32_0 = arith.constant 0 : i32
    %c0_i32_1 = arith.constant 0 : i32
    return %c0_i32, %c0_i32_0 : i32, i32
  }
  func.func @transform_2(%arg0: i32, %arg1: i32) -> (i32, i32) {
    %c0_i32 = arith.constant 0 : i32
    %c0_i32_0 = arith.constant 0 : i32
    %c0_i32_1 = arith.constant 0 : i32
    return %c0_i32, %c0_i32_0 : i32, i32
  }
  func.func @transform_3(%arg0: i32, %arg1: i32) -> (i32, i32) {
    %c0_i32 = arith.constant 0 : i32
    %c0_i32_0 = arith.constant 0 : i32
    %c0_i32_1 = arith.constant 0 : i32
    return %c0_i32, %c0_i32_0 : i32, i32
  }
  func.func @transform_4(%arg0: i32, %arg1: i32) -> (i32, i32) {
    %c0_i32 = arith.constant 0 : i32
    %c0_i32_0 = arith.constant 0 : i32
    %c0_i32_1 = arith.constant 0 : i32
    return %c0_i32, %c0_i32_0 : i32, i32
  }
  func.func @transform_5(%arg0: i32, %arg1: i32) -> (i32, i32) {
    %c0_i32 = arith.constant 0 : i32
    %c0_i32_0 = arith.constant 0 : i32
    return %arg0, %c0_i32 : i32, i32
  }
}

module attributes {stable_mosaic.version = 11 : i64} {
  func.func @_head_kernel(%arg0: i32, %arg1: i32, %arg2: memref<8x128x128xbf16, #tpu.memory_space<vmem>>, %arg3: memref<128x128xbf16, #tpu.memory_space<vmem>>, %arg4: memref<1x128xf32, #tpu.memory_space<vmem>>, %arg5: memref<128x256xbf16, #tpu.memory_space<vmem>>, %arg6: memref<1x256xf32, #tpu.memory_space<vmem>>, %arg7: memref<8x256xf32, #tpu.memory_space<vmem>>, %arg8: memref<8x128x128xf32, #tpu.memory_space<vmem>>) attributes {dimension_semantics = [#tpu.dimension_semantics<parallel>, #tpu.dimension_semantics<arbitrary>], iteration_bounds = array<i64: 2, 2>, scalar_prefetch = 0 : i64, scratch_operands = 1 : i64, tpu.core_type = #tpu.core_type<tc>, window_params = [{transform_indices = @transform_0, window_bounds = array<i64: 8, 128, 128>}, {pipeline_mode = #tpu.pipeline_mode<synchronous>, transform_indices = @transform_1, window_bounds = array<i64: 128, 128>}, {pipeline_mode = #tpu.pipeline_mode<synchronous>, transform_indices = @transform_2, window_bounds = array<i64: 1, 128>}, {pipeline_mode = #tpu.pipeline_mode<synchronous>, transform_indices = @transform_3, window_bounds = array<i64: 128, 256>}, {pipeline_mode = #tpu.pipeline_mode<synchronous>, transform_indices = @transform_4, window_bounds = array<i64: 1, 256>}, {transform_indices = @transform_5, window_bounds = array<i64: 8, 256>}]} {
    %c0_i32 = arith.constant 0 : i32
    %0 = arith.cmpi eq, %arg1, %c0_i32 : i32
    %1 = arith.extui %0 : i1 to i32
    %c0_i32_0 = arith.constant 0 : i32
    %2 = arith.cmpi ne, %1, %c0_i32_0 : i32
    scf.if %2 {
      %cst = arith.constant 0.000000e+00 : f32
      %12 = vector.broadcast %cst : f32 to vector<8x128x128xf32>
      %c0 = arith.constant 0 : index
      %c0_6 = arith.constant 0 : index
      %c0_7 = arith.constant 0 : index
      %13 = vector.load %arg8[%c0, %c0_6, %c0_7] : memref<8x128x128xf32, #tpu.memory_space<vmem>>, vector<8x128x128xf32>
      tpu.vector_store %arg8[%c0, %c0_6, %c0_7], %12 {strides = array<i32>} : memref<8x128x128xf32, #tpu.memory_space<vmem>>, vector<8x128x128xf32>,
    } else {
    }
    %c1_i32 = arith.constant 1 : i32
    %3 = arith.cmpi ne, %arg1, %c1_i32 : i32
    %4 = arith.extui %3 : i1 to i32
    %c0_i32_1 = arith.constant 0 : i32
    %5 = arith.cmpi ne, %4, %c0_i32_1 : i32
    scf.if %5 {
      %c0 = arith.constant 0 : index
      %c0_6 = arith.constant 0 : index
      %c0_7 = arith.constant 0 : index
      %12 = vector.load %arg8[%c0, %c0_6, %c0_7] : memref<8x128x128xf32, #tpu.memory_space<vmem>>, vector<8x128x128xf32>
      %c0_8 = arith.constant 0 : index
      %c0_9 = arith.constant 0 : index
      %c0_10 = arith.constant 0 : index
      %13 = vector.load %arg2[%c0_8, %c0_9, %c0_10] : memref<8x128x128xbf16, #tpu.memory_space<vmem>>, vector<8x128x128xbf16>
      %14 = arith.extf %13 : vector<8x128x128xbf16> to vector<8x128x128xf32>
      %15 = arith.addf %12, %14 : vector<8x128x128xf32>
      %c0_11 = arith.constant 0 : index
      %c0_12 = arith.constant 0 : index
      %c0_13 = arith.constant 0 : index
      %16 = vector.load %arg8[%c0_11, %c0_12, %c0_13] : memref<8x128x128xf32, #tpu.memory_space<vmem>>, vector<8x128x128xf32>
      tpu.vector_store %arg8[%c0_11, %c0_12, %c0_13], %15 {strides = array<i32>} : memref<8x128x128xf32, #tpu.memory_space<vmem>>, vector<8x128x128xf32>,
    } else {
    }
    %c1_i32_2 = arith.constant 1 : i32
    %6 = arith.cmpi eq, %arg1, %c1_i32_2 : i32
    %7 = arith.extui %6 : i1 to i32
    %c0_i32_3 = arith.constant 0 : i32
    %8 = arith.cmpi ne, %7, %c0_i32_3 : i32
    scf.if %8 {
      %c0 = arith.constant 0 : index
      %c0_6 = arith.constant 0 : index
      %c0_7 = arith.constant 0 : index
      %12 = vector.load %arg8[%c0, %c0_6, %c0_7] : memref<8x128x128xf32, #tpu.memory_space<vmem>>, vector<8x128x128xf32>
      %c0_8 = arith.constant 0 : index
      %c0_9 = arith.constant 0 : index
      %c0_10 = arith.constant 0 : index
      %13 = vector.load %arg2[%c0_8, %c0_9, %c0_10] : memref<8x128x128xbf16, #tpu.memory_space<vmem>>, vector<8x128x128xbf16>
      %14 = arith.extf %13 : vector<8x128x128xbf16> to vector<8x128x128xf32>
      %15 = tpu.iota {dimensions = array<i32: 2>} : vector<8x128x128xi32>
      %c97_i32 = arith.constant 97 : i32
      %16 = vector.broadcast %c97_i32 : i32 to vector<8x128x128xi32>
      %17 = arith.cmpi slt, %15, %16 : vector<8x128x128xi32>
      %cst = arith.constant 0.000000e+00 : f32
      %18 = vector.broadcast %cst : f32 to vector<8x128x128xf32>
      %19 = arith.select %17, %14, %18 : vector<8x128x128xi1>, vector<8x128x128xf32>
      %20 = arith.addf %12, %19 : vector<8x128x128xf32>
      %c0_11 = arith.constant 0 : index
      %c0_12 = arith.constant 0 : index
      %c0_13 = arith.constant 0 : index
      %21 = vector.load %arg8[%c0_11, %c0_12, %c0_13] : memref<8x128x128xf32, #tpu.memory_space<vmem>>, vector<8x128x128xf32>
      tpu.vector_store %arg8[%c0_11, %c0_12, %c0_13], %20 {strides = array<i32>} : memref<8x128x128xf32, #tpu.memory_space<vmem>>, vector<8x128x128xf32>,
    } else {
    }
    %c1_i32_4 = arith.constant 1 : i32
    %9 = arith.cmpi eq, %arg1, %c1_i32_4 : i32
    %10 = arith.extui %9 : i1 to i32
    %c0_i32_5 = arith.constant 0 : i32
    %11 = arith.cmpi ne, %10, %c0_i32_5 : i32
    scf.if %11 {
      %c0 = arith.constant 0 : index
      %c0_6 = arith.constant 0 : index
      %c0_7 = arith.constant 0 : index
      %12 = vector.load %arg8[%c0, %c0_6, %c0_7] : memref<8x128x128xf32, #tpu.memory_space<vmem>>, vector<8x128x128xf32>
      %cst = arith.constant dense<0.000000e+00> : vector<8x128xf32>
      %13 = vector.multi_reduction <add>, %12, %cst [2] : vector<8x128x128xf32> to vector<8x128xf32>
      %cst_8 = arith.constant 0.00444444455 : f32
      %14 = vector.broadcast %cst_8 : f32 to vector<8x128xf32>
      %15 = arith.mulf %13, %14 : vector<8x128xf32>
      %16 = arith.truncf %15 : vector<8x128xf32> to vector<8x128xbf16>
      %c0_9 = arith.constant 0 : index
      %c0_10 = arith.constant 0 : index
      %17 = vector.load %arg3[%c0_9, %c0_10] : memref<128x128xbf16, #tpu.memory_space<vmem>>, vector<128x128xbf16>
      %cst_11 = arith.constant dense<0.000000e+00> : vector<8x128xf32>
      %18 = tpu.matmul %16, %17, %cst_11 {dimension_numbers = #tpu.dot_dimension_numbers<[1], [0], [0], [1], [0, 0, 1, 1], [], []>} : vector<8x128xbf16>, vector<128x128xbf16>, vector<8x128xf32> -> vector<8x128xf32>
      %c0_12 = arith.constant 0 : index
      %c0_13 = arith.constant 0 : index
      %19 = vector.load %arg4[%c0_12, %c0_13] : memref<1x128xf32, #tpu.memory_space<vmem>>, vector<1x128xf32>
      %20 = vector.broadcast %19 : vector<1x128xf32> to vector<8x128xf32>
      %21 = arith.addf %18, %20 : vector<8x128xf32>
      %cst_14 = arith.constant 0.000000e+00 : f32
      %22 = vector.broadcast %cst_14 : f32 to vector<8x128xf32>
      %23 = arith.maximumf %21, %22 : vector<8x128xf32>
      %24 = arith.truncf %23 : vector<8x128xf32> to vector<8x128xbf16>
      %c0_15 = arith.constant 0 : index
      %c0_16 = arith.constant 0 : index
      %25 = vector.load %arg5[%c0_15, %c0_16] : memref<128x256xbf16, #tpu.memory_space<vmem>>, vector<128x256xbf16>
      %cst_17 = arith.constant dense<0.000000e+00> : vector<8x256xf32>
      %26 = tpu.matmul %24, %25, %cst_17 {dimension_numbers = #tpu.dot_dimension_numbers<[1], [0], [0], [1], [0, 0, 1, 1], [], []>} : vector<8x128xbf16>, vector<128x256xbf16>, vector<8x256xf32> -> vector<8x256xf32>
      %c0_18 = arith.constant 0 : index
      %c0_19 = arith.constant 0 : index
      %27 = vector.load %arg6[%c0_18, %c0_19] : memref<1x256xf32, #tpu.memory_space<vmem>>, vector<1x256xf32>
      %28 = vector.broadcast %27 : vector<1x256xf32> to vector<8x256xf32>
      %29 = arith.addf %26, %28 : vector<8x256xf32>
      %c0_20 = arith.constant 0 : index
      %c0_21 = arith.constant 0 : index
      %30 = vector.load %arg7[%c0_20, %c0_21] : memref<8x256xf32, #tpu.memory_space<vmem>>, vector<8x256xf32>
      tpu.vector_store %arg7[%c0_20, %c0_21], %29 {strides = array<i32>} : memref<8x256xf32, #tpu.memory_space<vmem>>, vector<8x256xf32>,
    } else {
    }
    return
  }
  func.func @transform_0(%arg0: i32, %arg1: i32) -> (i32, i32, i32) {
    %c0_i32 = arith.constant 0 : i32
    %c0_i32_0 = arith.constant 0 : i32
    return %arg0, %c0_i32, %arg1 : i32, i32, i32
  }
  func.func @transform_1(%arg0: i32, %arg1: i32) -> (i32, i32) {
    %c0_i32 = arith.constant 0 : i32
    %c0_i32_0 = arith.constant 0 : i32
    %c0_i32_1 = arith.constant 0 : i32
    return %c0_i32, %c0_i32_0 : i32, i32
  }
  func.func @transform_2(%arg0: i32, %arg1: i32) -> (i32, i32) {
    %c0_i32 = arith.constant 0 : i32
    %c0_i32_0 = arith.constant 0 : i32
    %c0_i32_1 = arith.constant 0 : i32
    return %c0_i32, %c0_i32_0 : i32, i32
  }
  func.func @transform_3(%arg0: i32, %arg1: i32) -> (i32, i32) {
    %c0_i32 = arith.constant 0 : i32
    %c0_i32_0 = arith.constant 0 : i32
    %c0_i32_1 = arith.constant 0 : i32
    return %c0_i32, %c0_i32_0 : i32, i32
  }
  func.func @transform_4(%arg0: i32, %arg1: i32) -> (i32, i32) {
    %c0_i32 = arith.constant 0 : i32
    %c0_i32_0 = arith.constant 0 : i32
    %c0_i32_1 = arith.constant 0 : i32
    return %c0_i32, %c0_i32_0 : i32, i32
  }
  func.func @transform_5(%arg0: i32, %arg1: i32) -> (i32, i32) {
    %c0_i32 = arith.constant 0 : i32
    %c0_i32_0 = arith.constant 0 : i32
    return %arg0, %c0_i32 : i32, i32
  }
}

</mosaic_0001>

<bundles_post_ra>
// kernel: tpu_custom_call.1
= control target key start
LH: loop header
LB: loop body
LE: loop exit
PB: predicated region body
PF: predicated region fallthrough
CT: control target
= control target key end

     0   :  { %10 = vsyncpa [#allocation5], 0  ;;  %s7094_s0 = inlined_call_operand.vmem [shape: bf16[16,128,225], index: 0, kind: input, shape index: {}]   ;;  %s7095_s1 = inlined_call_operand.vmem [shape: bf16[128,128], index: 1, kind: input, shape index: {}]   ;;  %s7096_s2 = inlined_call_operand.vmem [shape: f32[1,128], index: 2, kind: input, shape index: {}]   ;;  %s7097_s3 = inlined_call_operand.vmem [shape: bf16[128,256], index: 3, kind: input, shape index: {}]   ;;  %s7098_s4 = inlined_call_operand.vmem [shape: f32[1,256], index: 4, kind: input, shape index: {}]   ;;  %s7099_s5 = inlined_call_operand.hbm [shape: f32[16,256], index: 5, kind: output, shape index: {}]  }
   0x1   :  { %12 = vsyncpa [#allocation5 + $0x1], 0  ;;  %s5128_s18 = smov 0   ;;  %s5130_s19 = smov 0  }
   0x2   :  { %s5132_s20 = smov 0   ;;  %s5134_s21 = smov 0  }
   0x3   :  { %s5136_s22 = smov 0   ;;  %s5138_s23 = smov 0  }
   0x4   :  { %s5140_s24 = smov 0   ;;  %s5142_s25 = smov 0  }
   0x5   :  { %s5144_s26 = smov 0   ;;  %s5146_s27 = smov 0  }
   0x6 LB: > { %s4145_s28 = sadd.s32 4294967295, %s5091_s27   ;;  %s4146_s29 = sadd.s32 4294967294, %s5091_s27   ;;  %s5091_s27 = sphi %s5146_s27, %s18_s27   ;;  %s5087_s26 = sphi %s5144_s26, %s7173_s26   ;;  %s5083_s25 = sphi %s5142_s25, %s7172_s25   ;;  %s5079_s24 = sphi %s5140_s24, %s7171_s24   ;;  %s5075_s23 = sphi %s5138_s23, %s7170_s23   ;;  %s5071_s22 = sphi %s5136_s22, %s7169_s22   ;;  %s5067_s21 = sphi %s5134_s21, %s7168_s21   ;;  %s5063_s20 = sphi %s5132_s20, %s7167_s20   ;;  %s5059_s19 = sphi %s5130_s19, %s7166_s19   ;;  %s5055_s18 = sphi %s5128_s18, %s7165_s18  }
   0x7   : > { %s27_s30 = sadd.s32 1, %s5083_s25  ;;  %s30_s6 = sadd.s32 1, %s5087_s26 }
   0x8   : > { %p28_p0 = scmp.ge.s32.totalorder %s27_s30, 2  ;;  %s39_s7 = sadd.s32 1, %s5071_s22 }
   0x9   : > { %p46_p1 = scmp.ne.s32.totalorder %s5071_s22, %s5067_s21  ;;  %p47_p2 = scmp.eq.s32.totalorder %s5091_s27, 0 }
   0xa   : > { %s7175_s30 = smov (%p28_p0, %s27_s30), 0  ;;  %s7177_s6 = smov (!%p28_p0, %s30_s6), %s5087_s26 }
   0xb   : > { %s35_s8 = ssub.s32 %s5083_s25, %s7175_s30  ;;  %p5191_p3 = por %p47_p2, %p46_p1 }
   0xc   : > { %p32_p4 = scmp.ge.s32.totalorder %s7177_s6, 2  ;;  %s149_s10 = sadd.s32 1, %s5063_s20 }
   0xd   : > { %p159_p5 = scmp.ne.s32.totalorder %s5063_s20, %s5059_s19  ;;  %p160_p6 = scmp.eq.s32.totalorder %s4145_s28, 3 }
   0xe   : > { %s7179_s6 = smov (%p32_p4, %s7177_s6), 0  ;;  %p165_p8 = scmp.ne.s32.totalorder %s5059_s19, %s5055_s18 }
   0xf   : > { %7122 = sst [smem:[#allocation7_spill]] %s7179_s6  ;;  %p5200_p7 = por %p160_p6, %p159_p5 }
  0x10   : > { %s34_s12 = ssub.s32 %s5087_s26, %s7179_s6  ;;  %p166_p9 = scmp.eq.s32.totalorder %s4146_s29, 3 }
  0x11   : > { %s36_s13 = sor.u32 %s35_s8, %s34_s12  ;;  %p147_p10 = scmp.eq.s32.totalorder %s34_s12, 0 }
  0x12   : > { %p37_p11 = scmp.eq.s32.totalorder %s36_s13, 0  ;;  %p5208_p12 = por %p166_p9, %p165_p8 }
  0x13   : > { %s5213_s15 = scalar_select %p147_p10, %s5063_s20, %s149_s10  }
  0x14   : > { %s5216_s16 = scalar_select %p37_p11, %s5071_s22, %s39_s7  }
  0x15   : > { %p4148_p13 = scmp.ge.s32.totalorder %s5091_s27, 4 }
  0x17   : > { %194 = sbr.rel (%p4148_p13) target bundleno = 121 (0x79), region = 32 }
  0x1e   : > { %197 = sbr.rel (!%p5191_p3) target bundleno = 121 (0x79), region = 36  ;;  %s199_s17 = sand.u32 (%p5191_p3), 1, %s5071_s22  }
  0x1f   : > { %s4189_s28 = sshll.u32 (%p5191_p3), %s5087_s26, 8  ;;  %s4149_s29 = sshll.u32 (%p5191_p3), %s199_s17, 9 }
  0x20   : > { %s204_s8 = sadd.s32 (%p5191_p3), %s5083_s25, %s4189_s28  ;;  %s5232_s7 = scalar_lea.vmem (%p5191_p3), [#allocation3], %s4149_s29 }
  0x21   : > { %s4152_s12 = sshll.u32 (%p5191_p3), %s204_s8, 2 }
  0x22   : > { %s5227_s10 = scalar_lea.vmem (%p5191_p3), %s7094_s0, %s4152_s12 }
  0x23   : > { %v222_v0 = vld [vmem:[%s5227_s10] sm:$0xf] (%p5191_p3)  ;;  %v224_v1 = vld [vmem:[%s5227_s10 + $0x8] sm:$0xf] (%p5191_p3)  ;;  %v226_v2 = vld [vmem:[%s5227_s10 + $0x10] sm:$0xf] (%p5191_p3) }
  0x24   : > { %223 = vst [vmem:[%s5232_s7] sm:$0xf] (%p5191_p3), %v222_v0  ;;  %225 = vst [vmem:[%s5232_s7 + $0x4] sm:$0xf] (%p5191_p3), %v224_v1  ;;  %v228_v3 = vld [vmem:[%s5227_s10 + $0x18] sm:$0xf] (%p5191_p3) }
  0x25   : > { %227 = vst [vmem:[%s5232_s7 + $0x8] sm:$0xf] %v226_v2  ;;  %v230_v4 = vld [vmem:[%s5227_s10 + $0x20] sm:$0xf]  ;;  %v232_v5 = vld [vmem:[%s5227_s10 + $0x28] sm:$0xf] }
  0x26   : > { %229 = vst [vmem:[%s5232_s7 + $0xc] sm:$0xf] %v228_v3  ;;  %231 = vst [vmem:[%s5232_s7 + $0x10] sm:$0xf] %v230_v4  ;;  %v234_v6 = vld [vmem:[%s5227_s10 + $0x30] sm:$0xf] }
  0x27   : > { %233 = vst [vmem:[%s5232_s7 + $0x14] sm:$0xf] %v232_v5  ;;  %v236_v7 = vld [vmem:[%s5227_s10 + $0x38] sm:$0xf]  ;;  %v238_v8 = vld [vmem:[%s5227_s10 + $0x40] sm:$0xf] }
  0x28   : > { %235 = vst [vmem:[%s5232_s7 + $0x18] sm:$0xf] %v234_v6  ;;  %237 = vst [vmem:[%s5232_s7 + $0x1c] sm:$0xf] %v236_v7  ;;  %v240_v9 = vld [vmem:[%s5227_s10 + $0x48] sm:$0xf] }
  0x29   : > { %239 = vst [vmem:[%s5232_s7 + $0x20] sm:$0xf] %v238_v8  ;;  %v242_v10 = vld [vmem:[%s5227_s10 + $0x50] sm:$0xf]  ;;  %v244_v11 = vld [vmem:[%s5227_s10 + $0x58] sm:$0xf] }
  0x2a   : > { %241 = vst [vmem:[%s5232_s7 + $0x24] sm:$0xf] %v240_v9  ;;  %243 = vst [vmem:[%s5232_s7 + $0x28] sm:$0xf] %v242_v10  ;;  %v246_v12 = vld [vmem:[%s5227_s10 + $0x60] sm:$0xf] }
  0x2b   : > { %245 = vst [vmem:[%s5232_s7 + $0x2c] sm:$0xf] %v244_v11  ;;  %v248_v13 = vld [vmem:[%s5227_s10 + $0x68] sm:$0xf]  ;;  %v250_v14 = vld [vmem:[%s5227_s10 + $0x70] sm:$0xf] }
  0x2c   : > { %247 = vst [vmem:[%s5232_s7 + $0x30] sm:$0xf] %v246_v12  ;;  %249 = vst [vmem:[%s5232_s7 + $0x34] sm:$0xf] %v248_v13  ;;  %v252_v15 = vld [vmem:[%s5227_s10 + $0x78] sm:$0xf] }
  0x2d   : > { %251 = vst [vmem:[%s5232_s7 + $0x38] sm:$0xf] %v250_v14  ;;  %v254_v16 = vld [vmem:[%s5227_s10 + $0x80] sm:$0xf]  ;;  %v256_v17 = vld [vmem:[%s5227_s10 + $0x88] sm:$0xf] }
  0x2e   : > { %253 = vst [vmem:[%s5232_s7 + $0x3c] sm:$0xf] %v252_v15  ;;  %255 = vst [vmem:[%s5232_s7 + $0x40] sm:$0xf] %v254_v16  ;;  %v258_v18 = vld [vmem:[%s5227_s10 + $0x90] sm:$0xf] }
  0x2f   : > { %257 = vst [vmem:[%s5232_s7 + $0x44] sm:$0xf] %v256_v17  ;;  %v260_v19 = vld [vmem:[%s5227_s10 + $0x98] sm:$0xf]  ;;  %v262_v20 = vld [vmem:[%s5227_s10 + $0xa0] sm:$0xf] }
  0x30   : > { %259 = vst [vmem:[%s5232_s7 + $0x48] sm:$0xf] %v258_v18  ;;  %261 = vst [vmem:[%s5232_s7 + $0x4c] sm:$0xf] %v260_v19  ;;  %v264_v21 = vld [vmem:[%s5227_s10 + $0xa8] sm:$0xf] }
  0x31   : > { %263 = vst [vmem:[%s5232_s7 + $0x50] sm:$0xf] %v262_v20  ;;  %v266_v22 = vld [vmem:[%s5227_s10 + $0xb0] sm:$0xf]  ;;  %v268_v23 = vld [vmem:[%s5227_s10 + $0xb8] sm:$0xf] }
  0x32   : > { %265 = vst [vmem:[%s5232_s7 + $0x54] sm:$0xf] %v264_v21  ;;  %267 = vst [vmem:[%s5232_s7 + $0x58] sm:$0xf] %v266_v22  ;;  %v270_v24 = vld [vmem:[%s5227_s10 + $0xc0] sm:$0xf] }
  0x33   : > { %269 = vst [vmem:[%s5232_s7 + $0x5c] sm:$0xf] %v268_v23  ;;  %v272_v25 = vld [vmem:[%s5227_s10 + $0xc8] sm:$0xf]  ;;  %v274_v26 = vld [vmem:[%s5227_s10 + $0xd0] sm:$0xf] }
  0x34   : > { %271 = vst [vmem:[%s5232_s7 + $0x60] sm:$0xf] %v270_v24  ;;  %273 = vst [vmem:[%s5232_s7 + $0x64] sm:$0xf] %v272_v25  ;;  %v276_v27 = vld [vmem:[%s5227_s10 + $0xd8] sm:$0xf] }
  0x35   : > { %275 = vst [vmem:[%s5232_s7 + $0x68] sm:$0xf] %v274_v26  ;;  %v278_v28 = vld [vmem:[%s5227_s10 + $0xe0] sm:$0xf]  ;;  %v280_v29 = vld [vmem:[%s5227_s10 + $0xe8] sm:$0xf] }
  0x36   : > { %277 = vst [vmem:[%s5232_s7 + $0x6c] sm:$0xf] %v276_v27  ;;  %279 = vst [vmem:[%s5232_s7 + $0x70] sm:$0xf] %v278_v28  ;;  %v282_v30 = vld [vmem:[%s5227_s10 + $0xf0] sm:$0xf] }
  0x37   : > { %281 = vst [vmem:[%s5232_s7 + $0x74] sm:$0xf] %v280_v29  ;;  %v284_v31 = vld [vmem:[%s5227_s10 + $0xf8] sm:$0xf]  ;;  %v286_v32 = vld [vmem:[%s5227_s10 + $0x100] sm:$0xf] }
  0x38   : > { %283 = vst [vmem:[%s5232_s7 + $0x78] sm:$0xf] %v282_v30  ;;  %285 = vst [vmem:[%s5232_s7 + $0x7c] sm:$0xf] %v284_v31  ;;  %v288_v33 = vld [vmem:[%s5227_s10 + $0x108] sm:$0xf] }
  0x39   : > { %287 = vst [vmem:[%s5232_s7 + $0x80] sm:$0xf] %v286_v32  ;;  %v290_v34 = vld [vmem:[%s5227_s10 + $0x110] sm:$0xf]  ;;  %v292_v35 = vld [vmem:[%s5227_s10 + $0x118] sm:$0xf] }
  0x3a   : > { %289 = vst [vmem:[%s5232_s7 + $0x84] sm:$0xf] %v288_v33  ;;  %291 = vst [vmem:[%s5232_s7 + $0x88] sm:$0xf] %v290_v34  ;;  %v294_v36 = vld [vmem:[%s5227_s10 + $0x120] sm:$0xf] }
  0x3b   : > { %293 = vst [vmem:[%s5232_s7 + $0x8c] sm:$0xf] %v292_v35  ;;  %v296_v37 = vld [vmem:[%s5227_s10 + $0x128] sm:$0xf]  ;;  %v298_v38 = vld [vmem:[%s5227_s10 + $0x130] sm:$0xf] }
  0x3c   : > { %295 = vst [vmem:[%s5232_s7 + $0x90] sm:$0xf] %v294_v36  ;;  %297 = vst [vmem:[%s5232_s7 + $0x94] sm:$0xf] %v296_v37  ;;  %v300_v39 = vld [vmem:[%s5227_s10 + $0x138] sm:$0xf] }
  0x3d   : > { %299 = vst [vmem:[%s5232_s7 + $0x98] sm:$0xf] %v298_v38  ;;  %v302_v40 = vld [vmem:[%s5227_s10 + $0x140] sm:$0xf]  ;;  %v304_v41 = vld [vmem:[%s5227_s10 + $0x148] sm:$0xf] }
  0x3e   : > { %301 = vst [vmem:[%s5232_s7 + $0x9c] sm:$0xf] %v300_v39  ;;  %303 = vst [vmem:[%s5232_s7 + $0xa0] sm:$0xf] %v302_v40  ;;  %v306_v42 = vld [vmem:[%s5227_s10 + $0x150] sm:$0xf] }
  0x3f   : > { %305 = vst [vmem:[%s5232_s7 + $0xa4] sm:$0xf] %v304_v41  ;;  %v308_v43 = vld [vmem:[%s5227_s10 + $0x158] sm:$0xf]  ;;  %v310_v44 = vld [vmem:[%s5227_s10 + $0x160] sm:$0xf] }
  0x40   : > { %307 = vst [vmem:[%s5232_s7 + $0xa8] sm:$0xf] %v306_v42  ;;  %309 = vst [vmem:[%s5232_s7 + $0xac] sm:$0xf] %v308_v43  ;;  %v312_v45 = vld [vmem:[%s5227_s10 + $0x168] sm:$0xf] }
  0x41   : > { %311 = vst [vmem:[%s5232_s7 + $0xb0] sm:$0xf] %v310_v44  ;;  %v314_v46 = vld [vmem:[%s5227_s10 + $0x170] sm:$0xf]  ;;  %v316_v47 = vld [vmem:[%s5227_s10 + $0x178] sm:$0xf] }
  0x42   : > { %313 = vst [vmem:[%s5232_s7 + $0xb4] sm:$0xf] %v312_v45  ;;  %315 = vst [vmem:[%s5232_s7 + $0xb8] sm:$0xf] %v314_v46  ;;  %v318_v48 = vld [vmem:[%s5227_s10 + $0x180] sm:$0xf] }
  0x43   : > { %317 = vst [vmem:[%s5232_s7 + $0xbc] sm:$0xf] %v316_v47  ;;  %v320_v49 = vld [vmem:[%s5227_s10 + $0x188] sm:$0xf]  ;;  %v322_v50 = vld [vmem:[%s5227_s10 + $0x190] sm:$0xf] }
  0x44   : > { %319 = vst [vmem:[%s5232_s7 + $0xc0] sm:$0xf] %v318_v48  ;;  %321 = vst [vmem:[%s5232_s7 + $0xc4] sm:$0xf] %v320_v49  ;;  %v324_v51 = vld [vmem:[%s5227_s10 + $0x198] sm:$0xf] }
  0x45   : > { %323 = vst [vmem:[%s5232_s7 + $0xc8] sm:$0xf] %v322_v50  ;;  %v326_v52 = vld [vmem:[%s5227_s10 + $0x1a0] sm:$0xf]  ;;  %v328_v53 = vld [vmem:[%s5227_s10 + $0x1a8] sm:$0xf] }
  0x46   : > { %325 = vst [vmem:[%s5232_s7 + $0xcc] sm:$0xf] %v324_v51  ;;  %327 = vst [vmem:[%s5232_s7 + $0xd0] sm:$0xf] %v326_v52  ;;  %v330_v54 = vld [vmem:[%s5227_s10 + $0x1b0] sm:$0xf] }
  0x47   : > { %329 = vst [vmem:[%s5232_s7 + $0xd4] sm:$0xf] %v328_v53  ;;  %v332_v55 = vld [vmem:[%s5227_s10 + $0x1b8] sm:$0xf]  ;;  %v334_v56 = vld [vmem:[%s5227_s10 + $0x1c0] sm:$0xf] }
  0x48   : > { %331 = vst [vmem:[%s5232_s7 + $0xd8] sm:$0xf] %v330_v54  ;;  %333 = vst [vmem:[%s5232_s7 + $0xdc] sm:$0xf] %v332_v55  ;;  %v336_v57 = vld [vmem:[%s5227_s10 + $0x1c8] sm:$0xf] }
  0x49   : > { %335 = vst [vmem:[%s5232_s7 + $0xe0] sm:$0xf] %v334_v56  ;;  %v338_v58 = vld [vmem:[%s5227_s10 + $0x1d0] sm:$0xf]  ;;  %v340_v59 = vld [vmem:[%s5227_s10 + $0x1d8] sm:$0xf] }
  0x4a   : > { %337 = vst [vmem:[%s5232_s7 + $0xe4] sm:$0xf] %v336_v57  ;;  %339 = vst [vmem:[%s5232_s7 + $0xe8] sm:$0xf] %v338_v58  ;;  %v342_v60 = vld [vmem:[%s5227_s10 + $0x1e0] sm:$0xf] }
  0x4b   : > { %341 = vst [vmem:[%s5232_s7 + $0xec] sm:$0xf] %v340_v59  ;;  %v344_v61 = vld [vmem:[%s5227_s10 + $0x1e8] sm:$0xf]  ;;  %v346_v62 = vld [vmem:[%s5227_s10 + $0x1f0] sm:$0xf] }
  0x4c   : > { %343 = vst [vmem:[%s5232_s7 + $0xf0] sm:$0xf] %v342_v60  ;;  %345 = vst [vmem:[%s5232_s7 + $0xf4] sm:$0xf] %v344_v61  ;;  %v348_v63 = vld [vmem:[%s5227_s10 + $0x1f8] sm:$0xf] }
  0x4d   : > { %347 = vst [vmem:[%s5232_s7 + $0xf8] sm:$0xf] %v346_v62  ;;  %v350_v0 = vld [vmem:[%s5227_s10 + $0x200] sm:$0xf]  ;;  %v352_v1 = vld [vmem:[%s5227_s10 + $0x208] sm:$0xf] }
  0x4e   : > { %349 = vst [vmem:[%s5232_s7 + $0xfc] sm:$0xf] %v348_v63  ;;  %351 = vst [vmem:[%s5232_s7 + $0x100] sm:$0xf] %v350_v0  ;;  %v354_v2 = vld [vmem:[%s5227_s10 + $0x210] sm:$0xf] }
  0x4f   : > { %353 = vst [vmem:[%s5232_s7 + $0x104] sm:$0xf] %v352_v1  ;;  %v356_v3 = vld [vmem:[%s5227_s10 + $0x218] sm:$0xf]  ;;  %v358_v4 = vld [vmem:[%s5227_s10 + $0x220] sm:$0xf] }
  0x50   : > { %355 = vst [vmem:[%s5232_s7 + $0x108] sm:$0xf] %v354_v2  ;;  %357 = vst [vmem:[%s5232_s7 + $0x10c] sm:$0xf] %v356_v3  ;;  %v360_v5 = vld [vmem:[%s5227_s10 + $0x228] sm:$0xf] }
  0x51   : > { %359 = vst [vmem:[%s5232_s7 + $0x110] sm:$0xf] %v358_v4  ;;  %v362_v6 = vld [vmem:[%s5227_s10 + $0x230] sm:$0xf]  ;;  %v364_v7 = vld [vmem:[%s5227_s10 + $0x238] sm:$0xf] }
  0x52   : > { %361 = vst [vmem:[%s5232_s7 + $0x114] sm:$0xf] %v360_v5  ;;  %363 = vst [vmem:[%s5232_s7 + $0x118] sm:$0xf] %v362_v6  ;;  %v366_v8 = vld [vmem:[%s5227_s10 + $0x240] sm:$0xf] }
  0x53   : > { %365 = vst [vmem:[%s5232_s7 + $0x11c] sm:$0xf] %v364_v7  ;;  %v368_v9 = vld [vmem:[%s5227_s10 + $0x248] sm:$0xf]  ;;  %v370_v10 = vld [vmem:[%s5227_s10 + $0x250] sm:$0xf] }
  0x54   : > { %367 = vst [vmem:[%s5232_s7 + $0x120] sm:$0xf] %v366_v8  ;;  %369 = vst [vmem:[%s5232_s7 + $0x124] sm:$0xf] %v368_v9  ;;  %v372_v11 = vld [vmem:[%s5227_s10 + $0x258] sm:$0xf] }
  0x55   : > { %371 = vst [vmem:[%s5232_s7 + $0x128] sm:$0xf] %v370_v10  ;;  %v374_v12 = vld [vmem:[%s5227_s10 + $0x260] sm:$0xf]  ;;  %v376_v13 = vld [vmem:[%s5227_s10 + $0x268] sm:$0xf] }
  0x56   : > { %373 = vst [vmem:[%s5232_s7 + $0x12c] sm:$0xf] %v372_v11  ;;  %375 = vst [vmem:[%s5232_s7 + $0x130] sm:$0xf] %v374_v12  ;;  %v378_v14 = vld [vmem:[%s5227_s10 + $0x270] sm:$0xf] }
  0x57   : > { %377 = vst [vmem:[%s5232_s7 + $0x134] sm:$0xf] %v376_v13  ;;  %v380_v15 = vld [vmem:[%s5227_s10 + $0x278] sm:$0xf]  ;;  %v382_v16 = vld [vmem:[%s5227_s10 + $0x280] sm:$0xf] }
  0x58   : > { %379 = vst [vmem:[%s5232_s7 + $0x138] sm:$0xf] %v378_v14  ;;  %381 = vst [vmem:[%s5232_s7 + $0x13c] sm:$0xf] %v380_v15  ;;  %v384_v17 = vld [vmem:[%s5227_s10 + $0x288] sm:$0xf] }
  0x59   : > { %383 = vst [vmem:[%s5232_s7 + $0x140] sm:$0xf] %v382_v16  ;;  %v386_v18 = vld [vmem:[%s5227_s10 + $0x290] sm:$0xf]  ;;  %v388_v19 = vld [vmem:[%s5227_s10 + $0x298] sm:$0xf] }
  0x5a   : > { %385 = vst [vmem:[%s5232_s7 + $0x144] sm:$0xf] %v384_v17  ;;  %387 = vst [vmem:[%s5232_s7 + $0x148] sm:$0xf] %v386_v18  ;;  %v390_v20 = vld [vmem:[%s5227_s10 + $0x2a0] sm:$0xf] }
  0x5b   : > { %389 = vst [vmem:[%s5232_s7 + $0x14c] sm:$0xf] %v388_v19  ;;  %v392_v21 = vld [vmem:[%s5227_s10 + $0x2a8] sm:$0xf]  ;;  %v394_v22 = vld [vmem:[%s5227_s10 + $0x2b0] sm:$0xf] }
  0x5c   : > { %391 = vst [vmem:[%s5232_s7 + $0x150] sm:$0xf] %v390_v20  ;;  %393 = vst [vmem:[%s5232_s7 + $0x154] sm:$0xf] %v392_v21  ;;  %v396_v23 = vld [vmem:[%s5227_s10 + $0x2b8] sm:$0xf] }
  0x5d   : > { %395 = vst [vmem:[%s5232_s7 + $0x158] sm:$0xf] %v394_v22  ;;  %v398_v24 = vld [vmem:[%s5227_s10 + $0x2c0] sm:$0xf]  ;;  %v400_v25 = vld [vmem:[%s5227_s10 + $0x2c8] sm:$0xf] }
  0x5e   : > { %397 = vst [vmem:[%s5232_s7 + $0x15c] sm:$0xf] %v396_v23  ;;  %399 = vst [vmem:[%s5232_s7 + $0x160] sm:$0xf] %v398_v24  ;;  %v402_v26 = vld [vmem:[%s5227_s10 + $0x2d0] sm:$0xf] }
  0x5f   : > { %401 = vst [vmem:[%s5232_s7 + $0x164] sm:$0xf] %v400_v25  ;;  %v404_v27 = vld [vmem:[%s5227_s10 + $0x2d8] sm:$0xf]  ;;  %v406_v28 = vld [vmem:[%s5227_s10 + $0x2e0] sm:$0xf] }
  0x60   : > { %403 = vst [vmem:[%s5232_s7 + $0x168] sm:$0xf] %v402_v26  ;;  %405 = vst [vmem:[%s5232_s7 + $0x16c] sm:$0xf] %v404_v27  ;;  %v408_v29 = vld [vmem:[%s5227_s10 + $0x2e8] sm:$0xf] }
  0x61   : > { %407 = vst [vmem:[%s5232_s7 + $0x170] sm:$0xf] %v406_v28  ;;  %v410_v30 = vld [vmem:[%s5227_s10 + $0x2f0] sm:$0xf]  ;;  %v412_v31 = vld [vmem:[%s5227_s10 + $0x2f8] sm:$0xf] }
  0x62   : > { %409 = vst [vmem:[%s5232_s7 + $0x174] sm:$0xf] %v408_v29  ;;  %411 = vst [vmem:[%s5232_s7 + $0x178] sm:$0xf] %v410_v30  ;;  %v414_v32 = vld [vmem:[%s5227_s10 + $0x300] sm:$0xf] }
  0x63   : > { %413 = vst [vmem:[%s5232_s7 + $0x17c] sm:$0xf] %v412_v31  ;;  %v416_v33 = vld [vmem:[%s5227_s10 + $0x308] sm:$0xf]  ;;  %v418_v34 = vld [vmem:[%s5227_s10 + $0x310] sm:$0xf] }
  0x64   : > { %415 = vst [vmem:[%s5232_s7 + $0x180] sm:$0xf] %v414_v32  ;;  %417 = vst [vmem:[%s5232_s7 + $0x184] sm:$0xf] %v416_v33  ;;  %v420_v35 = vld [vmem:[%s5227_s10 + $0x318] sm:$0xf] }
  0x65   : > { %419 = vst [vmem:[%s5232_s7 + $0x188] sm:$0xf] %v418_v34  ;;  %v422_v36 = vld [vmem:[%s5227_s10 + $0x320] sm:$0xf]  ;;  %v424_v37 = vld [vmem:[%s5227_s10 + $0x328] sm:$0xf] }
  0x66   : > { %421 = vst [vmem:[%s5232_s7 + $0x18c] sm:$0xf] %v420_v35  ;;  %423 = vst [vmem:[%s5232_s7 + $0x190] sm:$0xf] %v422_v36  ;;  %v426_v38 = vld [vmem:[%s5227_s10 + $0x330] sm:$0xf] }
  0x67   : > { %425 = vst [vmem:[%s5232_s7 + $0x194] sm:$0xf] %v424_v37  ;;  %v428_v39 = vld [vmem:[%s5227_s10 + $0x338] sm:$0xf]  ;;  %v430_v40 = vld [vmem:[%s5227_s10 + $0x340] sm:$0xf] }
  0x68   : > { %427 = vst [vmem:[%s5232_s7 + $0x198] sm:$0xf] %v426_v38  ;;  %429 = vst [vmem:[%s5232_s7 + $0x19c] sm:$0xf] %v428_v39  ;;  %v432_v41 = vld [vmem:[%s5227_s10 + $0x348] sm:$0xf] }
  0x69   : > { %431 = vst [vmem:[%s5232_s7 + $0x1a0] sm:$0xf] %v430_v40  ;;  %v434_v42 = vld [vmem:[%s5227_s10 + $0x350] sm:$0xf]  ;;  %v436_v43 = vld [vmem:[%s5227_s10 + $0x358] sm:$0xf] }
  0x6a   : > { %433 = vst [vmem:[%s5232_s7 + $0x1a4] sm:$0xf] %v432_v41  ;;  %435 = vst [vmem:[%s5232_s7 + $0x1a8] sm:$0xf] %v434_v42  ;;  %v438_v44 = vld [vmem:[%s5227_s10 + $0x360] sm:$0xf] }
  0x6b   : > { %437 = vst [vmem:[%s5232_s7 + $0x1ac] sm:$0xf] %v436_v43  ;;  %v440_v45 = vld [vmem:[%s5227_s10 + $0x368] sm:$0xf]  ;;  %v442_v46 = vld [vmem:[%s5227_s10 + $0x370] sm:$0xf] }
  0x6c   : > { %439 = vst [vmem:[%s5232_s7 + $0x1b0] sm:$0xf] %v438_v44  ;;  %441 = vst [vmem:[%s5232_s7 + $0x1b4] sm:$0xf] %v440_v45  ;;  %v444_v47 = vld [vmem:[%s5227_s10 + $0x378] sm:$0xf] }
  0x6d   : > { %443 = vst [vmem:[%s5232_s7 + $0x1b8] sm:$0xf] %v442_v46  ;;  %v446_v48 = vld [vmem:[%s5227_s10 + $0x380] sm:$0xf]  ;;  %v448_v49 = vld [vmem:[%s5227_s10 + $0x388] sm:$0xf] }
  0x6e   : > { %445 = vst [vmem:[%s5232_s7 + $0x1bc] sm:$0xf] %v444_v47  ;;  %447 = vst [vmem:[%s5232_s7 + $0x1c0] sm:$0xf] %v446_v48  ;;  %v450_v50 = vld [vmem:[%s5227_s10 + $0x390] sm:$0xf] }
  0x6f   : > { %449 = vst [vmem:[%s5232_s7 + $0x1c4] sm:$0xf] %v448_v49  ;;  %v452_v51 = vld [vmem:[%s5227_s10 + $0x398] sm:$0xf]  ;;  %v454_v52 = vld [vmem:[%s5227_s10 + $0x3a0] sm:$0xf] }
  0x70   : > { %451 = vst [vmem:[%s5232_s7 + $0x1c8] sm:$0xf] %v450_v50  ;;  %453 = vst [vmem:[%s5232_s7 + $0x1cc] sm:$0xf] %v452_v51  ;;  %v456_v53 = vld [vmem:[%s5227_s10 + $0x3a8] sm:$0xf] }
  0x71   : > { %455 = vst [vmem:[%s5232_s7 + $0x1d0] sm:$0xf] %v454_v52  ;;  %v458_v54 = vld [vmem:[%s5227_s10 + $0x3b0] sm:$0xf]  ;;  %v460_v55 = vld [vmem:[%s5227_s10 + $0x3b8] sm:$0xf] }
  0x72   : > { %457 = vst [vmem:[%s5232_s7 + $0x1d4] sm:$0xf] %v456_v53  ;;  %459 = vst [vmem:[%s5232_s7 + $0x1d8] sm:$0xf] %v458_v54  ;;  %v462_v56 = vld [vmem:[%s5227_s10 + $0x3c0] sm:$0xf] }
  0x73   : > { %461 = vst [vmem:[%s5232_s7 + $0x1dc] sm:$0xf] %v460_v55  ;;  %v464_v57 = vld [vmem:[%s5227_s10 + $0x3c8] sm:$0xf]  ;;  %v466_v58 = vld [vmem:[%s5227_s10 + $0x3d0] sm:$0xf] }
  0x74   : > { %463 = vst [vmem:[%s5232_s7 + $0x1e0] sm:$0xf] %v462_v56  ;;  %465 = vst [vmem:[%s5232_s7 + $0x1e4] sm:$0xf] %v464_v57  ;;  %v468_v59 = vld [vmem:[%s5227_s10 + $0x3d8] sm:$0xf] }
  0x75   : > { %467 = vst [vmem:[%s5232_s7 + $0x1e8] sm:$0xf] %v466_v58  ;;  %v470_v60 = vld [vmem:[%s5227_s10 + $0x3e0] sm:$0xf]  ;;  %v472_v61 = vld [vmem:[%s5227_s10 + $0x3e8] sm:$0xf] }
  0x76   : > { %469 = vst [vmem:[%s5232_s7 + $0x1ec] sm:$0xf] %v468_v59  ;;  %471 = vst [vmem:[%s5232_s7 + $0x1f0] sm:$0xf] %v470_v60  ;;  %v474_v62 = vld [vmem:[%s5227_s10 + $0x3f0] sm:$0xf] }
  0x77   : > { %473 = vst [vmem:[%s5232_s7 + $0x1f4] sm:$0xf] %v472_v61  ;;  %v476_v63 = vld [vmem:[%s5227_s10 + $0x3f8] sm:$0xf]  ;;  %475 = vst [vmem:[%s5232_s7 + $0x1f8] sm:$0xf] %v474_v62 }
  0x78   : > { %477 = vst [vmem:[%s5232_s7 + $0x1fc] sm:$0xf] %v476_v63 }
  0x79 PF: > { %p4153_p0 = scmp.ge.s32.totalorder %s5091_s27, 1  ;;  %p755_p1 = scmp.lt.s32.totalorder %s5091_s27, 5 }
  0x7b   : > { %p756_p2 = pnand %p4153_p0, %p755_p1 }
  0x7c   : > { %s762_s6 = sand.u32 (!%p756_p2), 1, %s5067_s21   ;;  %s786_s9 = sand.u32 (!%p756_p2), 1, %s5059_s19  }
  0x7d   : > { %759 = sbr.rel (%p756_p2) target bundleno = 1165 (0x48d), region = 77  ;;  %s4154_s17 = sshll.u32 (!%p756_p2), %s762_s6, 9 }
  0x7e   : > { %s4155_s28 = sshll.u32 (!%p756_p2), %s786_s9, 4  ;;  %s5493_s29 = scalar_lea.vmem (!%p756_p2), [#allocation3], %s4154_s17 }
  0x7f   : > { %s5495_s8 = scalar_lea.vmem (!%p756_p2), [#allocation4], %s4155_s28  ;;  %p4156_p3 = scmp.ne.s32.totalorder (!%p756_p2), %s5075_s23, 0 }
  0x84   : > { %794 = sbr.rel (%p4156_p3) target bundleno = 197 (0xc5), region = 85  ;;  %v5093_v0 = vmov (!%p4156_p3), 0.0  }
  0x85   : > { %795 = vst [vmem:[#allocation2] sm:$0xff] (!%p4156_p3), %v5093_v0  ;;  %796 = vst [vmem:[#allocation2 + $0x8] sm:$0xff] (!%p4156_p3), %v5093_v0 }
  0x86   : > { %797 = vst [vmem:[#allocation2 + $0x10] sm:$0xff] (!%p4156_p3), %v5093_v0  ;;  %798 = vst [vmem:[#allocation2 + $0x18] sm:$0xff] (!%p4156_p3), %v5093_v0 }
  0x87   : > { %799 = vst [vmem:[#allocation2 + $0x20] sm:$0xff] (!%p4156_p3), %v5093_v0  ;;  %800 = vst [vmem:[#allocation2 + $0x28] sm:$0xff] (!%p4156_p3), %v5093_v0 }
  0x88   : > { %801 = vst [vmem:[#allocation2 + $0x30] sm:$0xff] (!%p4156_p3), %v5093_v0  ;;  %802 = vst [vmem:[#allocation2 + $0x38] sm:$0xff] (!%p4156_p3), %v5093_v0 }
  0x89   : > { %803 = vst [vmem:[#allocation2 + $0x40] sm:$0xff] (!%p4156_p3), %v5093_v0  ;;  %804 = vst [vmem:[#allocation2 + $0x48] sm:$0xff] (!%p4156_p3), %v5093_v0 }
  0x8a   : > { %805 = vst [vmem:[#allocation2 + $0x50] sm:$0xff] (!%p4156_p3), %v5093_v0  ;;  %806 = vst [vmem:[#allocation2 + $0x58] sm:$0xff] (!%p4156_p3), %v5093_v0 }
  0x8b   : > { %807 = vst [vmem:[#allocation2 + $0x60] sm:$0xff] %v5093_v0  ;;  %808 = vst [vmem:[#allocation2 + $0x68] sm:$0xff] %v5093_v0 }
  0x8c   : > { %809 = vst [vmem:[#allocation2 + $0x70] sm:$0xff] %v5093_v0  ;;  %810 = vst [vmem:[#allocation2 + $0x78] sm:$0xff] %v5093_v0 }
  0x8d   : > { %811 = vst [vmem:[#allocation2 + $0x80] sm:$0xff] %v5093_v0  ;;  %812 = vst [vmem:[#allocation2 + $0x88] sm:$0xff] %v5093_v0 }
  0x8e   : > { %813 = vst [vmem:[#allocation2 + $0x90] sm:$0xff] %v5093_v0  ;;  %814 = vst [vmem:[#allocation2 + $0x98] sm:$0xff] %v5093_v0 }
  0x8f   : > { %815 = vst [vmem:[#allocation2 + $0xa0] sm:$0xff] %v5093_v0  ;;  %816 = vst [vmem:[#allocation2 + $0xa8] sm:$0xff] %v5093_v0 }
  0x90   : > { %817 = vst [vmem:[#allocation2 + $0xb0] sm:$0xff] %v5093_v0  ;;  %818 = vst [vmem:[#allocation2 + $0xb8] sm:$0xff] %v5093_v0 }
  0x91   : > { %819 = vst [vmem:[#allocation2 + $0xc0] sm:$0xff] %v5093_v0  ;;  %820 = vst [vmem:[#allocation2 + $0xc8] sm:$0xff] %v5093_v0 }
  0x92   : > { %821 = vst [vmem:[#allocation2 + $0xd0] sm:$0xff] %v5093_v0  ;;  %822 = vst [vmem:[#allocation2 + $0xd8] sm:$0xff] %v5093_v0 }
  0x93   : > { %823 = vst [vmem:[#allocation2 + $0xe0] sm:$0xff] %v5093_v0  ;;  %824 = vst [vmem:[#allocation2 + $0xe8] sm:$0xff] %v5093_v0 }
  0x94   : > { %825 = vst [vmem:[#allocation2 + $0xf0] sm:$0xff] %v5093_v0  ;;  %826 = vst [vmem:[#allocation2 + $0xf8] sm:$0xff] %v5093_v0 }
  0x95   : > { %827 = vst [vmem:[#allocation2 + $0x100] sm:$0xff] %v5093_v0  ;;  %828 = vst [vmem:[#allocation2 + $0x108] sm:$0xff] %v5093_v0 }
  0x96   : > { %829 = vst [vmem:[#allocation2 + $0x110] sm:$0xff] %v5093_v0  ;;  %830 = vst [vmem:[#allocation2 + $0x118] sm:$0xff] %v5093_v0 }
  0x97   : > { %831 = vst [vmem:[#allocation2 + $0x120] sm:$0xff] %v5093_v0  ;;  %832 = vst [vmem:[#allocation2 + $0x128] sm:$0xff] %v5093_v0 }
  0x98   : > { %833 = vst [vmem:[#allocation2 + $0x130] sm:$0xff] %v5093_v0  ;;  %834 = vst [vmem:[#allocation2 + $0x138] sm:$0xff] %v5093_v0 }
  0x99   : > { %835 = vst [vmem:[#allocation2 + $0x140] sm:$0xff] %v5093_v0  ;;  %836 = vst [vmem:[#allocation2 + $0x148] sm:$0xff] %v5093_v0 }
  0x9a   : > { %837 = vst [vmem:[#allocation2 + $0x150] sm:$0xff] %v5093_v0  ;;  %838 = vst [vmem:[#allocation2 + $0x158] sm:$0xff] %v5093_v0 }
  0x9b   : > { %839 = vst [vmem:[#allocation2 + $0x160] sm:$0xff] %v5093_v0  ;;  %840 = vst [vmem:[#allocation2 + $0x168] sm:$0xff] %v5093_v0 }
  0x9c   : > { %841 = vst [vmem:[#allocation2 + $0x170] sm:$0xff] %v5093_v0  ;;  %842 = vst [vmem:[#allocation2 + $0x178] sm:$0xff] %v5093_v0 }
  0x9d   : > { %843 = vst [vmem:[#allocation2 + $0x180] sm:$0xff] %v5093_v0  ;;  %844 = vst [vmem:[#allocation2 + $0x188] sm:$0xff] %v5093_v0 }
  0x9e   : > { %845 = vst [vmem:[#allocation2 + $0x190] sm:$0xff] %v5093_v0  ;;  %846 = vst [vmem:[#allocation2 + $0x198] sm:$0xff] %v5093_v0 }
  0x9f   : > { %847 = vst [vmem:[#allocation2 + $0x1a0] sm:$0xff] %v5093_v0  ;;  %848 = vst [vmem:[#allocation2 + $0x1a8] sm:$0xff] %v5093_v0 }
  0xa0   : > { %849 = vst [vmem:[#allocation2 + $0x1b0] sm:$0xff] %v5093_v0  ;;  %850 = vst [vmem:[#allocation2 + $0x1b8] sm:$0xff] %v5093_v0 }
  0xa1   : > { %851 = vst [vmem:[#allocation2 + $0x1c0] sm:$0xff] %v5093_v0  ;;  %852 = vst [vmem:[#allocation2 + $0x1c8] sm:$0xff] %v5093_v0 }
  0xa2   : > { %853 = vst [vmem:[#allocation2 + $0x1d0] sm:$0xff] %v5093_v0  ;;  %854 = vst [vmem:[#allocation2 + $0x1d8] sm:$0xff] %v5093_v0 }
  0xa3   : > { %855 = vst [vmem:[#allocation2 + $0x1e0] sm:$0xff] %v5093_v0  ;;  %856 = vst [vmem:[#allocation2 + $0x1e8] sm:$0xff] %v5093_v0 }
  0xa4   : > { %857 = vst [vmem:[#allocation2 + $0x1f0] sm:$0xff] %v5093_v0  ;;  %858 = vst [vmem:[#allocation2 + $0x1f8] sm:$0xff] %v5093_v0 }
  0xa5   : > { %859 = vst [vmem:[#allocation2 + $0x200] sm:$0xff] %v5093_v0  ;;  %860 = vst [vmem:[#allocation2 + $0x208] sm:$0xff] %v5093_v0 }
  0xa6   : > { %861 = vst [vmem:[#allocation2 + $0x210] sm:$0xff] %v5093_v0  ;;  %862 = vst [vmem:[#allocation2 + $0x218] sm:$0xff] %v5093_v0 }
  0xa7   : > { %863 = vst [vmem:[#allocation2 + $0x220] sm:$0xff] %v5093_v0  ;;  %864 = vst [vmem:[#allocation2 + $0x228] sm:$0xff] %v5093_v0 }
  0xa8   : > { %865 = vst [vmem:[#allocation2 + $0x230] sm:$0xff] %v5093_v0  ;;  %866 = vst [vmem:[#allocation2 + $0x238] sm:$0xff] %v5093_v0 }
  0xa9   : > { %867 = vst [vmem:[#allocation2 + $0x240] sm:$0xff] %v5093_v0  ;;  %868 = vst [vmem:[#allocation2 + $0x248] sm:$0xff] %v5093_v0 }
  0xaa   : > { %869 = vst [vmem:[#allocation2 + $0x250] sm:$0xff] %v5093_v0  ;;  %870 = vst [vmem:[#allocation2 + $0x258] sm:$0xff] %v5093_v0 }
  0xab   : > { %871 = vst [vmem:[#allocation2 + $0x260] sm:$0xff] %v5093_v0  ;;  %872 = vst [vmem:[#allocation2 + $0x268] sm:$0xff] %v5093_v0 }
  0xac   : > { %873 = vst [vmem:[#allocation2 + $0x270] sm:$0xff] %v5093_v0  ;;  %874 = vst [vmem:[#allocation2 + $0x278] sm:$0xff] %v5093_v0 }
  0xad   : > { %875 = vst [vmem:[#allocation2 + $0x280] sm:$0xff] %v5093_v0  ;;  %876 = vst [vmem:[#allocation2 + $0x288] sm:$0xff] %v5093_v0 }
  0xae   : > { %877 = vst [vmem:[#allocation2 + $0x290] sm:$0xff] %v5093_v0  ;;  %878 = vst [vmem:[#allocation2 + $0x298] sm:$0xff] %v5093_v0 }
  0xaf   : > { %879 = vst [vmem:[#allocation2 + $0x2a0] sm:$0xff] %v5093_v0  ;;  %880 = vst [vmem:[#allocation2 + $0x2a8] sm:$0xff] %v5093_v0 }
  0xb0   : > { %881 = vst [vmem:[#allocation2 + $0x2b0] sm:$0xff] %v5093_v0  ;;  %882 = vst [vmem:[#allocation2 + $0x2b8] sm:$0xff] %v5093_v0 }
  0xb1   : > { %883 = vst [vmem:[#allocation2 + $0x2c0] sm:$0xff] %v5093_v0  ;;  %884 = vst [vmem:[#allocation2 + $0x2c8] sm:$0xff] %v5093_v0 }
  0xb2   : > { %885 = vst [vmem:[#allocation2 + $0x2d0] sm:$0xff] %v5093_v0  ;;  %886 = vst [vmem:[#allocation2 + $0x2d8] sm:$0xff] %v5093_v0 }
  0xb3   : > { %887 = vst [vmem:[#allocation2 + $0x2e0] sm:$0xff] %v5093_v0  ;;  %888 = vst [vmem:[#allocation2 + $0x2e8] sm:$0xff] %v5093_v0 }
  0xb4   : > { %889 = vst [vmem:[#allocation2 + $0x2f0] sm:$0xff] %v5093_v0  ;;  %890 = vst [vmem:[#allocation2 + $0x2f8] sm:$0xff] %v5093_v0 }
  0xb5   : > { %891 = vst [vmem:[#allocation2 + $0x300] sm:$0xff] %v5093_v0  ;;  %892 = vst [vmem:[#allocation2 + $0x308] sm:$0xff] %v5093_v0 }
  0xb6   : > { %893 = vst [vmem:[#allocation2 + $0x310] sm:$0xff] %v5093_v0  ;;  %894 = vst [vmem:[#allocation2 + $0x318] sm:$0xff] %v5093_v0 }
  0xb7   : > { %895 = vst [vmem:[#allocation2 + $0x320] sm:$0xff] %v5093_v0  ;;  %896 = vst [vmem:[#allocation2 + $0x328] sm:$0xff] %v5093_v0 }
  0xb8   : > { %897 = vst [vmem:[#allocation2 + $0x330] sm:$0xff] %v5093_v0  ;;  %898 = vst [vmem:[#allocation2 + $0x338] sm:$0xff] %v5093_v0 }
  0xb9   : > { %899 = vst [vmem:[#allocation2 + $0x340] sm:$0xff] %v5093_v0  ;;  %900 = vst [vmem:[#allocation2 + $0x348] sm:$0xff] %v5093_v0 }
  0xba   : > { %901 = vst [vmem:[#allocation2 + $0x350] sm:$0xff] %v5093_v0  ;;  %902 = vst [vmem:[#allocation2 + $0x358] sm:$0xff] %v5093_v0 }
  0xbb   : > { %903 = vst [vmem:[#allocation2 + $0x360] sm:$0xff] %v5093_v0  ;;  %904 = vst [vmem:[#allocation2 + $0x368] sm:$0xff] %v5093_v0 }
  0xbc   : > { %905 = vst [vmem:[#allocation2 + $0x370] sm:$0xff] %v5093_v0  ;;  %906 = vst [vmem:[#allocation2 + $0x378] sm:$0xff] %v5093_v0 }
  0xbd   : > { %907 = vst [vmem:[#allocation2 + $0x380] sm:$0xff] %v5093_v0  ;;  %908 = vst [vmem:[#allocation2 + $0x388] sm:$0xff] %v5093_v0 }
  0xbe   : > { %909 = vst [vmem:[#allocation2 + $0x390] sm:$0xff] %v5093_v0  ;;  %910 = vst [vmem:[#allocation2 + $0x398] sm:$0xff] %v5093_v0 }
  0xbf   : > { %911 = vst [vmem:[#allocation2 + $0x3a0] sm:$0xff] %v5093_v0  ;;  %912 = vst [vmem:[#allocation2 + $0x3a8] sm:$0xff] %v5093_v0 }
  0xc0   : > { %913 = vst [vmem:[#allocation2 + $0x3b0] sm:$0xff] %v5093_v0  ;;  %914 = vst [vmem:[#allocation2 + $0x3b8] sm:$0xff] %v5093_v0 }
  0xc1   : > { %915 = vst [vmem:[#allocation2 + $0x3c0] sm:$0xff] %v5093_v0  ;;  %916 = vst [vmem:[#allocation2 + $0x3c8] sm:$0xff] %v5093_v0 }
  0xc2   : > { %917 = vst [vmem:[#allocation2 + $0x3d0] sm:$0xff] %v5093_v0  ;;  %918 = vst [vmem:[#allocation2 + $0x3d8] sm:$0xff] %v5093_v0 }
  0xc3   : > { %919 = vst [vmem:[#allocation2 + $0x3e0] sm:$0xff] %v5093_v0  ;;  %920 = vst [vmem:[#allocation2 + $0x3e8] sm:$0xff] %v5093_v0 }
  0xc4   : > { %921 = vst [vmem:[#allocation2 + $0x3f0] sm:$0xff] %v5093_v0  ;;  %922 = vst [vmem:[#allocation2 + $0x3f8] sm:$0xff] %v5093_v0 }
  0xc5 PF: > { %p4157_p4 = scmp.eq.s32.totalorder %s5075_s23, 1 }
  0xc6   : > { %v927_v1 = vld [vmem:[#allocation2] sm:$0xff] (!%p4157_p4)  ;;  %v928_v3 = vld [vmem:[#allocation2 + $0x8] sm:$0xff] (!%p4157_p4)  ;;  %v4704_v12 = vld [vmem:[%s5493_s29 + $0x10] sm:$0xff] (!%p4157_p4)  }
  0xc7   : > { %926 = sbr.rel (%p4157_p4) target bundleno = 282 (0x11a), region = 89  ;;  %v4192_v2 = vld [vmem:[%s5493_s29] sm:$0xff] (!%p4157_p4)   ;;  %v929_v6 = vld [vmem:[#allocation2 + $0x10] sm:$0xff] (!%p4157_p4)  ;;  %v4703_v7 = vld [vmem:[%s5493_s29 + $0x8] sm:$0xff] (!%p4157_p4)   ;;  %v4201_v16 = vunpack.c.l.bf16 (!%p4157_p4), %v4704_v12  ;;  %v4202_v17 = vunpack.c.h.bf16 (!%p4157_p4), %v4704_v12 }
  0xc8   : > { %v4193_v4 = vunpack.c.l.bf16 (!%p4157_p4), %v4192_v2  ;;  %v4194_v5 = vunpack.c.h.bf16 (!%p4157_p4), %v4192_v2  ;;  %v930_v8 = vld [vmem:[#allocation2 + $0x18] sm:$0xff] (!%p4157_p4)  ;;  %v4197_v9 = vunpack.c.l.bf16 (!%p4157_p4), %v4703_v7  ;;  %v4198_v10 = vunpack.c.h.bf16 (!%p4157_p4), %v4703_v7  ;;  %v931_v11 = vld [vmem:[#allocation2 + $0x20] sm:$0xff] (!%p4157_p4)  ;;  %v932_v13 = vld [vmem:[#allocation2 + $0x28] sm:$0xff] (!%p4157_p4) }
  0xc9   : > { %v933_v18 = vld [vmem:[#allocation2 + $0x30] sm:$0xff] (!%p4157_p4)  ;;  %v4705_v19 = vld [vmem:[%s5493_s29 + $0x18] sm:$0xff] (!%p4157_p4)   ;;  %v4706_v26 = vld [vmem:[%s5493_s29 + $0x20] sm:$0xff] (!%p4157_p4)   ;;  %v1315_v28 = vadd.f32 (!%p4157_p4), %v4201_v16, %v931_v11  ;;  %v1316_v29 = vadd.f32 (!%p4157_p4), %v4202_v17, %v932_v13 }
  0xca   : > { %v1311_v14 = vadd.f32 (!%p4157_p4), %v4193_v4, %v927_v1  ;;  %v1312_v15 = vadd.f32 (!%p4157_p4), %v4194_v5, %v928_v3  ;;  %v934_v20 = vld [vmem:[#allocation2 + $0x38] sm:$0xff] (!%p4157_p4)  ;;  %v1313_v21 = vadd.f32 (!%p4157_p4), %v4197_v9, %v929_v6  ;;  %v1314_v22 = vadd.f32 (!%p4157_p4), %v4198_v10, %v930_v8  ;;  %v935_v25 = vld [vmem:[#allocation2 + $0x40] sm:$0xff] (!%p4157_p4)  ;;  %v936_v27 = vld [vmem:[#allocation2 + $0x48] sm:$0xff] (!%p4157_p4) }
  0xcb   : > { %v4205_v23 = vunpack.c.l.bf16 (!%p4157_p4), %v4705_v19  ;;  %v4206_v24 = vunpack.c.h.bf16 (!%p4157_p4), %v4705_v19  ;;  %v4209_v30 = vunpack.c.l.bf16 (!%p4157_p4), %v4706_v26  ;;  %v4210_v31 = vunpack.c.h.bf16 (!%p4157_p4), %v4706_v26  ;;  %v937_v32 = vld [vmem:[#allocation2 + $0x50] sm:$0xff] (!%p4157_p4)  ;;  %v4707_v33 = vld [vmem:[%s5493_s29 + $0x28] sm:$0xff] (!%p4157_p4)   ;;  %v938_v34 = vld [vmem:[#allocation2 + $0x58] sm:$0xff] (!%p4157_p4)  ;;  %1443 = vst [vmem:[#allocation2 + $0x20] sm:$0xff] (!%p4157_p4), %v1315_v28 }
  0xcc   : > { %1439 = vst [vmem:[#allocation2] sm:$0xff] (!%p4157_p4), %v1311_v14  ;;  %1440 = vst [vmem:[#allocation2 + $0x8] sm:$0xff] (!%p4157_p4), %v1312_v15  ;;  %v4213_v37 = vunpack.c.l.bf16 (!%p4157_p4), %v4707_v33  ;;  %v4214_v38 = vunpack.c.h.bf16 (!%p4157_p4), %v4707_v33  ;;  %v939_v39 = vld [vmem:[#allocation2 + $0x60] sm:$0xff] (!%p4157_p4)  ;;  %v4708_v40 = vld [vmem:[%s5493_s29 + $0x30] sm:$0xff] (!%p4157_p4)  }
  0xcd   : > { %1441 = vst [vmem:[#allocation2 + $0x10] sm:$0xff] (!%p4157_p4), %v1313_v21  ;;  %1442 = vst [vmem:[#allocation2 + $0x18] sm:$0xff] (!%p4157_p4), %v1314_v22  ;;  %v1317_v35 = vadd.f32 (!%p4157_p4), %v4205_v23, %v933_v18  ;;  %v1318_v36 = vadd.f32 (!%p4157_p4), %v4206_v24, %v934_v20  ;;  %v940_v41 = vld [vmem:[#allocation2 + $0x68] sm:$0xff] (!%p4157_p4)  ;;  %v1319_v42 = vadd.f32 (!%p4157_p4), %v4209_v30, %v935_v25  ;;  %v4217_v44 = vunpack.c.l.bf16 (!%p4157_p4), %v4708_v40  ;;  %v941_v46 = vld [vmem:[#allocation2 + $0x70] sm:$0xff] (!%p4157_p4) }
  0xce   : > { %1444 = vst [vmem:[#allocation2 + $0x28] sm:$0xff] %v1316_v29  ;;  %v1320_v43 = vadd.f32 %v4210_v31, %v936_v27  ;;  %v4218_v45 = vunpack.c.h.bf16 %v4708_v40  ;;  %v4709_v47 = vld [vmem:[%s5493_s29 + $0x38] sm:$0xff]   ;;  %v1321_v49 = vadd.f32 %v4213_v37, %v937_v32  ;;  %v1322_v50 = vadd.f32 %v4214_v38, %v938_v34  ;;  %v943_v53 = vld [vmem:[#allocation2 + $0x80] sm:$0xff]  ;;  %v944_v55 = vld [vmem:[#allocation2 + $0x88] sm:$0xff] }
  0xcf   : > { %v942_v48 = vld [vmem:[#allocation2 + $0x78] sm:$0xff]  ;;  %1445 = vst [vmem:[#allocation2 + $0x30] sm:$0xff] %v1317_v35  ;;  %1446 = vst [vmem:[#allocation2 + $0x38] sm:$0xff] %v1318_v36  ;;  %v4221_v51 = vunpack.c.l.bf16 %v4709_v47  ;;  %v4222_v52 = vunpack.c.h.bf16 %v4709_v47  ;;  %v4710_v54 = vld [vmem:[%s5493_s29 + $0x40] sm:$0xff]   ;;  %v1323_v56 = vadd.f32 %v4217_v44, %v939_v39 }
  0xd0   : > { %1447 = vst [vmem:[#allocation2 + $0x40] sm:$0xff] %v1319_v42  ;;  %1448 = vst [vmem:[#allocation2 + $0x48] sm:$0xff] %v1320_v43  ;;  %v1324_v57 = vadd.f32 %v4218_v45, %v940_v41  ;;  %v4225_v58 = vunpack.c.l.bf16 %v4710_v54  ;;  %v4226_v59 = vunpack.c.h.bf16 %v4710_v54  ;;  %v945_v60 = vld [vmem:[#allocation2 + $0x90] sm:$0xff]  ;;  %v4711_v61 = vld [vmem:[%s5493_s29 + $0x48] sm:$0xff]  }
  0xd1   : > { %v946_v62 = vld [vmem:[#allocation2 + $0x98] sm:$0xff]  ;;  %1449 = vst [vmem:[#allocation2 + $0x50] sm:$0xff] %v1321_v49  ;;  %1450 = vst [vmem:[#allocation2 + $0x58] sm:$0xff] %v1322_v50  ;;  %v1325_v63 = vadd.f32 %v4221_v51, %v941_v46  ;;  %v1326_v0 = vadd.f32 %v4222_v52, %v942_v48  ;;  %v4229_v1 = vunpack.c.l.bf16 %v4711_v61  ;;  %v4230_v2 = vunpack.c.h.bf16 %v4711_v61  ;;  %v947_v3 = vld [vmem:[#allocation2 + $0xa0] sm:$0xff] }
  0xd2   : > { %v4712_v4 = vld [vmem:[%s5493_s29 + $0x50] sm:$0xff]   ;;  %v948_v5 = vld [vmem:[#allocation2 + $0xa8] sm:$0xff]  ;;  %1451 = vst [vmem:[#allocation2 + $0x60] sm:$0xff] %v1323_v56  ;;  %1452 = vst [vmem:[#allocation2 + $0x68] sm:$0xff] %v1324_v57  ;;  %v1327_v6 = vadd.f32 %v4225_v58, %v943_v53  ;;  %v1328_v7 = vadd.f32 %v4226_v59, %v944_v55 }
  0xd3   : > { %v4233_v8 = vunpack.c.l.bf16 %v4712_v4  ;;  %v4234_v9 = vunpack.c.h.bf16 %v4712_v4  ;;  %v949_v10 = vld [vmem:[#allocation2 + $0xb0] sm:$0xff]  ;;  %v4713_v11 = vld [vmem:[%s5493_s29 + $0x58] sm:$0xff]   ;;  %1453 = vst [vmem:[#allocation2 + $0x70] sm:$0xff] %v1325_v63  ;;  %1454 = vst [vmem:[#allocation2 + $0x78] sm:$0xff] %v1326_v0  ;;  %v1329_v13 = vadd.f32 %v4229_v1, %v945_v60  ;;  %v1330_v14 = vadd.f32 %v4230_v2, %v946_v62 }
  0xd4   : > { %v950_v12 = vld [vmem:[#allocation2 + $0xb8] sm:$0xff]  ;;  %v4237_v15 = vunpack.c.l.bf16 %v4713_v11  ;;  %v4238_v16 = vunpack.c.h.bf16 %v4713_v11  ;;  %v951_v17 = vld [vmem:[#allocation2 + $0xc0] sm:$0xff]  ;;  %v952_v19 = vld [vmem:[#allocation2 + $0xc8] sm:$0xff]  ;;  %1455 = vst [vmem:[#allocation2 + $0x80] sm:$0xff] %v1327_v6 }
  0xd5   : > { %v4714_v18 = vld [vmem:[%s5493_s29 + $0x60] sm:$0xff]   ;;  %1456 = vst [vmem:[#allocation2 + $0x88] sm:$0xff] %v1328_v7  ;;  %v1331_v20 = vadd.f32 %v4233_v8, %v947_v3  ;;  %v1332_v21 = vadd.f32 %v4234_v9, %v948_v5  ;;  %v953_v24 = vld [vmem:[#allocation2 + $0xd0] sm:$0xff]  ;;  %v4715_v25 = vld [vmem:[%s5493_s29 + $0x68] sm:$0xff]  }
  0xd6   : > { %v4241_v22 = vunpack.c.l.bf16 %v4714_v18  ;;  %v4242_v23 = vunpack.c.h.bf16 %v4714_v18  ;;  %v954_v26 = vld [vmem:[#allocation2 + $0xd8] sm:$0xff]  ;;  %1457 = vst [vmem:[#allocation2 + $0x90] sm:$0xff] %v1329_v13  ;;  %1458 = vst [vmem:[#allocation2 + $0x98] sm:$0xff] %v1330_v14  ;;  %v1333_v27 = vadd.f32 %v4237_v15, %v949_v10  ;;  %v1334_v28 = vadd.f32 %v4238_v16, %v950_v12  ;;  %v955_v31 = vld [vmem:[#allocation2 + $0xe0] sm:$0xff] }
  0xd7   : > { %v4245_v29 = vunpack.c.l.bf16 %v4715_v25  ;;  %v4246_v30 = vunpack.c.h.bf16 %v4715_v25  ;;  %v4716_v32 = vld [vmem:[%s5493_s29 + $0x70] sm:$0xff]   ;;  %v956_v33 = vld [vmem:[#allocation2 + $0xe8] sm:$0xff]  ;;  %1459 = vst [vmem:[#allocation2 + $0xa0] sm:$0xff] %v1331_v20  ;;  %1460 = vst [vmem:[#allocation2 + $0xa8] sm:$0xff] %v1332_v21 }
  0xd8   : > { %v1335_v34 = vadd.f32 %v4241_v22, %v951_v17  ;;  %v1336_v35 = vadd.f32 %v4242_v23, %v952_v19  ;;  %v4249_v36 = vunpack.c.l.bf16 %v4716_v32  ;;  %v4250_v37 = vunpack.c.h.bf16 %v4716_v32  ;;  %v957_v38 = vld [vmem:[#allocation2 + $0xf0] sm:$0xff]  ;;  %v4717_v39 = vld [vmem:[%s5493_s29 + $0x78] sm:$0xff]   ;;  %1461 = vst [vmem:[#allocation2 + $0xb0] sm:$0xff] %v1333_v27  ;;  %1462 = vst [vmem:[#allocation2 + $0xb8] sm:$0xff] %v1334_v28 }
  0xd9   : > { %v958_v40 = vld [vmem:[#allocation2 + $0xf8] sm:$0xff]  ;;  %v1337_v41 = vadd.f32 %v4245_v29, %v953_v24  ;;  %v1338_v42 = vadd.f32 %v4246_v30, %v954_v26  ;;  %v4253_v43 = vunpack.c.l.bf16 %v4717_v39  ;;  %v4254_v44 = vunpack.c.h.bf16 %v4717_v39  ;;  %v959_v45 = vld [vmem:[#allocation2 + $0x100] sm:$0xff]  ;;  %v960_v47 = vld [vmem:[#allocation2 + $0x108] sm:$0xff] }
  0xda   : > { %v4718_v46 = vld [vmem:[%s5493_s29 + $0x80] sm:$0xff]   ;;  %1463 = vst [vmem:[#allocation2 + $0xc0] sm:$0xff] %v1335_v34  ;;  %1464 = vst [vmem:[#allocation2 + $0xc8] sm:$0xff] %v1336_v35  ;;  %v1339_v48 = vadd.f32 %v4249_v36, %v955_v31  ;;  %v1340_v49 = vadd.f32 %v4250_v37, %v956_v33  ;;  %v961_v52 = vld [vmem:[#allocation2 + $0x110] sm:$0xff] }
  0xdb   : > { %v4257_v50 = vunpack.c.l.bf16 %v4718_v46  ;;  %v4258_v51 = vunpack.c.h.bf16 %v4718_v46  ;;  %v4719_v53 = vld [vmem:[%s5493_s29 + $0x88] sm:$0xff]   ;;  %v962_v54 = vld [vmem:[#allocation2 + $0x118] sm:$0xff]  ;;  %1465 = vst [vmem:[#allocation2 + $0xd0] sm:$0xff] %v1337_v41  ;;  %1466 = vst [vmem:[#allocation2 + $0xd8] sm:$0xff] %v1338_v42  ;;  %v1341_v55 = vadd.f32 %v4253_v43, %v957_v38  ;;  %v1342_v56 = vadd.f32 %v4254_v44, %v958_v40 }
  0xdc   : > { %v4261_v57 = vunpack.c.l.bf16 %v4719_v53  ;;  %v4262_v58 = vunpack.c.h.bf16 %v4719_v53  ;;  %v963_v59 = vld [vmem:[#allocation2 + $0x120] sm:$0xff]  ;;  %v4720_v60 = vld [vmem:[%s5493_s29 + $0x90] sm:$0xff]   ;;  %v964_v61 = vld [vmem:[#allocation2 + $0x128] sm:$0xff]  ;;  %1467 = vst [vmem:[#allocation2 + $0xe0] sm:$0xff] %v1339_v48 }
  0xdd   : > { %1468 = vst [vmem:[#allocation2 + $0xe8] sm:$0xff] %v1340_v49  ;;  %v1343_v62 = vadd.f32 %v4257_v50, %v959_v45  ;;  %v1344_v63 = vadd.f32 %v4258_v51, %v960_v47  ;;  %v4265_v0 = vunpack.c.l.bf16 %v4720_v60  ;;  %v4266_v1 = vunpack.c.h.bf16 %v4720_v60  ;;  %v965_v2 = vld [vmem:[#allocation2 + $0x130] sm:$0xff]  ;;  %v4721_v3 = vld [vmem:[%s5493_s29 + $0x98] sm:$0xff]   ;;  %1469 = vst [vmem:[#allocation2 + $0xf0] sm:$0xff] %v1341_v55 }
  0xde   : > { %v966_v4 = vld [vmem:[#allocation2 + $0x138] sm:$0xff]  ;;  %1470 = vst [vmem:[#allocation2 + $0xf8] sm:$0xff] %v1342_v56  ;;  %v1345_v5 = vadd.f32 %v4261_v57, %v961_v52  ;;  %v1346_v6 = vadd.f32 %v4262_v58, %v962_v54  ;;  %v4269_v7 = vunpack.c.l.bf16 %v4721_v3  ;;  %v4270_v8 = vunpack.c.h.bf16 %v4721_v3  ;;  %v967_v9 = vld [vmem:[#allocation2 + $0x140] sm:$0xff]  ;;  %v968_v11 = vld [vmem:[#allocation2 + $0x148] sm:$0xff] }
  0xdf   : > { %v4722_v10 = vld [vmem:[%s5493_s29 + $0xa0] sm:$0xff]   ;;  %1471 = vst [vmem:[#allocation2 + $0x100] sm:$0xff] %v1343_v62  ;;  %1472 = vst [vmem:[#allocation2 + $0x108] sm:$0xff] %v1344_v63  ;;  %v1347_v12 = vadd.f32 %v4265_v0, %v963_v59  ;;  %v1348_v13 = vadd.f32 %v4266_v1, %v964_v61  ;;  %v969_v16 = vld [vmem:[#allocation2 + $0x150] sm:$0xff] }
  0xe0   : > { %v4273_v14 = vunpack.c.l.bf16 %v4722_v10  ;;  %v4274_v15 = vunpack.c.h.bf16 %v4722_v10  ;;  %v4723_v17 = vld [vmem:[%s5493_s29 + $0xa8] sm:$0xff]   ;;  %v970_v18 = vld [vmem:[#allocation2 + $0x158] sm:$0xff]  ;;  %1473 = vst [vmem:[#allocation2 + $0x110] sm:$0xff] %v1345_v5  ;;  %1474 = vst [vmem:[#allocation2 + $0x118] sm:$0xff] %v1346_v6  ;;  %v1349_v19 = vadd.f32 %v4269_v7, %v965_v2  ;;  %v1350_v20 = vadd.f32 %v4270_v8, %v966_v4 }
  0xe1   : > { %v4277_v21 = vunpack.c.l.bf16 %v4723_v17  ;;  %v4278_v22 = vunpack.c.h.bf16 %v4723_v17  ;;  %v971_v23 = vld [vmem:[#allocation2 + $0x160] sm:$0xff]  ;;  %v4724_v24 = vld [vmem:[%s5493_s29 + $0xb0] sm:$0xff]   ;;  %v972_v25 = vld [vmem:[#allocation2 + $0x168] sm:$0xff]  ;;  %1475 = vst [vmem:[#allocation2 + $0x120] sm:$0xff] %v1347_v12 }
  0xe2   : > { %1476 = vst [vmem:[#allocation2 + $0x128] sm:$0xff] %v1348_v13  ;;  %v1351_v26 = vadd.f32 %v4273_v14, %v967_v9  ;;  %v1352_v27 = vadd.f32 %v4274_v15, %v968_v11  ;;  %v4281_v28 = vunpack.c.l.bf16 %v4724_v24  ;;  %v4282_v29 = vunpack.c.h.bf16 %v4724_v24  ;;  %v973_v30 = vld [vmem:[#allocation2 + $0x170] sm:$0xff]  ;;  %v4725_v31 = vld [vmem:[%s5493_s29 + $0xb8] sm:$0xff]   ;;  %1477 = vst [vmem:[#allocation2 + $0x130] sm:$0xff] %v1349_v19 }
  0xe3   : > { %v974_v32 = vld [vmem:[#allocation2 + $0x178] sm:$0xff]  ;;  %1478 = vst [vmem:[#allocation2 + $0x138] sm:$0xff] %v1350_v20  ;;  %v1353_v33 = vadd.f32 %v4277_v21, %v969_v16  ;;  %v1354_v34 = vadd.f32 %v4278_v22, %v970_v18  ;;  %v4285_v35 = vunpack.c.l.bf16 %v4725_v31  ;;  %v4286_v36 = vunpack.c.h.bf16 %v4725_v31  ;;  %v975_v37 = vld [vmem:[#allocation2 + $0x180] sm:$0xff]  ;;  %v976_v39 = vld [vmem:[#allocation2 + $0x188] sm:$0xff] }
  0xe4   : > { %v4726_v38 = vld [vmem:[%s5493_s29 + $0xc0] sm:$0xff]   ;;  %1479 = vst [vmem:[#allocation2 + $0x140] sm:$0xff] %v1351_v26  ;;  %1480 = vst [vmem:[#allocation2 + $0x148] sm:$0xff] %v1352_v27  ;;  %v1355_v40 = vadd.f32 %v4281_v28, %v971_v23  ;;  %v1356_v41 = vadd.f32 %v4282_v29, %v972_v25  ;;  %v977_v44 = vld [vmem:[#allocation2 + $0x190] sm:$0xff] }
  0xe5   : > { %v4289_v42 = vunpack.c.l.bf16 %v4726_v38  ;;  %v4290_v43 = vunpack.c.h.bf16 %v4726_v38  ;;  %v4727_v45 = vld [vmem:[%s5493_s29 + $0xc8] sm:$0xff]   ;;  %v978_v46 = vld [vmem:[#allocation2 + $0x198] sm:$0xff]  ;;  %1481 = vst [vmem:[#allocation2 + $0x150] sm:$0xff] %v1353_v33  ;;  %1482 = vst [vmem:[#allocation2 + $0x158] sm:$0xff] %v1354_v34  ;;  %v1357_v47 = vadd.f32 %v4285_v35, %v973_v30  ;;  %v1358_v48 = vadd.f32 %v4286_v36, %v974_v32 }
  0xe6   : > { %v4293_v49 = vunpack.c.l.bf16 %v4727_v45  ;;  %v4294_v50 = vunpack.c.h.bf16 %v4727_v45  ;;  %v979_v51 = vld [vmem:[#allocation2 + $0x1a0] sm:$0xff]  ;;  %v4728_v52 = vld [vmem:[%s5493_s29 + $0xd0] sm:$0xff]   ;;  %v980_v53 = vld [vmem:[#allocation2 + $0x1a8] sm:$0xff]  ;;  %1483 = vst [vmem:[#allocation2 + $0x160] sm:$0xff] %v1355_v40 }
  0xe7   : > { %1484 = vst [vmem:[#allocation2 + $0x168] sm:$0xff] %v1356_v41  ;;  %v1359_v54 = vadd.f32 %v4289_v42, %v975_v37  ;;  %v1360_v55 = vadd.f32 %v4290_v43, %v976_v39  ;;  %v4297_v56 = vunpack.c.l.bf16 %v4728_v52  ;;  %v4298_v57 = vunpack.c.h.bf16 %v4728_v52  ;;  %v981_v58 = vld [vmem:[#allocation2 + $0x1b0] sm:$0xff]  ;;  %v4729_v59 = vld [vmem:[%s5493_s29 + $0xd8] sm:$0xff]   ;;  %1485 = vst [vmem:[#allocation2 + $0x170] sm:$0xff] %v1357_v47 }
  0xe8   : > { %v982_v60 = vld [vmem:[#allocation2 + $0x1b8] sm:$0xff]  ;;  %1486 = vst [vmem:[#allocation2 + $0x178] sm:$0xff] %v1358_v48  ;;  %v1361_v61 = vadd.f32 %v4293_v49, %v977_v44  ;;  %v1362_v62 = vadd.f32 %v4294_v50, %v978_v46  ;;  %v4301_v63 = vunpack.c.l.bf16 %v4729_v59  ;;  %v4302_v0 = vunpack.c.h.bf16 %v4729_v59  ;;  %v983_v1 = vld [vmem:[#allocation2 + $0x1c0] sm:$0xff]  ;;  %v984_v3 = vld [vmem:[#allocation2 + $0x1c8] sm:$0xff] }
  0xe9   : > { %v4730_v2 = vld [vmem:[%s5493_s29 + $0xe0] sm:$0xff]   ;;  %1487 = vst [vmem:[#allocation2 + $0x180] sm:$0xff] %v1359_v54  ;;  %1488 = vst [vmem:[#allocation2 + $0x188] sm:$0xff] %v1360_v55  ;;  %v1363_v4 = vadd.f32 %v4297_v56, %v979_v51  ;;  %v1364_v5 = vadd.f32 %v4298_v57, %v980_v53  ;;  %v985_v8 = vld [vmem:[#allocation2 + $0x1d0] sm:$0xff] }
  0xea   : > { %v4305_v6 = vunpack.c.l.bf16 %v4730_v2  ;;  %v4306_v7 = vunpack.c.h.bf16 %v4730_v2  ;;  %v4731_v9 = vld [vmem:[%s5493_s29 + $0xe8] sm:$0xff]   ;;  %v986_v10 = vld [vmem:[#allocation2 + $0x1d8] sm:$0xff]  ;;  %1489 = vst [vmem:[#allocation2 + $0x190] sm:$0xff] %v1361_v61  ;;  %1490 = vst [vmem:[#allocation2 + $0x198] sm:$0xff] %v1362_v62  ;;  %v1365_v11 = vadd.f32 %v4301_v63, %v981_v58  ;;  %v1366_v12 = vadd.f32 %v4302_v0, %v982_v60 }
  0xeb   : > { %v4309_v13 = vunpack.c.l.bf16 %v4731_v9  ;;  %v4310_v14 = vunpack.c.h.bf16 %v4731_v9  ;;  %v987_v15 = vld [vmem:[#allocation2 + $0x1e0] sm:$0xff]  ;;  %v4732_v16 = vld [vmem:[%s5493_s29 + $0xf0] sm:$0xff]   ;;  %v988_v17 = vld [vmem:[#allocation2 + $0x1e8] sm:$0xff]  ;;  %1491 = vst [vmem:[#allocation2 + $0x1a0] sm:$0xff] %v1363_v4 }
  0xec   : > { %1492 = vst [vmem:[#allocation2 + $0x1a8] sm:$0xff] %v1364_v5  ;;  %v1367_v18 = vadd.f32 %v4305_v6, %v983_v1  ;;  %v1368_v19 = vadd.f32 %v4306_v7, %v984_v3  ;;  %v4313_v20 = vunpack.c.l.bf16 %v4732_v16  ;;  %v4314_v21 = vunpack.c.h.bf16 %v4732_v16  ;;  %v989_v22 = vld [vmem:[#allocation2 + $0x1f0] sm:$0xff]  ;;  %v4733_v23 = vld [vmem:[%s5493_s29 + $0xf8] sm:$0xff]   ;;  %1493 = vst [vmem:[#allocation2 + $0x1b0] sm:$0xff] %v1365_v11 }
  0xed   : > { %v990_v24 = vld [vmem:[#allocation2 + $0x1f8] sm:$0xff]  ;;  %1494 = vst [vmem:[#allocation2 + $0x1b8] sm:$0xff] %v1366_v12  ;;  %v1369_v25 = vadd.f32 %v4309_v13, %v985_v8  ;;  %v1370_v26 = vadd.f32 %v4310_v14, %v986_v10  ;;  %v4317_v27 = vunpack.c.l.bf16 %v4733_v23  ;;  %v4318_v28 = vunpack.c.h.bf16 %v4733_v23  ;;  %v991_v29 = vld [vmem:[#allocation2 + $0x200] sm:$0xff]  ;;  %v992_v31 = vld [vmem:[#allocation2 + $0x208] sm:$0xff] }
  0xee   : > { %v4734_v30 = vld [vmem:[%s5493_s29 + $0x100] sm:$0xff]   ;;  %1495 = vst [vmem:[#allocation2 + $0x1c0] sm:$0xff] %v1367_v18  ;;  %1496 = vst [vmem:[#allocation2 + $0x1c8] sm:$0xff] %v1368_v19  ;;  %v1371_v32 = vadd.f32 %v4313_v20, %v987_v15  ;;  %v1372_v33 = vadd.f32 %v4314_v21, %v988_v17  ;;  %v993_v36 = vld [vmem:[#allocation2 + $0x210] sm:$0xff] }
  0xef   : > { %v4321_v34 = vunpack.c.l.bf16 %v4734_v30  ;;  %v4322_v35 = vunpack.c.h.bf16 %v4734_v30  ;;  %v4735_v37 = vld [vmem:[%s5493_s29 + $0x108] sm:$0xff]   ;;  %v994_v38 = vld [vmem:[#allocation2 + $0x218] sm:$0xff]  ;;  %1497 = vst [vmem:[#allocation2 + $0x1d0] sm:$0xff] %v1369_v25  ;;  %1498 = vst [vmem:[#allocation2 + $0x1d8] sm:$0xff] %v1370_v26  ;;  %v1373_v39 = vadd.f32 %v4317_v27, %v989_v22  ;;  %v1374_v40 = vadd.f32 %v4318_v28, %v990_v24 }
  0xf0   : > { %v4325_v41 = vunpack.c.l.bf16 %v4735_v37  ;;  %v4326_v42 = vunpack.c.h.bf16 %v4735_v37  ;;  %v995_v43 = vld [vmem:[#allocation2 + $0x220] sm:$0xff]  ;;  %v4736_v44 = vld [vmem:[%s5493_s29 + $0x110] sm:$0xff]   ;;  %v996_v45 = vld [vmem:[#allocation2 + $0x228] sm:$0xff]  ;;  %1499 = vst [vmem:[#allocation2 + $0x1e0] sm:$0xff] %v1371_v32 }
  0xf1   : > { %1500 = vst [vmem:[#allocation2 + $0x1e8] sm:$0xff] %v1372_v33  ;;  %v1375_v46 = vadd.f32 %v4321_v34, %v991_v29  ;;  %v1376_v47 = vadd.f32 %v4322_v35, %v992_v31  ;;  %v4329_v48 = vunpack.c.l.bf16 %v4736_v44  ;;  %v4330_v49 = vunpack.c.h.bf16 %v4736_v44  ;;  %v997_v50 = vld [vmem:[#allocation2 + $0x230] sm:$0xff]  ;;  %v4737_v51 = vld [vmem:[%s5493_s29 + $0x118] sm:$0xff]   ;;  %1501 = vst [vmem:[#allocation2 + $0x1f0] sm:$0xff] %v1373_v39 }
  0xf2   : > { %v998_v52 = vld [vmem:[#allocation2 + $0x238] sm:$0xff]  ;;  %1502 = vst [vmem:[#allocation2 + $0x1f8] sm:$0xff] %v1374_v40  ;;  %v1377_v53 = vadd.f32 %v4325_v41, %v993_v36  ;;  %v1378_v54 = vadd.f32 %v4326_v42, %v994_v38  ;;  %v4333_v55 = vunpack.c.l.bf16 %v4737_v51  ;;  %v4334_v56 = vunpack.c.h.bf16 %v4737_v51  ;;  %v999_v57 = vld [vmem:[#allocation2 + $0x240] sm:$0xff]  ;;  %v1000_v59 = vld [vmem:[#allocation2 + $0x248] sm:$0xff] }
  0xf3   : > { %v4738_v58 = vld [vmem:[%s5493_s29 + $0x120] sm:$0xff]   ;;  %1503 = vst [vmem:[#allocation2 + $0x200] sm:$0xff] %v1375_v46  ;;  %1504 = vst [vmem:[#allocation2 + $0x208] sm:$0xff] %v1376_v47  ;;  %v1379_v60 = vadd.f32 %v4329_v48, %v995_v43  ;;  %v1380_v61 = vadd.f32 %v4330_v49, %v996_v45  ;;  %v1001_v0 = vld [vmem:[#allocation2 + $0x250] sm:$0xff] }
  0xf4   : > { %v4337_v62 = vunpack.c.l.bf16 %v4738_v58  ;;  %v4338_v63 = vunpack.c.h.bf16 %v4738_v58  ;;  %v4739_v1 = vld [vmem:[%s5493_s29 + $0x128] sm:$0xff]   ;;  %v1002_v2 = vld [vmem:[#allocation2 + $0x258] sm:$0xff]  ;;  %1505 = vst [vmem:[#allocation2 + $0x210] sm:$0xff] %v1377_v53  ;;  %1506 = vst [vmem:[#allocation2 + $0x218] sm:$0xff] %v1378_v54  ;;  %v1381_v3 = vadd.f32 %v4333_v55, %v997_v50  ;;  %v1382_v4 = vadd.f32 %v4334_v56, %v998_v52 }
  0xf5   : > { %v4341_v5 = vunpack.c.l.bf16 %v4739_v1  ;;  %v4342_v6 = vunpack.c.h.bf16 %v4739_v1  ;;  %v1003_v7 = vld [vmem:[#allocation2 + $0x260] sm:$0xff]  ;;  %v4740_v8 = vld [vmem:[%s5493_s29 + $0x130] sm:$0xff]   ;;  %v1004_v9 = vld [vmem:[#allocation2 + $0x268] sm:$0xff]  ;;  %1507 = vst [vmem:[#allocation2 + $0x220] sm:$0xff] %v1379_v60 }
  0xf6   : > { %1508 = vst [vmem:[#allocation2 + $0x228] sm:$0xff] %v1380_v61  ;;  %v1383_v10 = vadd.f32 %v4337_v62, %v999_v57  ;;  %v1384_v11 = vadd.f32 %v4338_v63, %v1000_v59  ;;  %v4345_v12 = vunpack.c.l.bf16 %v4740_v8  ;;  %v4346_v13 = vunpack.c.h.bf16 %v4740_v8  ;;  %v1005_v14 = vld [vmem:[#allocation2 + $0x270] sm:$0xff]  ;;  %v4741_v15 = vld [vmem:[%s5493_s29 + $0x138] sm:$0xff]   ;;  %1509 = vst [vmem:[#allocation2 + $0x230] sm:$0xff] %v1381_v3 }
  0xf7   : > { %v1006_v16 = vld [vmem:[#allocation2 + $0x278] sm:$0xff]  ;;  %1510 = vst [vmem:[#allocation2 + $0x238] sm:$0xff] %v1382_v4  ;;  %v1385_v17 = vadd.f32 %v4341_v5, %v1001_v0  ;;  %v1386_v18 = vadd.f32 %v4342_v6, %v1002_v2  ;;  %v4349_v19 = vunpack.c.l.bf16 %v4741_v15  ;;  %v4350_v20 = vunpack.c.h.bf16 %v4741_v15  ;;  %v1007_v21 = vld [vmem:[#allocation2 + $0x280] sm:$0xff]  ;;  %v1008_v23 = vld [vmem:[#allocation2 + $0x288] sm:$0xff] }
  0xf8   : > { %v4742_v22 = vld [vmem:[%s5493_s29 + $0x140] sm:$0xff]   ;;  %1511 = vst [vmem:[#allocation2 + $0x240] sm:$0xff] %v1383_v10  ;;  %1512 = vst [vmem:[#allocation2 + $0x248] sm:$0xff] %v1384_v11  ;;  %v1387_v24 = vadd.f32 %v4345_v12, %v1003_v7  ;;  %v1388_v25 = vadd.f32 %v4346_v13, %v1004_v9  ;;  %v1009_v28 = vld [vmem:[#allocation2 + $0x290] sm:$0xff] }
  0xf9   : > { %v4353_v26 = vunpack.c.l.bf16 %v4742_v22  ;;  %v4354_v27 = vunpack.c.h.bf16 %v4742_v22  ;;  %v4743_v29 = vld [vmem:[%s5493_s29 + $0x148] sm:$0xff]   ;;  %v1010_v30 = vld [vmem:[#allocation2 + $0x298] sm:$0xff]  ;;  %1513 = vst [vmem:[#allocation2 + $0x250] sm:$0xff] %v1385_v17  ;;  %1514 = vst [vmem:[#allocation2 + $0x258] sm:$0xff] %v1386_v18  ;;  %v1389_v31 = vadd.f32 %v4349_v19, %v1005_v14  ;;  %v1390_v32 = vadd.f32 %v4350_v20, %v1006_v16 }
  0xfa   : > { %v4357_v33 = vunpack.c.l.bf16 %v4743_v29  ;;  %v4358_v34 = vunpack.c.h.bf16 %v4743_v29  ;;  %v1011_v35 = vld [vmem:[#allocation2 + $0x2a0] sm:$0xff]  ;;  %v4744_v36 = vld [vmem:[%s5493_s29 + $0x150] sm:$0xff]   ;;  %v1012_v37 = vld [vmem:[#allocation2 + $0x2a8] sm:$0xff]  ;;  %1515 = vst [vmem:[#allocation2 + $0x260] sm:$0xff] %v1387_v24 }
  0xfb   : > { %1516 = vst [vmem:[#allocation2 + $0x268] sm:$0xff] %v1388_v25  ;;  %v1391_v38 = vadd.f32 %v4353_v26, %v1007_v21  ;;  %v1392_v39 = vadd.f32 %v4354_v27, %v1008_v23  ;;  %v4361_v40 = vunpack.c.l.bf16 %v4744_v36  ;;  %v4362_v41 = vunpack.c.h.bf16 %v4744_v36  ;;  %v1013_v42 = vld [vmem:[#allocation2 + $0x2b0] sm:$0xff]  ;;  %v4745_v43 = vld [vmem:[%s5493_s29 + $0x158] sm:$0xff]   ;;  %1517 = vst [vmem:[#allocation2 + $0x270] sm:$0xff] %v1389_v31 }
  0xfc   : > { %v1014_v44 = vld [vmem:[#allocation2 + $0x2b8] sm:$0xff]  ;;  %1518 = vst [vmem:[#allocation2 + $0x278] sm:$0xff] %v1390_v32  ;;  %v1393_v45 = vadd.f32 %v4357_v33, %v1009_v28  ;;  %v1394_v46 = vadd.f32 %v4358_v34, %v1010_v30  ;;  %v4365_v47 = vunpack.c.l.bf16 %v4745_v43  ;;  %v4366_v48 = vunpack.c.h.bf16 %v4745_v43  ;;  %v1015_v49 = vld [vmem:[#allocation2 + $0x2c0] sm:$0xff]  ;;  %v1016_v51 = vld [vmem:[#allocation2 + $0x2c8] sm:$0xff] }
  0xfd   : > { %v4746_v50 = vld [vmem:[%s5493_s29 + $0x160] sm:$0xff]   ;;  %1519 = vst [vmem:[#allocation2 + $0x280] sm:$0xff] %v1391_v38  ;;  %1520 = vst [vmem:[#allocation2 + $0x288] sm:$0xff] %v1392_v39  ;;  %v1395_v52 = vadd.f32 %v4361_v40, %v1011_v35  ;;  %v1396_v53 = vadd.f32 %v4362_v41, %v1012_v37  ;;  %v1017_v56 = vld [vmem:[#allocation2 + $0x2d0] sm:$0xff] }
  0xfe   : > { %v4369_v54 = vunpack.c.l.bf16 %v4746_v50  ;;  %v4370_v55 = vunpack.c.h.bf16 %v4746_v50  ;;  %v4747_v57 = vld [vmem:[%s5493_s29 + $0x168] sm:$0xff]   ;;  %v1018_v58 = vld [vmem:[#allocation2 + $0x2d8] sm:$0xff]  ;;  %1521 = vst [vmem:[#allocation2 + $0x290] sm:$0xff] %v1393_v45  ;;  %1522 = vst [vmem:[#allocation2 + $0x298] sm:$0xff] %v1394_v46  ;;  %v1397_v59 = vadd.f32 %v4365_v47, %v1013_v42  ;;  %v1398_v60 = vadd.f32 %v4366_v48, %v1014_v44 }
  0xff   : > { %v4373_v61 = vunpack.c.l.bf16 %v4747_v57  ;;  %v4374_v62 = vunpack.c.h.bf16 %v4747_v57  ;;  %v1019_v63 = vld [vmem:[#allocation2 + $0x2e0] sm:$0xff]  ;;  %v4748_v0 = vld [vmem:[%s5493_s29 + $0x170] sm:$0xff]   ;;  %v1020_v1 = vld [vmem:[#allocation2 + $0x2e8] sm:$0xff]  ;;  %1523 = vst [vmem:[#allocation2 + $0x2a0] sm:$0xff] %v1395_v52 }
 0x100   : > { %1524 = vst [vmem:[#allocation2 + $0x2a8] sm:$0xff] %v1396_v53  ;;  %v1399_v2 = vadd.f32 %v4369_v54, %v1015_v49  ;;  %v1400_v3 = vadd.f32 %v4370_v55, %v1016_v51  ;;  %v4377_v4 = vunpack.c.l.bf16 %v4748_v0  ;;  %v4378_v5 = vunpack.c.h.bf16 %v4748_v0  ;;  %v1021_v6 = vld [vmem:[#allocation2 + $0x2f0] sm:$0xff]  ;;  %v4749_v7 = vld [vmem:[%s5493_s29 + $0x178] sm:$0xff]   ;;  %1525 = vst [vmem:[#allocation2 + $0x2b0] sm:$0xff] %v1397_v59 }
 0x101   : > { %v1022_v8 = vld [vmem:[#allocation2 + $0x2f8] sm:$0xff]  ;;  %1526 = vst [vmem:[#allocation2 + $0x2b8] sm:$0xff] %v1398_v60  ;;  %v1401_v9 = vadd.f32 %v4373_v61, %v1017_v56  ;;  %v1402_v10 = vadd.f32 %v4374_v62, %v1018_v58  ;;  %v4381_v11 = vunpack.c.l.bf16 %v4749_v7  ;;  %v4382_v12 = vunpack.c.h.bf16 %v4749_v7  ;;  %v1023_v13 = vld [vmem:[#allocation2 + $0x300] sm:$0xff]  ;;  %v1024_v15 = vld [vmem:[#allocation2 + $0x308] sm:$0xff] }
 0x102   : > { %v4750_v14 = vld [vmem:[%s5493_s29 + $0x180] sm:$0xff]   ;;  %1527 = vst [vmem:[#allocation2 + $0x2c0] sm:$0xff] %v1399_v2  ;;  %1528 = vst [vmem:[#allocation2 + $0x2c8] sm:$0xff] %v1400_v3  ;;  %v1403_v16 = vadd.f32 %v4377_v4, %v1019_v63  ;;  %v1404_v17 = vadd.f32 %v4378_v5, %v1020_v1  ;;  %v1025_v20 = vld [vmem:[#allocation2 + $0x310] sm:$0xff] }
 0x103   : > { %v4385_v18 = vunpack.c.l.bf16 %v4750_v14  ;;  %v4386_v19 = vunpack.c.h.bf16 %v4750_v14  ;;  %v4751_v21 = vld [vmem:[%s5493_s29 + $0x188] sm:$0xff]   ;;  %v1026_v22 = vld [vmem:[#allocation2 + $0x318] sm:$0xff]  ;;  %1529 = vst [vmem:[#allocation2 + $0x2d0] sm:$0xff] %v1401_v9  ;;  %1530 = vst [vmem:[#allocation2 + $0x2d8] sm:$0xff] %v1402_v10  ;;  %v1405_v23 = vadd.f32 %v4381_v11, %v1021_v6  ;;  %v1406_v24 = vadd.f32 %v4382_v12, %v1022_v8 }
 0x104   : > { %v4389_v25 = vunpack.c.l.bf16 %v4751_v21  ;;  %v4390_v26 = vunpack.c.h.bf16 %v4751_v21  ;;  %v1027_v27 = vld [vmem:[#allocation2 + $0x320] sm:$0xff]  ;;  %v4752_v28 = vld [vmem:[%s5493_s29 + $0x190] sm:$0xff]   ;;  %v1028_v29 = vld [vmem:[#allocation2 + $0x328] sm:$0xff]  ;;  %1531 = vst [vmem:[#allocation2 + $0x2e0] sm:$0xff] %v1403_v16 }
 0x105   : > { %1532 = vst [vmem:[#allocation2 + $0x2e8] sm:$0xff] %v1404_v17  ;;  %v1407_v30 = vadd.f32 %v4385_v18, %v1023_v13  ;;  %v1408_v31 = vadd.f32 %v4386_v19, %v1024_v15  ;;  %v4393_v32 = vunpack.c.l.bf16 %v4752_v28  ;;  %v4394_v33 = vunpack.c.h.bf16 %v4752_v28  ;;  %v1029_v34 = vld [vmem:[#allocation2 + $0x330] sm:$0xff]  ;;  %v4753_v35 = vld [vmem:[%s5493_s29 + $0x198] sm:$0xff]   ;;  %1533 = vst [vmem:[#allocation2 + $0x2f0] sm:$0xff] %v1405_v23 }
 0x106   : > { %v1030_v36 = vld [vmem:[#allocation2 + $0x338] sm:$0xff]  ;;  %1534 = vst [vmem:[#allocation2 + $0x2f8] sm:$0xff] %v1406_v24  ;;  %v1409_v37 = vadd.f32 %v4389_v25, %v1025_v20  ;;  %v1410_v38 = vadd.f32 %v4390_v26, %v1026_v22  ;;  %v4397_v39 = vunpack.c.l.bf16 %v4753_v35  ;;  %v4398_v40 = vunpack.c.h.bf16 %v4753_v35  ;;  %v1031_v41 = vld [vmem:[#allocation2 + $0x340] sm:$0xff]  ;;  %v1032_v43 = vld [vmem:[#allocation2 + $0x348] sm:$0xff] }
 0x107   : > { %v4754_v42 = vld [vmem:[%s5493_s29 + $0x1a0] sm:$0xff]   ;;  %1535 = vst [vmem:[#allocation2 + $0x300] sm:$0xff] %v1407_v30  ;;  %1536 = vst [vmem:[#allocation2 + $0x308] sm:$0xff] %v1408_v31  ;;  %v1411_v44 = vadd.f32 %v4393_v32, %v1027_v27  ;;  %v1412_v45 = vadd.f32 %v4394_v33, %v1028_v29  ;;  %v1033_v48 = vld [vmem:[#allocation2 + $0x350] sm:$0xff] }
 0x108   : > { %v4401_v46 = vunpack.c.l.bf16 %v4754_v42  ;;  %v4402_v47 = vunpack.c.h.bf16 %v4754_v42  ;;  %v4755_v49 = vld [vmem:[%s5493_s29 + $0x1a8] sm:$0xff]   ;;  %v1034_v50 = vld [vmem:[#allocation2 + $0x358] sm:$0xff]  ;;  %1537 = vst [vmem:[#allocation2 + $0x310] sm:$0xff] %v1409_v37  ;;  %1538 = vst [vmem:[#allocation2 + $0x318] sm:$0xff] %v1410_v38  ;;  %v1413_v51 = vadd.f32 %v4397_v39, %v1029_v34  ;;  %v1414_v52 = vadd.f32 %v4398_v40, %v1030_v36 }
 0x109   : > { %v4405_v53 = vunpack.c.l.bf16 %v4755_v49  ;;  %v4406_v54 = vunpack.c.h.bf16 %v4755_v49  ;;  %v1035_v55 = vld [vmem:[#allocation2 + $0x360] sm:$0xff]  ;;  %v4756_v56 = vld [vmem:[%s5493_s29 + $0x1b0] sm:$0xff]   ;;  %v1036_v57 = vld [vmem:[#allocation2 + $0x368] sm:$0xff]  ;;  %1539 = vst [vmem:[#allocation2 + $0x320] sm:$0xff] %v1411_v44 }
 0x10a   : > { %1540 = vst [vmem:[#allocation2 + $0x328] sm:$0xff] %v1412_v45  ;;  %v1415_v58 = vadd.f32 %v4401_v46, %v1031_v41  ;;  %v1416_v59 = vadd.f32 %v4402_v47, %v1032_v43  ;;  %v4409_v60 = vunpack.c.l.bf16 %v4756_v56  ;;  %v4410_v61 = vunpack.c.h.bf16 %v4756_v56  ;;  %v1037_v62 = vld [vmem:[#allocation2 + $0x370] sm:$0xff]  ;;  %v4757_v63 = vld [vmem:[%s5493_s29 + $0x1b8] sm:$0xff]   ;;  %1541 = vst [vmem:[#allocation2 + $0x330] sm:$0xff] %v1413_v51 }
 0x10b   : > { %v1038_v0 = vld [vmem:[#allocation2 + $0x378] sm:$0xff]  ;;  %1542 = vst [vmem:[#allocation2 + $0x338] sm:$0xff] %v1414_v52  ;;  %v1417_v1 = vadd.f32 %v4405_v53, %v1033_v48  ;;  %v1418_v2 = vadd.f32 %v4406_v54, %v1034_v50  ;;  %v4413_v3 = vunpack.c.l.bf16 %v4757_v63  ;;  %v4414_v4 = vunpack.c.h.bf16 %v4757_v63  ;;  %v1039_v5 = vld [vmem:[#allocation2 + $0x380] sm:$0xff]  ;;  %v1040_v7 = vld [vmem:[#allocation2 + $0x388] sm:$0xff] }
 0x10c   : > { %v4758_v6 = vld [vmem:[%s5493_s29 + $0x1c0] sm:$0xff]   ;;  %1543 = vst [vmem:[#allocation2 + $0x340] sm:$0xff] %v1415_v58  ;;  %1544 = vst [vmem:[#allocation2 + $0x348] sm:$0xff] %v1416_v59  ;;  %v1419_v8 = vadd.f32 %v4409_v60, %v1035_v55  ;;  %v1420_v9 = vadd.f32 %v4410_v61, %v1036_v57  ;;  %v1041_v12 = vld [vmem:[#allocation2 + $0x390] sm:$0xff] }
 0x10d   : > { %v4417_v10 = vunpack.c.l.bf16 %v4758_v6  ;;  %v4418_v11 = vunpack.c.h.bf16 %v4758_v6  ;;  %v4759_v13 = vld [vmem:[%s5493_s29 + $0x1c8] sm:$0xff]   ;;  %v1042_v14 = vld [vmem:[#allocation2 + $0x398] sm:$0xff]  ;;  %1545 = vst [vmem:[#allocation2 + $0x350] sm:$0xff] %v1417_v1  ;;  %1546 = vst [vmem:[#allocation2 + $0x358] sm:$0xff] %v1418_v2  ;;  %v1421_v15 = vadd.f32 %v4413_v3, %v1037_v62  ;;  %v1422_v16 = vadd.f32 %v4414_v4, %v1038_v0 }
 0x10e   : > { %v4421_v17 = vunpack.c.l.bf16 %v4759_v13  ;;  %v4422_v18 = vunpack.c.h.bf16 %v4759_v13  ;;  %v1043_v19 = vld [vmem:[#allocation2 + $0x3a0] sm:$0xff]  ;;  %v4760_v20 = vld [vmem:[%s5493_s29 + $0x1d0] sm:$0xff]   ;;  %v1044_v21 = vld [vmem:[#allocation2 + $0x3a8] sm:$0xff]  ;;  %1547 = vst [vmem:[#allocation2 + $0x360] sm:$0xff] %v1419_v8 }
 0x10f   : > { %1548 = vst [vmem:[#allocation2 + $0x368] sm:$0xff] %v1420_v9  ;;  %v1423_v22 = vadd.f32 %v4417_v10, %v1039_v5  ;;  %v1424_v23 = vadd.f32 %v4418_v11, %v1040_v7  ;;  %v4425_v24 = vunpack.c.l.bf16 %v4760_v20  ;;  %v4426_v25 = vunpack.c.h.bf16 %v4760_v20  ;;  %v1045_v26 = vld [vmem:[#allocation2 + $0x3b0] sm:$0xff]  ;;  %v4761_v27 = vld [vmem:[%s5493_s29 + $0x1d8] sm:$0xff]   ;;  %1549 = vst [vmem:[#allocation2 + $0x370] sm:$0xff] %v1421_v15 }
 0x110   : > { %v1046_v28 = vld [vmem:[#allocation2 + $0x3b8] sm:$0xff]  ;;  %1550 = vst [vmem:[#allocation2 + $0x378] sm:$0xff] %v1422_v16  ;;  %v1425_v29 = vadd.f32 %v4421_v17, %v1041_v12  ;;  %v1426_v30 = vadd.f32 %v4422_v18, %v1042_v14  ;;  %v4429_v31 = vunpack.c.l.bf16 %v4761_v27  ;;  %v4430_v32 = vunpack.c.h.bf16 %v4761_v27  ;;  %v1047_v33 = vld [vmem:[#allocation2 + $0x3c0] sm:$0xff]  ;;  %v1048_v35 = vld [vmem:[#allocation2 + $0x3c8] sm:$0xff] }
 0x111   : > { %v4762_v34 = vld [vmem:[%s5493_s29 + $0x1e0] sm:$0xff]   ;;  %1551 = vst [vmem:[#allocation2 + $0x380] sm:$0xff] %v1423_v22  ;;  %1552 = vst [vmem:[#allocation2 + $0x388] sm:$0xff] %v1424_v23  ;;  %v1427_v36 = vadd.f32 %v4425_v24, %v1043_v19  ;;  %v1428_v37 = vadd.f32 %v4426_v25, %v1044_v21  ;;  %v1049_v40 = vld [vmem:[#allocation2 + $0x3d0] sm:$0xff] }
 0x112   : > { %v4433_v38 = vunpack.c.l.bf16 %v4762_v34  ;;  %v4434_v39 = vunpack.c.h.bf16 %v4762_v34  ;;  %v4763_v41 = vld [vmem:[%s5493_s29 + $0x1e8] sm:$0xff]   ;;  %v1050_v42 = vld [vmem:[#allocation2 + $0x3d8] sm:$0xff]  ;;  %1553 = vst [vmem:[#allocation2 + $0x390] sm:$0xff] %v1425_v29  ;;  %1554 = vst [vmem:[#allocation2 + $0x398] sm:$0xff] %v1426_v30  ;;  %v1429_v43 = vadd.f32 %v4429_v31, %v1045_v26  ;;  %v1430_v44 = vadd.f32 %v4430_v32, %v1046_v28 }
 0x113   : > { %v4437_v45 = vunpack.c.l.bf16 %v4763_v41  ;;  %v4438_v46 = vunpack.c.h.bf16 %v4763_v41  ;;  %v1051_v47 = vld [vmem:[#allocation2 + $0x3e0] sm:$0xff]  ;;  %v4764_v48 = vld [vmem:[%s5493_s29 + $0x1f0] sm:$0xff]   ;;  %v1052_v49 = vld [vmem:[#allocation2 + $0x3e8] sm:$0xff]  ;;  %1555 = vst [vmem:[#allocation2 + $0x3a0] sm:$0xff] %v1427_v36 }
 0x114   : > { %1556 = vst [vmem:[#allocation2 + $0x3a8] sm:$0xff] %v1428_v37  ;;  %v1431_v50 = vadd.f32 %v4433_v38, %v1047_v33  ;;  %v1432_v51 = vadd.f32 %v4434_v39, %v1048_v35  ;;  %v4441_v52 = vunpack.c.l.bf16 %v4764_v48  ;;  %v4442_v53 = vunpack.c.h.bf16 %v4764_v48  ;;  %v1053_v54 = vld [vmem:[#allocation2 + $0x3f0] sm:$0xff]  ;;  %v4765_v55 = vld [vmem:[%s5493_s29 + $0x1f8] sm:$0xff]   ;;  %1557 = vst [vmem:[#allocation2 + $0x3b0] sm:$0xff] %v1429_v43 }
 0x115   : > { %v1054_v56 = vld [vmem:[#allocation2 + $0x3f8] sm:$0xff]  ;;  %1558 = vst [vmem:[#allocation2 + $0x3b8] sm:$0xff] %v1430_v44  ;;  %v1433_v57 = vadd.f32 %v4437_v45, %v1049_v40  ;;  %v1434_v58 = vadd.f32 %v4438_v46, %v1050_v42  ;;  %v4445_v59 = vunpack.c.l.bf16 %v4765_v55  ;;  %v4446_v60 = vunpack.c.h.bf16 %v4765_v55 }
 0x116   : > { %1559 = vst [vmem:[#allocation2 + $0x3c0] sm:$0xff] %v1431_v50  ;;  %1560 = vst [vmem:[#allocation2 + $0x3c8] sm:$0xff] %v1432_v51  ;;  %v1435_v61 = vadd.f32 %v4441_v52, %v1051_v47  ;;  %v1436_v62 = vadd.f32 %v4442_v53, %v1052_v49 }
 0x117   : > { %1561 = vst [vmem:[#allocation2 + $0x3d0] sm:$0xff] %v1433_v57  ;;  %1562 = vst [vmem:[#allocation2 + $0x3d8] sm:$0xff] %v1434_v58  ;;  %v1437_v63 = vadd.f32 %v4445_v59, %v1053_v54  ;;  %v1438_v0 = vadd.f32 %v4446_v60, %v1054_v56 }
 0x118   : > { %1563 = vst [vmem:[#allocation2 + $0x3e0] sm:$0xff] %v1435_v61  ;;  %1564 = vst [vmem:[#allocation2 + $0x3e8] sm:$0xff] %v1436_v62 }
 0x119   : > { %1565 = vst [vmem:[#allocation2 + $0x3f0] sm:$0xff] %v1437_v63  ;;  %1566 = vst [vmem:[#allocation2 + $0x3f8] sm:$0xff] %v1438_v0 }
 0x11a PF: > { %p4158_p5 = scmp.ne.s32.totalorder %s5075_s23, 1 }
 0x11c   : > { %1570 = sbr.rel (%p4158_p5) target bundleno = 1141 (0x475), region = 93 }
 0x123   : > { %v4773_v1 = vld [vmem:[%s5493_s29 + $0x40] sm:$0xff]   ;;  %v7101_v2 = vlaneseq  ;;  %v4766_v11 = vld [vmem:[%s5493_s29 + $0x8] sm:$0xff]   ;;  %v1574_v17 = vld [vmem:[#allocation2 + $0x18] sm:$0xff]  ;;  %vm3142_vm1 = vcmask 130112   ;;  %vm3149_vm2 = vcmask 195712   ;;  %vm3156_vm3 = vcmask 261312  }
 0x124   : > { %v4481_v3 = vunpack.c.l.bf16 %v4773_v1  ;;  %v4448_v4 = vld [vmem:[%s5493_s29] sm:$0xff]   ;;  %v4482_v5 = vunpack.c.h.bf16 %v4773_v1  ;;  %v1588_v12 = vld [vmem:[#allocation2 + $0x88] sm:$0xff]  ;;  %v4454_v14 = vunpack.c.h.bf16 %v4766_v11  ;;  %v4453_v15 = vunpack.c.l.bf16 %v4766_v11  ;;  %v1573_v18 = vld [vmem:[#allocation2 + $0x10] sm:$0xff] }
 0x125   : > { %v1587_v6 = vld [vmem:[#allocation2 + $0x80] sm:$0xff]  ;;  %v5695_v7 = vand.u32 127, %v7101_v2  ;;  %v4449_v9 = vunpack.c.l.bf16 %v4448_v4  ;;  %v4450_v10 = vunpack.c.h.bf16 %v4448_v4  ;;  %v1572_v13 = vld [vmem:[#allocation2 + $0x8] sm:$0xff]  ;;  %v1590_v25 = vld [vmem:[#allocation2 + $0x98] sm:$0xff]  ;;  %vm3163_vm4 = vcmask 326912  }
 0x126   : > { %v1571_v8 = vld [vmem:[#allocation2] sm:$0xff]  ;;  %v4774_v16 = vld [vmem:[%s5493_s29 + $0x48] sm:$0xff]   ;;  %v1589_v31 = vld [vmem:[#allocation2 + $0x90] sm:$0xff]  ;;  %vm3170_vm5 = vcmask 392512   ;;  %vm3177_vm6 = vcmask 458112   ;;  %vm3184_vm7 = vcmask 523712  }
 0x127   : > { %vm1957_vm0 = vcmp.lt.s32.totalorder %v5695_v7, 97  ;;  %v4486_v19 = vunpack.c.h.bf16 %v4774_v16  ;;  %v4485_v20 = vunpack.c.l.bf16 %v4774_v16  ;;  %v4781_v26 = vld [vmem:[%s5493_s29 + $0x80] sm:$0xff]   ;;  %v4782_v32 = vld [vmem:[%s5493_s29 + $0x88] sm:$0xff]   ;;  %v4767_v43 = vld [vmem:[%s5493_s29 + $0x10] sm:$0xff]   ;;  %vm3191_vm8 = vcmask 589312  }
 0x128   : > { %v1974_v21 = vsel %vm1957_vm0, %v4481_v3, 0.0  ;;  %v1958_v22 = vsel %vm1957_vm0, %v4449_v9, 0.0  ;;  %v1975_v23 = vsel %vm1957_vm0, %v4482_v5, 0.0  ;;  %v1959_v24 = vsel %vm1957_vm0, %v4450_v10, 0.0  ;;  %v4789_v37 = vld [vmem:[%s5493_s29 + $0xc0] sm:$0xff]   ;;  %v1604_v41 = vld [vmem:[#allocation2 + $0x108] sm:$0xff] }
 0x129   : > { %v2102_v27 = vadd.f32 %v1974_v21, %v1587_v6  ;;  %v2086_v28 = vadd.f32 %v1958_v22, %v1571_v8  ;;  %v2103_v29 = vadd.f32 %v1975_v23, %v1588_v12  ;;  %v2087_v30 = vadd.f32 %v1959_v24, %v1572_v13  ;;  %v1603_v45 = vld [vmem:[#allocation2 + $0x100] sm:$0xff]  ;;  %v1606_v47 = vld [vmem:[#allocation2 + $0x118] sm:$0xff]  ;;  %v1605_v49 = vld [vmem:[#allocation2 + $0x110] sm:$0xff] }
 0x12a   : > { %v1961_v33 = vsel %vm1957_vm0, %v4454_v14, 0.0  ;;  %v1960_v34 = vsel %vm1957_vm0, %v4453_v15, 0.0  ;;  %v1977_v35 = vsel %vm1957_vm0, %v4486_v19, 0.0  ;;  %v1976_v36 = vsel %vm1957_vm0, %v4485_v20, 0.0  ;;  %v1620_v52 = vld [vmem:[#allocation2 + $0x188] sm:$0xff]  ;;  %v1619_v60 = vld [vmem:[#allocation2 + $0x180] sm:$0xff] }
 0x12b   : > { %2230 = vst [vmem:[#allocation2 + $0x80] sm:$0xff] %v2102_v27  ;;  %2502 = vadd.xlane.f32.xlu1 %v2102_v27  ;;  %2214 = vst [vmem:[#allocation2] sm:$0xff] %v2086_v28  ;;  %2470 = vadd.xlane.f32.xlu0 %v2086_v28  ;;  %v2089_v38 = vadd.f32 %v1961_v33, %v1574_v17  ;;  %v2088_v39 = vadd.f32 %v1960_v34, %v1573_v18  ;;  %v4514_v42 = vunpack.c.h.bf16 %v4781_v26  ;;  %v1576_v61 = vld [vmem:[#allocation2 + $0x28] sm:$0xff]  ;;  %v4775_v62 = vld [vmem:[%s5493_s29 + $0x50] sm:$0xff]   ;;  %vm3198_vm9 = vcmask 654912  }
 0x12c   : > { %2231 = vst [vmem:[#allocation2 + $0x88] sm:$0xff] %v2103_v29  ;;  %2215 = vst [vmem:[#allocation2 + $0x8] sm:$0xff] %v2087_v30  ;;  %v5719_v40 = vadd.f32 %v1977_v35, %v1590_v25  ;;  %v5722_v44 = vadd.f32 %v1976_v36, %v1589_v31  ;;  %v4513_v46 = vunpack.c.l.bf16 %v4781_v26  ;;  %v4518_v48 = vunpack.c.h.bf16 %v4782_v32  ;;  %v4790_v4 = vld [vmem:[%s5493_s29 + $0xc8] sm:$0xff]   ;;  %v4797_v5 = vld [vmem:[%s5493_s29 + $0x100] sm:$0xff]  }
 0x12d   : > { %v4517_v50 = vunpack.c.l.bf16 %v4782_v32  ;;  %2217 = vst [vmem:[#allocation2 + $0x18] sm:$0xff] %v2089_v38  ;;  %2216 = vst [vmem:[#allocation2 + $0x10] sm:$0xff] %v2088_v39  ;;  %v1991_v51 = vsel %vm1957_vm0, %v4514_v42, 0.0  ;;  %v4546_v53 = vunpack.c.h.bf16 %v4789_v37  ;;  %v4545_v54 = vunpack.c.l.bf16 %v4789_v37  ;;  %v1575_v10 = vld [vmem:[#allocation2 + $0x20] sm:$0xff]  ;;  %v1592_v14 = vld [vmem:[#allocation2 + $0xa8] sm:$0xff] }
 0x12e   : > { %2233 = vst [vmem:[#allocation2 + $0x98] sm:$0xff] %v5719_v40  ;;  %v4458_v55 = vunpack.c.h.bf16 %v4767_v43  ;;  %2232 = vst [vmem:[#allocation2 + $0x90] sm:$0xff] %v5722_v44  ;;  %v5728_v56 = vadd.f32 %v1991_v51, %v1604_v41  ;;  %v1990_v57 = vsel %vm1957_vm0, %v4513_v46, 0.0  ;;  %v1993_v58 = vsel %vm1957_vm0, %v4518_v48, 0.0  ;;  %v1591_v16 = vld [vmem:[#allocation2 + $0xa0] sm:$0xff]  ;;  %v1622_v19 = vld [vmem:[#allocation2 + $0x198] sm:$0xff] }
 0x12f   : > { %v1992_v59 = vsel %vm1957_vm0, %v4517_v50, 0.0  ;;  %2504 = vadd.xlane.f32.xlu1 %v2103_v29  ;;  %2472 = vadd.xlane.f32.xlu0 %v2087_v30  ;;  %v5737_v63 = vadd.f32 %v1990_v57, %v1603_v45  ;;  %v5739_v0 = vadd.f32 %v1993_v58, %v1606_v47  ;;  %v2007_v3 = vsel %vm1957_vm0, %v4546_v53, 0.0  ;;  %v1621_v21 = vld [vmem:[#allocation2 + $0x190] sm:$0xff]  ;;  %v1636_v27 = vld [vmem:[#allocation2 + $0x208] sm:$0xff]  ;;  %v1635_v28 = vld [vmem:[#allocation2 + $0x200] sm:$0xff] }
 0x130   : > { %v5741_v1 = vadd.f32 %v1992_v59, %v1605_v49  ;;  %2247 = vst [vmem:[#allocation2 + $0x108] sm:$0xff] %v5728_v56  ;;  %v5748_v6 = vadd.f32 %v2007_v3, %v1620_v52  ;;  %v2006_v8 = vsel %vm1957_vm0, %v4545_v54, 0.0  ;;  %v1963_v9 = vsel %vm1957_vm0, %v4458_v55, 0.0  ;;  %v4783_v30 = vld [vmem:[%s5493_s29 + $0x90] sm:$0xff]   ;;  %v4798_v35 = vld [vmem:[%s5493_s29 + $0x108] sm:$0xff]   ;;  %v4805_v36 = vld [vmem:[%s5493_s29 + $0x140] sm:$0xff]  }
 0x131   : > { %v4457_v11 = vunpack.c.l.bf16 %v4767_v43  ;;  %2246 = vst [vmem:[#allocation2 + $0x100] sm:$0xff] %v5737_v63  ;;  %2249 = vst [vmem:[#allocation2 + $0x118] sm:$0xff] %v5739_v0  ;;  %v5757_v12 = vadd.f32 %v2006_v8, %v1619_v60  ;;  %v5759_v13 = vadd.f32 %v1963_v9, %v1576_v61  ;;  %v4490_v15 = vunpack.c.h.bf16 %v4775_v62  ;;  %v4768_v42 = vld [vmem:[%s5493_s29 + $0x18] sm:$0xff]   ;;  %v1608_v46 = vld [vmem:[#allocation2 + $0x128] sm:$0xff] }
 0x132   : > { %2248 = vst [vmem:[#allocation2 + $0x110] sm:$0xff] %v5741_v1  ;;  %v4489_v17 = vunpack.c.l.bf16 %v4775_v62  ;;  %2263 = vst [vmem:[#allocation2 + $0x188] sm:$0xff] %v5748_v6  ;;  %v4550_v20 = vunpack.c.h.bf16 %v4790_v4  ;;  %v4549_v22 = vunpack.c.l.bf16 %v4790_v4  ;;  %v4578_v23 = vunpack.c.h.bf16 %v4797_v5  ;;  %v1607_v48 = vld [vmem:[#allocation2 + $0x120] sm:$0xff]  ;;  %v1638_v50 = vld [vmem:[#allocation2 + $0x218] sm:$0xff] }
 0x133   : > { %v1962_v18 = vsel %vm1957_vm0, %v4457_v11, 0.0  ;;  %2476 = vadd.xlane.f32.xlu1 %v2089_v38  ;;  %2474 = vadd.xlane.f32.xlu0 %v2088_v39  ;;  %2262 = vst [vmem:[#allocation2 + $0x180] sm:$0xff] %v5757_v12  ;;  %2219 = vst [vmem:[#allocation2 + $0x28] sm:$0xff] %v5759_v13  ;;  %v1979_v25 = vsel %vm1957_vm0, %v4490_v15, 0.0  ;;  %v4577_v29 = vunpack.c.l.bf16 %v4797_v5  ;;  %v4522_v47 = vunpack.c.h.bf16 %v4783_v30  ;;  %v1637_v52 = vld [vmem:[#allocation2 + $0x210] sm:$0xff]  ;;  %v1652_v57 = vld [vmem:[#allocation2 + $0x288] sm:$0xff] }
 0x134   : > { %v5766_v24 = vadd.f32 %v1962_v18, %v1575_v10  ;;  %v1978_v26 = vsel %vm1957_vm0, %v4489_v17, 0.0  ;;  %v5773_v31 = vadd.f32 %v1979_v25, %v1592_v14  ;;  %v2009_v33 = vsel %vm1957_vm0, %v4550_v20, 0.0  ;;  %v1651_v58 = vld [vmem:[#allocation2 + $0x280] sm:$0xff]  ;;  %v1578_v5 = vld [vmem:[#allocation2 + $0x38] sm:$0xff]  ;;  %v1577_v8 = vld [vmem:[#allocation2 + $0x30] sm:$0xff] }
 0x135   : > { %v5775_v32 = vadd.f32 %v1978_v26, %v1591_v16  ;;  %v2008_v34 = vsel %vm1957_vm0, %v4549_v22, 0.0  ;;  %v5784_v37 = vadd.f32 %v2009_v33, %v1622_v19  ;;  %v2023_v39 = vsel %vm1957_vm0, %v4578_v23, 0.0  ;;  %v4776_v9 = vld [vmem:[%s5493_s29 + $0x58] sm:$0xff]   ;;  %v4791_v16 = vld [vmem:[%s5493_s29 + $0xd0] sm:$0xff]   ;;  %v4806_v17 = vld [vmem:[%s5493_s29 + $0x148] sm:$0xff]  }
 0x136   : > { %2218 = vst [vmem:[#allocation2 + $0x20] sm:$0xff] %v5766_v24  ;;  %v5786_v38 = vadd.f32 %v2008_v34, %v1621_v21  ;;  %v2022_v41 = vsel %vm1957_vm0, %v4577_v29, 0.0  ;;  %2235 = vst [vmem:[#allocation2 + $0xa8] sm:$0xff] %v5773_v31  ;;  %v5795_v43 = vadd.f32 %v2023_v39, %v1636_v27  ;;  %v4521_v49 = vunpack.c.l.bf16 %v4783_v30  ;;  %v4813_v22 = vld [vmem:[%s5493_s29 + $0x180] sm:$0xff]   ;;  %v1594_v23 = vld [vmem:[#allocation2 + $0xb8] sm:$0xff] }
 0x137   : > { %2234 = vst [vmem:[#allocation2 + $0xa0] sm:$0xff] %v5775_v32  ;;  %v5797_v45 = vadd.f32 %v2022_v41, %v1635_v28  ;;  %2508 = vadd.xlane.f32.xlu1 %v5719_v40  ;;  %2506 = vadd.xlane.f32.xlu0 %v5722_v44  ;;  %2265 = vst [vmem:[#allocation2 + $0x198] sm:$0xff] %v5784_v37  ;;  %v4582_v51 = vunpack.c.h.bf16 %v4798_v35  ;;  %v4581_v53 = vunpack.c.l.bf16 %v4798_v35  ;;  %v4610_v54 = vunpack.c.h.bf16 %v4805_v36  ;;  %v1593_v26 = vld [vmem:[#allocation2 + $0xb0] sm:$0xff]  ;;  %v1624_v28 = vld [vmem:[#allocation2 + $0x1a8] sm:$0xff] }
 0x138   : > { %2264 = vst [vmem:[#allocation2 + $0x190] sm:$0xff] %v5786_v38  ;;  %v4609_v55 = vunpack.c.l.bf16 %v4805_v36  ;;  %2279 = vst [vmem:[#allocation2 + $0x208] sm:$0xff] %v5795_v43  ;;  %v1995_v40 = vsel %vm1957_vm0, %v4522_v47, 0.0  ;;  %v1994_v44 = vsel %vm1957_vm0, %v4521_v49, 0.0  ;;  %v4462_v59 = vunpack.c.h.bf16 %v4768_v42  ;;  %v1623_v30 = vld [vmem:[#allocation2 + $0x1a0] sm:$0xff]  ;;  %v1654_v41 = vld [vmem:[#allocation2 + $0x298] sm:$0xff] }
 0x139   : > { %2278 = vst [vmem:[#allocation2 + $0x200] sm:$0xff] %v5797_v45  ;;  %v4461_v60 = vunpack.c.l.bf16 %v4768_v42  ;;  %v5809_v61 = vadd.f32 %v1995_v40, %v1608_v46  ;;  %v5811_v62 = vadd.f32 %v1994_v44, %v1607_v48  ;;  %v2025_v3 = vsel %vm1957_vm0, %v4582_v51, 0.0  ;;  %v1653_v42 = vld [vmem:[#allocation2 + $0x290] sm:$0xff] }
 0x13a   : > { %v2024_v4 = vsel %vm1957_vm0, %v4581_v53, 0.0  ;;  %v5818_v10 = vadd.f32 %v2025_v3, %v1638_v50  ;;  %v2039_v14 = vsel %vm1957_vm0, %v4610_v54, 0.0  ;;  %v2038_v15 = vsel %vm1957_vm0, %v4609_v55, 0.0  ;;  %v1667_v53 = vld [vmem:[#allocation2 + $0x300] sm:$0xff]  ;;  %v4784_v54 = vld [vmem:[%s5493_s29 + $0x98] sm:$0xff]   ;;  %v4799_v44 = vld [vmem:[%s5493_s29 + $0x110] sm:$0xff]  }
 0x13b   : > { %v5820_v11 = vadd.f32 %v2024_v4, %v1637_v52  ;;  %2536 = vadd.xlane.f32.xlu1 %v5728_v56  ;;  %2534 = vadd.xlane.f32.xlu0 %v5737_v63  ;;  %2251 = vst [vmem:[#allocation2 + $0x128] sm:$0xff] %v5809_v61  ;;  %2250 = vst [vmem:[#allocation2 + $0x120] sm:$0xff] %v5811_v62  ;;  %v5832_v18 = vadd.f32 %v2039_v14, %v1652_v57  ;;  %v1965_v20 = vsel %vm1957_vm0, %v4462_v59, 0.0  ;;  %v1668_v52 = vld [vmem:[#allocation2 + $0x308] sm:$0xff]  ;;  %v4821_v4 = vld [vmem:[%s5493_s29 + $0x1c0] sm:$0xff]   ;;  %vm3205_vm10 = vcmask 720512  }
 0x13c   : > { %v5834_v19 = vadd.f32 %v2038_v15, %v1651_v58  ;;  %v1964_v21 = vsel %vm1957_vm0, %v4461_v60, 0.0  ;;  %2281 = vst [vmem:[#allocation2 + $0x218] sm:$0xff] %v5818_v10  ;;  %v5843_v56 = vadd.f32 %v1965_v20, %v1578_v5  ;;  %v4494_v25 = vunpack.c.h.bf16 %v4776_v9  ;;  %v4814_v57 = vld [vmem:[%s5493_s29 + $0x188] sm:$0xff]   ;;  %v1609_v15 = vld [vmem:[#allocation2 + $0x130] sm:$0xff] }
 0x13d   : > { %2280 = vst [vmem:[#allocation2 + $0x210] sm:$0xff] %v5820_v11  ;;  %v5845_v63 = vadd.f32 %v1964_v21, %v1577_v8  ;;  %v4493_v27 = vunpack.c.l.bf16 %v4776_v9  ;;  %2295 = vst [vmem:[#allocation2 + $0x288] sm:$0xff] %v5832_v18  ;;  %v4554_v29 = vunpack.c.h.bf16 %v4791_v16  ;;  %v4553_v33 = vunpack.c.l.bf16 %v4791_v16  ;;  %v1610_v9 = vld [vmem:[#allocation2 + $0x138] sm:$0xff]  ;;  %v1639_v21 = vld [vmem:[#allocation2 + $0x220] sm:$0xff] }
 0x13e   : > { %2294 = vst [vmem:[#allocation2 + $0x280] sm:$0xff] %v5834_v19  ;;  %v4614_v34 = vunpack.c.h.bf16 %v4806_v17  ;;  %v4613_v35 = vunpack.c.l.bf16 %v4806_v17  ;;  %2221 = vst [vmem:[#allocation2 + $0x38] sm:$0xff] %v5843_v56  ;;  %v1981_v36 = vsel %vm1957_vm0, %v4494_v25, 0.0  ;;  %v4642_v46 = vunpack.c.h.bf16 %v4813_v22  ;;  %v1640_v17 = vld [vmem:[#allocation2 + $0x228] sm:$0xff]  ;;  %v4823_v2 = vld [vmem:[%s5493_s29 + $0x1d0] sm:$0xff]  }
 0x13f   : > { %2220 = vst [vmem:[#allocation2 + $0x30] sm:$0xff] %v5845_v63  ;;  %v1980_v39 = vsel %vm1957_vm0, %v4493_v27, 0.0  ;;  %v4641_v47 = vunpack.c.l.bf16 %v4813_v22  ;;  %2540 = vadd.xlane.f32.xlu1 %v5739_v0  ;;  %2538 = vadd.xlane.f32.xlu0 %v5741_v1  ;;  %v5857_v48 = vadd.f32 %v1981_v36, %v1594_v23  ;;  %v2011_v50 = vsel %vm1957_vm0, %v4554_v29, 0.0  ;;  %v1669_v27 = vld [vmem:[#allocation2 + $0x310] sm:$0xff]  ;;  %v1684_v36 = vld [vmem:[#allocation2 + $0x388] sm:$0xff] }
 0x140   : > { %v5859_v49 = vadd.f32 %v1980_v39, %v1593_v26  ;;  %v2010_v51 = vsel %vm1957_vm0, %v4553_v33, 0.0  ;;  %v5866_v55 = vadd.f32 %v2011_v50, %v1624_v28  ;;  %v2041_v0 = vsel %vm1957_vm0, %v4614_v34, 0.0  ;;  %v1670_v26 = vld [vmem:[#allocation2 + $0x318] sm:$0xff]  ;;  %v1683_v39 = vld [vmem:[#allocation2 + $0x380] sm:$0xff] }
 0x141   : > { %v5868_v40 = vadd.f32 %v2010_v51, %v1623_v30  ;;  %v2040_v1 = vsel %vm1957_vm0, %v4613_v35, 0.0  ;;  %2237 = vst [vmem:[#allocation2 + $0xb8] sm:$0xff] %v5857_v48  ;;  %v5878_v58 = vadd.f32 %v2041_v0, %v1654_v41  ;;  %v2055_v60 = vsel %vm1957_vm0, %v4642_v46, 0.0  ;;  %v4769_v41 = vld [vmem:[%s5493_s29 + $0x20] sm:$0xff]  }
 0x142   : > { %2236 = vst [vmem:[#allocation2 + $0xb0] sm:$0xff] %v5859_v49  ;;  %v5880_v59 = vadd.f32 %v2040_v1, %v1653_v42  ;;  %v2054_v3 = vsel %vm1957_vm0, %v4641_v47, 0.0  ;;  %2267 = vst [vmem:[#allocation2 + $0x1a8] sm:$0xff] %v5866_v55  ;;  %v5889_v5 = vadd.f32 %v2055_v60, %v1668_v52  ;;  %v4526_v14 = vunpack.c.h.bf16 %v4784_v54  ;;  %v4777_v51 = vld [vmem:[%s5493_s29 + $0x60] sm:$0xff]   ;;  %v4792_v52 = vld [vmem:[%s5493_s29 + $0xd8] sm:$0xff]  }
 0x143   : > { %2266 = vst [vmem:[#allocation2 + $0x1a0] sm:$0xff] %v5868_v40  ;;  %v5891_v8 = vadd.f32 %v2054_v3, %v1667_v53  ;;  %v4525_v16 = vunpack.c.l.bf16 %v4784_v54  ;;  %2568 = vadd.xlane.f32.xlu1 %v5748_v6  ;;  %2566 = vadd.xlane.f32.xlu0 %v5757_v12  ;;  %2297 = vst [vmem:[#allocation2 + $0x298] sm:$0xff] %v5878_v58  ;;  %v4586_v20 = vunpack.c.h.bf16 %v4799_v44  ;;  %v4585_v22 = vunpack.c.l.bf16 %v4799_v44  ;;  %v4807_v44 = vld [vmem:[%s5493_s29 + $0x150] sm:$0xff]   ;;  %v1579_v3 = vld [vmem:[#allocation2 + $0x40] sm:$0xff] }
 0x144   : > { %2296 = vst [vmem:[#allocation2 + $0x290] sm:$0xff] %v5880_v59  ;;  %v4646_v23 = vunpack.c.h.bf16 %v4814_v57  ;;  %v4645_v25 = vunpack.c.l.bf16 %v4814_v57  ;;  %2311 = vst [vmem:[#allocation2 + $0x308] sm:$0xff] %v5889_v5  ;;  %v1997_v6 = vsel %vm1957_vm0, %v4526_v14, 0.0  ;;  %v4674_v28 = vunpack.c.h.bf16 %v4821_v4  ;;  %v1580_v57 = vld [vmem:[#allocation2 + $0x48] sm:$0xff] }
 0x145   : > { %2310 = vst [vmem:[#allocation2 + $0x300] sm:$0xff] %v5891_v8  ;;  %v1996_v12 = vsel %vm1957_vm0, %v4525_v16, 0.0  ;;  %v4673_v29 = vunpack.c.l.bf16 %v4821_v4  ;;  %v5903_v30 = vadd.f32 %v1997_v6, %v1610_v9  ;;  %v2027_v34 = vsel %vm1957_vm0, %v4586_v20, 0.0  ;;  %v1596_v9 = vld [vmem:[#allocation2 + $0xc8] sm:$0xff] }
 0x146   : > { %v5905_v33 = vadd.f32 %v1996_v12, %v1609_v15  ;;  %v2026_v35 = vsel %vm1957_vm0, %v4585_v22, 0.0  ;;  %v5912_v42 = vadd.f32 %v2027_v34, %v1640_v17  ;;  %v2057_v47 = vsel %vm1957_vm0, %v4646_v23, 0.0  ;;  %v1595_v15 = vld [vmem:[#allocation2 + $0xc0] sm:$0xff]  ;;  %v1626_v23 = vld [vmem:[#allocation2 + $0x1b8] sm:$0xff]  ;;  %v1656_v34 = vld [vmem:[#allocation2 + $0x2a8] sm:$0xff] }
 0x147   : > { %v5914_v46 = vadd.f32 %v2026_v35, %v1639_v21  ;;  %v2056_v50 = vsel %vm1957_vm0, %v4645_v25, 0.0  ;;  %2480 = vadd.xlane.f32.xlu1 %v5759_v13  ;;  %2478 = vadd.xlane.f32.xlu0 %v5766_v24  ;;  %2253 = vst [vmem:[#allocation2 + $0x138] sm:$0xff] %v5903_v30  ;;  %v5926_v53 = vadd.f32 %v2057_v47, %v1670_v26  ;;  %v2071_v0 = vsel %vm1957_vm0, %v4674_v28, 0.0  ;;  %v1625_v25 = vld [vmem:[#allocation2 + $0x1b0] sm:$0xff]  ;;  %v1655_v35 = vld [vmem:[#allocation2 + $0x2a0] sm:$0xff]  ;;  %v1686_v47 = vld [vmem:[#allocation2 + $0x398] sm:$0xff] }
 0x148   : > { %2252 = vst [vmem:[#allocation2 + $0x130] sm:$0xff] %v5905_v33  ;;  %v5928_v54 = vadd.f32 %v2056_v50, %v1669_v27  ;;  %v2070_v1 = vsel %vm1957_vm0, %v4673_v29, 0.0  ;;  %2283 = vst [vmem:[#allocation2 + $0x228] sm:$0xff] %v5912_v42  ;;  %v5937_v13 = vadd.f32 %v2071_v0, %v1684_v36  ;;  %v4466_v60 = vunpack.c.h.bf16 %v4769_v41  ;;  %v4822_v36 = vld [vmem:[%s5493_s29 + $0x1c8] sm:$0xff]   ;;  %v1685_v50 = vld [vmem:[#allocation2 + $0x390] sm:$0xff] }
 0x149   : > { %2282 = vst [vmem:[#allocation2 + $0x220] sm:$0xff] %v5914_v46  ;;  %v5939_v24 = vadd.f32 %v2070_v1, %v1683_v39  ;;  %v4465_v4 = vunpack.c.l.bf16 %v4769_v41  ;;  %2313 = vst [vmem:[#allocation2 + $0x318] sm:$0xff] %v5926_v53  ;;  %v4498_v14 = vunpack.c.h.bf16 %v4777_v51  ;;  %v4497_v16 = vunpack.c.l.bf16 %v4777_v51  ;;  %v4785_v51 = vld [vmem:[%s5493_s29 + $0xa0] sm:$0xff]  }
 0x14a   : > { %2312 = vst [vmem:[#allocation2 + $0x310] sm:$0xff] %v5928_v54  ;;  %v4558_v17 = vunpack.c.h.bf16 %v4792_v52  ;;  %v4557_v20 = vunpack.c.l.bf16 %v4792_v52  ;;  %2327 = vst [vmem:[#allocation2 + $0x388] sm:$0xff] %v5937_v13  ;;  %v1967_v21 = vsel %vm1957_vm0, %v4466_v60, 0.0  ;;  %v4618_v6 = vunpack.c.h.bf16 %v4807_v44  ;;  %v4800_v52 = vld [vmem:[%s5493_s29 + $0x118] sm:$0xff]   ;;  %v1612_v60 = vld [vmem:[#allocation2 + $0x148] sm:$0xff] }
 0x14b   : > { %2326 = vst [vmem:[#allocation2 + $0x380] sm:$0xff] %v5939_v24  ;;  %v1966_v22 = vsel %vm1957_vm0, %v4465_v4, 0.0  ;;  %v4617_v12 = vunpack.c.l.bf16 %v4807_v44  ;;  %2512 = vadd.xlane.f32.xlu1 %v5773_v31  ;;  %2510 = vadd.xlane.f32.xlu0 %v5775_v32  ;;  %v5951_v26 = vadd.f32 %v1967_v21, %v1580_v57  ;;  %v1983_v28 = vsel %vm1957_vm0, %v4498_v14, 0.0  ;;  %v4815_v4 = vld [vmem:[%s5493_s29 + $0x190] sm:$0xff]  }
 0x14c   : > { %v5953_v27 = vadd.f32 %v1966_v22, %v1579_v3  ;;  %v1982_v29 = vsel %vm1957_vm0, %v4497_v16, 0.0  ;;  %v5960_v39 = vadd.f32 %v1983_v28, %v1596_v9  ;;  %v2013_v32 = vsel %vm1957_vm0, %v4558_v17, 0.0  ;;  %v1611_v3 = vld [vmem:[#allocation2 + $0x140] sm:$0xff]  ;;  %v1642_v17 = vld [vmem:[#allocation2 + $0x238] sm:$0xff]  ;;  %v4770_v28 = vld [vmem:[%s5493_s29 + $0x28] sm:$0xff]  }
 0x14d   : > { %v5962_v31 = vadd.f32 %v1982_v29, %v1595_v15  ;;  %v2012_v41 = vsel %vm1957_vm0, %v4557_v20, 0.0  ;;  %2223 = vst [vmem:[#allocation2 + $0x48] sm:$0xff] %v5951_v26  ;;  %v5972_v0 = vadd.f32 %v2013_v32, %v1626_v23  ;;  %v2043_v44 = vsel %vm1957_vm0, %v4618_v6, 0.0  ;;  %v1641_v20 = vld [vmem:[#allocation2 + $0x230] sm:$0xff]  ;;  %v1672_v6 = vld [vmem:[#allocation2 + $0x328] sm:$0xff] }
 0x14e   : > { %2222 = vst [vmem:[#allocation2 + $0x40] sm:$0xff] %v5953_v27  ;;  %v5974_v1 = vadd.f32 %v2012_v41, %v1625_v25  ;;  %v2042_v57 = vsel %vm1957_vm0, %v4617_v12, 0.0  ;;  %2239 = vst [vmem:[#allocation2 + $0xc8] sm:$0xff] %v5960_v39  ;;  %v5983_v9 = vadd.f32 %v2043_v44, %v1656_v34  ;;  %v4678_v15 = vunpack.c.h.bf16 %v4822_v36  ;;  %v1671_v12 = vld [vmem:[#allocation2 + $0x320] sm:$0xff] }
 0x14f   : > { %2238 = vst [vmem:[#allocation2 + $0xc0] sm:$0xff] %v5962_v31  ;;  %v5985_v14 = vadd.f32 %v2042_v57, %v1655_v35  ;;  %v4677_v16 = vunpack.c.l.bf16 %v4822_v36  ;;  %2572 = vadd.xlane.f32.xlu1 %v5784_v37  ;;  %2570 = vadd.xlane.f32.xlu0 %v5786_v38  ;;  %2269 = vst [vmem:[#allocation2 + $0x1b8] sm:$0xff] %v5972_v0  ;;  %v4530_v21 = vunpack.c.h.bf16 %v4785_v51  ;;  %v4529_v22 = vunpack.c.l.bf16 %v4785_v51  ;;  %v4778_v51 = vld [vmem:[%s5493_s29 + $0x68] sm:$0xff]  }
 0x150   : > { %2268 = vst [vmem:[#allocation2 + $0x1b0] sm:$0xff] %v5974_v1  ;;  %v4590_v23 = vunpack.c.h.bf16 %v4800_v52  ;;  %v4589_v25 = vunpack.c.l.bf16 %v4800_v52  ;;  %2299 = vst [vmem:[#allocation2 + $0x2a8] sm:$0xff] %v5983_v9  ;;  %v2073_v37 = vsel %vm1957_vm0, %v4678_v15, 0.0  ;;  %v4650_v29 = vunpack.c.h.bf16 %v4815_v4  ;;  %v4793_v52 = vld [vmem:[%s5493_s29 + $0xe0] sm:$0xff]  }
 0x151   : > { %2298 = vst [vmem:[#allocation2 + $0x2a0] sm:$0xff] %v5985_v14  ;;  %v2072_v38 = vsel %vm1957_vm0, %v4677_v16, 0.0  ;;  %v4649_v34 = vunpack.c.l.bf16 %v4815_v4  ;;  %v5998_v35 = vadd.f32 %v2073_v37, %v1686_v47  ;;  %v1999_v32 = vsel %vm1957_vm0, %v4530_v21, 0.0  ;;  %v1581_v4 = vld [vmem:[#allocation2 + $0x50] sm:$0xff]  ;;  %v4808_v16 = vld [vmem:[%s5493_s29 + $0x158] sm:$0xff]   ;;  %v1628_v37 = vld [vmem:[#allocation2 + $0x1c8] sm:$0xff] }
 0x152   : > { %v6000_v36 = vadd.f32 %v2072_v38, %v1685_v50  ;;  %v1998_v41 = vsel %vm1957_vm0, %v4529_v22, 0.0  ;;  %v6008_v44 = vadd.f32 %v1999_v32, %v1612_v60  ;;  %v2029_v15 = vsel %vm1957_vm0, %v4590_v23, 0.0  ;;  %v1582_v50 = vld [vmem:[#allocation2 + $0x58] sm:$0xff]  ;;  %v1627_v38 = vld [vmem:[#allocation2 + $0x1c0] sm:$0xff] }
 0x153   : > { %v6010_v57 = vadd.f32 %v1998_v41, %v1611_v3  ;;  %v2028_v47 = vsel %vm1957_vm0, %v4589_v25, 0.0  ;;  %2600 = vadd.xlane.f32.xlu1 %v5795_v43  ;;  %2598 = vadd.xlane.f32.xlu0 %v5797_v45  ;;  %2329 = vst [vmem:[#allocation2 + $0x398] sm:$0xff] %v5998_v35  ;;  %v6021_v60 = vadd.f32 %v2029_v15, %v1642_v17  ;;  %v2059_v21 = vsel %vm1957_vm0, %v4650_v29, 0.0  ;;  %v1598_v23 = vld [vmem:[#allocation2 + $0xd8] sm:$0xff]  ;;  %v1597_v25 = vld [vmem:[#allocation2 + $0xd0] sm:$0xff] }
 0x154   : > { %2328 = vst [vmem:[#allocation2 + $0x390] sm:$0xff] %v6000_v36  ;;  %v6023_v3 = vadd.f32 %v2028_v47, %v1641_v20  ;;  %v2058_v22 = vsel %vm1957_vm0, %v4649_v34, 0.0  ;;  %2255 = vst [vmem:[#allocation2 + $0x148] sm:$0xff] %v6008_v44  ;;  %v6031_v43 = vadd.f32 %v2059_v21, %v1672_v6  ;;  %v4470_v17 = vunpack.c.h.bf16 %v4770_v28  ;;  %v1658_v15 = vld [vmem:[#allocation2 + $0x2b8] sm:$0xff]  ;;  %v1657_v47 = vld [vmem:[#allocation2 + $0x2b0] sm:$0xff] }
 0x155   : > { %2254 = vst [vmem:[#allocation2 + $0x140] sm:$0xff] %v6010_v57  ;;  %v6033_v45 = vadd.f32 %v2058_v22, %v1671_v12  ;;  %v4469_v20 = vunpack.c.l.bf16 %v4770_v28  ;;  %2285 = vst [vmem:[#allocation2 + $0x238] sm:$0xff] %v6021_v60  ;;  %v4502_v29 = vunpack.c.h.bf16 %v4778_v51  ;;  %v4501_v34 = vunpack.c.l.bf16 %v4778_v51  ;;  %v4786_v22 = vld [vmem:[%s5493_s29 + $0xa8] sm:$0xff]  }
 0x156   : > { %7125 = vst [vmem:[#allocation8_spill] sm:$0xff] %v6031_v43  ;;  %2284 = vst [vmem:[#allocation2 + $0x230] sm:$0xff] %v6023_v3  ;;  %v4562_v32 = vunpack.c.h.bf16 %v4793_v52  ;;  %v4561_v41 = vunpack.c.l.bf16 %v4793_v52  ;;  %v1969_v6 = vsel %vm1957_vm0, %v4470_v17, 0.0  ;;  %v4622_v28 = vunpack.c.h.bf16 %v4808_v16 }
 0x157   : > { %7126 = vst [vmem:[#allocation9_spill] sm:$0xff] %v6033_v45  ;;  %2315 = vst [vmem:[#allocation2 + $0x328] sm:$0xff] %v6031_v43  ;;  %v1968_v12 = vsel %vm1957_vm0, %v4469_v20, 0.0  ;;  %v4621_v21 = vunpack.c.l.bf16 %v4808_v16  ;;  %2544 = vadd.xlane.f32.xlu1 %v5809_v61  ;;  %2542 = vadd.xlane.f32.xlu0 %v5811_v62  ;;  %v6047_v51 = vadd.f32 %v1969_v6, %v1582_v50  ;;  %v1984_v17 = vsel %vm1957_vm0, %v4501_v34, 0.0  ;;  %v1688_v50 = vld [vmem:[#allocation2 + $0x3a8] sm:$0xff]  ;;  %v4801_v34 = vld [vmem:[%s5493_s29 + $0x120] sm:$0xff]  }
 0x158   : > { %2314 = vst [vmem:[#allocation2 + $0x320] sm:$0xff] %v6033_v45  ;;  %v6049_v52 = vadd.f32 %v1968_v12, %v1581_v4  ;;  %v1985_v45 = vsel %vm1957_vm0, %v4502_v29, 0.0  ;;  %v6057_v20 = vadd.f32 %v1984_v17, %v1597_v25  ;;  %v2015_v61 = vsel %vm1957_vm0, %v4562_v32, 0.0  ;;  %v1687_v4 = vld [vmem:[#allocation2 + $0x3a0] sm:$0xff]  ;;  %v1644_v17 = vld [vmem:[#allocation2 + $0x248] sm:$0xff] }
 0x159   : > { %v6055_v43 = vadd.f32 %v1985_v45, %v1598_v23  ;;  %v2014_v62 = vsel %vm1957_vm0, %v4561_v41, 0.0  ;;  %2225 = vst [vmem:[#allocation2 + $0x58] sm:$0xff] %v6047_v51  ;;  %v6065_v16 = vadd.f32 %v2015_v61, %v1628_v37  ;;  %v2045_v23 = vsel %vm1957_vm0, %v4622_v28, 0.0  ;;  %v1614_v45 = vld [vmem:[#allocation2 + $0x158] sm:$0xff] }
 0x15a   : > { %2224 = vst [vmem:[#allocation2 + $0x50] sm:$0xff] %v6049_v52  ;;  %v6067_v29 = vadd.f32 %v2014_v62, %v1627_v38  ;;  %v2044_v25 = vsel %vm1957_vm0, %v4621_v21, 0.0  ;;  %2240 = vst [vmem:[#allocation2 + $0xd0] sm:$0xff] %v6057_v20  ;;  %v6076_v32 = vadd.f32 %v2045_v23, %v1658_v15  ;;  %v4682_v37 = vunpack.c.h.bf16 %v4823_v2  ;;  %v1613_v38 = vld [vmem:[#allocation2 + $0x150] sm:$0xff]  ;;  %v4816_v61 = vld [vmem:[%s5493_s29 + $0x198] sm:$0xff]  }
 0x15b   : > { %2241 = vst [vmem:[#allocation2 + $0xd8] sm:$0xff] %v6055_v43  ;;  %v6078_v41 = vadd.f32 %v2044_v25, %v1657_v47  ;;  %v4681_v6 = vunpack.c.l.bf16 %v4823_v2  ;;  %2604 = vadd.xlane.f32.xlu1 %v5818_v10  ;;  %2602 = vadd.xlane.f32.xlu0 %v5820_v11  ;;  %2271 = vst [vmem:[#allocation2 + $0x1c8] sm:$0xff] %v6065_v16  ;;  %v4534_v12 = vunpack.c.h.bf16 %v4786_v22  ;;  %v4533_v28 = vunpack.c.l.bf16 %v4786_v22  ;;  %v4771_v25 = vld [vmem:[%s5493_s29 + $0x30] sm:$0xff]  }
 0x15c   : > { %2270 = vst [vmem:[#allocation2 + $0x1c0] sm:$0xff] %v6067_v29  ;;  %2301 = vst [vmem:[#allocation2 + $0x2b8] sm:$0xff] %v6076_v32  ;;  %v2075_v2 = vsel %vm1957_vm0, %v4682_v37, 0.0  ;;  %v4594_v15 = vunpack.c.h.bf16 %v4801_v34  ;;  %v4593_v37 = vunpack.c.l.bf16 %v4801_v34  ;;  %vm3212_vm11 = vcmask 786112  }
 0x15d   : > { %2300 = vst [vmem:[#allocation2 + $0x2b0] sm:$0xff] %v6078_v41  ;;  %v2074_v10 = vsel %vm1957_vm0, %v4681_v6, 0.0  ;;  %v6090_v47 = vadd.f32 %v2075_v2, %v1688_v50  ;;  %v2001_v21 = vsel %vm1957_vm0, %v4534_v12, 0.0  ;;  %v2000_v22 = vsel %vm1957_vm0, %v4533_v28, 0.0  ;;  %v1674_v6 = vld [vmem:[#allocation2 + $0x338] sm:$0xff]  ;;  %v1673_v12 = vld [vmem:[#allocation2 + $0x330] sm:$0xff] }
 0x15e   : > { %v6092_v11 = vadd.f32 %v2074_v10, %v1687_v4  ;;  %v6099_v62 = vadd.f32 %v2001_v21, %v1614_v45  ;;  %v6101_v23 = vadd.f32 %v2000_v22, %v1613_v38  ;;  %v2031_v50 = vsel %vm1957_vm0, %v4594_v15, 0.0  ;;  %v1643_v4 = vld [vmem:[#allocation2 + $0x240] sm:$0xff]  ;;  %v4779_v38 = vld [vmem:[%s5493_s29 + $0x70] sm:$0xff]   ;;  %v1584_v2 = vld [vmem:[#allocation2 + $0x68] sm:$0xff] }
 0x15f   : > { %2632 = vadd.xlane.f32.xlu1 %v5832_v18  ;;  %2630 = vadd.xlane.f32.xlu0 %v5834_v19  ;;  %2331 = vst [vmem:[#allocation2 + $0x3a8] sm:$0xff] %v6090_v47  ;;  %v6112_v45 = vadd.f32 %v2031_v50, %v1644_v17  ;;  %v4654_v18 = vunpack.c.h.bf16 %v4816_v61  ;;  %v2030_v19 = vsel %vm1957_vm0, %v4593_v37, 0.0  ;;  %v4653_v28 = vunpack.c.l.bf16 %v4816_v61  ;;  %v1583_v21 = vld [vmem:[#allocation2 + $0x60] sm:$0xff]  ;;  %v4794_v17 = vld [vmem:[%s5493_s29 + $0xe8] sm:$0xff]  }
 0x160   : > { %7127 = vst [vmem:[#allocation10_spill] sm:$0xff] %v6099_v62  ;;  %7128 = vst [vmem:[#allocation11_spill] sm:$0xff] %v6101_v23  ;;  %v4474_v10 = vunpack.c.h.bf16 %v4771_v25  ;;  %v6118_v34 = vadd.f32 %v2030_v19, %v1643_v4  ;;  %v4473_v22 = vunpack.c.l.bf16 %v4771_v25  ;;  %v1600_v4 = vld [vmem:[#allocation2 + $0xe8] sm:$0xff]  ;;  %v4506_v19 = vunpack.c.h.bf16 %v4779_v38 }
 0x161   : > { %2330 = vst [vmem:[#allocation2 + $0x3a0] sm:$0xff] %v6092_v11  ;;  %2257 = vst [vmem:[#allocation2 + $0x158] sm:$0xff] %v6099_v62  ;;  %v2061_v15 = vsel %vm1957_vm0, %v4654_v18, 0.0  ;;  %v2060_v61 = vsel %vm1957_vm0, %v4653_v28, 0.0  ;;  %v1629_v62 = vld [vmem:[#allocation2 + $0x1d0] sm:$0xff]  ;;  %vm5095_vm12 = vmmov 0  }
 0x162   : > { %2256 = vst [vmem:[#allocation2 + $0x150] sm:$0xff] %v6101_v23  ;;  %7129 = vst [vmem:[#allocation12_spill] sm:$0xff] %v6112_v45  ;;  %v6125_v50 = vadd.f32 %v2061_v15, %v1674_v6  ;;  %v1971_v37 = vsel %vm1957_vm0, %v4474_v10, 0.0  ;;  %v6133_v18 = vadd.f32 %v2060_v61, %v1673_v12  ;;  %v4505_v6 = vunpack.c.l.bf16 %v4779_v38  ;;  %v1630_v15 = vld [vmem:[#allocation2 + $0x1d8] sm:$0xff]  ;;  %v1659_v61 = vld [vmem:[#allocation2 + $0x2c0] sm:$0xff] }
 0x163   : > { %2287 = vst [vmem:[#allocation2 + $0x248] sm:$0xff] %v6112_v45  ;;  %2484 = vadd.xlane.f32.xlu1 %v5843_v56  ;;  %2482 = vadd.xlane.f32.xlu0 %v5845_v63  ;;  %v4809_v45 = vld [vmem:[%s5493_s29 + $0x160] sm:$0xff]   ;;  %2286 = vst [vmem:[#allocation2 + $0x240] sm:$0xff] %v6118_v34  ;;  %v6135_v25 = vadd.f32 %v1971_v37, %v1584_v2  ;;  %v1970_v56 = vsel %vm1957_vm0, %v4473_v22, 0.0  ;;  %v1987_v10 = vsel %vm1957_vm0, %v4506_v19, 0.0  ;;  %v4566_v23 = vunpack.c.h.bf16 %v4794_v17  ;;  %v1660_v22 = vld [vmem:[#allocation2 + $0x2c8] sm:$0xff] }
 0x164   : > { %v1599_v63 = vld [vmem:[#allocation2 + $0xe0] sm:$0xff]  ;;  %2317 = vst [vmem:[#allocation2 + $0x338] sm:$0xff] %v6125_v50  ;;  %v6140_v28 = vadd.f32 %v1970_v56, %v1583_v21  ;;  %v4565_v12 = vunpack.c.l.bf16 %v4794_v17  ;;  %2316 = vst [vmem:[#allocation2 + $0x330] sm:$0xff] %v6133_v18  ;;  %v6146_v2 = vadd.f32 %v1987_v10, %v1600_v4  ;;  %v1986_v38 = vsel %vm1957_vm0, %v4505_v6, 0.0  ;;  %v4824_v56 = vld [vmem:[%s5493_s29 + $0x1d8] sm:$0xff]  }
 0x165   : > { %7130 = vst [vmem:[#allocation13_spill] sm:$0xff] %v6135_v25  ;;  %2227 = vst [vmem:[#allocation2 + $0x68] sm:$0xff] %v6135_v25  ;;  %v4626_v21 = vunpack.c.h.bf16 %v4809_v45  ;;  %v4625_v37 = vunpack.c.l.bf16 %v4809_v45  ;;  %v6153_v17 = vadd.f32 %v1986_v38, %v1599_v63  ;;  %v2017_v4 = vsel %vm1957_vm0, %v4566_v23, 0.0  ;;  %v4787_v63 = vld [vmem:[%s5493_s29 + $0xb0] sm:$0xff]   ;;  %v4802_v10 = vld [vmem:[%s5493_s29 + $0x128] sm:$0xff]  }
 0x166   : > { %7131 = vst [vmem:[#allocation14_spill] sm:$0xff] %v6140_v28  ;;  %7132 = vst [vmem:[#allocation15_spill] sm:$0xff] %v6146_v2  ;;  %v2016_v19 = vsel %vm1957_vm0, %v4565_v12, 0.0  ;;  %v6161_v6 = vadd.f32 %v2017_v4, %v1630_v15  ;;  %v4817_v38 = vld [vmem:[%s5493_s29 + $0x1a0] sm:$0xff]   ;;  %v4686_v15 = vunpack.c.h.bf16 %v4824_v56  ;;  %v1689_v4 = vld [vmem:[#allocation2 + $0x3b0] sm:$0xff]  ;;  %vm3219_vm13 = vcmask 851712  }
 0x167   : > { %2516 = vadd.xlane.f32.xlu1 %v5857_v48  ;;  %2514 = vadd.xlane.f32.xlu0 %v5859_v49  ;;  %2226 = vst [vmem:[#allocation2 + $0x60] sm:$0xff] %v6140_v28  ;;  %7133 = vst [vmem:[#allocation16_spill] sm:$0xff] %v6153_v17  ;;  %v6163_v45 = vadd.f32 %v2016_v19, %v1629_v62  ;;  %v2047_v48 = vsel %vm1957_vm0, %v4626_v21, 0.0  ;;  %v2046_v49 = vsel %vm1957_vm0, %v4625_v37, 0.0  ;;  %v1690_v62 = vld [vmem:[#allocation2 + $0x3b8] sm:$0xff]  ;;  %v4685_v21 = vunpack.c.l.bf16 %v4824_v56  ;;  %v1615_v37 = vld [vmem:[#allocation2 + $0x160] sm:$0xff] }
 0x168   : > { %2243 = vst [vmem:[#allocation2 + $0xe8] sm:$0xff] %v6146_v2  ;;  %7134 = vst [vmem:[#allocation17_spill] sm:$0xff] %v6161_v6  ;;  %v6172_v23 = vadd.f32 %v2047_v48, %v1660_v22  ;;  %v6174_v12 = vadd.f32 %v2046_v49, %v1659_v61  ;;  %v1616_v22 = vld [vmem:[#allocation2 + $0x168] sm:$0xff]  ;;  %v4538_v61 = vunpack.c.h.bf16 %v4787_v63  ;;  %v4537_v19 = vunpack.c.l.bf16 %v4787_v63  ;;  %v1645_v56 = vld [vmem:[#allocation2 + $0x250] sm:$0xff] }
 0x169   : > { %7135 = vst [vmem:[#allocation18_spill] sm:$0xff] %v6163_v45  ;;  %2242 = vst [vmem:[#allocation2 + $0xe0] sm:$0xff] %v6153_v17  ;;  %v4598_v48 = vunpack.c.h.bf16 %v4802_v10  ;;  %v4597_v49 = vunpack.c.l.bf16 %v4802_v10  ;;  %v1676_v10 = vld [vmem:[#allocation2 + $0x348] sm:$0xff]  ;;  %v4772_v2 = vld [vmem:[%s5493_s29 + $0x38] sm:$0xff]   ;;  %vm3226_vm14 = vcmask 917312   ;;  %vm3233_vm15 = vcmask 982912  }
 0x16a   : > { %7136 = vst [vmem:[#allocation19_spill] sm:$0xff] %v6172_v23  ;;  %7137 = vst [vmem:[#allocation20_spill] sm:$0xff] %v6174_v12  ;;  %v2003_v17 = vsel %vm1957_vm0, %v4538_v61, 0.0  ;;  %v2002_v63 = vsel %vm1957_vm0, %v4537_v19, 0.0  ;;  %v1675_v61 = vld [vmem:[#allocation2 + $0x340] sm:$0xff]  ;;  %v4478_v19 = vunpack.c.h.bf16 %v4772_v2 }
 0x16b   : > { %2273 = vst [vmem:[#allocation2 + $0x1d8] sm:$0xff] %v6161_v6  ;;  %2272 = vst [vmem:[#allocation2 + $0x1d0] sm:$0xff] %v6163_v45  ;;  %2576 = vadd.xlane.f32.xlu1 %v5866_v55  ;;  %2574 = vadd.xlane.f32.xlu0 %v5868_v40  ;;  %v2077_v45 = vsel %vm1957_vm0, %v4686_v15, 0.0  ;;  %v2076_v55 = vsel %vm1957_vm0, %v4685_v21, 0.0  ;;  %v1646_v40 = vld [vmem:[#allocation2 + $0x258] sm:$0xff]  ;;  %v6197_v28 = vadd.f32 %v2003_v17, %v1616_v22  ;;  %v2033_v21 = vsel %vm1957_vm0, %v4598_v48, 0.0 }
 0x16c   : > { %2303 = vst [vmem:[#allocation2 + $0x2c8] sm:$0xff] %v6172_v23  ;;  %2302 = vst [vmem:[#allocation2 + $0x2c0] sm:$0xff] %v6174_v12  ;;  %v4658_v23 = vunpack.c.h.bf16 %v4817_v38  ;;  %v6187_v6 = vadd.f32 %v2077_v45, %v1690_v62  ;;  %v6189_v12 = vadd.f32 %v2076_v55, %v1689_v4  ;;  %v4780_v15 = vld [vmem:[%s5493_s29 + $0x78] sm:$0xff]   ;;  %v6199_v25 = vadd.f32 %v2002_v63, %v1615_v37  ;;  %v4795_v62 = vld [vmem:[%s5493_s29 + $0xf0] sm:$0xff]  }
 0x16d   : > { %v2032_v45 = vsel %vm1957_vm0, %v4597_v49, 0.0  ;;  %v6210_v4 = vadd.f32 %v2033_v21, %v1646_v40  ;;  %v4657_v37 = vunpack.c.l.bf16 %v4817_v38  ;;  %2259 = vst [vmem:[#allocation2 + $0x168] sm:$0xff] %v6197_v28  ;;  %v1585_v48 = vld [vmem:[#allocation2 + $0x70] sm:$0xff]  ;;  %v4477_v49 = vunpack.c.l.bf16 %v4772_v2  ;;  %v1602_v55 = vld [vmem:[#allocation2 + $0xf8] sm:$0xff] }
 0x16e   : > { %2333 = vst [vmem:[#allocation2 + $0x3b8] sm:$0xff] %v6187_v6  ;;  %2332 = vst [vmem:[#allocation2 + $0x3b0] sm:$0xff] %v6189_v12  ;;  %v6212_v17 = vadd.f32 %v2032_v45, %v1645_v56  ;;  %v2063_v22 = vsel %vm1957_vm0, %v4658_v23, 0.0  ;;  %v4510_v40 = vunpack.c.h.bf16 %v4780_v15  ;;  %v1601_v38 = vld [vmem:[#allocation2 + $0xf0] sm:$0xff]  ;;  %v4509_v56 = vunpack.c.l.bf16 %v4780_v15 }
 0x16f   : > { %2636 = vadd.xlane.f32.xlu1 %v5878_v58  ;;  %2634 = vadd.xlane.f32.xlu0 %v5880_v59  ;;  %2258 = vst [vmem:[#allocation2 + $0x160] sm:$0xff] %v6199_v25  ;;  %v6218_v58 = vadd.f32 %v2063_v22, %v1676_v10  ;;  %v1586_v59 = vld [vmem:[#allocation2 + $0x78] sm:$0xff]  ;;  %2289 = vst [vmem:[#allocation2 + $0x258] sm:$0xff] %v6210_v4  ;;  %v2062_v23 = vsel %vm1957_vm0, %v4657_v37, 0.0  ;;  %v4570_v63 = vunpack.c.h.bf16 %v4795_v62  ;;  %v4569_v21 = vunpack.c.l.bf16 %v4795_v62  ;;  %v1632_v37 = vld [vmem:[#allocation2 + $0x1e8] sm:$0xff] }
 0x170   : > { %7138 = vst [vmem:[#allocation21_spill] sm:$0xff] %v6212_v17  ;;  %2288 = vst [vmem:[#allocation2 + $0x250] sm:$0xff] %v6212_v17  ;;  %v6225_v10 = vadd.f32 %v2062_v23, %v1675_v61  ;;  %v1973_v2 = vsel %vm1957_vm0, %v4478_v19, 0.0  ;;  %v1972_v45 = vsel %vm1957_vm0, %v4477_v49, 0.0  ;;  %v1989_v22 = vsel %vm1957_vm0, %v4510_v40, 0.0  ;;  %v1631_v17 = vld [vmem:[#allocation2 + $0x1e0] sm:$0xff] }
 0x171   : > { %2319 = vst [vmem:[#allocation2 + $0x348] sm:$0xff] %v6218_v58  ;;  %v6235_v15 = vadd.f32 %v1973_v2, %v1586_v59  ;;  %v6237_v62 = vadd.f32 %v1972_v45, %v1585_v48  ;;  %v6239_v61 = vadd.f32 %v1989_v22, %v1602_v55  ;;  %v1988_v19 = vsel %vm1957_vm0, %v4509_v56, 0.0  ;;  %v4810_v23 = vld [vmem:[%s5493_s29 + $0x168] sm:$0xff]   ;;  %v4825_v59 = vld [vmem:[%s5493_s29 + $0x1e0] sm:$0xff]   ;;  %v1662_v40 = vld [vmem:[#allocation2 + $0x2d8] sm:$0xff] }
 0x172   : > { %2318 = vst [vmem:[#allocation2 + $0x340] sm:$0xff] %v6225_v10  ;;  %v6245_v49 = vadd.f32 %v1988_v19, %v1601_v38  ;;  %v4630_v38 = vunpack.c.h.bf16 %v4810_v23  ;;  %v1661_v56 = vld [vmem:[#allocation2 + $0x2d0] sm:$0xff]  ;;  %v4788_v2 = vld [vmem:[%s5493_s29 + $0xb8] sm:$0xff]   ;;  %v4690_v45 = vunpack.c.h.bf16 %v4825_v59  ;;  %v1691_v22 = vld [vmem:[#allocation2 + $0x3c0] sm:$0xff] }
 0x173   : > { %2664 = vadd.xlane.f32.xlu1 %v5889_v5  ;;  %2662 = vadd.xlane.f32.xlu0 %v5891_v8  ;;  %7139 = vst [vmem:[#allocation22_spill] sm:$0xff] %v6239_v61  ;;  %v2019_v5 = vsel %vm1957_vm0, %v4570_v63, 0.0  ;;  %v2018_v8 = vsel %vm1957_vm0, %v4569_v21, 0.0  ;;  %2229 = vst [vmem:[#allocation2 + $0x78] sm:$0xff] %v6235_v15  ;;  %v4629_v63 = vunpack.c.l.bf16 %v4810_v23  ;;  %v1692_v21 = vld [vmem:[#allocation2 + $0x3c8] sm:$0xff] }
 0x174   : > { %7140 = vst [vmem:[#allocation23_spill] sm:$0xff] %v6245_v49  ;;  %2228 = vst [vmem:[#allocation2 + $0x70] sm:$0xff] %v6237_v62  ;;  %v6255_v48 = vadd.f32 %v2019_v5, %v1632_v37  ;;  %v6257_v55 = vadd.f32 %v2018_v8, %v1631_v17  ;;  %v4689_v17 = vunpack.c.l.bf16 %v4825_v59  ;;  %v4542_v37 = vunpack.c.h.bf16 %v4788_v2  ;;  %v1617_v59 = vld [vmem:[#allocation2 + $0x170] sm:$0xff] }
 0x175   : > { %2245 = vst [vmem:[#allocation2 + $0xf8] sm:$0xff] %v6239_v61  ;;  %2244 = vst [vmem:[#allocation2 + $0xf0] sm:$0xff] %v6245_v49  ;;  %v2049_v19 = vsel %vm1957_vm0, %v4630_v38, 0.0  ;;  %v2048_v23 = vsel %vm1957_vm0, %v4629_v63, 0.0  ;;  %v4541_v5 = vunpack.c.l.bf16 %v4788_v2  ;;  %v2079_v8 = vsel %vm1957_vm0, %v4690_v45, 0.0  ;;  %v1647_v45 = vld [vmem:[#allocation2 + $0x260] sm:$0xff] }
 0x176   : > { %7141 = vst [vmem:[#allocation24_spill] sm:$0xff] %v6255_v48  ;;  %7142 = vst [vmem:[#allocation25_spill] sm:$0xff] %v6257_v55  ;;  %v6277_v49 = vadd.f32 %v2079_v8, %v1692_v21  ;;  %v2005_v38 = vsel %vm1957_vm0, %v4542_v37, 0.0  ;;  %v4818_v37 = vld [vmem:[%s5493_s29 + $0x1a8] sm:$0xff]  }
 0x177   : > { %2548 = vadd.xlane.f32.xlu1 %v5903_v30  ;;  %2546 = vadd.xlane.f32.xlu0 %v5905_v33  ;;  %2275 = vst [vmem:[#allocation2 + $0x1e8] sm:$0xff] %v6255_v48  ;;  %2274 = vst [vmem:[#allocation2 + $0x1e0] sm:$0xff] %v6257_v55  ;;  %v6269_v30 = vadd.f32 %v2049_v19, %v1662_v40  ;;  %v6271_v33 = vadd.f32 %v2048_v23, %v1661_v56  ;;  %v2078_v55 = vsel %vm1957_vm0, %v4689_v17, 0.0  ;;  %v1618_v48 = vld [vmem:[#allocation2 + $0x178] sm:$0xff]  ;;  %v4803_v56 = vld [vmem:[%s5493_s29 + $0x130] sm:$0xff]  }
 0x178   : > { %v6279_v61 = vadd.f32 %v2078_v55, %v1691_v22  ;;  %v2004_v40 = vsel %vm1957_vm0, %v4541_v5, 0.0  ;;  %v6290_v63 = vadd.f32 %v2005_v38, %v1618_v48  ;;  %v4602_v2 = vunpack.c.h.bf16 %v4803_v56  ;;  %2335 = vst [vmem:[#allocation2 + $0x3c8] sm:$0xff] %v6277_v49  ;;  %v1678_v5 = vld [vmem:[#allocation2 + $0x358] sm:$0xff] }
 0x179   : > { %2305 = vst [vmem:[#allocation2 + $0x2d8] sm:$0xff] %v6269_v30  ;;  %2304 = vst [vmem:[#allocation2 + $0x2d0] sm:$0xff] %v6271_v33  ;;  %v6292_v55 = vadd.f32 %v2004_v40, %v1617_v59  ;;  %v4601_v21 = vunpack.c.l.bf16 %v4803_v56  ;;  %v4662_v19 = vunpack.c.h.bf16 %v4818_v37  ;;  %v4661_v23 = vunpack.c.l.bf16 %v4818_v37  ;;  %v1677_v59 = vld [vmem:[#allocation2 + $0x350] sm:$0xff] }
 0x17a   : > { %2334 = vst [vmem:[#allocation2 + $0x3c0] sm:$0xff] %v6279_v61  ;;  %2261 = vst [vmem:[#allocation2 + $0x178] sm:$0xff] %v6290_v63 }
 0x17b   : > { %2608 = vadd.xlane.f32.xlu1 %v5912_v42  ;;  %2606 = vadd.xlane.f32.xlu0 %v5914_v46  ;;  %2260 = vst [vmem:[#allocation2 + $0x170] sm:$0xff] %v6292_v55  ;;  %v1648_v42 = vld [vmem:[#allocation2 + $0x268] sm:$0xff]  ;;  %v2035_v46 = vsel %vm1957_vm0, %v4602_v2, 0.0  ;;  %v2034_v48 = vsel %vm1957_vm0, %v4601_v21, 0.0  ;;  %v2065_v8 = vsel %vm1957_vm0, %v4662_v19, 0.0  ;;  %v2064_v38 = vsel %vm1957_vm0, %v4661_v23, 0.0 }
 0x17c   : > { %v6302_v22 = vadd.f32 %v2035_v46, %v1648_v42  ;;  %v6304_v17 = vadd.f32 %v2034_v48, %v1647_v45  ;;  %v6315_v40 = vadd.f32 %v2065_v8, %v1678_v5  ;;  %v1634_v21 = vld [vmem:[#allocation2 + $0x1f8] sm:$0xff]  ;;  %v1633_v46 = vld [vmem:[#allocation2 + $0x1f0] sm:$0xff]  ;;  %v1664_v23 = vld [vmem:[#allocation2 + $0x2e8] sm:$0xff] }
 0x17d   : > { %v1663_v8 = vld [vmem:[#allocation2 + $0x2e0] sm:$0xff] }
 0x17e   : > { %2291 = vst [vmem:[#allocation2 + $0x268] sm:$0xff] %v6302_v22  ;;  %2290 = vst [vmem:[#allocation2 + $0x260] sm:$0xff] %v6304_v17 }
 0x17f   : > { %2668 = vadd.xlane.f32.xlu1 %v5926_v53  ;;  %2666 = vadd.xlane.f32.xlu0 %v5928_v54  ;;  %v6317_v53 = vadd.f32 %v2064_v38, %v1677_v59  ;;  %v4796_v54 = vld [vmem:[%s5493_s29 + $0xf8] sm:$0xff]   ;;  %2321 = vst [vmem:[#allocation2 + $0x358] sm:$0xff] %v6315_v40 }
 0x180   : > { %v4574_v56 = vunpack.c.h.bf16 %v4796_v54  ;;  %v4573_v2 = vunpack.c.l.bf16 %v4796_v54 }
 0x181   : > { %2320 = vst [vmem:[#allocation2 + $0x350] sm:$0xff] %v6317_v53 }
 0x182   : > { %v2021_v42 = vsel %vm1957_vm0, %v4574_v56, 0.0  ;;  %v2020_v45 = vsel %vm1957_vm0, %v4573_v2, 0.0  ;;  %v1694_v2 = vld [vmem:[#allocation2 + $0x3d8] sm:$0xff] }
 0x183   : > { %2696 = vadd.xlane.f32.xlu1 %v5937_v13  ;;  %2694 = vadd.xlane.f32.xlu0 %v5939_v24  ;;  %v6328_v48 = vadd.f32 %v2021_v42, %v1634_v21  ;;  %v6330_v13 = vadd.f32 %v2020_v45, %v1633_v46  ;;  %v4811_v24 = vld [vmem:[%s5493_s29 + $0x170] sm:$0xff]  }
 0x184   : > { %v4634_v37 = vunpack.c.h.bf16 %v4811_v24  ;;  %v4633_v19 = vunpack.c.l.bf16 %v4811_v24  ;;  %v1693_v42 = vld [vmem:[#allocation2 + $0x3d0] sm:$0xff] }
 0x185   : > { %2277 = vst [vmem:[#allocation2 + $0x1f8] sm:$0xff] %v6328_v48  ;;  %2276 = vst [vmem:[#allocation2 + $0x1f0] sm:$0xff] %v6330_v13 }
 0x186   : > { %v2051_v5 = vsel %vm1957_vm0, %v4634_v37, 0.0  ;;  %v2050_v59 = vsel %vm1957_vm0, %v4633_v19, 0.0  ;;  %v1650_v19 = vld [vmem:[#allocation2 + $0x278] sm:$0xff] }
 0x187   : > { %2488 = vadd.xlane.f32.xlu1 %v5951_v26  ;;  %2486 = vadd.xlane.f32.xlu0 %v5953_v27  ;;  %v6341_v38 = vadd.f32 %v2051_v5, %v1664_v23  ;;  %v6343_v26 = vadd.f32 %v2050_v59, %v1663_v8  ;;  %v4826_v27 = vld [vmem:[%s5493_s29 + $0x1e8] sm:$0xff]   ;;  %v1649_v5 = vld [vmem:[#allocation2 + $0x270] sm:$0xff] }
 0x188   : > { %v4694_v54 = vunpack.c.h.bf16 %v4826_v27  ;;  %v4693_v56 = vunpack.c.l.bf16 %v4826_v27 }
 0x189   : > { %2307 = vst [vmem:[#allocation2 + $0x2e8] sm:$0xff] %v6341_v38  ;;  %2306 = vst [vmem:[#allocation2 + $0x2e0] sm:$0xff] %v6343_v26 }
 0x18a   : > { %v2081_v21 = vsel %vm1957_vm0, %v4694_v54, 0.0  ;;  %v2080_v46 = vsel %vm1957_vm0, %v4693_v56, 0.0  ;;  %v1680_v56 = vld [vmem:[#allocation2 + $0x368] sm:$0xff] }
 0x18b   : > { %2520 = vadd.xlane.f32.xlu1 %v5960_v39  ;;  %2518 = vadd.xlane.f32.xlu0 %v5962_v31  ;;  %v6354_v45 = vadd.f32 %v2081_v21, %v1694_v2  ;;  %v6356_v39 = vadd.f32 %v2080_v46, %v1693_v42  ;;  %v4804_v31 = vld [vmem:[%s5493_s29 + $0x138] sm:$0xff]   ;;  %v1679_v21 = vld [vmem:[#allocation2 + $0x360] sm:$0xff] }
 0x18c   : > { %v4606_v24 = vunpack.c.h.bf16 %v4804_v31  ;;  %v4605_v37 = vunpack.c.l.bf16 %v4804_v31 }
 0x18d   : > { %2337 = vst [vmem:[#allocation2 + $0x3d8] sm:$0xff] %v6354_v45  ;;  %2336 = vst [vmem:[#allocation2 + $0x3d0] sm:$0xff] %v6356_v39 }
 0x18e   : > { %v2037_v23 = vsel %vm1957_vm0, %v4606_v24, 0.0  ;;  %v2036_v8 = vsel %vm1957_vm0, %v4605_v37, 0.0  ;;  %v1666_v37 = vld [vmem:[#allocation2 + $0x2f8] sm:$0xff] }
 0x18f   : > { %2580 = vadd.xlane.f32.xlu1 %v5972_v0  ;;  %2578 = vadd.xlane.f32.xlu0 %v5974_v1  ;;  %v6367_v59 = vadd.f32 %v2037_v23, %v1650_v19  ;;  %v6369_v0 = vadd.f32 %v2036_v8, %v1649_v5  ;;  %v4819_v1 = vld [vmem:[%s5493_s29 + $0x1b0] sm:$0xff]  }
 0x190   : > { %v4666_v27 = vunpack.c.h.bf16 %v4819_v1  ;;  %v4665_v54 = vunpack.c.l.bf16 %v4819_v1  ;;  %v1665_v23 = vld [vmem:[#allocation2 + $0x2f0] sm:$0xff] }
 0x191   : > { %2293 = vst [vmem:[#allocation2 + $0x278] sm:$0xff] %v6367_v59  ;;  %2292 = vst [vmem:[#allocation2 + $0x270] sm:$0xff] %v6369_v0 }
 0x192   : > { %v2067_v2 = vsel %vm1957_vm0, %v4666_v27, 0.0  ;;  %v2066_v42 = vsel %vm1957_vm0, %v4665_v54, 0.0  ;;  %v1696_v54 = vld [vmem:[#allocation2 + $0x3e8] sm:$0xff] }
 0x193   : > { %2640 = vadd.xlane.f32.xlu1 %v5983_v9  ;;  %2638 = vadd.xlane.f32.xlu0 %v5985_v14  ;;  %v6380_v46 = vadd.f32 %v2067_v2, %v1680_v56  ;;  %v6382_v9 = vadd.f32 %v2066_v42, %v1679_v21  ;;  %v4812_v14 = vld [vmem:[%s5493_s29 + $0x178] sm:$0xff]   ;;  %v1695_v2 = vld [vmem:[#allocation2 + $0x3e0] sm:$0xff] }
 0x194   : > { %v4638_v31 = vunpack.c.h.bf16 %v4812_v14  ;;  %v4637_v24 = vunpack.c.l.bf16 %v4812_v14 }
 0x195   : > { %2323 = vst [vmem:[#allocation2 + $0x368] sm:$0xff] %v6380_v46  ;;  %2322 = vst [vmem:[#allocation2 + $0x360] sm:$0xff] %v6382_v9 }
 0x196   : > { %v2053_v19 = vsel %vm1957_vm0, %v4638_v31, 0.0  ;;  %v2052_v5 = vsel %vm1957_vm0, %v4637_v24, 0.0  ;;  %v1682_v24 = vld [vmem:[#allocation2 + $0x378] sm:$0xff] }
 0x197   : > { %2700 = vadd.xlane.f32.xlu1 %v5998_v35  ;;  %2698 = vadd.xlane.f32.xlu0 %v6000_v36  ;;  %v6393_v8 = vadd.f32 %v2053_v19, %v1666_v37  ;;  %v6395_v35 = vadd.f32 %v2052_v5, %v1665_v23  ;;  %v4827_v36 = vld [vmem:[%s5493_s29 + $0x1f0] sm:$0xff]  }
 0x198   : > { %v4698_v1 = vunpack.c.h.bf16 %v4827_v36  ;;  %v4697_v27 = vunpack.c.l.bf16 %v4827_v36  ;;  %v1681_v19 = vld [vmem:[#allocation2 + $0x370] sm:$0xff] }
 0x199   : > { %2309 = vst [vmem:[#allocation2 + $0x2f8] sm:$0xff] %v6393_v8  ;;  %2308 = vst [vmem:[#allocation2 + $0x2f0] sm:$0xff] %v6395_v35 }
 0x19a   : > { %v2083_v56 = vsel %vm1957_vm0, %v4698_v1, 0.0  ;;  %v2082_v21 = vsel %vm1957_vm0, %v4697_v27, 0.0  ;;  %v7144_v1 = vld [vmem:[#allocation9_spill] sm:$0xff] }
 0x19b   : > { %2552 = vadd.xlane.f32.xlu1 %v6008_v44  ;;  %2550 = vadd.xlane.f32.xlu0 %v6010_v57  ;;  %v6406_v42 = vadd.f32 %v2083_v56, %v1696_v54  ;;  %v6408_v44 = vadd.f32 %v2082_v21, %v1695_v2  ;;  %v4820_v57 = vld [vmem:[%s5493_s29 + $0x1b8] sm:$0xff]   ;;  %v1697_v21 = vld [vmem:[#allocation2 + $0x3f0] sm:$0xff] }
 0x19c   : > { %v4670_v14 = vunpack.c.h.bf16 %v4820_v57  ;;  %v4669_v31 = vunpack.c.l.bf16 %v4820_v57  ;;  %v1698_v56 = vld [vmem:[#allocation2 + $0x3f8] sm:$0xff] }
 0x19d   : > { %2339 = vst [vmem:[#allocation2 + $0x3e8] sm:$0xff] %v6406_v42  ;;  %2338 = vst [vmem:[#allocation2 + $0x3e0] sm:$0xff] %v6408_v44 }
 0x19e   : > { %v2069_v37 = vsel %vm1957_vm0, %v4670_v14, 0.0  ;;  %v2068_v23 = vsel %vm1957_vm0, %v4669_v31, 0.0 }
 0x19f   : > { %2612 = vadd.xlane.f32.xlu1 %v6021_v60  ;;  %2610 = vadd.xlane.f32.xlu0 %v6023_v3  ;;  %v6419_v5 = vadd.f32 %v2069_v37, %v1682_v24  ;;  %v6421_v36 = vadd.f32 %v2068_v23, %v1681_v19  ;;  %v4828_v60 = vld [vmem:[%s5493_s29 + $0x1f8] sm:$0xff]   ;;  %v7143_v3 = vld [vmem:[#allocation8_spill] sm:$0xff]  ;;  %v7146_v24 = vld [vmem:[#allocation10_spill] sm:$0xff] }
 0x1a0   : > { %v4702_v27 = vunpack.c.h.bf16 %v4828_v60  ;;  %v4701_v54 = vunpack.c.l.bf16 %v4828_v60  ;;  %v7147_v37 = vld [vmem:[#allocation11_spill] sm:$0xff] }
 0x1a1   : > { %2325 = vst [vmem:[#allocation2 + $0x378] sm:$0xff] %v6419_v5  ;;  %2324 = vst [vmem:[#allocation2 + $0x370] sm:$0xff] %v6421_v36 }
 0x1a2   : > { %v2085_v2 = vsel %vm1957_vm0, %v4702_v27, 0.0  ;;  %v2084_v57 = vsel %vm1957_vm0, %v4701_v54, 0.0  ;;  %v3151_v27 = vadd.s32 4294967272, %v5695_v7  ;;  %vm3240_vm0 = vcmask 1048512  }
 0x1a3   : > { %2672 = vadd.xlane.f32.xlu1 %v7143_v3  ;;  %2670 = vadd.xlane.f32.xlu0 %v7144_v1  ;;  %v6432_v14 = vadd.f32 %v2085_v2, %v1698_v56  ;;  %v6434_v31 = vadd.f32 %v2084_v57, %v1697_v21  ;;  %v3144_v1 = vadd.s32 4294967280, %v5695_v7 }
 0x1a5   : > { %7145 = vst [vmem:[#allocation8_spill] sm:$0xff] %v6434_v31  ;;  %2341 = vst [vmem:[#allocation2 + $0x3f8] sm:$0xff] %v6432_v14 }
 0x1a6   : > { %2340 = vst [vmem:[#allocation2 + $0x3f0] sm:$0xff] %v6434_v31  ;;  %v7156_v31 = vld [vmem:[#allocation19_spill] sm:$0xff] }
 0x1a7   : > { %2492 = vadd.xlane.f32.xlu1 %v6047_v51  ;;  %2490 = vadd.xlane.f32.xlu0 %v6049_v52 }
 0x1ab   : > { %2524 = vadd.xlane.f32.xlu1 %v6055_v43  ;;  %2522 = vadd.xlane.f32.xlu0 %v6057_v20  ;;  %v7148_v20 = vlaneseq }
 0x1ad   : > { %v6451_v19 = vshrl.u32 %v7148_v20, 7 }
 0x1af   : > { %2584 = vadd.xlane.f32.xlu1 %v6065_v16  ;;  %2582 = vadd.xlane.f32.xlu0 %v6067_v29  ;;  %v3137_v16 = vadd.s32 4294967288, %v5695_v7  ;;  %v6460_v54 = vsub.s32 %v5695_v7, %v6451_v19 }
 0x1b1   : > { %v6463_v56 = vsub.s32 %v3137_v16, %v6451_v19 }
 0x1b3   : > { %2644 = vadd.xlane.f32.xlu1 %v6076_v32  ;;  %2642 = vadd.xlane.f32.xlu0 %v6078_v41 }
 0x1b7   : > { %2704 = vadd.xlane.f32.xlu1 %v6090_v47  ;;  %2702 = vadd.xlane.f32.xlu0 %v6092_v11  ;;  %v7149_v11 = vld [vmem:[#allocation12_spill] sm:$0xff] }
 0x1b8   : > { %v2503_v51 = vpop.xlane.xlu1 %2502  ;;  %v2471_v52 = vpop.xlane.xlu0 %2470 }
 0x1b9   : > { %v2742_v43 = vmul.f32 0.0044444446, %v2503_v51  ;;  %v2726_v23 = vmul.f32 0.0044444446, %v2471_v52 }
 0x1bb   : > { %2556 = vadd.xlane.f32.xlu1 %v7146_v24  ;;  %2554 = vadd.xlane.f32.xlu0 %v7147_v37 }
 0x1bc   : > { %v2505_v29 = vpop.xlane.xlu1 %2504  ;;  %v2473_v32 = vpop.xlane.xlu0 %2472 }
 0x1bd   : > { %v2743_v41 = vmul.f32 0.0044444446, %v2505_v29  ;;  %v2727_v60 = vmul.f32 0.0044444446, %v2473_v32 }
 0x1bf   : > { %v2862_v47 = vpack.c.bf16 %v2743_v41, %v2742_v43  ;;  %v2854_v3 = vpack.c.bf16 %v2727_v60, %v2726_v23  ;;  %2616 = vadd.xlane.f32.xlu1 %v7149_v11  ;;  %2614 = vadd.xlane.f32.xlu0 %v6118_v34  ;;  %v6466_v34 = vsub.s32 %v3144_v1, %v6451_v19 }
 0x1c0   : > { %v2477_v2 = vpop.xlane.xlu1 %2476  ;;  %v2475_v21 = vpop.xlane.xlu0 %2474  ;;  %v6469_v43 = vsub.s32 %v3151_v27, %v6451_v19 }
 0x1c1   : > { %v3005_v57 = vunpack.c.l.b16 %v2854_v3  ;;  %v3006_v51 = vunpack.c.h.b16 %v2854_v3  ;;  %v2729_v52 = vmul.f32 0.0044444446, %v2477_v2  ;;  %v2728_v24 = vmul.f32 0.0044444446, %v2475_v21 }
 0x1c2   : > { %v3021_v37 = vunpack.c.l.b16 %v2862_v47  ;;  %v3022_v20 = vunpack.c.h.b16 %v2862_v47  ;;  %v7150_v47 = vld [vmem:[#allocation13_spill] sm:$0xff] }
 0x1c3   : > { %2676 = vadd.xlane.f32.xlu1 %v6125_v50  ;;  %v3136_v29 = vrot.slane %v3005_v57, %v6460_v54  ;;  %v3141_v16 = vrot.slane %v3006_v51, %v6463_v56  ;;  %v2855_v32 = vpack.c.bf16 %v2729_v52, %v2728_v24  ;;  %2674 = vadd.xlane.f32.xlu0 %v6133_v18  ;;  %v7151_v51 = vld [vmem:[#allocation14_spill] sm:$0xff] }
 0x1c4   : > { %v2509_v23 = vpop.xlane.xlu1 %2508  ;;  %v2507_v41 = vpop.xlane.xlu0 %2506  ;;  %v3245_v27 = vrot.slane %v3021_v37, %v6460_v54  ;;  %v3249_v2 = vrot.slane %v3022_v20, %v6463_v56 }
 0x1c5   : > { %v2745_v60 = vmul.f32 0.0044444446, %v2509_v23  ;;  %v2744_v3 = vmul.f32 0.0044444446, %v2507_v41  ;;  %v3007_v11 = vunpack.c.l.b16 %v2855_v32  ;;  %v3008_v1 = vunpack.c.h.b16 %v2855_v32 }
 0x1c6   : > { %v3143_v21 = vsel %vm3142_vm1, %v3141_v16, %v3136_v29 }
 0x1c7   : > { %v2863_v50 = vpack.c.bf16 %v2745_v60, %v2744_v3  ;;  %2496 = vadd.xlane.f32.xlu1 %v7150_v47  ;;  %v3148_v18 = vrot.slane %v3007_v11, %v6466_v34  ;;  %v3155_v57 = vrot.slane %v3008_v1, %v6469_v43  ;;  %2494 = vadd.xlane.f32.xlu0 %v7151_v51  ;;  %v7152_v11 = vld [vmem:[#allocation15_spill] sm:$0xff]  ;;  %v7153_v47 = vld [vmem:[#allocation16_spill] sm:$0xff] }
 0x1c8   : > { %v2537_v52 = vpop.xlane.xlu1 %2536  ;;  %v2535_v24 = vpop.xlane.xlu0 %2534  ;;  %v3250_v1 = vsel %vm3142_vm1, %v3249_v2, %v3245_v27 }
 0x1c9   : > { %v3023_v32 = vunpack.c.l.b16 %v2863_v50  ;;  %v3024_v23 = vunpack.c.h.b16 %v2863_v50  ;;  %v2759_v37 = vmul.f32 0.0044444446, %v2537_v52  ;;  %v2758_v41 = vmul.f32 0.0044444446, %v2535_v24 }
 0x1ca   : > { %v3150_v60 = vsel %vm3149_vm2, %v3148_v18, %v3143_v21 }
 0x1cb   : > { %v6484_v3 = vsel %vm3156_vm3, %v3155_v57, %v3150_v60  ;;  %v3254_v20 = vrot.slane %v3023_v32, %v6466_v34  ;;  %v3259_v29 = vrot.slane %v3024_v23, %v6469_v43  ;;  %v2870_v16 = vpack.c.bf16 %v2759_v37, %v2758_v41  ;;  %2528 = vadd.xlane.f32.xlu1 %v7152_v11  ;;  %v7154_v60 = vld [vmem:[#allocation17_spill] sm:$0xff]  ;;  %v7155_v37 = vld [vmem:[#allocation18_spill] sm:$0xff] }
 0x1cc   : > { %2526 = vadd.xlane.f32.xlu0 %v7153_v47  ;;  %v2541_v51 = vpop.xlane.xlu1 %2540  ;;  %v2539_v50 = vpop.xlane.xlu0 %2538 }
 0x1cd   : > { %v3255_v52 = vsel %vm3149_vm2, %v3254_v20, %v3250_v1  ;;  %v3037_v24 = vunpack.c.l.b16 %v2870_v16  ;;  %v3038_v21 = vunpack.c.h.b16 %v2870_v16  ;;  %v2761_v18 = vmul.f32 0.0044444446, %v2541_v51 }
 0x1ce   : > { %v6493_v57 = vsel %vm3156_vm3, %v3259_v29, %v3255_v52  ;;  %v2760_v32 = vmul.f32 0.0044444446, %v2539_v50  ;;  %v3158_v29 = vadd.s32 4294967264, %v5695_v7  ;;  %v3165_v50 = vadd.s32 4294967256, %v5695_v7 }
 0x1cf   : > { %2588 = vadd.xlane.f32.xlu1 %v7154_v60  ;;  %v3324_v2 = vrot.slane %v3037_v24, %v6460_v54  ;;  %v3328_v11 = vrot.slane %v3038_v21, %v6463_v56 }
 0x1d0   : > { %v2871_v23 = vpack.c.bf16 %v2761_v18, %v2760_v32  ;;  %2586 = vadd.xlane.f32.xlu0 %v7155_v37  ;;  %v2569_v41 = vpop.xlane.xlu1 %2568  ;;  %v2567_v27 = vpop.xlane.xlu0 %2566  ;;  %v7157_v32 = vld [vmem:[#allocation20_spill] sm:$0xff] }
 0x1d1   : > { %v2775_v47 = vmul.f32 0.0044444446, %v2569_v41  ;;  %v2774_v20 = vmul.f32 0.0044444446, %v2567_v27  ;;  %v3329_v21 = vsel %vm3142_vm1, %v3328_v11, %v3324_v2  ;;  %v6511_v27 = vsub.s32 %v3158_v29, %v6451_v19 }
 0x1d2   : > { %v3039_v1 = vunpack.c.l.b16 %v2871_v23  ;;  %v3040_v16 = vunpack.c.h.b16 %v2871_v23 }
 0x1d3   : > { %v2878_v51 = vpack.c.bf16 %v2775_v47, %v2774_v20  ;;  %2648 = vadd.xlane.f32.xlu1 %v7156_v31  ;;  %v6514_v47 = vsub.s32 %v3165_v50, %v6451_v19 }
 0x1d4   : > { %v3333_v52 = vrot.slane %v3039_v1, %v6466_v34  ;;  %v3338_v18 = vrot.slane %v3040_v16, %v6469_v43  ;;  %2646 = vadd.xlane.f32.xlu0 %v7157_v32  ;;  %v2481_v24 = vpop.xlane.xlu1 %2480  ;;  %v2479_v60 = vpop.xlane.xlu0 %2478 }
 0x1d5   : > { %v2731_v37 = vmul.f32 0.0044444446, %v2481_v24  ;;  %v2730_v41 = vmul.f32 0.0044444446, %v2479_v60  ;;  %v3053_v50 = vunpack.c.l.b16 %v2878_v51  ;;  %v3054_v24 = vunpack.c.h.b16 %v2878_v51 }
 0x1d6   : > { %v3334_v23 = vsel %vm3149_vm2, %v3333_v52, %v3329_v21 }
 0x1d7   : > { %v6508_v31 = vsel %vm3156_vm3, %v3338_v18, %v3334_v23  ;;  %v2856_v20 = vpack.c.bf16 %v2731_v37, %v2730_v41  ;;  %2708 = vadd.xlane.f32.xlu1 %v6187_v6  ;;  %v3407_v51 = vrot.slane %v3054_v24, %v6463_v56 }
 0x1d8   : > { %2706 = vadd.xlane.f32.xlu0 %v6189_v12  ;;  %v2513_v1 = vpop.xlane.xlu1 %2512  ;;  %v2511_v2 = vpop.xlane.xlu0 %2510 }
 0x1d9   : > { %v3009_v11 = vunpack.c.l.b16 %v2856_v20  ;;  %v3010_v16 = vunpack.c.h.b16 %v2856_v20  ;;  %v2747_v32 = vmul.f32 0.0044444446, %v2513_v1  ;;  %v2746_v52 = vmul.f32 0.0044444446, %v2511_v2 }
 0x1db   : > { %v3162_v18 = vrot.slane %v3009_v11, %v6511_v27  ;;  %v3169_v29 = vrot.slane %v3010_v16, %v6514_v47  ;;  %2560 = vadd.xlane.f32.xlu1 %v6197_v28  ;;  %v2864_v60 = vpack.c.bf16 %v2747_v32, %v2746_v52  ;;  %v3403_v28 = vrot.slane %v3053_v50, %v6460_v54  ;;  %v7158_v16 = vld [vmem:[#allocation21_spill] sm:$0xff] }
 0x1dc   : > { %2558 = vadd.xlane.f32.xlu0 %v6199_v25  ;;  %v2573_v6 = vpop.xlane.xlu1 %2572  ;;  %v2571_v12 = vpop.xlane.xlu0 %2570 }
 0x1dd   : > { %v3164_v21 = vsel %vm3163_vm4, %v3162_v18, %v6484_v3  ;;  %v2777_v37 = vmul.f32 0.0044444446, %v2573_v6  ;;  %v2776_v41 = vmul.f32 0.0044444446, %v2571_v12  ;;  %v3025_v20 = vunpack.c.l.b16 %v2864_v60 }
 0x1de   : > { %v6525_v23 = vsel %vm3170_vm5, %v3169_v29, %v3164_v21  ;;  %v3026_v1 = vunpack.c.h.b16 %v2864_v60  ;;  %v3408_v21 = vsel %vm3142_vm1, %v3407_v51, %v3403_v28 }
 0x1df   : > { %v2879_v2 = vpack.c.bf16 %v2777_v37, %v2776_v41  ;;  %2620 = vadd.xlane.f32.xlu1 %v6210_v4  ;;  %v3264_v25 = vrot.slane %v3025_v20, %v6511_v27 }
 0x1e0   : > { %v3269_v11 = vrot.slane %v3026_v1, %v6514_v47  ;;  %2618 = vadd.xlane.f32.xlu0 %v7158_v16  ;;  %v2601_v3 = vpop.xlane.xlu1 %2600  ;;  %v2599_v32 = vpop.xlane.xlu0 %2598 }
 0x1e1   : > { %v3055_v52 = vunpack.c.l.b16 %v2879_v2  ;;  %v3056_v18 = vunpack.c.h.b16 %v2879_v2  ;;  %v2791_v29 = vmul.f32 0.0044444446, %v2601_v3  ;;  %v2790_v6 = vmul.f32 0.0044444446, %v2599_v32 }
 0x1e2   : > { %v3265_v60 = vsel %vm3163_vm4, %v3264_v25, %v6493_v57 }
 0x1e3   : > { %v6536_v4 = vsel %vm3170_vm5, %v3269_v11, %v3265_v60  ;;  %v3412_v50 = vrot.slane %v3055_v52, %v6466_v34  ;;  %v3417_v24 = vrot.slane %v3056_v18, %v6469_v43  ;;  %v2886_v12 = vpack.c.bf16 %v2791_v29, %v2790_v6  ;;  %2680 = vadd.xlane.f32.xlu1 %v6218_v58  ;;  %v7159_v18 = vld [vmem:[#allocation22_spill] sm:$0xff] }
 0x1e4   : > { %2678 = vadd.xlane.f32.xlu0 %v6225_v10  ;;  %v2545_v37 = vpop.xlane.xlu1 %2544  ;;  %v2543_v41 = vpop.xlane.xlu0 %2542 }
 0x1e5   : > { %v3413_v20 = vsel %vm3149_vm2, %v3412_v50, %v3408_v21  ;;  %v2763_v1 = vmul.f32 0.0044444446, %v2545_v37  ;;  %v2762_v2 = vmul.f32 0.0044444446, %v2543_v41  ;;  %v3069_v25 = vunpack.c.l.b16 %v2886_v12  ;;  %v7160_v50 = vld [vmem:[#allocation23_spill] sm:$0xff] }
 0x1e6   : > { %v6545_v57 = vsel %vm3156_vm3, %v3417_v24, %v3413_v20  ;;  %v3070_v11 = vunpack.c.h.b16 %v2886_v12 }
 0x1e7   : > { %2500 = vadd.xlane.f32.xlu1 %v6235_v15  ;;  %v2872_v16 = vpack.c.bf16 %v2763_v1, %v2762_v2  ;;  %v3482_v29 = vrot.slane %v3069_v25, %v6460_v54 }
 0x1e8   : > { %2498 = vadd.xlane.f32.xlu0 %v6237_v62  ;;  %v2605_v58 = vpop.xlane.xlu1 %2604  ;;  %v2603_v28 = vpop.xlane.xlu0 %2602  ;;  %v3486_v6 = vrot.slane %v3070_v11, %v6463_v56 }
 0x1e9   : > { %v2793_v51 = vmul.f32 0.0044444446, %v2605_v58  ;;  %v2792_v10 = vmul.f32 0.0044444446, %v2603_v28  ;;  %v3041_v3 = vunpack.c.l.b16 %v2872_v16  ;;  %v3042_v32 = vunpack.c.h.b16 %v2872_v16  ;;  %v7161_v16 = vld [vmem:[#allocation24_spill] sm:$0xff]  ;;  %v7162_v28 = vld [vmem:[#allocation25_spill] sm:$0xff] }
 0x1ea   : > { %v3487_v58 = vsel %vm3142_vm1, %v3486_v6, %v3482_v29 }
 0x1eb   : > { %v2887_v52 = vpack.c.bf16 %v2793_v51, %v2792_v10  ;;  %2532 = vadd.xlane.f32.xlu1 %v7159_v18  ;;  %v3343_v15 = vrot.slane %v3041_v3, %v6511_v27  ;;  %v3348_v60 = vrot.slane %v3042_v32, %v6514_v47  ;;  %v3172_v10 = vadd.s32 4294967248, %v5695_v7 }
 0x1ec   : > { %2530 = vadd.xlane.f32.xlu0 %v7160_v50  ;;  %v2633_v62 = vpop.xlane.xlu1 %2632  ;;  %v2631_v24 = vpop.xlane.xlu0 %2630  ;;  %v3179_v3 = vadd.s32 4294967240, %v5695_v7 }
 0x1ed   : > { %v3071_v12 = vunpack.c.l.b16 %v2887_v52  ;;  %v3072_v21 = vunpack.c.h.b16 %v2887_v52  ;;  %v2807_v37 = vmul.f32 0.0044444446, %v2633_v62  ;;  %v2806_v41 = vmul.f32 0.0044444446, %v2631_v24 }
 0x1ee   : > { %v3344_v20 = vsel %vm3163_vm4, %v3343_v15, %v6508_v31  ;;  %v6576_v29 = vsub.s32 %v3179_v3, %v6451_v19 }
 0x1ef   : > { %v6558_v1 = vsel %vm3170_vm5, %v3348_v60, %v3344_v20  ;;  %v3491_v2 = vrot.slane %v3071_v12, %v6466_v34  ;;  %v3496_v25 = vrot.slane %v3072_v21, %v6469_v43  ;;  %v2894_v11 = vpack.c.bf16 %v2807_v37, %v2806_v41  ;;  %2592 = vadd.xlane.f32.xlu1 %v7161_v16 }
 0x1f0   : > { %2590 = vadd.xlane.f32.xlu0 %v7162_v28  ;;  %v2485_v51 = vpop.xlane.xlu1 %2484  ;;  %v2483_v31 = vpop.xlane.xlu0 %2482  ;;  %v6573_v60 = vsub.s32 %v3172_v10, %v6451_v19 }
 0x1f1   : > { %v3492_v32 = vsel %vm3149_vm2, %v3491_v2, %v3487_v58  ;;  %v2733_v52 = vmul.f32 0.0044444446, %v2485_v51  ;;  %v2732_v15 = vmul.f32 0.0044444446, %v2483_v31 }
 0x1f2   : > { %v6569_v18 = vsel %vm3156_vm3, %v3496_v25, %v3492_v32  ;;  %v3086_v32 = vunpack.c.h.b16 %v2894_v11 }
 0x1f3   : > { %2652 = vadd.xlane.f32.xlu1 %v6269_v30  ;;  %v2857_v6 = vpack.c.bf16 %v2733_v52, %v2732_v15 }
 0x1f4   : > { %2650 = vadd.xlane.f32.xlu0 %v6271_v33  ;;  %v2517_v50 = vpop.xlane.xlu1 %2516  ;;  %v2515_v62 = vpop.xlane.xlu0 %2514 }
 0x1f5   : > { %v2749_v24 = vmul.f32 0.0044444446, %v2517_v50  ;;  %v2748_v12 = vmul.f32 0.0044444446, %v2515_v62  ;;  %v3011_v21 = vunpack.c.l.b16 %v2857_v6  ;;  %v3012_v37 = vunpack.c.h.b16 %v2857_v6 }
 0x1f7   : > { %v2865_v41 = vpack.c.bf16 %v2749_v24, %v2748_v12  ;;  %2712 = vadd.xlane.f32.xlu1 %v6277_v49  ;;  %v3176_v30 = vrot.slane %v3011_v21, %v6573_v60  ;;  %v3183_v20 = vrot.slane %v3012_v37, %v6576_v29 }
 0x1f8   : > { %2710 = vadd.xlane.f32.xlu0 %v6279_v61  ;;  %v2577_v2 = vpop.xlane.xlu1 %2576  ;;  %v2575_v25 = vpop.xlane.xlu0 %2574  ;;  %v3085_v61 = vunpack.c.l.b16 %v2894_v11 }
 0x1f9   : > { %v3027_v33 = vunpack.c.l.b16 %v2865_v41  ;;  %v3028_v16 = vunpack.c.h.b16 %v2865_v41  ;;  %v2779_v58 = vmul.f32 0.0044444446, %v2577_v2  ;;  %v2778_v28 = vmul.f32 0.0044444446, %v2575_v25 }
 0x1fa   : > { %v3178_v51 = vsel %vm3177_vm6, %v3176_v30, %v6525_v23  ;;  %v3565_v41 = vrot.slane %v3086_v32, %v6463_v56 }
 0x1fb   : > { %v6586_v10 = vsel %vm3184_vm7, %v3183_v20, %v3178_v51  ;;  %v3274_v49 = vrot.slane %v3027_v33, %v6573_v60  ;;  %v3279_v3 = vrot.slane %v3028_v16, %v6576_v29  ;;  %v2880_v31 = vpack.c.bf16 %v2779_v58, %v2778_v28  ;;  %2564 = vadd.xlane.f32.xlu1 %v6290_v63 }
 0x1fc   : > { %2562 = vadd.xlane.f32.xlu0 %v6292_v55  ;;  %v2637_v52 = vpop.xlane.xlu1 %2636  ;;  %v2635_v15 = vpop.xlane.xlu0 %2634  ;;  %v3561_v55 = vrot.slane %v3085_v61, %v6460_v54 }
 0x1fd   : > { %v3275_v6 = vsel %vm3177_vm6, %v3274_v49, %v6536_v4  ;;  %v3057_v23 = vunpack.c.l.b16 %v2880_v31  ;;  %v3058_v50 = vunpack.c.h.b16 %v2880_v31  ;;  %v2809_v62 = vmul.f32 0.0044444446, %v2637_v52 }
 0x1fe   : > { %v6595_v24 = vsel %vm3184_vm7, %v3279_v3, %v3275_v6  ;;  %v2808_v12 = vmul.f32 0.0044444446, %v2635_v15 }
 0x1ff   : > { %v3422_v21 = vrot.slane %v3057_v23, %v6511_v27  ;;  %v3427_v63 = vrot.slane %v3058_v50, %v6514_v47  ;;  %2624 = vadd.xlane.f32.xlu1 %v6302_v22 }
 0x200   : > { %v2895_v11 = vpack.c.bf16 %v2809_v62, %v2808_v12  ;;  %2622 = vadd.xlane.f32.xlu0 %v6304_v17  ;;  %v2665_v37 = vpop.xlane.xlu1 %2664  ;;  %v2663_v4 = vpop.xlane.xlu0 %2662 }
 0x201   : > { %v3423_v30 = vsel %vm3163_vm4, %v3422_v21, %v6545_v57  ;;  %v2823_v20 = vmul.f32 0.0044444446, %v2665_v37  ;;  %v2822_v2 = vmul.f32 0.0044444446, %v2663_v4  ;;  %v3566_v57 = vsel %vm3142_vm1, %v3565_v41, %v3561_v55 }
 0x202   : > { %v6606_v25 = vsel %vm3170_vm5, %v3427_v63, %v3423_v30  ;;  %v3087_v33 = vunpack.c.l.b16 %v2895_v11  ;;  %v3088_v16 = vunpack.c.h.b16 %v2895_v11 }
 0x203   : > { %v2902_v22 = vpack.c.bf16 %v2823_v20, %v2822_v2  ;;  %2684 = vadd.xlane.f32.xlu1 %v6315_v40 }
 0x204   : > { %v3570_v58 = vrot.slane %v3087_v33, %v6466_v34  ;;  %v3575_v17 = vrot.slane %v3088_v16, %v6469_v43  ;;  %2682 = vadd.xlane.f32.xlu0 %v6317_v53  ;;  %v2549_v28 = vpop.xlane.xlu1 %2548  ;;  %v2547_v51 = vpop.xlane.xlu0 %2546 }
 0x205   : > { %v2765_v49 = vmul.f32 0.0044444446, %v2549_v28  ;;  %v2764_v3 = vmul.f32 0.0044444446, %v2547_v51  ;;  %v3101_v12 = vunpack.c.l.b16 %v2902_v22  ;;  %v3102_v21 = vunpack.c.h.b16 %v2902_v22 }
 0x206   : > { %v3571_v31 = vsel %vm3149_vm2, %v3570_v58, %v3566_v57 }
 0x207   : > { %v6615_v61 = vsel %vm3156_vm3, %v3575_v17, %v3571_v31  ;;  %v2873_v32 = vpack.c.bf16 %v2765_v49, %v2764_v3  ;;  %2596 = vadd.xlane.f32.xlu1 %v6328_v48  ;;  %v3644_v2 = vrot.slane %v3102_v21, %v6463_v56 }
 0x208   : > { %2594 = vadd.xlane.f32.xlu0 %v6330_v13  ;;  %v2609_v40 = vpop.xlane.xlu1 %2608  ;;  %v2607_v52 = vpop.xlane.xlu0 %2606 }
 0x209   : > { %v3043_v15 = vunpack.c.l.b16 %v2873_v32  ;;  %v3044_v53 = vunpack.c.h.b16 %v2873_v32  ;;  %v2795_v6 = vmul.f32 0.0044444446, %v2609_v40  ;;  %v2794_v23 = vmul.f32 0.0044444446, %v2607_v52 }
 0x20a   : > { %v3186_v32 = vadd.s32 4294967232, %v5695_v7 }
 0x20b   : > { %v3353_v50 = vrot.slane %v3043_v15, %v6573_v60  ;;  %v3358_v62 = vrot.slane %v3044_v53, %v6576_v29  ;;  %2656 = vadd.xlane.f32.xlu1 %v6341_v38  ;;  %v2888_v63 = vpack.c.bf16 %v2795_v6, %v2794_v23  ;;  %v3640_v38 = vrot.slane %v3101_v12, %v6460_v54 }
 0x20c   : > { %2654 = vadd.xlane.f32.xlu0 %v6343_v26  ;;  %v2669_v48 = vpop.xlane.xlu1 %2668  ;;  %v2667_v55 = vpop.xlane.xlu0 %2666 }
 0x20d   : > { %v3354_v13 = vsel %vm3177_vm6, %v3353_v50, %v6558_v1  ;;  %v2825_v11 = vmul.f32 0.0044444446, %v2669_v48  ;;  %v2824_v37 = vmul.f32 0.0044444446, %v2667_v55  ;;  %v3073_v41 = vunpack.c.l.b16 %v2888_v63 }
 0x20e   : > { %v6626_v4 = vsel %vm3184_vm7, %v3358_v62, %v3354_v13  ;;  %v3074_v30 = vunpack.c.h.b16 %v2888_v63 }
 0x20f   : > { %v2903_v20 = vpack.c.bf16 %v2825_v11, %v2824_v37  ;;  %2716 = vadd.xlane.f32.xlu1 %v6354_v45  ;;  %v3501_v26 = vrot.slane %v3073_v41, %v6511_v27 }
 0x210   : > { %v3506_v33 = vrot.slane %v3074_v30, %v6514_v47  ;;  %2714 = vadd.xlane.f32.xlu0 %v6356_v39  ;;  %v2697_v1 = vpop.xlane.xlu1 %2696  ;;  %v2695_v16 = vpop.xlane.xlu0 %2694  ;;  %v3645_v39 = vsel %vm3142_vm1, %v3644_v2, %v3640_v38 }
 0x211   : > { %v3103_v22 = vunpack.c.l.b16 %v2903_v20  ;;  %v3104_v58 = vunpack.c.h.b16 %v2903_v20  ;;  %v2839_v17 = vmul.f32 0.0044444446, %v2697_v1  ;;  %v2838_v28 = vmul.f32 0.0044444446, %v2695_v16 }
 0x212   : > { %v3502_v51 = vsel %vm3163_vm4, %v3501_v26, %v6569_v18  ;;  %v3193_v18 = vadd.s32 4294967224, %v5695_v7 }
 0x213   : > { %v6637_v45 = vsel %vm3170_vm5, %v3506_v33, %v3502_v51  ;;  %v3649_v57 = vrot.slane %v3103_v22, %v6466_v34  ;;  %v3654_v49 = vrot.slane %v3104_v58, %v6469_v43  ;;  %v6641_v3 = vpack.c.bf16 %v2839_v17, %v2838_v28  ;;  %2628 = vadd.xlane.f32.xlu1 %v6367_v59  ;;  %v4949_v51 = vld [vmem:[%s7095_s1] sm:$0xff]  }
 0x214   : > { %2626 = vadd.xlane.f32.xlu0 %v6369_v0  ;;  %v2489_v31 = vpop.xlane.xlu1 %2488  ;;  %v2487_v40 = vpop.xlane.xlu0 %2486  ;;  %v6654_v59 = vsub.s32 %v3186_v32, %v6451_v19  ;;  %v6657_v0 = vsub.s32 %v3193_v18, %v6451_v19 }
 0x215   : > { %v3650_v52 = vsel %vm3149_vm2, %v3649_v57, %v3645_v39  ;;  %v2735_v15 = vmul.f32 0.0044444446, %v2489_v31  ;;  %v2734_v6 = vmul.f32 0.0044444446, %v2487_v40 }
 0x216   : > { %v6650_v53 = vsel %vm3156_vm3, %v3654_v49, %v3650_v52  ;;  %v3118_v49 = vunpack.c.h.b16 %v6641_v3 }
 0x217   : > { %2688 = vadd.xlane.f32.xlu1 %v6380_v46  ;;  %v2858_v23 = vpack.c.bf16 %v2735_v15, %v2734_v6 }
 0x218   : > { %2686 = vadd.xlane.f32.xlu0 %v6382_v9  ;;  %v2521_v50 = vpop.xlane.xlu1 %2520  ;;  %v2519_v62 = vpop.xlane.xlu0 %2518 }
 0x219   : > { %v2751_v12 = vmul.f32 0.0044444446, %v2521_v50  ;;  %v2750_v21 = vmul.f32 0.0044444446, %v2519_v62  ;;  %v3013_v63 = vunpack.c.l.b16 %v2858_v23  ;;  %v3014_v48 = vunpack.c.h.b16 %v2858_v23 }
 0x21b   : > { %v2866_v55 = vpack.c.bf16 %v2751_v12, %v2750_v21  ;;  %2660 = vadd.xlane.f32.xlu1 %v6393_v8  ;;  %v3190_v46 = vrot.slane %v3013_v63, %v6654_v59  ;;  %v3197_v13 = vrot.slane %v3014_v48, %v6657_v0  ;;  %v7163_v12 = vld [vmem:[#allocation8_spill] sm:$0xff] }
 0x21c   : > { %2658 = vadd.xlane.f32.xlu0 %v6395_v35  ;;  %v2581_v11 = vpop.xlane.xlu1 %2580  ;;  %v2579_v37 = vpop.xlane.xlu0 %2578 }
 0x21d   : > { %v3029_v9 = vunpack.c.l.b16 %v2866_v55  ;;  %v3030_v41 = vunpack.c.h.b16 %v2866_v55  ;;  %v2781_v30 = vmul.f32 0.0044444446, %v2581_v11  ;;  %v2780_v20 = vmul.f32 0.0044444446, %v2579_v37 }
 0x21e   : > { %v3192_v38 = vsel %vm3191_vm8, %v3190_v46, %v6586_v10 }
 0x21f   : > { %v6667_v2 = vsel %vm3198_vm9, %v3197_v13, %v3192_v38  ;;  %v3284_v8 = vrot.slane %v3029_v9, %v6654_v59  ;;  %v3289_v26 = vrot.slane %v3030_v41, %v6657_v0  ;;  %v2881_v33 = vpack.c.bf16 %v2781_v30, %v2780_v20  ;;  %2720 = vadd.xlane.f32.xlu1 %v6406_v42 }
 0x220   : > { %2718 = vadd.xlane.f32.xlu0 %v6408_v44  ;;  %v2641_v35 = vpop.xlane.xlu1 %2640  ;;  %v2639_v1 = vpop.xlane.xlu0 %2638  ;;  %v3117_v42 = vunpack.c.l.b16 %v6641_v3  ;;  %v4950_v3 = vld [vmem:[%s7095_s1 + $0x8] sm:$0xff]  }
 0x221   : > { %v3285_v16 = vsel %vm3191_vm8, %v3284_v8, %v6595_v24  ;;  %v3059_v22 = vunpack.c.l.b16 %v2881_v33  ;;  %v3060_v58 = vunpack.c.h.b16 %v2881_v33  ;;  %v2811_v10 = vmul.f32 0.0044444446, %v2641_v35 }
 0x222   : > { %v6676_v17 = vsel %vm3198_vm9, %v3289_v26, %v3285_v16  ;;  %v2810_v28 = vmul.f32 0.0044444446, %v2639_v1  ;;  %v5094_v24 = vmov 0.0  }
 0x223   : > { %v3432_v44 = vrot.slane %v3059_v22, %v6573_v60  ;;  %v3437_v57 = vrot.slane %v3060_v58, %v6576_v29  ;;  %2692 = vadd.xlane.f32.xlu1 %v6419_v5  ;;  %4838 = vmatprep.subr.bf16.mxu0 %v5094_v24 }
 0x224   : > { %v2896_v39 = vpack.c.bf16 %v2811_v10, %v2810_v28  ;;  %2690 = vadd.xlane.f32.xlu0 %v6421_v36  ;;  %v2701_v31 = vpop.xlane.xlu1 %2700  ;;  %v2699_v32 = vpop.xlane.xlu0 %2698  ;;  %4839 = vmatpush3.bf16.msra.mxu0 %v4949_v51  ;;  %v3719_v36 = vrot.slane %v3117_v42, %v6460_v54  ;;  %v4951_v54 = vld [vmem:[%s7095_s1 + $0x10] sm:$0xff]   ;;  %v3200_v42 = vadd.s32 4294967216, %v5695_v7 }
 0x225   : > { %v3433_v18 = vsel %vm3177_vm6, %v3432_v44, %v6606_v25  ;;  %v2841_v40 = vmul.f32 0.0044444446, %v2701_v31  ;;  %v2840_v52 = vmul.f32 0.0044444446, %v2699_v32  ;;  %4840 = vmatprep.subr.bf16.mxu0 %v5094_v24  ;;  %v3723_v25 = vrot.slane %v3118_v49, %v6463_v56  ;;  %v4953_v31 = vld [vmem:[%s7095_s1 + $0x20] sm:$0xff]   ;;  %4854 = vmatprep.mubr.msk.bf16.mxu0 %vm5095_vm12, %v5094_v24 }
 0x226   : > { %v6692_v5 = vsel %vm3184_vm7, %v3437_v57, %v3433_v18  ;;  %v3089_v15 = vunpack.c.l.b16 %v2896_v39  ;;  %v3090_v6 = vunpack.c.h.b16 %v2896_v39  ;;  %v3207_v39 = vadd.s32 4294967208, %v5695_v7 }
 0x227   : > { %v2911_v23 = vpack.c.bf16 %v2841_v40, %v2840_v52  ;;  %2724 = vadd.xlane.f32.xlu1 %v6432_v14  ;;  %v3724_v41 = vsel %vm3142_vm1, %v3723_v25, %v3719_v36  ;;  %v6742_v25 = vsub.s32 %v3200_v42, %v6451_v19  ;;  %vm3795_vm1 = vcmask 1041409  }
 0x228   : > { %v3580_v50 = vrot.slane %v3089_v15, %v6511_v27  ;;  %v3585_v62 = vrot.slane %v3090_v6, %v6514_v47  ;;  %2722 = vadd.xlane.f32.xlu0 %v7163_v12  ;;  %v2553_v21 = vpop.xlane.xlu1 %2552  ;;  %v2551_v63 = vpop.xlane.xlu0 %2550  ;;  %4841 = vmatpush3.bf16.msra.mxu0 %v4950_v3 }
 0x229   : > { %v3119_v48 = vunpack.c.l.b16 %v2911_v23  ;;  %v3120_v55 = vunpack.c.h.b16 %v2911_v23  ;;  %v2767_v46 = vmul.f32 0.0044444446, %v2553_v21  ;;  %v2766_v13 = vmul.f32 0.0044444446, %v2551_v63  ;;  %4842 = vmatprep.subr.bf16.mxu0 %v5094_v24 }
 0x22a   : > { %v3581_v14 = vsel %vm3163_vm4, %v3580_v50, %v6615_v61  ;;  %v6745_v50 = vsub.s32 %v3207_v39, %v6451_v19 }
 0x22b   : > { %v6710_v56 = vsel %vm3170_vm5, %v3585_v62, %v3581_v14  ;;  %v3728_v11 = vrot.slane %v3119_v48, %v6466_v34  ;;  %v3733_v37 = vrot.slane %v3120_v55, %v6469_v43  ;;  %v2874_v9 = vpack.c.bf16 %v2767_v46, %v2766_v13  ;;  %v4952_v34 = vld [vmem:[%s7095_s1 + $0x18] sm:$0xff]   ;;  %v4954_v62 = vld [vmem:[%s7095_s1 + $0x28] sm:$0xff]  }
 0x22c   : > { %v2613_v30 = vpop.xlane.xlu1 %2612  ;;  %v2611_v20 = vpop.xlane.xlu0 %2610  ;;  %4843 = vmatpush3.bf16.msra.mxu0 %v4951_v54 }
 0x22d   : > { %v3729_v38 = vsel %vm3149_vm2, %v3728_v11, %v3724_v41  ;;  %v3045_v61 = vunpack.c.l.b16 %v2874_v9  ;;  %v3046_v8 = vunpack.c.h.b16 %v2874_v9  ;;  %v2797_v26 = vmul.f32 0.0044444446, %v2613_v30  ;;  %4844 = vmatprep.subr.bf16.mxu0 %v5094_v24  ;;  %v4955_v9 = vld [vmem:[%s7095_s1 + $0x30] sm:$0xff]  }
 0x22e   : > { %v6718_v33 = vsel %vm3156_vm3, %v3733_v37, %v3729_v38  ;;  %v2796_v35 = vmul.f32 0.0044444446, %v2611_v20  ;;  %vm3797_vm2 = vcmask 1042434   ;;  %vm3799_vm3 = vcmask 1043459  }
 0x22f   : > { %v3363_v43 = vrot.slane %v3045_v61, %v6654_v59  ;;  %v3368_v1 = vrot.slane %v3046_v8, %v6657_v0  ;;  %v4956_v61 = vld [vmem:[%s7095_s1 + $0x38] sm:$0xff]  }
 0x230   : > { %v2889_v16 = vpack.c.bf16 %v2797_v26, %v2796_v35  ;;  %v2673_v22 = vpop.xlane.xlu1 %2672  ;;  %v2671_v58 = vpop.xlane.xlu0 %2670  ;;  %4845 = vmatpush3.bf16.msra.mxu0 %v4952_v34 }
 0x231   : > { %v3364_v10 = vsel %vm3191_vm8, %v3363_v43, %v6626_v4  ;;  %v2827_v28 = vmul.f32 0.0044444446, %v2673_v22  ;;  %v2826_v51 = vmul.f32 0.0044444446, %v2671_v58  ;;  %4846 = vmatprep.subr.bf16.mxu0 %v5094_v24 }
 0x232   : > { %v6730_v44 = vsel %vm3198_vm9, %v3368_v1, %v3364_v10  ;;  %v3075_v57 = vunpack.c.l.b16 %v2889_v16  ;;  %v3076_v49 = vunpack.c.h.b16 %v2889_v16 }
 0x233   : > { %v2904_v32 = vpack.c.bf16 %v2827_v28, %v2826_v51 }
 0x234   : > { %v3511_v4 = vrot.slane %v3075_v57, %v6573_v60  ;;  %v3516_v18 = vrot.slane %v3076_v49, %v6576_v29  ;;  %v2493_v40 = vpop.xlane.xlu1 %2492  ;;  %v2491_v52 = vpop.xlane.xlu0 %2490  ;;  %4847 = vmatpush3.bf16.msra.mxu0 %v4953_v31 }
 0x235   : > { %v3105_v15 = vunpack.c.l.b16 %v2904_v32  ;;  %v3106_v6 = vunpack.c.h.b16 %v2904_v32  ;;  %v2737_v3 = vmul.f32 0.0044444446, %v2493_v40  ;;  %v2736_v36 = vmul.f32 0.0044444446, %v2491_v52  ;;  %4848 = vmatprep.subr.bf16.mxu0 %v5094_v24 }
 0x236   : > { %v3512_v23 = vsel %vm3177_vm6, %v3511_v4, %v6637_v45  ;;  %v4957_v4 = vld [vmem:[%s7097_s3 + $0x4] ss:$8 sps:$4 sm:$0xff]  }
 0x237   : > { %v6751_v12 = vsel %vm3184_vm7, %v3516_v18, %v3512_v23  ;;  %v3659_v21 = vrot.slane %v3105_v15, %v6511_v27  ;;  %v3664_v63 = vrot.slane %v3106_v6, %v6514_v47  ;;  %v2859_v48 = vpack.c.bf16 %v2737_v3, %v2736_v36  ;;  %v4959_v18 = vld [vmem:[%s7097_s3] ss:$8 sps:$4 sm:$0xff]   ;;  %4009 = vmatprep.subr.bf16.mxu1 %v4957_v4 }
 0x238   : > { %v2525_v55 = vpop.xlane.xlu1 %2524  ;;  %v2523_v45 = vpop.xlane.xlu0 %2522  ;;  %4849 = vmatpush3.bf16.msra.mxu0 %v4954_v62  ;;  %4010 = vmatpush1.bf16.msra.mxu1 %v4959_v18 }
 0x239   : > { %v3660_v46 = vsel %vm3163_vm4, %v3659_v21, %v6650_v53  ;;  %v3015_v13 = vunpack.c.l.b16 %v2859_v48  ;;  %v3016_v14 = vunpack.c.h.b16 %v2859_v48  ;;  %v2753_v54 = vmul.f32 0.0044444446, %v2525_v55  ;;  %4850 = vmatprep.subr.bf16.mxu0 %v5094_v24  ;;  %v4962_v21 = vld [vmem:[%s7097_s3 + $0x10] ss:$8 sps:$4 sm:$0xff]  }
 0x23a   : > { %v6759_v11 = vsel %vm3170_vm5, %v3664_v63, %v3660_v46  ;;  %v2752_v37 = vmul.f32 0.0044444446, %v2523_v45 }
 0x23b   : > { %v3204_v41 = vrot.slane %v3015_v13, %v6742_v25  ;;  %v3211_v30 = vrot.slane %v3016_v14, %v6745_v50 }
 0x23c   : > { %v2867_v53 = vpack.c.bf16 %v2753_v54, %v2752_v37  ;;  %v2585_v20 = vpop.xlane.xlu1 %2584  ;;  %v2583_v38 = vpop.xlane.xlu0 %2582  ;;  %4851 = vmatpush3.bf16.msra.mxu0 %v4955_v9 }
 0x23d   : > { %v3206_v8 = vsel %vm3205_vm10, %v3204_v41, %v6667_v2  ;;  %v2783_v26 = vmul.f32 0.0044444446, %v2585_v20  ;;  %v2782_v35 = vmul.f32 0.0044444446, %v2583_v38  ;;  %4852 = vmatprep.subr.bf16.mxu0 %v5094_v24  ;;  %v4966_v20 = vld [vmem:[%s7097_s3 + $0x34] ss:$8 sps:$4 sm:$0xff]  }
 0x23e   : > { %v6774_v34 = vsel %vm3212_vm11, %v3211_v30, %v3206_v8  ;;  %v3031_v43 = vunpack.c.l.b16 %v2867_v53  ;;  %v3032_v1 = vunpack.c.h.b16 %v2867_v53  ;;  %v4965_v30 = vld [vmem:[%s7097_s3 + $0x20] ss:$8 sps:$4 sm:$0xff]  }
 0x23f   : > { %v2882_v16 = vpack.c.bf16 %v2783_v26, %v2782_v35 }
 0x240   : > { %v3294_v22 = vrot.slane %v3031_v43, %v6742_v25  ;;  %v3299_v58 = vrot.slane %v3032_v1, %v6745_v50  ;;  %v2645_v10 = vpop.xlane.xlu1 %2644  ;;  %v2643_v28 = vpop.xlane.xlu0 %2642  ;;  %4853 = vmatpush3.bf16.msra.mxu0 %v4956_v61 }
 0x241   : > { %v3061_v2 = vunpack.c.l.b16 %v2882_v16  ;;  %v3062_v51 = vunpack.c.h.b16 %v2882_v16  ;;  %v2813_v42 = vmul.f32 0.0044444446, %v2645_v10  ;;  %v2812_v57 = vmul.f32 0.0044444446, %v2643_v28  ;;  %v4969_v28 = vld [vmem:[%s7097_s3 + $0x44] ss:$8 sps:$4 sm:$0xff]  }
 0x242   : > { %v3295_v24 = vsel %vm3205_vm10, %v3294_v22, %v6676_v17  ;;  %v4960_v17 = vld [vmem:[%s7097_s3 + $0x14] ss:$8 sps:$4 sm:$0xff]   ;;  %v4968_v22 = vld [vmem:[%s7097_s3 + $0x30] ss:$8 sps:$4 sm:$0xff]  }
 0x243   : > { %v6781_v49 = vsel %vm3212_vm11, %v3299_v58, %v3295_v24  ;;  %v3442_v39 = vrot.slane %v3061_v2, %v6654_v59  ;;  %v3447_v31 = vrot.slane %v3062_v51, %v6657_v0  ;;  %v2897_v32 = vpack.c.bf16 %v2813_v42, %v2812_v57  ;;  %4011 = vmatprep.subr.bf16.mxu1 %v4960_v17 }
 0x244   : > { %v2705_v40 = vpop.xlane.xlu1 %2704  ;;  %v2703_v52 = vpop.xlane.xlu0 %2702  ;;  %4012 = vmatpush1.bf16.msra.mxu1 %v4962_v21  ;;  %v3214_v17 = vadd.s32 4294967200, %v5695_v7 }
 0x245   : > { %v3443_v15 = vsel %vm3191_vm8, %v3442_v39, %v6692_v5  ;;  %v3091_v6 = vunpack.c.l.b16 %v2897_v32  ;;  %v3092_v3 = vunpack.c.h.b16 %v2897_v32  ;;  %v2843_v36 = vmul.f32 0.0044444446, %v2705_v40  ;;  %v4963_v5 = vld [vmem:[%s7097_s3 + $0x24] ss:$8 sps:$4 sm:$0xff]   ;;  %v4971_v32 = vld [vmem:[%s7097_s3 + $0x40] ss:$8 sps:$4 sm:$0xff]  }
 0x246   : > { %v6797_v23 = vsel %vm3198_vm9, %v3447_v31, %v3443_v15  ;;  %v2842_v62 = vmul.f32 0.0044444446, %v2703_v52  ;;  %4013 = vmatprep.subr.bf16.mxu1 %v4963_v5  ;;  %v3221_v15 = vadd.s32 4294967192, %v5695_v7  ;;  %v4974_v5 = vld [vmem:[%s7097_s3 + $0x50] ss:$8 sps:$4 sm:$0xff]  }
 0x247   : > { %v3590_v63 = vrot.slane %v3091_v6, %v6573_v60  ;;  %v3595_v48 = vrot.slane %v3092_v3, %v6576_v29 }
 0x248   : > { %v2912_v55 = vpack.c.bf16 %v2843_v36, %v2842_v62  ;;  %v2557_v45 = vpop.xlane.xlu1 %2556  ;;  %v2555_v46 = vpop.xlane.xlu0 %2554  ;;  %4014 = vmatpush1.bf16.msra.mxu1 %v4965_v30 }
 0x249   : > { %v3591_v13 = vsel %vm3177_vm6, %v3590_v63, %v6710_v56  ;;  %v2769_v14 = vmul.f32 0.0044444446, %v2557_v45  ;;  %v2768_v54 = vmul.f32 0.0044444446, %v2555_v46  ;;  %4015 = vmatprep.subr.bf16.mxu1 %v4966_v20 }
 0x24a   : > { %v6810_v37 = vsel %vm3184_vm7, %v3595_v48, %v3591_v13  ;;  %v3121_v9 = vunpack.c.l.b16 %v2912_v55  ;;  %v3122_v41 = vunpack.c.h.b16 %v2912_v55  ;;  %v6857_v55 = vsub.s32 %v3214_v17, %v6451_v19 }
 0x24b   : > { %v2875_v53 = vpack.c.bf16 %v2769_v14, %v2768_v54  ;;  %v6865_v13 = vsub.s32 %v3221_v15, %v6451_v19 }
 0x24c   : > { %v3738_v56 = vrot.slane %v3121_v9, %v6511_v27  ;;  %v3743_v38 = vrot.slane %v3122_v41, %v6514_v47  ;;  %v2617_v61 = vpop.xlane.xlu1 %2616  ;;  %v2615_v8 = vpop.xlane.xlu0 %2614  ;;  %4016 = vmatpush1.bf16.msra.mxu1 %v4968_v22 }
 0x24d   : > { %v3047_v26 = vunpack.c.l.b16 %v2875_v53  ;;  %v3048_v35 = vunpack.c.h.b16 %v2875_v53  ;;  %v2799_v43 = vmul.f32 0.0044444446, %v2617_v61  ;;  %v2798_v1 = vmul.f32 0.0044444446, %v2615_v8  ;;  %4017 = vmatprep.subr.bf16.mxu1 %v4969_v28 }
 0x24e   : > { %v3739_v16 = vsel %vm3163_vm4, %v3738_v56, %v6718_v33  ;;  %vm3801_vm4 = vcmask 1044484  }
 0x24f   : > { %v6826_v58 = vsel %vm3170_vm5, %v3743_v38, %v3739_v16  ;;  %v3373_v27 = vrot.slane %v3047_v26, %v6742_v25  ;;  %v3378_v47 = vrot.slane %v3048_v35, %v6745_v50  ;;  %v2890_v10 = vpack.c.bf16 %v2799_v43, %v2798_v1 }
 0x250   : > { %v2677_v2 = vpop.xlane.xlu1 %2676  ;;  %v2675_v24 = vpop.xlane.xlu0 %2674  ;;  %4018 = vmatpush1.bf16.msra.mxu1 %v4971_v32  ;;  %vm3803_vm5 = vcmask 1045509  }
 0x251   : > { %v3374_v33 = vsel %vm3205_vm10, %v3373_v27, %v6730_v44  ;;  %v3077_v51 = vunpack.c.l.b16 %v2890_v10  ;;  %v3078_v42 = vunpack.c.h.b16 %v2890_v10  ;;  %v2829_v57 = vmul.f32 0.0044444446, %v2677_v2  ;;  %v4972_v44 = vld [vmem:[%s7097_s3 + $0x54] ss:$8 sps:$4 sm:$0xff]  }
 0x252   : > { %v6836_v39 = vsel %vm3212_vm11, %v3378_v47, %v3374_v33  ;;  %v2828_v31 = vmul.f32 0.0044444446, %v2675_v24  ;;  %4019 = vmatprep.subr.bf16.mxu1 %v4972_v44 }
 0x253   : > { %v3521_v4 = vrot.slane %v3077_v51, %v6654_v59  ;;  %v3526_v18 = vrot.slane %v3078_v42, %v6657_v0 }
 0x254   : > { %v2905_v40 = vpack.c.bf16 %v2829_v57, %v2828_v31  ;;  %v2497_v52 = vpop.xlane.xlu1 %2496  ;;  %v2495_v36 = vpop.xlane.xlu0 %2494  ;;  %4020 = vmatpush1.bf16.msra.mxu1 %v4974_v5 }
 0x255   : > { %v3522_v6 = vsel %vm3191_vm8, %v3521_v4, %v6751_v12  ;;  %v2739_v3 = vmul.f32 0.0044444446, %v2497_v52  ;;  %v2738_v48 = vmul.f32 0.0044444446, %v2495_v36  ;;  %v4975_v12 = vld [vmem:[%s7097_s3 + $0x64] ss:$8 sps:$4 sm:$0xff]  }
 0x256   : > { %v6851_v62 = vsel %vm3198_vm9, %v3526_v18, %v3522_v6  ;;  %v3107_v21 = vunpack.c.l.b16 %v2905_v40  ;;  %v3108_v63 = vunpack.c.h.b16 %v2905_v40  ;;  %4021 = vmatprep.subr.bf16.mxu1 %v4975_v12 }
 0x257   : > { %v2860_v14 = vpack.c.bf16 %v2739_v3, %v2738_v48 }
 0x258   : > { %v3669_v45 = vrot.slane %v3107_v21, %v6573_v60  ;;  %v3674_v46 = vrot.slane %v3108_v63, %v6576_v29  ;;  %v2529_v54 = vpop.xlane.xlu1 %2528 }
 0x259   : > { %v2755_v9 = vmul.f32 0.0044444446, %v2529_v54  ;;  %v2527_v41 = vpop.xlane.xlu0 %2526  ;;  %v3017_v53 = vunpack.c.l.b16 %v2860_v14  ;;  %v3018_v20 = vunpack.c.h.b16 %v2860_v14 }
 0x25a   : > { %v3670_v30 = vsel %vm3177_vm6, %v3669_v45, %v6759_v11  ;;  %v2754_v56 = vmul.f32 0.0044444446, %v2527_v41 }
 0x25b   : > { %v6870_v38 = vsel %vm3184_vm7, %v3674_v46, %v3670_v30  ;;  %v3218_v61 = vrot.slane %v3017_v53, %v6857_v55  ;;  %v3225_v8 = vrot.slane %v3018_v20, %v6865_v13 }
 0x25c   : > { %v2868_v26 = vpack.c.bf16 %v2755_v9, %v2754_v56  ;;  %v2589_v35 = vpop.xlane.xlu1 %2588 }
 0x25d   : > { %v2785_v43 = vmul.f32 0.0044444446, %v2589_v35  ;;  %v2587_v1 = vpop.xlane.xlu0 %2586  ;;  %v3220_v11 = vsel %vm3219_vm13, %v3218_v61, %v6774_v34 }
 0x25e   : > { %v3033_v16 = vunpack.c.l.b16 %v2868_v26  ;;  %v3034_v22 = vunpack.c.h.b16 %v2868_v26  ;;  %v2784_v27 = vmul.f32 0.0044444446, %v2587_v1  ;;  %v6877_v47 = vsel %vm3226_vm14, %v3225_v8, %v3220_v11 }
 0x260   : > { %v3304_v10 = vrot.slane %v3033_v16, %v6857_v55  ;;  %v3309_v28 = vrot.slane %v3034_v22, %v6865_v13  ;;  %v2883_v2 = vpack.c.bf16 %v2785_v43, %v2784_v27  ;;  %v2649_v33 = vpop.xlane.xlu1 %2648 }
 0x261   : > { %v2815_v51 = vmul.f32 0.0044444446, %v2649_v33  ;;  %v2647_v42 = vpop.xlane.xlu0 %2646 }
 0x262   : > { %v3305_v57 = vsel %vm3219_vm13, %v3304_v10, %v6781_v49  ;;  %v3063_v24 = vunpack.c.l.b16 %v2883_v2  ;;  %v3064_v31 = vunpack.c.h.b16 %v2883_v2  ;;  %v2814_v34 = vmul.f32 0.0044444446, %v2647_v42 }
 0x263   : > { %v6884_v32 = vsel %vm3226_vm14, %v3309_v28, %v3305_v57 }
 0x264   : > { %v3452_v4 = vrot.slane %v3063_v24, %v6742_v25  ;;  %v3457_v18 = vrot.slane %v3064_v31, %v6745_v50  ;;  %v2898_v17 = vpack.c.bf16 %v2815_v51, %v2814_v34  ;;  %v2709_v44 = vpop.xlane.xlu1 %2708  ;;  %v3228_v51 = vadd.s32 4294967184, %v5695_v7 }
 0x265   : > { %v2845_v40 = vmul.f32 0.0044444446, %v2709_v44  ;;  %v2707_v52 = vpop.xlane.xlu0 %2706 }
 0x266   : > { %v3453_v15 = vsel %vm3205_vm10, %v3452_v4, %v6797_v23  ;;  %v3093_v6 = vunpack.c.l.b16 %v2898_v17  ;;  %v3094_v3 = vunpack.c.h.b16 %v2898_v17  ;;  %v2844_v49 = vmul.f32 0.0044444446, %v2707_v52 }
 0x267   : > { %v6891_v36 = vsel %vm3212_vm11, %v3457_v18, %v3453_v15  ;;  %v6926_v4 = vsub.s32 %v3228_v51, %v6451_v19 }
 0x268   : > { %v3600_v21 = vrot.slane %v3093_v6, %v6654_v59  ;;  %v3605_v63 = vrot.slane %v3094_v3, %v6657_v0  ;;  %v2913_v48 = vpack.c.bf16 %v2845_v40, %v2844_v49  ;;  %v2561_v5 = vpop.xlane.xlu1 %2560 }
 0x269   : > { %v2771_v12 = vmul.f32 0.0044444446, %v2561_v5  ;;  %v2559_v45 = vpop.xlane.xlu0 %2558 }
 0x26a   : > { %v3601_v46 = vsel %vm3191_vm8, %v3600_v21, %v6810_v37  ;;  %v3123_v14 = vunpack.c.l.b16 %v2913_v48  ;;  %v3124_v54 = vunpack.c.h.b16 %v2913_v48  ;;  %v2770_v23 = vmul.f32 0.0044444446, %v2559_v45 }
 0x26b   : > { %v6898_v9 = vsel %vm3198_vm9, %v3605_v63, %v3601_v46 }
 0x26c   : > { %v3748_v41 = vrot.slane %v3123_v14, %v6573_v60  ;;  %v3753_v30 = vrot.slane %v3124_v54, %v6576_v29  ;;  %v2876_v53 = vpack.c.bf16 %v2771_v12, %v2770_v23  ;;  %v2621_v20 = vpop.xlane.xlu1 %2620 }
 0x26d   : > { %v2801_v56 = vmul.f32 0.0044444446, %v2621_v20  ;;  %v2619_v61 = vpop.xlane.xlu0 %2618 }
 0x26e   : > { %v3749_v8 = vsel %vm3177_vm6, %v3748_v41, %v6826_v58  ;;  %v3049_v26 = vunpack.c.l.b16 %v2876_v53  ;;  %v3050_v35 = vunpack.c.h.b16 %v2876_v53  ;;  %v2800_v37 = vmul.f32 0.0044444446, %v2619_v61 }
 0x26f   : > { %v6905_v43 = vsel %vm3184_vm7, %v3753_v30, %v3749_v8  ;;  %vm3805_vm6 = vcmask 1046534   ;;  %vm3807_vm7 = vcmask 1047559  }
 0x270   : > { %v3383_v1 = vrot.slane %v3049_v26, %v6857_v55  ;;  %v3388_v11 = vrot.slane %v3050_v35, %v6865_v13  ;;  %v2891_v60 = vpack.c.bf16 %v2801_v56, %v2800_v37  ;;  %v6909_v16 = vpop.xlane.xlu1 %2680 }
 0x271   : > { %v6911_v29 = vpop.xlane.xlu0 %2678 }
 0x272   : > { %v3384_v22 = vsel %vm3219_vm13, %v3383_v1, %v6836_v39  ;;  %v3079_v27 = vunpack.c.l.b16 %v2891_v60  ;;  %v3080_v58 = vunpack.c.h.b16 %v2891_v60  ;;  %v3235_v39 = vadd.s32 4294967176, %v5695_v7 }
 0x273   : > { %v3389_v10 = vsel %vm3226_vm14, %v3388_v11, %v3384_v22 }
 0x274   : > { %v3531_v28 = vrot.slane %v3079_v27, %v6742_v25  ;;  %v3536_v2 = vrot.slane %v3080_v58, %v6745_v50  ;;  %v2501_v33 = vpop.xlane.xlu1 %2500  ;;  %v6929_v6 = vsub.s32 %v3235_v39, %v6451_v19 }
 0x275   : > { %v2741_v42 = vmul.f32 0.0044444446, %v2501_v33  ;;  %v2499_v57 = vpop.xlane.xlu0 %2498 }
 0x276   : > { %v3532_v24 = vsel %vm3205_vm10, %v3531_v28, %v6851_v62  ;;  %v2740_v31 = vmul.f32 0.0044444446, %v2499_v57 }
 0x277   : > { %v6922_v34 = vsel %vm3212_vm11, %v3536_v2, %v3532_v24  ;;  %v2831_v24 = vmul.f32 0.0044444446, %v6909_v16 }
 0x278   : > { %v2861_v18 = vpack.c.bf16 %v2741_v42, %v2740_v31  ;;  %v2533_v17 = vpop.xlane.xlu1 %2532  ;;  %v2830_v31 = vmul.f32 0.0044444446, %v6911_v29 }
 0x279   : > { %v2757_v44 = vmul.f32 0.0044444446, %v2533_v17  ;;  %v2531_v40 = vpop.xlane.xlu0 %2530 }
 0x27a   : > { %v3019_v52 = vunpack.c.l.b16 %v2861_v18  ;;  %v2756_v15 = vmul.f32 0.0044444446, %v2531_v40  ;;  %v3020_v3 = vunpack.c.h.b16 %v2861_v18 }
 0x27c   : > { %v3232_v62 = vrot.slane %v3019_v52, %v6926_v4  ;;  %v2869_v49 = vpack.c.bf16 %v2757_v44, %v2756_v15  ;;  %v2593_v21 = vpop.xlane.xlu1 %2592  ;;  %v3239_v5 = vrot.slane %v3020_v3, %v6929_v6 }
 0x27d   : > { %v2591_v63 = vpop.xlane.xlu0 %2590  ;;  %v2787_v26 = vmul.f32 0.0044444446, %v2593_v21 }
 0x27e   : > { %v3035_v7 = vunpack.c.l.b16 %v2869_v49  ;;  %v3036_v48 = vunpack.c.h.b16 %v2869_v49  ;;  %v3234_v12 = vsel %vm3233_vm15, %v3232_v62, %v6877_v47  ;;  %v2786_v35 = vmul.f32 0.0044444446, %v2591_v63 }
 0x27f   : > { %v3241_v41 = vsel %vm3240_vm0, %v3239_v5, %v3234_v12 }
 0x280   : > { %v3314_v45 = vrot.slane %v3035_v7, %v6926_v4  ;;  %v3319_v46 = vrot.slane %v3036_v48, %v6929_v6  ;;  %v2653_v14 = vpop.xlane.xlu1 %2652  ;;  %v2884_v22 = vpack.c.bf16 %v2787_v26, %v2786_v35  ;;  %v2906_v7 = vpack.c.bf16 %v2831_v24, %v2830_v31 }
 0x281   : > { %v2651_v54 = vpop.xlane.xlu0 %2650  ;;  %v2817_v62 = vmul.f32 0.0044444446, %v2653_v14 }
 0x282   : > { %v3315_v23 = vsel %vm3233_vm15, %v3314_v45, %v6884_v32  ;;  %v3065_v51 = vunpack.c.l.b16 %v2884_v22  ;;  %v3066_v17 = vunpack.c.h.b16 %v2884_v22  ;;  %v2816_v49 = vmul.f32 0.0044444446, %v2651_v54 }
 0x283   : > { %v3320_v30 = vsel %vm3240_vm0, %v3319_v46, %v3315_v23  ;;  %v3109_v54 = vunpack.c.l.b16 %v2906_v7  ;;  %v3110_v22 = vunpack.c.h.b16 %v2906_v7 }
 0x284   : > { %v3796_v53 = vsel %vm3795_vm1, %v3320_v30, %v3241_v41  ;;  %v2713_v20 = vpop.xlane.xlu1 %2712  ;;  %v3462_v3 = vrot.slane %v3065_v51, %v6857_v55  ;;  %v3467_v48 = vrot.slane %v3066_v17, %v6865_v13  ;;  %v2899_v12 = vpack.c.bf16 %v2817_v62, %v2816_v49 }
 0x285   : > { %v2711_v56 = vpop.xlane.xlu0 %2710 }
 0x286   : > { %v3463_v29 = vsel %vm3219_vm13, %v3462_v3, %v6891_v36  ;;  %v3096_v31 = vunpack.c.h.b16 %v2899_v12 }
 0x287   : > { %v3468_v30 = vsel %vm3226_vm14, %v3467_v48, %v3463_v29 }
 0x288   : > { %v2565_v61 = vpop.xlane.xlu1 %2564 }
 0x289   : > { %v2773_v8 = vmul.f32 0.0044444446, %v2565_v61  ;;  %v2563_v47 = vpop.xlane.xlu0 %2562 }
 0x28a   : > { %v2772_v37 = vmul.f32 0.0044444446, %v2563_v47  ;;  %v3095_v47 = vunpack.c.l.b16 %v2899_v12 }
 0x28c   : > { %v2877_v1 = vpack.c.bf16 %v2773_v8, %v2772_v37  ;;  %v2625_v11 = vpop.xlane.xlu1 %2624  ;;  %v2846_v37 = vmul.f32 0.0044444446, %v2711_v56  ;;  %v3610_v56 = vrot.slane %v3095_v47, %v6742_v25 }
 0x28d   : > { %v2623_v60 = vpop.xlane.xlu0 %2622  ;;  %v2803_v44 = vmul.f32 0.0044444446, %v2625_v11 }
 0x28e   : > { %v3051_v27 = vunpack.c.l.b16 %v2877_v1  ;;  %v3052_v58 = vunpack.c.h.b16 %v2877_v1  ;;  %v2802_v40 = vmul.f32 0.0044444446, %v2623_v60  ;;  %v3611_v48 = vsel %vm3205_vm10, %v3610_v56, %v6898_v9 }
 0x290   : > { %v3393_v32 = vrot.slane %v3051_v27, %v6926_v4  ;;  %v3398_v28 = vrot.slane %v3052_v58, %v6929_v6  ;;  %v2685_v2 = vpop.xlane.xlu1 %2684  ;;  %v2892_v16 = vpack.c.bf16 %v2803_v44, %v2802_v40 }
 0x291   : > { %v2683_v33 = vpop.xlane.xlu0 %2682  ;;  %v2833_v1 = vmul.f32 0.0044444446, %v2685_v2 }
 0x292   : > { %v3394_v42 = vsel %vm3233_vm15, %v3393_v32, %v3389_v10  ;;  %v3081_v61 = vunpack.c.l.b16 %v2892_v16  ;;  %v2832_v11 = vmul.f32 0.0044444446, %v2683_v33  ;;  %v3679_v32 = vrot.slane %v3109_v54, %v6654_v59 }
 0x293   : > { %v3399_v57 = vsel %vm3240_vm0, %v3398_v28, %v3394_v42  ;;  %v3082_v28 = vunpack.c.h.b16 %v2892_v16  ;;  %v3615_v16 = vrot.slane %v3096_v31, %v6745_v50 }
 0x294   : > { %v3798_v39 = vsel %vm3797_vm2, %v3399_v57, %v3796_v53  ;;  %v2597_v18 = vpop.xlane.xlu1 %2596  ;;  %v2847_v53 = vmul.f32 0.0044444446, %v2713_v20  ;;  %v3541_v20 = vrot.slane %v3081_v61, %v6857_v55  ;;  %v2907_v33 = vpack.c.bf16 %v2833_v1, %v2832_v11 }
 0x295   : > { %v2789_v52 = vmul.f32 0.0044444446, %v2597_v18  ;;  %v2595_v15 = vpop.xlane.xlu0 %2594  ;;  %v3684_v18 = vrot.slane %v3110_v22, %v6657_v0  ;;  %v3546_v3 = vrot.slane %v3082_v28, %v6865_v13 }
 0x296   : > { %v2788_v21 = vmul.f32 0.0044444446, %v2595_v15  ;;  %v2914_v2 = vpack.c.bf16 %v2847_v53, %v2846_v37  ;;  %v3542_v15 = vsel %vm3219_vm13, %v3541_v20, %v6922_v34  ;;  %v3111_v29 = vunpack.c.l.b16 %v2907_v33 }
 0x297   : > { %v3616_v37 = vsel %vm3212_vm11, %v3615_v16, %v3611_v48 }
 0x298   : > { %v2885_v63 = vpack.c.bf16 %v2789_v52, %v2788_v21  ;;  %v2657_v10 = vpop.xlane.xlu1 %2656  ;;  %v3680_v52 = vsel %vm3191_vm8, %v3679_v32, %v6870_v38  ;;  %v3126_v12 = vunpack.c.h.b16 %v2914_v2 }
 0x299   : > { %v2655_v5 = vpop.xlane.xlu0 %2654  ;;  %v2819_v35 = vmul.f32 0.0044444446, %v2657_v10  ;;  %v3685_v9 = vsel %vm3198_vm9, %v3684_v18, %v3680_v52 }
 0x29a   : > { %v3067_v45 = vunpack.c.l.b16 %v2885_v63  ;;  %v3068_v46 = vunpack.c.h.b16 %v2885_v63  ;;  %v2818_v36 = vmul.f32 0.0044444446, %v2655_v5  ;;  %v3125_v5 = vunpack.c.l.b16 %v2914_v2 }
 0x29c   : > { %v3472_v23 = vrot.slane %v3067_v45, %v6926_v4  ;;  %v3477_v41 = vrot.slane %v3068_v46, %v6929_v6  ;;  %v2717_v14 = vpop.xlane.xlu1 %2716  ;;  %v2900_v57 = vpack.c.bf16 %v2819_v35, %v2818_v36  ;;  %v3758_v47 = vrot.slane %v3125_v5, %v6654_v59 }
 0x29d   : > { %v2715_v8 = vpop.xlane.xlu0 %2714  ;;  %v2849_v17 = vmul.f32 0.0044444446, %v2717_v14  ;;  %v3689_v35 = vrot.slane %v3111_v29, %v6742_v25 }
 0x29e   : > { %v3473_v26 = vsel %vm3233_vm15, %v3472_v23, %v3468_v30  ;;  %v2848_v44 = vmul.f32 0.0044444446, %v2715_v8  ;;  %v3097_v21 = vunpack.c.l.b16 %v2900_v57  ;;  %v3547_v23 = vsel %vm3226_vm14, %v3546_v3, %v3542_v15 }
 0x29f   : > { %v3478_v60 = vsel %vm3240_vm0, %v3477_v41, %v3473_v26  ;;  %v3098_v41 = vunpack.c.h.b16 %v2900_v57  ;;  %v3112_v26 = vunpack.c.h.b16 %v2907_v33  ;;  %v3759_v31 = vsel %vm3191_vm8, %v3758_v47, %v6905_v43 }
 0x2a0   : > { %v2629_v27 = vpop.xlane.xlu1 %2628  ;;  %v3800_v58 = vsel %vm3799_vm3, %v3478_v60, %v3798_v39  ;;  %v2915_v38 = vpack.c.bf16 %v2849_v17, %v2848_v44  ;;  %v3620_v53 = vrot.slane %v3097_v21, %v6857_v55  ;;  %v3690_v56 = vsel %vm3205_vm10, %v3689_v35, %v3685_v9 }
 0x2a1   : > { %v2805_v51 = vmul.f32 0.0044444446, %v2629_v27  ;;  %v2627_v42 = vpop.xlane.xlu0 %2626  ;;  %v3763_v27 = vrot.slane %v3126_v12, %v6657_v0  ;;  %v3625_v32 = vrot.slane %v3098_v41, %v6865_v13  ;;  %v3694_v2 = vrot.slane %v3112_v26, %v6745_v50 }
 0x2a2   : > { %v2804_v24 = vmul.f32 0.0044444446, %v2627_v42  ;;  %v3127_v1 = vunpack.c.l.b16 %v2915_v38  ;;  %v3621_v59 = vsel %vm3219_vm13, %v3620_v53, %v3616_v37 }
 0x2a3   : > { %v3764_v21 = vsel %vm3198_vm9, %v3763_v27, %v3759_v31 }
 0x2a4   : > { %v2893_v39 = vpack.c.bf16 %v2805_v51, %v2804_v24  ;;  %v2689_v40 = vpop.xlane.xlu1 %2688  ;;  %v3768_v0 = vrot.slane %v3127_v1, %v6742_v25  ;;  %v3695_v25 = vsel %vm3212_vm11, %v3694_v2, %v3690_v56  ;;  %v3921_v2 = vsub.s32 0, %v6451_v19 }
 0x2a5   : > { %v2835_v62 = vmul.f32 0.0044444446, %v2689_v40  ;;  %v2687_v49 = vpop.xlane.xlu0 %2686 }
 0x2a6   : > { %v3083_v63 = vunpack.c.l.b16 %v2893_v39  ;;  %v3084_v10 = vunpack.c.h.b16 %v2893_v39  ;;  %v2834_v7 = vmul.f32 0.0044444446, %v2687_v49  ;;  %v3626_v39 = vsel %vm3226_vm14, %v3625_v32, %v3621_v59  ;;  %v4977_v32 = vld [vmem:[%s7097_s3 + $0x60] ss:$8 sps:$4 sm:$0xff]  }
 0x2a7   : > { %4022 = vmatpush1.bf16.msra.mxu1 %v4977_v32 }
 0x2a8   : > { %v3551_v45 = vrot.slane %v3083_v63, %v6926_v4  ;;  %v3556_v34 = vrot.slane %v3084_v10, %v6929_v6  ;;  %v2661_v46 = vpop.xlane.xlu1 %2660  ;;  %v2908_v14 = vpack.c.bf16 %v2835_v62, %v2834_v7  ;;  %v3769_v10 = vsel %vm3205_vm10, %v3768_v0, %v3764_v21 }
 0x2a9   : > { %v2821_v54 = vmul.f32 0.0044444446, %v2661_v46  ;;  %v2659_v30 = vpop.xlane.xlu0 %2658  ;;  %v3925_v0 = vsub.s32 1, %v6451_v19 }
 0x2aa   : > { %v3552_v61 = vsel %vm3233_vm15, %v3551_v45, %v3547_v23  ;;  %v2820_v8 = vmul.f32 0.0044444446, %v2659_v30  ;;  %v3113_v28 = vunpack.c.l.b16 %v2908_v14  ;;  %v3114_v40 = vunpack.c.h.b16 %v2908_v14 }
 0x2ab   : > { %v3557_v36 = vsel %vm3240_vm0, %v3556_v34, %v3552_v61 }
 0x2ac   : > { %v2901_v11 = vpack.c.bf16 %v2821_v54, %v2820_v8  ;;  %v2721_v60 = vpop.xlane.xlu1 %2720  ;;  %v3802_v22 = vsel %vm3801_vm4, %v3557_v36, %v3800_v58  ;;  %v3128_v58 = vunpack.c.h.b16 %v2915_v38  ;;  %v3699_v52 = vrot.slane %v3113_v28, %v6857_v55 }
 0x2ad   : > { %v2851_v20 = vmul.f32 0.0044444446, %v2721_v60  ;;  %v2719_v51 = vpop.xlane.xlu0 %2718  ;;  %v3704_v12 = vrot.slane %v3114_v40, %v6865_v13  ;;  %v5096_v28 = vmov 0  }
 0x2ae   : > { %v3099_v42 = vunpack.c.l.b16 %v2901_v11  ;;  %v3100_v57 = vunpack.c.h.b16 %v2901_v11  ;;  %v2850_v24 = vmul.f32 0.0044444446, %v2719_v51  ;;  %v3773_v7 = vrot.slane %v3128_v58, %v6745_v50  ;;  %4041 = vmatprep.mubr.bf16.mxu1 %v5096_v28  ;;  %v3917_v58 = vld [vmem:[%s7098_s4] sm:$0x3] }
 0x2af   : > { %v3700_v29 = vsel %vm3219_vm13, %v3699_v52, %v3695_v25 }
 0x2b0   : > { %v3630_v33 = vrot.slane %v3099_v42, %v6926_v4  ;;  %v3635_v18 = vrot.slane %v3100_v57, %v6929_v6  ;;  %v2916_v17 = vpack.c.bf16 %v2851_v20, %v2850_v24  ;;  %v2693_v44 = vpop.xlane.xlu1 %2692  ;;  %v3774_v9 = vsel %vm3212_vm11, %v3773_v7, %v3769_v10  ;;  %v4159_v20 = vld [vmem:[%s7096_s2] ss:$0 sm:$0xff] }
 0x2b1   : > { %v2837_v15 = vmul.f32 0.0044444446, %v2693_v44  ;;  %v2691_v43 = vpop.xlane.xlu0 %2690  ;;  %v3705_v53 = vsel %vm3226_vm14, %v3704_v12, %v3700_v29 }
 0x2b2   : > { %v3631_v3 = vsel %vm3233_vm15, %v3630_v33, %v3626_v39  ;;  %v3129_v62 = vunpack.c.l.b16 %v2916_v17  ;;  %v2836_v49 = vmul.f32 0.0044444446, %v2691_v43  ;;  %v3130_v38 = vunpack.c.h.b16 %v2916_v17 }
 0x2b3   : > { %v3636_v63 = vsel %vm3240_vm0, %v3635_v18, %v3631_v3  ;;  %v3922_v33 = vrot.slane %v3917_v58, %v3921_v2  ;;  %v3926_v18 = vrot.slane %v3917_v58, %v3925_v0 }
 0x2b4   : > { %v2909_v48 = vpack.c.bf16 %v2837_v15, %v2836_v49  ;;  %v2725_v16 = vpop.xlane.xlu1 %2724  ;;  %v3804_v5 = vsel %vm3803_vm5, %v3636_v63, %v3802_v22  ;;  %v3778_v46 = vrot.slane %v3129_v62, %v6857_v55  ;;  %v3783_v61 = vrot.slane %v3130_v38, %v6865_v13 }
 0x2b5   : > { %v2853_v45 = vmul.f32 0.0044444446, %v2725_v16  ;;  %v2723_v34 = vpop.xlane.xlu0 %2722 }
 0x2b6   : > { %v3115_v23 = vunpack.c.l.b16 %v2909_v48  ;;  %v3116_v41 = vunpack.c.h.b16 %v2909_v48  ;;  %v2852_v14 = vmul.f32 0.0044444446, %v2723_v34  ;;  %v3779_v8 = vsel %vm3219_vm13, %v3778_v46, %v3774_v9 }
 0x2b7   : > { %v3784_v11 = vsel %vm3226_vm14, %v3783_v61, %v3779_v8 }
 0x2b8   : > { %v3709_v54 = vrot.slane %v3115_v23, %v6926_v4  ;;  %v3714_v50 = vrot.slane %v3116_v41, %v6929_v6  ;;  %v2917_v30 = vpack.c.bf16 %v2853_v45, %v2852_v14 }
 0x2ba   : > { %v3131_v47 = vunpack.c.l.b16 %v2917_v30  ;;  %v3132_v26 = vunpack.c.h.b16 %v2917_v30  ;;  %v3710_v55 = vsel %vm3233_vm15, %v3709_v54, %v3705_v53 }
 0x2bb   : > { %v3715_v35 = vsel %vm3240_vm0, %v3714_v50, %v3710_v55 }
 0x2bc   : > { %v3788_v36 = vrot.slane %v3131_v47, %v6926_v4  ;;  %v3793_v37 = vrot.slane %v3132_v26, %v6929_v6  ;;  %v3806_v1 = vsel %vm3805_vm6, %v3715_v35, %v3804_v5  ;;  %v4978_v4 = vld [vmem:[%s7097_s3 + $0x74] ss:$8 sps:$4 sm:$0xff]   ;;  %v4980_v6 = vld [vmem:[%s7097_s3 + $0x70] ss:$8 sps:$4 sm:$0xff]  }
 0x2bd   : > { %4023 = vmatprep.subr.bf16.mxu1 %v4978_v4 }
 0x2be   : > { %v3789_v60 = vsel %vm3233_vm15, %v3788_v36, %v3784_v11  ;;  %4024 = vmatpush1.bf16.msra.mxu1 %v4980_v6 }
 0x2bf   : > { %v3794_v13 = vsel %vm3240_vm0, %v3793_v37, %v3789_v60 }
 0x2c0   : > { %v3808_v22 = vsel %vm3807_vm7, %v3794_v13, %v3806_v1 }
 0x2c1   : > { %v3809_v27 = vpack.c.b16 %v3808_v22, %v3808_v22 }
 0x2c3   : > { %4855 = vmatmul.mubr.bf16.vlgmr.msra.gmra.mrb[0].mxu0 %v3809_v27 }
 0x396   : > { %v3893_v51 = vpop.f32.mrb[0].mxu0 }
 0x397   : > { %v3894_v59 = vadd.f32 %v4159_v20, %v3893_v51  ;;  %v4856_v42 = vpop.f32.mrb[1].mxu0 }
 0x398   : > { %v3896_v57 = vpop.f32.mrb[2].mxu0 }
 0x399   : > { %v3899_v24 = vmax.f32 %v3894_v59, 0.0  ;;  %v4857_v31 = vpop.f32.mrb[3].mxu0 }
 0x39b   : > { %v3900_v56 = vpack.c.bf16 %v3899_v24, %v3899_v24 }
 0x39d   : > { %4042 = vmatmul.mubr.bf16.vlgmr.msra.gmra.mrb[0].mxu1 %v3900_v56 }
 0x470   : > { %v4043_v17 = vpop.f32.mrb[0].mxu1 }
 0x471   : > { %v4044_v44 = vadd.f32 %v4043_v17, %v3922_v33  ;;  %v4045_v39 = vpop.f32.mrb[1].mxu1 }
 0x472   : > { %v4046_v40 = vadd.f32 %v4045_v39, %v3926_v18  ;;  %v4047_v52 = vpop.f32.mrb[2].mxu1 }
 0x473   : > { %4050 = vst [vmem:[%s5495_s8] sm:$0xff] %v4044_v44  ;;  %v4048_v15 = vpop.f32.mrb[3].mxu1 }
 0x474   : > { %4051 = vst [vmem:[%s5495_s8 + $0x8] sm:$0xff] %v4046_v40 }
 0x475 PF: > { %s4190_s12 = sshll.u32 %s5079_s24, 8  ;;  %s4067_s6 = sshll.u32 %s5495_s8, 4  ;;  %s4068_s6 = int_to_ptr.vmem [resolvable:$true] %s4067_s6 }
 0x476   : > { %s7038_s7 = scalar_lea.hbm %s7099_s5, %s4190_s12  ;;  %s4053_s17 = scalar_lea.sflag [#allocation5], %s786_s9 }
 0x477   : > { %s4981_s28 = scalar_lea.vmem %s4068_s6, 256  ;;  %s5097_s29 = smov [#allocation4]  }
 0x478   : > { %p4982_p6 = scmp.ne.s32.totalorder %s4068_s6, %s4981_s28  ;;  %s4985_s21 = sshll.u32 %s5097_s29, 4  ;;  %s4986_s21 = int_to_ptr.vmem [resolvable:$false] %s4985_s21 }
 0x479   : > { %s4987_s23 = scalar_lea.vmem %s4986_s21, 512  ;;  %p4988_p10 = scmp.lt.s32.totalorder %s4068_s6, %s4986_s21 }
 0x47a   : > { %p4983_p8 = pnand %p4982_p6, %p5200_p7  ;;  %p4989_p11 = scmp.lt.s32.totalorder %s4987_s23, %s4981_s28 }
 0x47c   : > { %p4984_p9 = pneg %p4983_p8  ;;  %p4990_p13 = por %p4989_p11, %p4988_p10 }
 0x47e   : > { %p4991_p0 = pnand %p4990_p13, %p4984_p9 }
 0x480   : > { %4994 = shalt.err (!%p4991_p0)
}
 0x481   : > { %s4995_s24 = scalar_lea.hbm %s7038_s7, 256  ;;  %s4999_s12 = scalar_lea.hbm %s7099_s5, 512 }
 0x482   : > { %p4996_p1 = scmp.ne.s32.totalorder %s7038_s7, %s4995_s24  ;;  %p5000_p4 = scmp.lt.u32.totalorder %s7038_s7, %s7099_s5 }
 0x483   : > { %p5001_p5 = scmp.lt.u32.totalorder %s4999_s12, %s4995_s24  ;;  %p5003_p8 = scmp.lt.u32.totalorder %s4995_s24, %s7038_s7 }
 0x484   : > { %p4997_p2 = pnand %p4996_p1, %p5200_p7 }
 0x485   : > { %p5002_p6 = por %p5001_p5, %p5000_p4 }
 0x486   : > { %p4998_p3 = pneg %p4997_p2 }
 0x487   : > { %p5004_p9 = por %p5003_p8, %p5002_p6 }
 0x489   : > { %p5005_p10 = pnand %p5004_p9, %p4998_p3 }
 0x48b   : > { %5008 = shalt.err (!%p5005_p10)
}
 0x48c   : > { %4858 = dma.vmem_to_hbm [thread:$0]  (%p5200_p7), %s4068_s6, 256, %s7038_s7, %s4053_s17  }
 0x48d PF: > { %p4864_p11 = scmp.ge.s32.totalorder %s5091_s27, 2  ;;  %s4079_s28 = sand.u32 1, %s5055_s18  }
 0x48e   : > { %s4080_s29 = scalar_lea.sflag [#allocation5], %s4079_s28 }
 0x48f   : > { %p4861_p13 = pnand %p4864_p11, %p5208_p12 }
 0x491   : > { %5050 = dma.done.wait (!%p4861_p13), %s4080_s29, 256  }
 0x492   : > { %5052 = vsyncadd (!%p4861_p13), %s4080_s29, 4294967040  ;;  %s18_s27 = sadd.s32 1, %s5091_s27   ;;  %s7164_s11 = sld [smem:[#allocation7_spill]] }
 0x493   : > { %p15_p0 = scmp.ge.s32.totalorder %s18_s27, 6   ;;  %s7165_s18 = smov %s5059_s19 }
 0x494   : > { %s7166_s19 = smov %s5063_s20  ;;  %s7167_s20 = smov %s5213_s15 }
 0x495   : > { %s7168_s21 = smov %s5071_s22  ;;  %s7169_s22 = smov %s5216_s16 }
 0x496   : > { %s7170_s23 = smov %s5083_s25  ;;  %s7171_s24 = smov %s5087_s26 }
 0x497   : > { %s7172_s25 = smov %s7175_s30  ;;  %17 = sbr.rel (!%p15_p0) target bundleno = 6 (0x6), region = 133 }
 0x498   : > { %s7173_s26 = smov %s7164_s11 }
 0x49e   :  { %4085 = vsyncpa [#allocation5], 1 }
 0x49f   :  { %4087 = vsyncpa [#allocation5 + $0x1], 1 }

// kernel: tpu_custom_call.1
= control target key start
LH: loop header
LB: loop body
LE: loop exit
PB: predicated region body
PF: predicated region fallthrough
CT: control target
= control target key end

     0   :  { %10 = vsyncpa [#allocation5], 0  ;;  %s7094_s0 = inlined_call_operand.vmem [shape: bf16[16,128,225], index: 0, kind: input, shape index: {}]   ;;  %s7095_s1 = inlined_call_operand.vmem [shape: bf16[128,128], index: 1, kind: input, shape index: {}]   ;;  %s7096_s2 = inlined_call_operand.vmem [shape: f32[1,128], index: 2, kind: input, shape index: {}]   ;;  %s7097_s3 = inlined_call_operand.vmem [shape: bf16[128,256], index: 3, kind: input, shape index: {}]   ;;  %s7098_s4 = inlined_call_operand.vmem [shape: f32[1,256], index: 4, kind: input, shape index: {}]   ;;  %s7099_s5 = inlined_call_operand.hbm [shape: f32[16,256], index: 5, kind: output, shape index: {}]  }
   0x1   :  { %12 = vsyncpa [#allocation5 + $0x1], 0  ;;  %s5128_s18 = smov 0   ;;  %s5130_s19 = smov 0  }
   0x2   :  { %s5132_s20 = smov 0   ;;  %s5134_s21 = smov 0  }
   0x3   :  { %s5136_s22 = smov 0   ;;  %s5138_s23 = smov 0  }
   0x4   :  { %s5140_s24 = smov 0   ;;  %s5142_s25 = smov 0  }
   0x5   :  { %s5144_s26 = smov 0   ;;  %s5146_s27 = smov 0  }
   0x6 LB: > { %s4145_s28 = sadd.s32 4294967295, %s5091_s27   ;;  %s4146_s29 = sadd.s32 4294967294, %s5091_s27   ;;  %s5091_s27 = sphi %s5146_s27, %s18_s27   ;;  %s5087_s26 = sphi %s5144_s26, %s7173_s26   ;;  %s5083_s25 = sphi %s5142_s25, %s7172_s25   ;;  %s5079_s24 = sphi %s5140_s24, %s7171_s24   ;;  %s5075_s23 = sphi %s5138_s23, %s7170_s23   ;;  %s5071_s22 = sphi %s5136_s22, %s7169_s22   ;;  %s5067_s21 = sphi %s5134_s21, %s7168_s21   ;;  %s5063_s20 = sphi %s5132_s20, %s7167_s20   ;;  %s5059_s19 = sphi %s5130_s19, %s7166_s19   ;;  %s5055_s18 = sphi %s5128_s18, %s7165_s18  }
   0x7   : > { %s27_s30 = sadd.s32 1, %s5083_s25  ;;  %s30_s6 = sadd.s32 1, %s5087_s26 }
   0x8   : > { %p28_p0 = scmp.ge.s32.totalorder %s27_s30, 2  ;;  %s39_s7 = sadd.s32 1, %s5071_s22 }
   0x9   : > { %p46_p1 = scmp.ne.s32.totalorder %s5071_s22, %s5067_s21  ;;  %p47_p2 = scmp.eq.s32.totalorder %s5091_s27, 0 }
   0xa   : > { %s7175_s30 = smov (%p28_p0, %s27_s30), 0  ;;  %s7177_s6 = smov (!%p28_p0, %s30_s6), %s5087_s26 }
   0xb   : > { %s35_s8 = ssub.s32 %s5083_s25, %s7175_s30  ;;  %p5191_p3 = por %p47_p2, %p46_p1 }
   0xc   : > { %p32_p4 = scmp.ge.s32.totalorder %s7177_s6, 2  ;;  %s149_s10 = sadd.s32 1, %s5063_s20 }
   0xd   : > { %p159_p5 = scmp.ne.s32.totalorder %s5063_s20, %s5059_s19  ;;  %p160_p6 = scmp.eq.s32.totalorder %s4145_s28, 3 }
   0xe   : > { %s7179_s6 = smov (%p32_p4, %s7177_s6), 0  ;;  %p165_p8 = scmp.ne.s32.totalorder %s5059_s19, %s5055_s18 }
   0xf   : > { %7122 = sst [smem:[#allocation7_spill]] %s7179_s6  ;;  %p5200_p7 = por %p160_p6, %p159_p5 }
  0x10   : > { %s34_s12 = ssub.s32 %s5087_s26, %s7179_s6  ;;  %p166_p9 = scmp.eq.s32.totalorder %s4146_s29, 3 }
  0x11   : > { %s36_s13 = sor.u32 %s35_s8, %s34_s12  ;;  %p147_p10 = scmp.eq.s32.totalorder %s34_s12, 0 }
  0x12   : > { %p37_p11 = scmp.eq.s32.totalorder %s36_s13, 0  ;;  %p5208_p12 = por %p166_p9, %p165_p8 }
  0x13   : > { %s5213_s15 = scalar_select %p147_p10, %s5063_s20, %s149_s10  }
  0x14   : > { %s5216_s16 = scalar_select %p37_p11, %s5071_s22, %s39_s7  }
  0x15   : > { %p4148_p13 = scmp.ge.s32.totalorder %s5091_s27, 4 }
  0x17   : > { %194 = sbr.rel (%p4148_p13) target bundleno = 121 (0x79), region = 32 }
  0x1e   : > { %197 = sbr.rel (!%p5191_p3) target bundleno = 121 (0x79), region = 36  ;;  %s199_s17 = sand.u32 (%p5191_p3), 1, %s5071_s22  }
  0x1f   : > { %s4189_s28 = sshll.u32 (%p5191_p3), %s5087_s26, 8  ;;  %s4149_s29 = sshll.u32 (%p5191_p3), %s199_s17, 9 }
  0x20   : > { %s204_s8 = sadd.s32 (%p5191_p3), %s5083_s25, %s4189_s28  ;;  %s5232_s7 = scalar_lea.vmem (%p5191_p3), [#allocation3], %s4149_s29 }
  0x21   : > { %s4152_s12 = sshll.u32 (%p5191_p3), %s204_s8, 2 }
  0x22   : > { %s5227_s10 = scalar_lea.vmem (%p5191_p3), %s7094_s0, %s4152_s12 }
  0x23   : > { %v222_v0 = vld [vmem:[%s5227_s10] sm:$0xf] (%p5191_p3)  ;;  %v224_v1 = vld [vmem:[%s5227_s10 + $0x8] sm:$0xf] (%p5191_p3)  ;;  %v226_v2 = vld [vmem:[%s5227_s10 + $0x10] sm:$0xf] (%p5191_p3) }
  0x24   : > { %223 = vst [vmem:[%s5232_s7] sm:$0xf] (%p5191_p3), %v222_v0  ;;  %225 = vst [vmem:[%s5232_s7 + $0x4] sm:$0xf] (%p5191_p3), %v224_v1  ;;  %v228_v3 = vld [vmem:[%s5227_s10 + $0x18] sm:$0xf] (%p5191_p3) }
  0x25   : > { %227 = vst [vmem:[%s5232_s7 + $0x8] sm:$0xf] %v226_v2  ;;  %v230_v4 = vld [vmem:[%s5227_s10 + $0x20] sm:$0xf]  ;;  %v232_v5 = vld [vmem:[%s5227_s10 + $0x28] sm:$0xf] }
  0x26   : > { %229 = vst [vmem:[%s5232_s7 + $0xc] sm:$0xf] %v228_v3  ;;  %231 = vst [vmem:[%s5232_s7 + $0x10] sm:$0xf] %v230_v4  ;;  %v234_v6 = vld [vmem:[%s5227_s10 + $0x30] sm:$0xf] }
  0x27   : > { %233 = vst [vmem:[%s5232_s7 + $0x14] sm:$0xf] %v232_v5  ;;  %v236_v7 = vld [vmem:[%s5227_s10 + $0x38] sm:$0xf]  ;;  %v238_v8 = vld [vmem:[%s5227_s10 + $0x40] sm:$0xf] }
  0x28   : > { %235 = vst [vmem:[%s5232_s7 + $0x18] sm:$0xf] %v234_v6  ;;  %237 = vst [vmem:[%s5232_s7 + $0x1c] sm:$0xf] %v236_v7  ;;  %v240_v9 = vld [vmem:[%s5227_s10 + $0x48] sm:$0xf] }
  0x29   : > { %239 = vst [vmem:[%s5232_s7 + $0x20] sm:$0xf] %v238_v8  ;;  %v242_v10 = vld [vmem:[%s5227_s10 + $0x50] sm:$0xf]  ;;  %v244_v11 = vld [vmem:[%s5227_s10 + $0x58] sm:$0xf] }
  0x2a   : > { %241 = vst [vmem:[%s5232_s7 + $0x24] sm:$0xf] %v240_v9  ;;  %243 = vst [vmem:[%s5232_s7 + $0x28] sm:$0xf] %v242_v10  ;;  %v246_v12 = vld [vmem:[%s5227_s10 + $0x60] sm:$0xf] }
  0x2b   : > { %245 = vst [vmem:[%s5232_s7 + $0x2c] sm:$0xf] %v244_v11  ;;  %v248_v13 = vld [vmem:[%s5227_s10 + $0x68] sm:$0xf]  ;;  %v250_v14 = vld [vmem:[%s5227_s10 + $0x70] sm:$0xf] }
  0x2c   : > { %247 = vst [vmem:[%s5232_s7 + $0x30] sm:$0xf] %v246_v12  ;;  %249 = vst [vmem:[%s5232_s7 + $0x34] sm:$0xf] %v248_v13  ;;  %v252_v15 = vld [vmem:[%s5227_s10 + $0x78] sm:$0xf] }
  0x2d   : > { %251 = vst [vmem:[%s5232_s7 + $0x38] sm:$0xf] %v250_v14  ;;  %v254_v16 = vld [vmem:[%s5227_s10 + $0x80] sm:$0xf]  ;;  %v256_v17 = vld [vmem:[%s5227_s10 + $0x88] sm:$0xf] }
  0x2e   : > { %253 = vst [vmem:[%s5232_s7 + $0x3c] sm:$0xf] %v252_v15  ;;  %255 = vst [vmem:[%s5232_s7 + $0x40] sm:$0xf] %v254_v16  ;;  %v258_v18 = vld [vmem:[%s5227_s10 + $0x90] sm:$0xf] }
  0x2f   : > { %257 = vst [vmem:[%s5232_s7 + $0x44] sm:$0xf] %v256_v17  ;;  %v260_v19 = vld [vmem:[%s5227_s10 + $0x98] sm:$0xf]  ;;  %v262_v20 = vld [vmem:[%s5227_s10 + $0xa0] sm:$0xf] }
  0x30   : > { %259 = vst [vmem:[%s5232_s7 + $0x48] sm:$0xf] %v258_v18  ;;  %261 = vst [vmem:[%s5232_s7 + $0x4c] sm:$0xf] %v260_v19  ;;  %v264_v21 = vld [vmem:[%s5227_s10 + $0xa8] sm:$0xf] }
  0x31   : > { %263 = vst [vmem:[%s5232_s7 + $0x50] sm:$0xf] %v262_v20  ;;  %v266_v22 = vld [vmem:[%s5227_s10 + $0xb0] sm:$0xf]  ;;  %v268_v23 = vld [vmem:[%s5227_s10 + $0xb8] sm:$0xf] }
  0x32   : > { %265 = vst [vmem:[%s5232_s7 + $0x54] sm:$0xf] %v264_v21  ;;  %267 = vst [vmem:[%s5232_s7 + $0x58] sm:$0xf] %v266_v22  ;;  %v270_v24 = vld [vmem:[%s5227_s10 + $0xc0] sm:$0xf] }
  0x33   : > { %269 = vst [vmem:[%s5232_s7 + $0x5c] sm:$0xf] %v268_v23  ;;  %v272_v25 = vld [vmem:[%s5227_s10 + $0xc8] sm:$0xf]  ;;  %v274_v26 = vld [vmem:[%s5227_s10 + $0xd0] sm:$0xf] }
  0x34   : > { %271 = vst [vmem:[%s5232_s7 + $0x60] sm:$0xf] %v270_v24  ;;  %273 = vst [vmem:[%s5232_s7 + $0x64] sm:$0xf] %v272_v25  ;;  %v276_v27 = vld [vmem:[%s5227_s10 + $0xd8] sm:$0xf] }
  0x35   : > { %275 = vst [vmem:[%s5232_s7 + $0x68] sm:$0xf] %v274_v26  ;;  %v278_v28 = vld [vmem:[%s5227_s10 + $0xe0] sm:$0xf]  ;;  %v280_v29 = vld [vmem:[%s5227_s10 + $0xe8] sm:$0xf] }
  0x36   : > { %277 = vst [vmem:[%s5232_s7 + $0x6c] sm:$0xf] %v276_v27  ;;  %279 = vst [vmem:[%s5232_s7 + $0x70] sm:$0xf] %v278_v28  ;;  %v282_v30 = vld [vmem:[%s5227_s10 + $0xf0] sm:$0xf] }
  0x37   : > { %281 = vst [vmem:[%s5232_s7 + $0x74] sm:$0xf] %v280_v29  ;;  %v284_v31 = vld [vmem:[%s5227_s10 + $0xf8] sm:$0xf]  ;;  %v286_v32 = vld [vmem:[%s5227_s10 + $0x100] sm:$0xf] }
  0x38   : > { %283 = vst [vmem:[%s5232_s7 + $0x78] sm:$0xf] %v282_v30  ;;  %285 = vst [vmem:[%s5232_s7 + $0x7c] sm:$0xf] %v284_v31  ;;  %v288_v33 = vld [vmem:[%s5227_s10 + $0x108] sm:$0xf] }
  0x39   : > { %287 = vst [vmem:[%s5232_s7 + $0x80] sm:$0xf] %v286_v32  ;;  %v290_v34 = vld [vmem:[%s5227_s10 + $0x110] sm:$0xf]  ;;  %v292_v35 = vld [vmem:[%s5227_s10 + $0x118] sm:$0xf] }
  0x3a   : > { %289 = vst [vmem:[%s5232_s7 + $0x84] sm:$0xf] %v288_v33  ;;  %291 = vst [vmem:[%s5232_s7 + $0x88] sm:$0xf] %v290_v34  ;;  %v294_v36 = vld [vmem:[%s5227_s10 + $0x120] sm:$0xf] }
  0x3b   : > { %293 = vst [vmem:[%s5232_s7 + $0x8c] sm:$0xf] %v292_v35  ;;  %v296_v37 = vld [vmem:[%s5227_s10 + $0x128] sm:$0xf]  ;;  %v298_v38 = vld [vmem:[%s5227_s10 + $0x130] sm:$0xf] }
  0x3c   : > { %295 = vst [vmem:[%s5232_s7 + $0x90] sm:$0xf] %v294_v36  ;;  %297 = vst [vmem:[%s5232_s7 + $0x94] sm:$0xf] %v296_v37  ;;  %v300_v39 = vld [vmem:[%s5227_s10 + $0x138] sm:$0xf] }
  0x3d   : > { %299 = vst [vmem:[%s5232_s7 + $0x98] sm:$0xf] %v298_v38  ;;  %v302_v40 = vld [vmem:[%s5227_s10 + $0x140] sm:$0xf]  ;;  %v304_v41 = vld [vmem:[%s5227_s10 + $0x148] sm:$0xf] }
  0x3e   : > { %301 = vst [vmem:[%s5232_s7 + $0x9c] sm:$0xf] %v300_v39  ;;  %303 = vst [vmem:[%s5232_s7 + $0xa0] sm:$0xf] %v302_v40  ;;  %v306_v42 = vld [vmem:[%s5227_s10 + $0x150] sm:$0xf] }
  0x3f   : > { %305 = vst [vmem:[%s5232_s7 + $0xa4] sm:$0xf] %v304_v41  ;;  %v308_v43 = vld [vmem:[%s5227_s10 + $0x158] sm:$0xf]  ;;  %v310_v44 = vld [vmem:[%s5227_s10 + $0x160] sm:$0xf] }
  0x40   : > { %307 = vst [vmem:[%s5232_s7 + $0xa8] sm:$0xf] %v306_v42  ;;  %309 = vst [vmem:[%s5232_s7 + $0xac] sm:$0xf] %v308_v43  ;;  %v312_v45 = vld [vmem:[%s5227_s10 + $0x168] sm:$0xf] }
  0x41   : > { %311 = vst [vmem:[%s5232_s7 + $0xb0] sm:$0xf] %v310_v44  ;;  %v314_v46 = vld [vmem:[%s5227_s10 + $0x170] sm:$0xf]  ;;  %v316_v47 = vld [vmem:[%s5227_s10 + $0x178] sm:$0xf] }
  0x42   : > { %313 = vst [vmem:[%s5232_s7 + $0xb4] sm:$0xf] %v312_v45  ;;  %315 = vst [vmem:[%s5232_s7 + $0xb8] sm:$0xf] %v314_v46  ;;  %v318_v48 = vld [vmem:[%s5227_s10 + $0x180] sm:$0xf] }
  0x43   : > { %317 = vst [vmem:[%s5232_s7 + $0xbc] sm:$0xf] %v316_v47  ;;  %v320_v49 = vld [vmem:[%s5227_s10 + $0x188] sm:$0xf]  ;;  %v322_v50 = vld [vmem:[%s5227_s10 + $0x190] sm:$0xf] }
  0x44   : > { %319 = vst [vmem:[%s5232_s7 + $0xc0] sm:$0xf] %v318_v48  ;;  %321 = vst [vmem:[%s5232_s7 + $0xc4] sm:$0xf] %v320_v49  ;;  %v324_v51 = vld [vmem:[%s5227_s10 + $0x198] sm:$0xf] }
  0x45   : > { %323 = vst [vmem:[%s5232_s7 + $0xc8] sm:$0xf] %v322_v50  ;;  %v326_v52 = vld [vmem:[%s5227_s10 + $0x1a0] sm:$0xf]  ;;  %v328_v53 = vld [vmem:[%s5227_s10 + $0x1a8] sm:$0xf] }
  0x46   : > { %325 = vst [vmem:[%s5232_s7 + $0xcc] sm:$0xf] %v324_v51  ;;  %327 = vst [vmem:[%s5232_s7 + $0xd0] sm:$0xf] %v326_v52  ;;  %v330_v54 = vld [vmem:[%s5227_s10 + $0x1b0] sm:$0xf] }
  0x47   : > { %329 = vst [vmem:[%s5232_s7 + $0xd4] sm:$0xf] %v328_v53  ;;  %v332_v55 = vld [vmem:[%s5227_s10 + $0x1b8] sm:$0xf]  ;;  %v334_v56 = vld [vmem:[%s5227_s10 + $0x1c0] sm:$0xf] }
  0x48   : > { %331 = vst [vmem:[%s5232_s7 + $0xd8] sm:$0xf] %v330_v54  ;;  %333 = vst [vmem:[%s5232_s7 + $0xdc] sm:$0xf] %v332_v55  ;;  %v336_v57 = vld [vmem:[%s5227_s10 + $0x1c8] sm:$0xf] }
  0x49   : > { %335 = vst [vmem:[%s5232_s7 + $0xe0] sm:$0xf] %v334_v56  ;;  %v338_v58 = vld [vmem:[%s5227_s10 + $0x1d0] sm:$0xf]  ;;  %v340_v59 = vld [vmem:[%s5227_s10 + $0x1d8] sm:$0xf] }
  0x4a   : > { %337 = vst [vmem:[%s5232_s7 + $0xe4] sm:$0xf] %v336_v57  ;;  %339 = vst [vmem:[%s5232_s7 + $0xe8] sm:$0xf] %v338_v58  ;;  %v342_v60 = vld [vmem:[%s5227_s10 + $0x1e0] sm:$0xf] }
  0x4b   : > { %341 = vst [vmem:[%s5232_s7 + $0xec] sm:$0xf] %v340_v59  ;;  %v344_v61 = vld [vmem:[%s5227_s10 + $0x1e8] sm:$0xf]  ;;  %v346_v62 = vld [vmem:[%s5227_s10 + $0x1f0] sm:$0xf] }
  0x4c   : > { %343 = vst [vmem:[%s5232_s7 + $0xf0] sm:$0xf] %v342_v60  ;;  %345 = vst [vmem:[%s5232_s7 + $0xf4] sm:$0xf] %v344_v61  ;;  %v348_v63 = vld [vmem:[%s5227_s10 + $0x1f8] sm:$0xf] }
  0x4d   : > { %347 = vst [vmem:[%s5232_s7 + $0xf8] sm:$0xf] %v346_v62  ;;  %v350_v0 = vld [vmem:[%s5227_s10 + $0x200] sm:$0xf]  ;;  %v352_v1 = vld [vmem:[%s5227_s10 + $0x208] sm:$0xf] }
  0x4e   : > { %349 = vst [vmem:[%s5232_s7 + $0xfc] sm:$0xf] %v348_v63  ;;  %351 = vst [vmem:[%s5232_s7 + $0x100] sm:$0xf] %v350_v0  ;;  %v354_v2 = vld [vmem:[%s5227_s10 + $0x210] sm:$0xf] }
  0x4f   : > { %353 = vst [vmem:[%s5232_s7 + $0x104] sm:$0xf] %v352_v1  ;;  %v356_v3 = vld [vmem:[%s5227_s10 + $0x218] sm:$0xf]  ;;  %v358_v4 = vld [vmem:[%s5227_s10 + $0x220] sm:$0xf] }
  0x50   : > { %355 = vst [vmem:[%s5232_s7 + $0x108] sm:$0xf] %v354_v2  ;;  %357 = vst [vmem:[%s5232_s7 + $0x10c] sm:$0xf] %v356_v3  ;;  %v360_v5 = vld [vmem:[%s5227_s10 + $0x228] sm:$0xf] }
  0x51   : > { %359 = vst [vmem:[%s5232_s7 + $0x110] sm:$0xf] %v358_v4  ;;  %v362_v6 = vld [vmem:[%s5227_s10 + $0x230] sm:$0xf]  ;;  %v364_v7 = vld [vmem:[%s5227_s10 + $0x238] sm:$0xf] }
  0x52   : > { %361 = vst [vmem:[%s5232_s7 + $0x114] sm:$0xf] %v360_v5  ;;  %363 = vst [vmem:[%s5232_s7 + $0x118] sm:$0xf] %v362_v6  ;;  %v366_v8 = vld [vmem:[%s5227_s10 + $0x240] sm:$0xf] }
  0x53   : > { %365 = vst [vmem:[%s5232_s7 + $0x11c] sm:$0xf] %v364_v7  ;;  %v368_v9 = vld [vmem:[%s5227_s10 + $0x248] sm:$0xf]  ;;  %v370_v10 = vld [vmem:[%s5227_s10 + $0x250] sm:$0xf] }
  0x54   : > { %367 = vst [vmem:[%s5232_s7 + $0x120] sm:$0xf] %v366_v8  ;;  %369 = vst [vmem:[%s5232_s7 + $0x124] sm:$0xf] %v368_v9  ;;  %v372_v11 = vld [vmem:[%s5227_s10 + $0x258] sm:$0xf] }
  0x55   : > { %371 = vst [vmem:[%s5232_s7 + $0x128] sm:$0xf] %v370_v10  ;;  %v374_v12 = vld [vmem:[%s5227_s10 + $0x260] sm:$0xf]  ;;  %v376_v13 = vld [vmem:[%s5227_s10 + $0x268] sm:$0xf] }
  0x56   : > { %373 = vst [vmem:[%s5232_s7 + $0x12c] sm:$0xf] %v372_v11  ;;  %375 = vst [vmem:[%s5232_s7 + $0x130] sm:$0xf] %v374_v12  ;;  %v378_v14 = vld [vmem:[%s5227_s10 + $0x270] sm:$0xf] }
  0x57   : > { %377 = vst [vmem:[%s5232_s7 + $0x134] sm:$0xf] %v376_v13  ;;  %v380_v15 = vld [vmem:[%s5227_s10 + $0x278] sm:$0xf]  ;;  %v382_v16 = vld [vmem:[%s5227_s10 + $0x280] sm:$0xf] }
  0x58   : > { %379 = vst [vmem:[%s5232_s7 + $0x138] sm:$0xf] %v378_v14  ;;  %381 = vst [vmem:[%s5232_s7 + $0x13c] sm:$0xf] %v380_v15  ;;  %v384_v17 = vld [vmem:[%s5227_s10 + $0x288] sm:$0xf] }
  0x59   : > { %383 = vst [vmem:[%s5232_s7 + $0x140] sm:$0xf] %v382_v16  ;;  %v386_v18 = vld [vmem:[%s5227_s10 + $0x290] sm:$0xf]  ;;  %v388_v19 = vld [vmem:[%s5227_s10 + $0x298] sm:$0xf] }
  0x5a   : > { %385 = vst [vmem:[%s5232_s7 + $0x144] sm:$0xf] %v384_v17  ;;  %387 = vst [vmem:[%s5232_s7 + $0x148] sm:$0xf] %v386_v18  ;;  %v390_v20 = vld [vmem:[%s5227_s10 + $0x2a0] sm:$0xf] }
  0x5b   : > { %389 = vst [vmem:[%s5232_s7 + $0x14c] sm:$0xf] %v388_v19  ;;  %v392_v21 = vld [vmem:[%s5227_s10 + $0x2a8] sm:$0xf]  ;;  %v394_v22 = vld [vmem:[%s5227_s10 + $0x2b0] sm:$0xf] }
  0x5c   : > { %391 = vst [vmem:[%s5232_s7 + $0x150] sm:$0xf] %v390_v20  ;;  %393 = vst [vmem:[%s5232_s7 + $0x154] sm:$0xf] %v392_v21  ;;  %v396_v23 = vld [vmem:[%s5227_s10 + $0x2b8] sm:$0xf] }
  0x5d   : > { %395 = vst [vmem:[%s5232_s7 + $0x158] sm:$0xf] %v394_v22  ;;  %v398_v24 = vld [vmem:[%s5227_s10 + $0x2c0] sm:$0xf]  ;;  %v400_v25 = vld [vmem:[%s5227_s10 + $0x2c8] sm:$0xf] }
  0x5e   : > { %397 = vst [vmem:[%s5232_s7 + $0x15c] sm:$0xf] %v396_v23  ;;  %399 = vst [vmem:[%s5232_s7 + $0x160] sm:$0xf] %v398_v24  ;;  %v402_v26 = vld [vmem:[%s5227_s10 + $0x2d0] sm:$0xf] }
  0x5f   : > { %401 = vst [vmem:[%s5232_s7 + $0x164] sm:$0xf] %v400_v25  ;;  %v404_v27 = vld [vmem:[%s5227_s10 + $0x2d8] sm:$0xf]  ;;  %v406_v28 = vld [vmem:[%s5227_s10 + $0x2e0] sm:$0xf] }
  0x60   : > { %403 = vst [vmem:[%s5232_s7 + $0x168] sm:$0xf] %v402_v26  ;;  %405 = vst [vmem:[%s5232_s7 + $0x16c] sm:$0xf] %v404_v27  ;;  %v408_v29 = vld [vmem:[%s5227_s10 + $0x2e8] sm:$0xf] }
  0x61   : > { %407 = vst [vmem:[%s5232_s7 + $0x170] sm:$0xf] %v406_v28  ;;  %v410_v30 = vld [vmem:[%s5227_s10 + $0x2f0] sm:$0xf]  ;;  %v412_v31 = vld [vmem:[%s5227_s10 + $0x2f8] sm:$0xf] }
  0x62   : > { %409 = vst [vmem:[%s5232_s7 + $0x174] sm:$0xf] %v408_v29  ;;  %411 = vst [vmem:[%s5232_s7 + $0x178] sm:$0xf] %v410_v30  ;;  %v414_v32 = vld [vmem:[%s5227_s10 + $0x300] sm:$0xf] }
  0x63   : > { %413 = vst [vmem:[%s5232_s7 + $0x17c] sm:$0xf] %v412_v31  ;;  %v416_v33 = vld [vmem:[%s5227_s10 + $0x308] sm:$0xf]  ;;  %v418_v34 = vld [vmem:[%s5227_s10 + $0x310] sm:$0xf] }
  0x64   : > { %415 = vst [vmem:[%s5232_s7 + $0x180] sm:$0xf] %v414_v32  ;;  %417 = vst [vmem:[%s5232_s7 + $0x184] sm:$0xf] %v416_v33  ;;  %v420_v35 = vld [vmem:[%s5227_s10 + $0x318] sm:$0xf] }
  0x65   : > { %419 = vst [vmem:[%s5232_s7 + $0x188] sm:$0xf] %v418_v34  ;;  %v422_v36 = vld [vmem:[%s5227_s10 + $0x320] sm:$0xf]  ;;  %v424_v37 = vld [vmem:[%s5227_s10 + $0x328] sm:$0xf] }
  0x66   : > { %421 = vst [vmem:[%s5232_s7 + $0x18c] sm:$0xf] %v420_v35  ;;  %423 = vst [vmem:[%s5232_s7 + $0x190] sm:$0xf] %v422_v36  ;;  %v426_v38 = vld [vmem:[%s5227_s10 + $0x330] sm:$0xf] }
  0x67   : > { %425 = vst [vmem:[%s5232_s7 + $0x194] sm:$0xf] %v424_v37  ;;  %v428_v39 = vld [vmem:[%s5227_s10 + $0x338] sm:$0xf]  ;;  %v430_v40 = vld [vmem:[%s5227_s10 + $0x340] sm:$0xf] }
  0x68   : > { %427 = vst [vmem:[%s5232_s7 + $0x198] sm:$0xf] %v426_v38  ;;  %429 = vst [vmem:[%s5232_s7 + $0x19c] sm:$0xf] %v428_v39  ;;  %v432_v41 = vld [vmem:[%s5227_s10 + $0x348] sm:$0xf] }
  0x69   : > { %431 = vst [vmem:[%s5232_s7 + $0x1a0] sm:$0xf] %v430_v40  ;;  %v434_v42 = vld [vmem:[%s5227_s10 + $0x350] sm:$0xf]  ;;  %v436_v43 = vld [vmem:[%s5227_s10 + $0x358] sm:$0xf] }
  0x6a   : > { %433 = vst [vmem:[%s5232_s7 + $0x1a4] sm:$0xf] %v432_v41  ;;  %435 = vst [vmem:[%s5232_s7 + $0x1a8] sm:$0xf] %v434_v42  ;;  %v438_v44 = vld [vmem:[%s5227_s10 + $0x360] sm:$0xf] }
  0x6b   : > { %437 = vst [vmem:[%s5232_s7 + $0x1ac] sm:$0xf] %v436_v43  ;;  %v440_v45 = vld [vmem:[%s5227_s10 + $0x368] sm:$0xf]  ;;  %v442_v46 = vld [vmem:[%s5227_s10 + $0x370] sm:$0xf] }
  0x6c   : > { %439 = vst [vmem:[%s5232_s7 + $0x1b0] sm:$0xf] %v438_v44  ;;  %441 = vst [vmem:[%s5232_s7 + $0x1b4] sm:$0xf] %v440_v45  ;;  %v444_v47 = vld [vmem:[%s5227_s10 + $0x378] sm:$0xf] }
  0x6d   : > { %443 = vst [vmem:[%s5232_s7 + $0x1b8] sm:$0xf] %v442_v46  ;;  %v446_v48 = vld [vmem:[%s5227_s10 + $0x380] sm:$0xf]  ;;  %v448_v49 = vld [vmem:[%s5227_s10 + $0x388] sm:$0xf] }
  0x6e   : > { %445 = vst [vmem:[%s5232_s7 + $0x1bc] sm:$0xf] %v444_v47  ;;  %447 = vst [vmem:[%s5232_s7 + $0x1c0] sm:$0xf] %v446_v48  ;;  %v450_v50 = vld [vmem:[%s5227_s10 + $0x390] sm:$0xf] }
  0x6f   : > { %449 = vst [vmem:[%s5232_s7 + $0x1c4] sm:$0xf] %v448_v49  ;;  %v452_v51 = vld [vmem:[%s5227_s10 + $0x398] sm:$0xf]  ;;  %v454_v52 = vld [vmem:[%s5227_s10 + $0x3a0] sm:$0xf] }
  0x70   : > { %451 = vst [vmem:[%s5232_s7 + $0x1c8] sm:$0xf] %v450_v50  ;;  %453 = vst [vmem:[%s5232_s7 + $0x1cc] sm:$0xf] %v452_v51  ;;  %v456_v53 = vld [vmem:[%s5227_s10 + $0x3a8] sm:$0xf] }
  0x71   : > { %455 = vst [vmem:[%s5232_s7 + $0x1d0] sm:$0xf] %v454_v52  ;;  %v458_v54 = vld [vmem:[%s5227_s10 + $0x3b0] sm:$0xf]  ;;  %v460_v55 = vld [vmem:[%s5227_s10 + $0x3b8] sm:$0xf] }
  0x72   : > { %457 = vst [vmem:[%s5232_s7 + $0x1d4] sm:$0xf] %v456_v53  ;;  %459 = vst [vmem:[%s5232_s7 + $0x1d8] sm:$0xf] %v458_v54  ;;  %v462_v56 = vld [vmem:[%s5227_s10 + $0x3c0] sm:$0xf] }
  0x73   : > { %461 = vst [vmem:[%s5232_s7 + $0x1dc] sm:$0xf] %v460_v55  ;;  %v464_v57 = vld [vmem:[%s5227_s10 + $0x3c8] sm:$0xf]  ;;  %v466_v58 = vld [vmem:[%s5227_s10 + $0x3d0] sm:$0xf] }
  0x74   : > { %463 = vst [vmem:[%s5232_s7 + $0x1e0] sm:$0xf] %v462_v56  ;;  %465 = vst [vmem:[%s5232_s7 + $0x1e4] sm:$0xf] %v464_v57  ;;  %v468_v59 = vld [vmem:[%s5227_s10 + $0x3d8] sm:$0xf] }
  0x75   : > { %467 = vst [vmem:[%s5232_s7 + $0x1e8] sm:$0xf] %v466_v58  ;;  %v470_v60 = vld [vmem:[%s5227_s10 + $0x3e0] sm:$0xf]  ;;  %v472_v61 = vld [vmem:[%s5227_s10 + $0x3e8] sm:$0xf] }
  0x76   : > { %469 = vst [vmem:[%s5232_s7 + $0x1ec] sm:$0xf] %v468_v59  ;;  %471 = vst [vmem:[%s5232_s7 + $0x1f0] sm:$0xf] %v470_v60  ;;  %v474_v62 = vld [vmem:[%s5227_s10 + $0x3f0] sm:$0xf] }
  0x77   : > { %473 = vst [vmem:[%s5232_s7 + $0x1f4] sm:$0xf] %v472_v61  ;;  %v476_v63 = vld [vmem:[%s5227_s10 + $0x3f8] sm:$0xf]  ;;  %475 = vst [vmem:[%s5232_s7 + $0x1f8] sm:$0xf] %v474_v62 }
  0x78   : > { %477 = vst [vmem:[%s5232_s7 + $0x1fc] sm:$0xf] %v476_v63 }
  0x79 PF: > { %p4153_p0 = scmp.ge.s32.totalorder %s5091_s27, 1  ;;  %p755_p1 = scmp.lt.s32.totalorder %s5091_s27, 5 }
  0x7b   : > { %p756_p2 = pnand %p4153_p0, %p755_p1 }
  0x7c   : > { %s762_s6 = sand.u32 (!%p756_p2), 1, %s5067_s21   ;;  %s786_s9 = sand.u32 (!%p756_p2), 1, %s5059_s19  }
  0x7d   : > { %759 = sbr.rel (%p756_p2) target bundleno = 1165 (0x48d), region = 77  ;;  %s4154_s17 = sshll.u32 (!%p756_p2), %s762_s6, 9 }
  0x7e   : > { %s4155_s28 = sshll.u32 (!%p756_p2), %s786_s9, 4  ;;  %s5493_s29 = scalar_lea.vmem (!%p756_p2), [#allocation3], %s4154_s17 }
  0x7f   : > { %s5495_s8 = scalar_lea.vmem (!%p756_p2), [#allocation4], %s4155_s28  ;;  %p4156_p3 = scmp.ne.s32.totalorder (!%p756_p2), %s5075_s23, 0 }
  0x84   : > { %794 = sbr.rel (%p4156_p3) target bundleno = 197 (0xc5), region = 85  ;;  %v5093_v0 = vmov (!%p4156_p3), 0.0  }
  0x85   : > { %795 = vst [vmem:[#allocation2] sm:$0xff] (!%p4156_p3), %v5093_v0  ;;  %796 = vst [vmem:[#allocation2 + $0x8] sm:$0xff] (!%p4156_p3), %v5093_v0 }
  0x86   : > { %797 = vst [vmem:[#allocation2 + $0x10] sm:$0xff] (!%p4156_p3), %v5093_v0  ;;  %798 = vst [vmem:[#allocation2 + $0x18] sm:$0xff] (!%p4156_p3), %v5093_v0 }
  0x87   : > { %799 = vst [vmem:[#allocation2 + $0x20] sm:$0xff] (!%p4156_p3), %v5093_v0  ;;  %800 = vst [vmem:[#allocation2 + $0x28] sm:$0xff] (!%p4156_p3), %v5093_v0 }
  0x88   : > { %801 = vst [vmem:[#allocation2 + $0x30] sm:$0xff] (!%p4156_p3), %v5093_v0  ;;  %802 = vst [vmem:[#allocation2 + $0x38] sm:$0xff] (!%p4156_p3), %v5093_v0 }
  0x89   : > { %803 = vst [vmem:[#allocation2 + $0x40] sm:$0xff] (!%p4156_p3), %v5093_v0  ;;  %804 = vst [vmem:[#allocation2 + $0x48] sm:$0xff] (!%p4156_p3), %v5093_v0 }
  0x8a   : > { %805 = vst [vmem:[#allocation2 + $0x50] sm:$0xff] (!%p4156_p3), %v5093_v0  ;;  %806 = vst [vmem:[#allocation2 + $0x58] sm:$0xff] (!%p4156_p3), %v5093_v0 }
  0x8b   : > { %807 = vst [vmem:[#allocation2 + $0x60] sm:$0xff] %v5093_v0  ;;  %808 = vst [vmem:[#allocation2 + $0x68] sm:$0xff] %v5093_v0 }
  0x8c   : > { %809 = vst [vmem:[#allocation2 + $0x70] sm:$0xff] %v5093_v0  ;;  %810 = vst [vmem:[#allocation2 + $0x78] sm:$0xff] %v5093_v0 }
  0x8d   : > { %811 = vst [vmem:[#allocation2 + $0x80] sm:$0xff] %v5093_v0  ;;  %812 = vst [vmem:[#allocation2 + $0x88] sm:$0xff] %v5093_v0 }
  0x8e   : > { %813 = vst [vmem:[#allocation2 + $0x90] sm:$0xff] %v5093_v0  ;;  %814 = vst [vmem:[#allocation2 + $0x98] sm:$0xff] %v5093_v0 }
  0x8f   : > { %815 = vst [vmem:[#allocation2 + $0xa0] sm:$0xff] %v5093_v0  ;;  %816 = vst [vmem:[#allocation2 + $0xa8] sm:$0xff] %v5093_v0 }
  0x90   : > { %817 = vst [vmem:[#allocation2 + $0xb0] sm:$0xff] %v5093_v0  ;;  %818 = vst [vmem:[#allocation2 + $0xb8] sm:$0xff] %v5093_v0 }
  0x91   : > { %819 = vst [vmem:[#allocation2 + $0xc0] sm:$0xff] %v5093_v0  ;;  %820 = vst [vmem:[#allocation2 + $0xc8] sm:$0xff] %v5093_v0 }
  0x92   : > { %821 = vst [vmem:[#allocation2 + $0xd0] sm:$0xff] %v5093_v0  ;;  %822 = vst [vmem:[#allocation2 + $0xd8] sm:$0xff] %v5093_v0 }
  0x93   : > { %823 = vst [vmem:[#allocation2 + $0xe0] sm:$0xff] %v5093_v0  ;;  %824 = vst [vmem:[#allocation2 + $0xe8] sm:$0xff] %v5093_v0 }
  0x94   : > { %825 = vst [vmem:[#allocation2 + $0xf0] sm:$0xff] %v5093_v0  ;;  %826 = vst [vmem:[#allocation2 + $0xf8] sm:$0xff] %v5093_v0 }
  0x95   : > { %827 = vst [vmem:[#allocation2 + $0x100] sm:$0xff] %v5093_v0  ;;  %828 = vst [vmem:[#allocation2 + $0x108] sm:$0xff] %v5093_v0 }
  0x96   : > { %829 = vst [vmem:[#allocation2 + $0x110] sm:$0xff] %v5093_v0  ;;  %830 = vst [vmem:[#allocation2 + $0x118] sm:$0xff] %v5093_v0 }
  0x97   : > { %831 = vst [vmem:[#allocation2 + $0x120] sm:$0xff] %v5093_v0  ;;  %832 = vst [vmem:[#allocation2 + $0x128] sm:$0xff] %v5093_v0 }
  0x98   : > { %833 = vst [vmem:[#allocation2 + $0x130] sm:$0xff] %v5093_v0  ;;  %834 = vst [vmem:[#allocation2 + $0x138] sm:$0xff] %v5093_v0 }
  0x99   : > { %835 = vst [vmem:[#allocation2 + $0x140] sm:$0xff] %v5093_v0  ;;  %836 = vst [vmem:[#allocation2 + $0x148] sm:$0xff] %v5093_v0 }
  0x9a   : > { %837 = vst [vmem:[#allocation2 + $0x150] sm:$0xff] %v5093_v0  ;;  %838 = vst [vmem:[#allocation2 + $0x158] sm:$0xff] %v5093_v0 }
  0x9b   : > { %839 = vst [vmem:[#allocation2 + $0x160] sm:$0xff] %v5093_v0  ;;  %840 = vst [vmem:[#allocation2 + $0x168] sm:$0xff] %v5093_v0 }
  0x9c   : > { %841 = vst [vmem:[#allocation2 + $0x170] sm:$0xff] %v5093_v0  ;;  %842 = vst [vmem:[#allocation2 + $0x178] sm:$0xff] %v5093_v0 }
  0x9d   : > { %843 = vst [vmem:[#allocation2 + $0x180] sm:$0xff] %v5093_v0  ;;  %844 = vst [vmem:[#allocation2 + $0x188] sm:$0xff] %v5093_v0 }
  0x9e   : > { %845 = vst [vmem:[#allocation2 + $0x190] sm:$0xff] %v5093_v0  ;;  %846 = vst [vmem:[#allocation2 + $0x198] sm:$0xff] %v5093_v0 }
  0x9f   : > { %847 = vst [vmem:[#allocation2 + $0x1a0] sm:$0xff] %v5093_v0  ;;  %848 = vst [vmem:[#allocation2 + $0x1a8] sm:$0xff] %v5093_v0 }
  0xa0   : > { %849 = vst [vmem:[#allocation2 + $0x1b0] sm:$0xff] %v5093_v0  ;;  %850 = vst [vmem:[#allocation2 + $0x1b8] sm:$0xff] %v5093_v0 }
  0xa1   : > { %851 = vst [vmem:[#allocation2 + $0x1c0] sm:$0xff] %v5093_v0  ;;  %852 = vst [vmem:[#allocation2 + $0x1c8] sm:$0xff] %v5093_v0 }
  0xa2   : > { %853 = vst [vmem:[#allocation2 + $0x1d0] sm:$0xff] %v5093_v0  ;;  %854 = vst [vmem:[#allocation2 + $0x1d8] sm:$0xff] %v5093_v0 }
  0xa3   : > { %855 = vst [vmem:[#allocation2 + $0x1e0] sm:$0xff] %v5093_v0  ;;  %856 = vst [vmem:[#allocation2 + $0x1e8] sm:$0xff] %v5093_v0 }
  0xa4   : > { %857 = vst [vmem:[#allocation2 + $0x1f0] sm:$0xff] %v5093_v0  ;;  %858 = vst [vmem:[#allocation2 + $0x1f8] sm:$0xff] %v5093_v0 }
  0xa5   : > { %859 = vst [vmem:[#allocation2 + $0x200] sm:$0xff] %v5093_v0  ;;  %860 = vst [vmem:[#allocation2 + $0x208] sm:$0xff] %v5093_v0 }
  0xa6   : > { %861 = vst [vmem:[#allocation2 + $0x210] sm:$0xff] %v5093_v0  ;;  %862 = vst [vmem:[#allocation2 + $0x218] sm:$0xff] %v5093_v0 }
  0xa7   : > { %863 = vst [vmem:[#allocation2 + $0x220] sm:$0xff] %v5093_v0  ;;  %864 = vst [vmem:[#allocation2 + $0x228] sm:$0xff] %v5093_v0 }
  0xa8   : > { %865 = vst [vmem:[#allocation2 + $0x230] sm:$0xff] %v5093_v0  ;;  %866 = vst [vmem:[#allocation2 + $0x238] sm:$0xff] %v5093_v0 }
  0xa9   : > { %867 = vst [vmem:[#allocation2 + $0x240] sm:$0xff] %v5093_v0  ;;  %868 = vst [vmem:[#allocation2 + $0x248] sm:$0xff] %v5093_v0 }
  0xaa   : > { %869 = vst [vmem:[#allocation2 + $0x250] sm:$0xff] %v5093_v0  ;;  %870 = vst [vmem:[#allocation2 + $0x258] sm:$0xff] %v5093_v0 }
  0xab   : > { %871 = vst [vmem:[#allocation2 + $0x260] sm:$0xff] %v5093_v0  ;;  %872 = vst [vmem:[#allocation2 + $0x268] sm:$0xff] %v5093_v0 }
  0xac   : > { %873 = vst [vmem:[#allocation2 + $0x270] sm:$0xff] %v5093_v0  ;;  %874 = vst [vmem:[#allocation2 + $0x278] sm:$0xff] %v5093_v0 }
  0xad   : > { %875 = vst [vmem:[#allocation2 + $0x280] sm:$0xff] %v5093_v0  ;;  %876 = vst [vmem:[#allocation2 + $0x288] sm:$0xff] %v5093_v0 }
  0xae   : > { %877 = vst [vmem:[#allocation2 + $0x290] sm:$0xff] %v5093_v0  ;;  %878 = vst [vmem:[#allocation2 + $0x298] sm:$0xff] %v5093_v0 }
  0xaf   : > { %879 = vst [vmem:[#allocation2 + $0x2a0] sm:$0xff] %v5093_v0  ;;  %880 = vst [vmem:[#allocation2 + $0x2a8] sm:$0xff] %v5093_v0 }
  0xb0   : > { %881 = vst [vmem:[#allocation2 + $0x2b0] sm:$0xff] %v5093_v0  ;;  %882 = vst [vmem:[#allocation2 + $0x2b8] sm:$0xff] %v5093_v0 }
  0xb1   : > { %883 = vst [vmem:[#allocation2 + $0x2c0] sm:$0xff] %v5093_v0  ;;  %884 = vst [vmem:[#allocation2 + $0x2c8] sm:$0xff] %v5093_v0 }
  0xb2   : > { %885 = vst [vmem:[#allocation2 + $0x2d0] sm:$0xff] %v5093_v0  ;;  %886 = vst [vmem:[#allocation2 + $0x2d8] sm:$0xff] %v5093_v0 }
  0xb3   : > { %887 = vst [vmem:[#allocation2 + $0x2e0] sm:$0xff] %v5093_v0  ;;  %888 = vst [vmem:[#allocation2 + $0x2e8] sm:$0xff] %v5093_v0 }
  0xb4   : > { %889 = vst [vmem:[#allocation2 + $0x2f0] sm:$0xff] %v5093_v0  ;;  %890 = vst [vmem:[#allocation2 + $0x2f8] sm:$0xff] %v5093_v0 }
  0xb5   : > { %891 = vst [vmem:[#allocation2 + $0x300] sm:$0xff] %v5093_v0  ;;  %892 = vst [vmem:[#allocation2 + $0x308] sm:$0xff] %v5093_v0 }
  0xb6   : > { %893 = vst [vmem:[#allocation2 + $0x310] sm:$0xff] %v5093_v0  ;;  %894 = vst [vmem:[#allocation2 + $0x318] sm:$0xff] %v5093_v0 }
  0xb7   : > { %895 = vst [vmem:[#allocation2 + $0x320] sm:$0xff] %v5093_v0  ;;  %896 = vst [vmem:[#allocation2 + $0x328] sm:$0xff] %v5093_v0 }
  0xb8   : > { %897 = vst [vmem:[#allocation2 + $0x330] sm:$0xff] %v5093_v0  ;;  %898 = vst [vmem:[#allocation2 + $0x338] sm:$0xff] %v5093_v0 }
  0xb9   : > { %899 = vst [vmem:[#allocation2 + $0x340] sm:$0xff] %v5093_v0  ;;  %900 = vst [vmem:[#allocation2 + $0x348] sm:$0xff] %v5093_v0 }
  0xba   : > { %901 = vst [vmem:[#allocation2 + $0x350] sm:$0xff] %v5093_v0  ;;  %902 = vst [vmem:[#allocation2 + $0x358] sm:$0xff] %v5093_v0 }
  0xbb   : > { %903 = vst [vmem:[#allocation2 + $0x360] sm:$0xff] %v5093_v0  ;;  %904 = vst [vmem:[#allocation2 + $0x368] sm:$0xff] %v5093_v0 }
  0xbc   : > { %905 = vst [vmem:[#allocation2 + $0x370] sm:$0xff] %v5093_v0  ;;  %906 = vst [vmem:[#allocation2 + $0x378] sm:$0xff] %v5093_v0 }
  0xbd   : > { %907 = vst [vmem:[#allocation2 + $0x380] sm:$0xff] %v5093_v0  ;;  %908 = vst [vmem:[#allocation2 + $0x388] sm:$0xff] %v5093_v0 }
  0xbe   : > { %909 = vst [vmem:[#allocation2 + $0x390] sm:$0xff] %v5093_v0  ;;  %910 = vst [vmem:[#allocation2 + $0x398] sm:$0xff] %v5093_v0 }
  0xbf   : > { %911 = vst [vmem:[#allocation2 + $0x3a0] sm:$0xff] %v5093_v0  ;;  %912 = vst [vmem:[#allocation2 + $0x3a8] sm:$0xff] %v5093_v0 }
  0xc0   : > { %913 = vst [vmem:[#allocation2 + $0x3b0] sm:$0xff] %v5093_v0  ;;  %914 = vst [vmem:[#allocation2 + $0x3b8] sm:$0xff] %v5093_v0 }
  0xc1   : > { %915 = vst [vmem:[#allocation2 + $0x3c0] sm:$0xff] %v5093_v0  ;;  %916 = vst [vmem:[#allocation2 + $0x3c8] sm:$0xff] %v5093_v0 }
  0xc2   : > { %917 = vst [vmem:[#allocation2 + $0x3d0] sm:$0xff] %v5093_v0  ;;  %918 = vst [vmem:[#allocation2 + $0x3d8] sm:$0xff] %v5093_v0 }
  0xc3   : > { %919 = vst [vmem:[#allocation2 + $0x3e0] sm:$0xff] %v5093_v0  ;;  %920 = vst [vmem:[#allocation2 + $0x3e8] sm:$0xff] %v5093_v0 }
  0xc4   : > { %921 = vst [vmem:[#allocation2 + $0x3f0] sm:$0xff] %v5093_v0  ;;  %922 = vst [vmem:[#allocation2 + $0x3f8] sm:$0xff] %v5093_v0 }
  0xc5 PF: > { %p4157_p4 = scmp.eq.s32.totalorder %s5075_s23, 1 }
  0xc6   : > { %v927_v1 = vld [vmem:[#allocation2] sm:$0xff] (!%p4157_p4)  ;;  %v928_v3 = vld [vmem:[#allocation2 + $0x8] sm:$0xff] (!%p4157_p4)  ;;  %v4704_v12 = vld [vmem:[%s5493_s29 + $0x10] sm:$0xff] (!%p4157_p4)  }
  0xc7   : > { %926 = sbr.rel (%p4157_p4) target bundleno = 282 (0x11a), region = 89  ;;  %v4192_v2 = vld [vmem:[%s5493_s29] sm:$0xff] (!%p4157_p4)   ;;  %v929_v6 = vld [vmem:[#allocation2 + $0x10] sm:$0xff] (!%p4157_p4)  ;;  %v4703_v7 = vld [vmem:[%s5493_s29 + $0x8] sm:$0xff] (!%p4157_p4)   ;;  %v4201_v16 = vunpack.c.l.bf16 (!%p4157_p4), %v4704_v12  ;;  %v4202_v17 = vunpack.c.h.bf16 (!%p4157_p4), %v4704_v12 }
  0xc8   : > { %v4193_v4 = vunpack.c.l.bf16 (!%p4157_p4), %v4192_v2  ;;  %v4194_v5 = vunpack.c.h.bf16 (!%p4157_p4), %v4192_v2  ;;  %v930_v8 = vld [vmem:[#allocation2 + $0x18] sm:$0xff] (!%p4157_p4)  ;;  %v4197_v9 = vunpack.c.l.bf16 (!%p4157_p4), %v4703_v7  ;;  %v4198_v10 = vunpack.c.h.bf16 (!%p4157_p4), %v4703_v7  ;;  %v931_v11 = vld [vmem:[#allocation2 + $0x20] sm:$0xff] (!%p4157_p4)  ;;  %v932_v13 = vld [vmem:[#allocation2 + $0x28] sm:$0xff] (!%p4157_p4) }
  0xc9   : > { %v933_v18 = vld [vmem:[#allocation2 + $0x30] sm:$0xff] (!%p4157_p4)  ;;  %v4705_v19 = vld [vmem:[%s5493_s29 + $0x18] sm:$0xff] (!%p4157_p4)   ;;  %v4706_v26 = vld [vmem:[%s5493_s29 + $0x20] sm:$0xff] (!%p4157_p4)   ;;  %v1315_v28 = vadd.f32 (!%p4157_p4), %v4201_v16, %v931_v11  ;;  %v1316_v29 = vadd.f32 (!%p4157_p4), %v4202_v17, %v932_v13 }
  0xca   : > { %v1311_v14 = vadd.f32 (!%p4157_p4), %v4193_v4, %v927_v1  ;;  %v1312_v15 = vadd.f32 (!%p4157_p4), %v4194_v5, %v928_v3  ;;  %v934_v20 = vld [vmem:[#allocation2 + $0x38] sm:$0xff] (!%p4157_p4)  ;;  %v1313_v21 = vadd.f32 (!%p4157_p4), %v4197_v9, %v929_v6  ;;  %v1314_v22 = vadd.f32 (!%p4157_p4), %v4198_v10, %v930_v8  ;;  %v935_v25 = vld [vmem:[#allocation2 + $0x40] sm:$0xff] (!%p4157_p4)  ;;  %v936_v27 = vld [vmem:[#allocation2 + $0x48] sm:$0xff] (!%p4157_p4) }
  0xcb   : > { %v4205_v23 = vunpack.c.l.bf16 (!%p4157_p4), %v4705_v19  ;;  %v4206_v24 = vunpack.c.h.bf16 (!%p4157_p4), %v4705_v19  ;;  %v4209_v30 = vunpack.c.l.bf16 (!%p4157_p4), %v4706_v26  ;;  %v4210_v31 = vunpack.c.h.bf16 (!%p4157_p4), %v4706_v26  ;;  %v937_v32 = vld [vmem:[#allocation2 + $0x50] sm:$0xff] (!%p4157_p4)  ;;  %v4707_v33 = vld [vmem:[%s5493_s29 + $0x28] sm:$0xff] (!%p4157_p4)   ;;  %v938_v34 = vld [vmem:[#allocation2 + $0x58] sm:$0xff] (!%p4157_p4)  ;;  %1443 = vst [vmem:[#allocation2 + $0x20] sm:$0xff] (!%p4157_p4), %v1315_v28 }
  0xcc   : > { %1439 = vst [vmem:[#allocation2] sm:$0xff] (!%p4157_p4), %v1311_v14  ;;  %1440 = vst [vmem:[#allocation2 + $0x8] sm:$0xff] (!%p4157_p4), %v1312_v15  ;;  %v4213_v37 = vunpack.c.l.bf16 (!%p4157_p4), %v4707_v33  ;;  %v4214_v38 = vunpack.c.h.bf16 (!%p4157_p4), %v4707_v33  ;;  %v939_v39 = vld [vmem:[#allocation2 + $0x60] sm:$0xff] (!%p4157_p4)  ;;  %v4708_v40 = vld [vmem:[%s5493_s29 + $0x30] sm:$0xff] (!%p4157_p4)  }
  0xcd   : > { %1441 = vst [vmem:[#allocation2 + $0x10] sm:$0xff] (!%p4157_p4), %v1313_v21  ;;  %1442 = vst [vmem:[#allocation2 + $0x18] sm:$0xff] (!%p4157_p4), %v1314_v22  ;;  %v1317_v35 = vadd.f32 (!%p4157_p4), %v4205_v23, %v933_v18  ;;  %v1318_v36 = vadd.f32 (!%p4157_p4), %v4206_v24, %v934_v20  ;;  %v940_v41 = vld [vmem:[#allocation2 + $0x68] sm:$0xff] (!%p4157_p4)  ;;  %v1319_v42 = vadd.f32 (!%p4157_p4), %v4209_v30, %v935_v25  ;;  %v4217_v44 = vunpack.c.l.bf16 (!%p4157_p4), %v4708_v40  ;;  %v941_v46 = vld [vmem:[#allocation2 + $0x70] sm:$0xff] (!%p4157_p4) }
  0xce   : > { %1444 = vst [vmem:[#allocation2 + $0x28] sm:$0xff] %v1316_v29  ;;  %v1320_v43 = vadd.f32 %v4210_v31, %v936_v27  ;;  %v4218_v45 = vunpack.c.h.bf16 %v4708_v40  ;;  %v4709_v47 = vld [vmem:[%s5493_s29 + $0x38] sm:$0xff]   ;;  %v1321_v49 = vadd.f32 %v4213_v37, %v937_v32  ;;  %v1322_v50 = vadd.f32 %v4214_v38, %v938_v34  ;;  %v943_v53 = vld [vmem:[#allocation2 + $0x80] sm:$0xff]  ;;  %v944_v55 = vld [vmem:[#allocation2 + $0x88] sm:$0xff] }
  0xcf   : > { %v942_v48 = vld [vmem:[#allocation2 + $0x78] sm:$0xff]  ;;  %1445 = vst [vmem:[#allocation2 + $0x30] sm:$0xff] %v1317_v35  ;;  %1446 = vst [vmem:[#allocation2 + $0x38] sm:$0xff] %v1318_v36  ;;  %v4221_v51 = vunpack.c.l.bf16 %v4709_v47  ;;  %v4222_v52 = vunpack.c.h.bf16 %v4709_v47  ;;  %v4710_v54 = vld [vmem:[%s5493_s29 + $0x40] sm:$0xff]   ;;  %v1323_v56 = vadd.f32 %v4217_v44, %v939_v39 }
  0xd0   : > { %1447 = vst [vmem:[#allocation2 + $0x40] sm:$0xff] %v1319_v42  ;;  %1448 = vst [vmem:[#allocation2 + $0x48] sm:$0xff] %v1320_v43  ;;  %v1324_v57 = vadd.f32 %v4218_v45, %v940_v41  ;;  %v4225_v58 = vunpack.c.l.bf16 %v4710_v54  ;;  %v4226_v59 = vunpack.c.h.bf16 %v4710_v54  ;;  %v945_v60 = vld [vmem:[#allocation2 + $0x90] sm:$0xff]  ;;  %v4711_v61 = vld [vmem:[%s5493_s29 + $0x48] sm:$0xff]  }
  0xd1   : > { %v946_v62 = vld [vmem:[#allocation2 + $0x98] sm:$0xff]  ;;  %1449 = vst [vmem:[#allocation2 + $0x50] sm:$0xff] %v1321_v49  ;;  %1450 = vst [vmem:[#allocation2 + $0x58] sm:$0xff] %v1322_v50  ;;  %v1325_v63 = vadd.f32 %v4221_v51, %v941_v46  ;;  %v1326_v0 = vadd.f32 %v4222_v52, %v942_v48  ;;  %v4229_v1 = vunpack.c.l.bf16 %v4711_v61  ;;  %v4230_v2 = vunpack.c.h.bf16 %v4711_v61  ;;  %v947_v3 = vld [vmem:[#allocation2 + $0xa0] sm:$0xff] }
  0xd2   : > { %v4712_v4 = vld [vmem:[%s5493_s29 + $0x50] sm:$0xff]   ;;  %v948_v5 = vld [vmem:[#allocation2 + $0xa8] sm:$0xff]  ;;  %1451 = vst [vmem:[#allocation2 + $0x60] sm:$0xff] %v1323_v56  ;;  %1452 = vst [vmem:[#allocation2 + $0x68] sm:$0xff] %v1324_v57  ;;  %v1327_v6 = vadd.f32 %v4225_v58, %v943_v53  ;;  %v1328_v7 = vadd.f32 %v4226_v59, %v944_v55 }
  0xd3   : > { %v4233_v8 = vunpack.c.l.bf16 %v4712_v4  ;;  %v4234_v9 = vunpack.c.h.bf16 %v4712_v4  ;;  %v949_v10 = vld [vmem:[#allocation2 + $0xb0] sm:$0xff]  ;;  %v4713_v11 = vld [vmem:[%s5493_s29 + $0x58] sm:$0xff]   ;;  %1453 = vst [vmem:[#allocation2 + $0x70] sm:$0xff] %v1325_v63  ;;  %1454 = vst [vmem:[#allocation2 + $0x78] sm:$0xff] %v1326_v0  ;;  %v1329_v13 = vadd.f32 %v4229_v1, %v945_v60  ;;  %v1330_v14 = vadd.f32 %v4230_v2, %v946_v62 }
  0xd4   : > { %v950_v12 = vld [vmem:[#allocation2 + $0xb8] sm:$0xff]  ;;  %v4237_v15 = vunpack.c.l.bf16 %v4713_v11  ;;  %v4238_v16 = vunpack.c.h.bf16 %v4713_v11  ;;  %v951_v17 = vld [vmem:[#allocation2 + $0xc0] sm:$0xff]  ;;  %v952_v19 = vld [vmem:[#allocation2 + $0xc8] sm:$0xff]  ;;  %1455 = vst [vmem:[#allocation2 + $0x80] sm:$0xff] %v1327_v6 }
  0xd5   : > { %v4714_v18 = vld [vmem:[%s5493_s29 + $0x60] sm:$0xff]   ;;  %1456 = vst [vmem:[#allocation2 + $0x88] sm:$0xff] %v1328_v7  ;;  %v1331_v20 = vadd.f32 %v4233_v8, %v947_v3  ;;  %v1332_v21 = vadd.f32 %v4234_v9, %v948_v5  ;;  %v953_v24 = vld [vmem:[#allocation2 + $0xd0] sm:$0xff]  ;;  %v4715_v25 = vld [vmem:[%s5493_s29 + $0x68] sm:$0xff]  }
  0xd6   : > { %v4241_v22 = vunpack.c.l.bf16 %v4714_v18  ;;  %v4242_v23 = vunpack.c.h.bf16 %v4714_v18  ;;  %v954_v26 = vld [vmem:[#allocation2 + $0xd8] sm:$0xff]  ;;  %1457 = vst [vmem:[#allocation2 + $0x90] sm:$0xff] %v1329_v13  ;;  %1458 = vst [vmem:[#allocation2 + $0x98] sm:$0xff] %v1330_v14  ;;  %v1333_v27 = vadd.f32 %v4237_v15, %v949_v10  ;;  %v1334_v28 = vadd.f32 %v4238_v16, %v950_v12  ;;  %v955_v31 = vld [vmem:[#allocation2 + $0xe0] sm:$0xff] }
  0xd7   : > { %v4245_v29 = vunpack.c.l.bf16 %v4715_v25  ;;  %v4246_v30 = vunpack.c.h.bf16 %v4715_v25  ;;  %v4716_v32 = vld [vmem:[%s5493_s29 + $0x70] sm:$0xff]   ;;  %v956_v33 = vld [vmem:[#allocation2 + $0xe8] sm:$0xff]  ;;  %1459 = vst [vmem:[#allocation2 + $0xa0] sm:$0xff] %v1331_v20  ;;  %1460 = vst [vmem:[#allocation2 + $0xa8] sm:$0xff] %v1332_v21 }
  0xd8   : > { %v1335_v34 = vadd.f32 %v4241_v22, %v951_v17  ;;  %v1336_v35 = vadd.f32 %v4242_v23, %v952_v19  ;;  %v4249_v36 = vunpack.c.l.bf16 %v4716_v32  ;;  %v4250_v37 = vunpack.c.h.bf16 %v4716_v32  ;;  %v957_v38 = vld [vmem:[#allocation2 + $0xf0] sm:$0xff]  ;;  %v4717_v39 = vld [vmem:[%s5493_s29 + $0x78] sm:$0xff]   ;;  %1461 = vst [vmem:[#allocation2 + $0xb0] sm:$0xff] %v1333_v27  ;;  %1462 = vst [vmem:[#allocation2 + $0xb8] sm:$0xff] %v1334_v28 }
  0xd9   : > { %v958_v40 = vld [vmem:[#allocation2 + $0xf8] sm:$0xff]  ;;  %v1337_v41 = vadd.f32 %v4245_v29, %v953_v24  ;;  %v1338_v42 = vadd.f32 %v4246_v30, %v954_v26  ;;  %v4253_v43 = vunpack.c.l.bf16 %v4717_v39  ;;  %v4254_v44 = vunpack.c.h.bf16 %v4717_v39  ;;  %v959_v45 = vld [vmem:[#allocation2 + $0x100] sm:$0xff]  ;;  %v960_v47 = vld [vmem:[#allocation2 + $0x108] sm:$0xff] }
  0xda   : > { %v4718_v46 = vld [vmem:[%s5493_s29 + $0x80] sm:$0xff]   ;;  %1463 = vst [vmem:[#allocation2 + $0xc0] sm:$0xff] %v1335_v34  ;;  %1464 = vst [vmem:[#allocation2 + $0xc8] sm:$0xff] %v1336_v35  ;;  %v1339_v48 = vadd.f32 %v4249_v36, %v955_v31  ;;  %v1340_v49 = vadd.f32 %v4250_v37, %v956_v33  ;;  %v961_v52 = vld [vmem:[#allocation2 + $0x110] sm:$0xff] }
  0xdb   : > { %v4257_v50 = vunpack.c.l.bf16 %v4718_v46  ;;  %v4258_v51 = vunpack.c.h.bf16 %v4718_v46  ;;  %v4719_v53 = vld [vmem:[%s5493_s29 + $0x88] sm:$0xff]   ;;  %v962_v54 = vld [vmem:[#allocation2 + $0x118] sm:$0xff]  ;;  %1465 = vst [vmem:[#allocation2 + $0xd0] sm:$0xff] %v1337_v41  ;;  %1466 = vst [vmem:[#allocation2 + $0xd8] sm:$0xff] %v1338_v42  ;;  %v1341_v55 = vadd.f32 %v4253_v43, %v957_v38  ;;  %v1342_v56 = vadd.f32 %v4254_v44, %v958_v40 }
  0xdc   : > { %v4261_v57 = vunpack.c.l.bf16 %v4719_v53  ;;  %v4262_v58 = vunpack.c.h.bf16 %v4719_v53  ;;  %v963_v59 = vld [vmem:[#allocation2 + $0x120] sm:$0xff]  ;;  %v4720_v60 = vld [vmem:[%s5493_s29 + $0x90] sm:$0xff]   ;;  %v964_v61 = vld [vmem:[#allocation2 + $0x128] sm:$0xff]  ;;  %1467 = vst [vmem:[#allocation2 + $0xe0] sm:$0xff] %v1339_v48 }
  0xdd   : > { %1468 = vst [vmem:[#allocation2 + $0xe8] sm:$0xff] %v1340_v49  ;;  %v1343_v62 = vadd.f32 %v4257_v50, %v959_v45  ;;  %v1344_v63 = vadd.f32 %v4258_v51, %v960_v47  ;;  %v4265_v0 = vunpack.c.l.bf16 %v4720_v60  ;;  %v4266_v1 = vunpack.c.h.bf16 %v4720_v60  ;;  %v965_v2 = vld [vmem:[#allocation2 + $0x130] sm:$0xff]  ;;  %v4721_v3 = vld [vmem:[%s5493_s29 + $0x98] sm:$0xff]   ;;  %1469 = vst [vmem:[#allocation2 + $0xf0] sm:$0xff] %v1341_v55 }
  0xde   : > { %v966_v4 = vld [vmem:[#allocation2 + $0x138] sm:$0xff]  ;;  %1470 = vst [vmem:[#allocation2 + $0xf8] sm:$0xff] %v1342_v56  ;;  %v1345_v5 = vadd.f32 %v4261_v57, %v961_v52  ;;  %v1346_v6 = vadd.f32 %v4262_v58, %v962_v54  ;;  %v4269_v7 = vunpack.c.l.bf16 %v4721_v3  ;;  %v4270_v8 = vunpack.c.h.bf16 %v4721_v3  ;;  %v967_v9 = vld [vmem:[#allocation2 + $0x140] sm:$0xff]  ;;  %v968_v11 = vld [vmem:[#allocation2 + $0x148] sm:$0xff] }
  0xdf   : > { %v4722_v10 = vld [vmem:[%s5493_s29 + $0xa0] sm:$0xff]   ;;  %1471 = vst [vmem:[#allocation2 + $0x100] sm:$0xff] %v1343_v62  ;;  %1472 = vst [vmem:[#allocation2 + $0x108] sm:$0xff] %v1344_v63  ;;  %v1347_v12 = vadd.f32 %v4265_v0, %v963_v59  ;;  %v1348_v13 = vadd.f32 %v4266_v1, %v964_v61  ;;  %v969_v16 = vld [vmem:[#allocation2 + $0x150] sm:$0xff] }
  0xe0   : > { %v4273_v14 = vunpack.c.l.bf16 %v4722_v10  ;;  %v4274_v15 = vunpack.c.h.bf16 %v4722_v10  ;;  %v4723_v17 = vld [vmem:[%s5493_s29 + $0xa8] sm:$0xff]   ;;  %v970_v18 = vld [vmem:[#allocation2 + $0x158] sm:$0xff]  ;;  %1473 = vst [vmem:[#allocation2 + $0x110] sm:$0xff] %v1345_v5  ;;  %1474 = vst [vmem:[#allocation2 + $0x118] sm:$0xff] %v1346_v6  ;;  %v1349_v19 = vadd.f32 %v4269_v7, %v965_v2  ;;  %v1350_v20 = vadd.f32 %v4270_v8, %v966_v4 }
  0xe1   : > { %v4277_v21 = vunpack.c.l.bf16 %v4723_v17  ;;  %v4278_v22 = vunpack.c.h.bf16 %v4723_v17  ;;  %v971_v23 = vld [vmem:[#allocation2 + $0x160] sm:$0xff]  ;;  %v4724_v24 = vld [vmem:[%s5493_s29 + $0xb0] sm:$0xff]   ;;  %v972_v25 = vld [vmem:[#allocation2 + $0x168] sm:$0xff]  ;;  %1475 = vst [vmem:[#allocation2 + $0x120] sm:$0xff] %v1347_v12 }
  0xe2   : > { %1476 = vst [vmem:[#allocation2 + $0x128] sm:$0xff] %v1348_v13  ;;  %v1351_v26 = vadd.f32 %v4273_v14, %v967_v9  ;;  %v1352_v27 = vadd.f32 %v4274_v15, %v968_v11  ;;  %v4281_v28 = vunpack.c.l.bf16 %v4724_v24  ;;  %v4282_v29 = vunpack.c.h.bf16 %v4724_v24  ;;  %v973_v30 = vld [vmem:[#allocation2 + $0x170] sm:$0xff]  ;;  %v4725_v31 = vld [vmem:[%s5493_s29 + $0xb8] sm:$0xff]   ;;  %1477 = vst [vmem:[#allocation2 + $0x130] sm:$0xff] %v1349_v19 }
  0xe3   : > { %v974_v32 = vld [vmem:[#allocation2 + $0x178] sm:$0xff]  ;;  %1478 = vst [vmem:[#allocation2 + $0x138] sm:$0xff] %v1350_v20  ;;  %v1353_v33 = vadd.f32 %v4277_v21, %v969_v16  ;;  %v1354_v34 = vadd.f32 %v4278_v22, %v970_v18  ;;  %v4285_v35 = vunpack.c.l.bf16 %v4725_v31  ;;  %v4286_v36 = vunpack.c.h.bf16 %v4725_v31  ;;  %v975_v37 = vld [vmem:[#allocation2 + $0x180] sm:$0xff]  ;;  %v976_v39 = vld [vmem:[#allocation2 + $0x188] sm:$0xff] }
  0xe4   : > { %v4726_v38 = vld [vmem:[%s5493_s29 + $0xc0] sm:$0xff]   ;;  %1479 = vst [vmem:[#allocation2 + $0x140] sm:$0xff] %v1351_v26  ;;  %1480 = vst [vmem:[#allocation2 + $0x148] sm:$0xff] %v1352_v27  ;;  %v1355_v40 = vadd.f32 %v4281_v28, %v971_v23  ;;  %v1356_v41 = vadd.f32 %v4282_v29, %v972_v25  ;;  %v977_v44 = vld [vmem:[#allocation2 + $0x190] sm:$0xff] }
  0xe5   : > { %v4289_v42 = vunpack.c.l.bf16 %v4726_v38  ;;  %v4290_v43 = vunpack.c.h.bf16 %v4726_v38  ;;  %v4727_v45 = vld [vmem:[%s5493_s29 + $0xc8] sm:$0xff]   ;;  %v978_v46 = vld [vmem:[#allocation2 + $0x198] sm:$0xff]  ;;  %1481 = vst [vmem:[#allocation2 + $0x150] sm:$0xff] %v1353_v33  ;;  %1482 = vst [vmem:[#allocation2 + $0x158] sm:$0xff] %v1354_v34  ;;  %v1357_v47 = vadd.f32 %v4285_v35, %v973_v30  ;;  %v1358_v48 = vadd.f32 %v4286_v36, %v974_v32 }
  0xe6   : > { %v4293_v49 = vunpack.c.l.bf16 %v4727_v45  ;;  %v4294_v50 = vunpack.c.h.bf16 %v4727_v45  ;;  %v979_v51 = vld [vmem:[#allocation2 + $0x1a0] sm:$0xff]  ;;  %v4728_v52 = vld [vmem:[%s5493_s29 + $0xd0] sm:$0xff]   ;;  %v980_v53 = vld [vmem:[#allocation2 + $0x1a8] sm:$0xff]  ;;  %1483 = vst [vmem:[#allocation2 + $0x160] sm:$0xff] %v1355_v40 }
  0xe7   : > { %1484 = vst [vmem:[#allocation2 + $0x168] sm:$0xff] %v1356_v41  ;;  %v1359_v54 = vadd.f32 %v4289_v42, %v975_v37  ;;  %v1360_v55 = vadd.f32 %v4290_v43, %v976_v39  ;;  %v4297_v56 = vunpack.c.l.bf16 %v4728_v52  ;;  %v4298_v57 = vunpack.c.h.bf16 %v4728_v52  ;;  %v981_v58 = vld [vmem:[#allocation2 + $0x1b0] sm:$0xff]  ;;  %v4729_v59 = vld [vmem:[%s5493_s29 + $0xd8] sm:$0xff]   ;;  %1485 = vst [vmem:[#allocation2 + $0x170] sm:$0xff] %v1357_v47 }
  0xe8   : > { %v982_v60 = vld [vmem:[#allocation2 + $0x1b8] sm:$0xff]  ;;  %1486 = vst [vmem:[#allocation2 + $0x178] sm:$0xff] %v1358_v48  ;;  %v1361_v61 = vadd.f32 %v4293_v49, %v977_v44  ;;  %v1362_v62 = vadd.f32 %v4294_v50, %v978_v46  ;;  %v4301_v63 = vunpack.c.l.bf16 %v4729_v59  ;;  %v4302_v0 = vunpack.c.h.bf16 %v4729_v59  ;;  %v983_v1 = vld [vmem:[#allocation2 + $0x1c0] sm:$0xff]  ;;  %v984_v3 = vld [vmem:[#allocation2 + $0x1c8] sm:$0xff] }
  0xe9   : > { %v4730_v2 = vld [vmem:[%s5493_s29 + $0xe0] sm:$0xff]   ;;  %1487 = vst [vmem:[#allocation2 + $0x180] sm:$0xff] %v1359_v54  ;;  %1488 = vst [vmem:[#allocation2 + $0x188] sm:$0xff] %v1360_v55  ;;  %v1363_v4 = vadd.f32 %v4297_v56, %v979_v51  ;;  %v1364_v5 = vadd.f32 %v4298_v57, %v980_v53  ;;  %v985_v8 = vld [vmem:[#allocation2 + $0x1d0] sm:$0xff] }
  0xea   : > { %v4305_v6 = vunpack.c.l.bf16 %v4730_v2  ;;  %v4306_v7 = vunpack.c.h.bf16 %v4730_v2  ;;  %v4731_v9 = vld [vmem:[%s5493_s29 + $0xe8] sm:$0xff]   ;;  %v986_v10 = vld [vmem:[#allocation2 + $0x1d8] sm:$0xff]  ;;  %1489 = vst [vmem:[#allocation2 + $0x190] sm:$0xff] %v1361_v61  ;;  %1490 = vst [vmem:[#allocation2 + $0x198] sm:$0xff] %v1362_v62  ;;  %v1365_v11 = vadd.f32 %v4301_v63, %v981_v58  ;;  %v1366_v12 = vadd.f32 %v4302_v0, %v982_v60 }
  0xeb   : > { %v4309_v13 = vunpack.c.l.bf16 %v4731_v9  ;;  %v4310_v14 = vunpack.c.h.bf16 %v4731_v9  ;;  %v987_v15 = vld [vmem:[#allocation2 + $0x1e0] sm:$0xff]  ;;  %v4732_v16 = vld [vmem:[%s5493_s29 + $0xf0] sm:$0xff]   ;;  %v988_v17 = vld [vmem:[#allocation2 + $0x1e8] sm:$0xff]  ;;  %1491 = vst [vmem:[#allocation2 + $0x1a0] sm:$0xff] %v1363_v4 }
  0xec   : > { %1492 = vst [vmem:[#allocation2 + $0x1a8] sm:$0xff] %v1364_v5  ;;  %v1367_v18 = vadd.f32 %v4305_v6, %v983_v1  ;;  %v1368_v19 = vadd.f32 %v4306_v7, %v984_v3  ;;  %v4313_v20 = vunpack.c.l.bf16 %v4732_v16  ;;  %v4314_v21 = vunpack.c.h.bf16 %v4732_v16  ;;  %v989_v22 = vld [vmem:[#allocation2 + $0x1f0] sm:$0xff]  ;;  %v4733_v23 = vld [vmem:[%s5493_s29 + $0xf8] sm:$0xff]   ;;  %1493 = vst [vmem:[#allocation2 + $0x1b0] sm:$0xff] %v1365_v11 }
  0xed   : > { %v990_v24 = vld [vmem:[#allocation2 + $0x1f8] sm:$0xff]  ;;  %1494 = vst [vmem:[#allocation2 + $0x1b8] sm:$0xff] %v1366_v12  ;;  %v1369_v25 = vadd.f32 %v4309_v13, %v985_v8  ;;  %v1370_v26 = vadd.f32 %v4310_v14, %v986_v10  ;;  %v4317_v27 = vunpack.c.l.bf16 %v4733_v23  ;;  %v4318_v28 = vunpack.c.h.bf16 %v4733_v23  ;;  %v991_v29 = vld [vmem:[#allocation2 + $0x200] sm:$0xff]  ;;  %v992_v31 = vld [vmem:[#allocation2 + $0x208] sm:$0xff] }
  0xee   : > { %v4734_v30 = vld [vmem:[%s5493_s29 + $0x100] sm:$0xff]   ;;  %1495 = vst [vmem:[#allocation2 + $0x1c0] sm:$0xff] %v1367_v18  ;;  %1496 = vst [vmem:[#allocation2 + $0x1c8] sm:$0xff] %v1368_v19  ;;  %v1371_v32 = vadd.f32 %v4313_v20, %v987_v15  ;;  %v1372_v33 = vadd.f32 %v4314_v21, %v988_v17  ;;  %v993_v36 = vld [vmem:[#allocation2 + $0x210] sm:$0xff] }
  0xef   : > { %v4321_v34 = vunpack.c.l.bf16 %v4734_v30  ;;  %v4322_v35 = vunpack.c.h.bf16 %v4734_v30  ;;  %v4735_v37 = vld [vmem:[%s5493_s29 + $0x108] sm:$0xff]   ;;  %v994_v38 = vld [vmem:[#allocation2 + $0x218] sm:$0xff]  ;;  %1497 = vst [vmem:[#allocation2 + $0x1d0] sm:$0xff] %v1369_v25  ;;  %1498 = vst [vmem:[#allocation2 + $0x1d8] sm:$0xff] %v1370_v26  ;;  %v1373_v39 = vadd.f32 %v4317_v27, %v989_v22  ;;  %v1374_v40 = vadd.f32 %v4318_v28, %v990_v24 }
  0xf0   : > { %v4325_v41 = vunpack.c.l.bf16 %v4735_v37  ;;  %v4326_v42 = vunpack.c.h.bf16 %v4735_v37  ;;  %v995_v43 = vld [vmem:[#allocation2 + $0x220] sm:$0xff]  ;;  %v4736_v44 = vld [vmem:[%s5493_s29 + $0x110] sm:$0xff]   ;;  %v996_v45 = vld [vmem:[#allocation2 + $0x228] sm:$0xff]  ;;  %1499 = vst [vmem:[#allocation2 + $0x1e0] sm:$0xff] %v1371_v32 }
  0xf1   : > { %1500 = vst [vmem:[#allocation2 + $0x1e8] sm:$0xff] %v1372_v33  ;;  %v1375_v46 = vadd.f32 %v4321_v34, %v991_v29  ;;  %v1376_v47 = vadd.f32 %v4322_v35, %v992_v31  ;;  %v4329_v48 = vunpack.c.l.bf16 %v4736_v44  ;;  %v4330_v49 = vunpack.c.h.bf16 %v4736_v44  ;;  %v997_v50 = vld [vmem:[#allocation2 + $0x230] sm:$0xff]  ;;  %v4737_v51 = vld [vmem:[%s5493_s29 + $0x118] sm:$0xff]   ;;  %1501 = vst [vmem:[#allocation2 + $0x1f0] sm:$0xff] %v1373_v39 }
  0xf2   : > { %v998_v52 = vld [vmem:[#allocation2 + $0x238] sm:$0xff]  ;;  %1502 = vst [vmem:[#allocation2 + $0x1f8] sm:$0xff] %v1374_v40  ;;  %v1377_v53 = vadd.f32 %v4325_v41, %v993_v36  ;;  %v1378_v54 = vadd.f32 %v4326_v42, %v994_v38  ;;  %v4333_v55 = vunpack.c.l.bf16 %v4737_v51  ;;  %v4334_v56 = vunpack.c.h.bf16 %v4737_v51  ;;  %v999_v57 = vld [vmem:[#allocation2 + $0x240] sm:$0xff]  ;;  %v1000_v59 = vld [vmem:[#allocation2 + $0x248] sm:$0xff] }
  0xf3   : > { %v4738_v58 = vld [vmem:[%s5493_s29 + $0x120] sm:$0xff]   ;;  %1503 = vst [vmem:[#allocation2 + $0x200] sm:$0xff] %v1375_v46  ;;  %1504 = vst [vmem:[#allocation2 + $0x208] sm:$0xff] %v1376_v47  ;;  %v1379_v60 = vadd.f32 %v4329_v48, %v995_v43  ;;  %v1380_v61 = vadd.f32 %v4330_v49, %v996_v45  ;;  %v1001_v0 = vld [vmem:[#allocation2 + $0x250] sm:$0xff] }
  0xf4   : > { %v4337_v62 = vunpack.c.l.bf16 %v4738_v58  ;;  %v4338_v63 = vunpack.c.h.bf16 %v4738_v58  ;;  %v4739_v1 = vld [vmem:[%s5493_s29 + $0x128] sm:$0xff]   ;;  %v1002_v2 = vld [vmem:[#allocation2 + $0x258] sm:$0xff]  ;;  %1505 = vst [vmem:[#allocation2 + $0x210] sm:$0xff] %v1377_v53  ;;  %1506 = vst [vmem:[#allocation2 + $0x218] sm:$0xff] %v1378_v54  ;;  %v1381_v3 = vadd.f32 %v4333_v55, %v997_v50  ;;  %v1382_v4 = vadd.f32 %v4334_v56, %v998_v52 }
  0xf5   : > { %v4341_v5 = vunpack.c.l.bf16 %v4739_v1  ;;  %v4342_v6 = vunpack.c.h.bf16 %v4739_v1  ;;  %v1003_v7 = vld [vmem:[#allocation2 + $0x260] sm:$0xff]  ;;  %v4740_v8 = vld [vmem:[%s5493_s29 + $0x130] sm:$0xff]   ;;  %v1004_v9 = vld [vmem:[#allocation2 + $0x268] sm:$0xff]  ;;  %1507 = vst [vmem:[#allocation2 + $0x220] sm:$0xff] %v1379_v60 }
  0xf6   : > { %1508 = vst [vmem:[#allocation2 + $0x228] sm:$0xff] %v1380_v61  ;;  %v1383_v10 = vadd.f32 %v4337_v62, %v999_v57  ;;  %v1384_v11 = vadd.f32 %v4338_v63, %v1000_v59  ;;  %v4345_v12 = vunpack.c.l.bf16 %v4740_v8  ;;  %v4346_v13 = vunpack.c.h.bf16 %v4740_v8  ;;  %v1005_v14 = vld [vmem:[#allocation2 + $0x270] sm:$0xff]  ;;  %v4741_v15 = vld [vmem:[%s5493_s29 + $0x138] sm:$0xff]   ;;  %1509 = vst [vmem:[#allocation2 + $0x230] sm:$0xff] %v1381_v3 }
  0xf7   : > { %v1006_v16 = vld [vmem:[#allocation2 + $0x278] sm:$0xff]  ;;  %1510 = vst [vmem:[#allocation2 + $0x238] sm:$0xff] %v1382_v4  ;;  %v1385_v17 = vadd.f32 %v4341_v5, %v1001_v0  ;;  %v1386_v18 = vadd.f32 %v4342_v6, %v1002_v2  ;;  %v4349_v19 = vunpack.c.l.bf16 %v4741_v15  ;;  %v4350_v20 = vunpack.c.h.bf16 %v4741_v15  ;;  %v1007_v21 = vld [vmem:[#allocation2 + $0x280] sm:$0xff]  ;;  %v1008_v23 = vld [vmem:[#allocation2 + $0x288] sm:$0xff] }
  0xf8   : > { %v4742_v22 = vld [vmem:[%s5493_s29 + $0x140] sm:$0xff]   ;;  %1511 = vst [vmem:[#allocation2 + $0x240] sm:$0xff] %v1383_v10  ;;  %1512 = vst [vmem:[#allocation2 + $0x248] sm:$0xff] %v1384_v11  ;;  %v1387_v24 = vadd.f32 %v4345_v12, %v1003_v7  ;;  %v1388_v25 = vadd.f32 %v4346_v13, %v1004_v9  ;;  %v1009_v28 = vld [vmem:[#allocation2 + $0x290] sm:$0xff] }
  0xf9   : > { %v4353_v26 = vunpack.c.l.bf16 %v4742_v22  ;;  %v4354_v27 = vunpack.c.h.bf16 %v4742_v22  ;;  %v4743_v29 = vld [vmem:[%s5493_s29 + $0x148] sm:$0xff]   ;;  %v1010_v30 = vld [vmem:[#allocation2 + $0x298] sm:$0xff]  ;;  %1513 = vst [vmem:[#allocation2 + $0x250] sm:$0xff] %v1385_v17  ;;  %1514 = vst [vmem:[#allocation2 + $0x258] sm:$0xff] %v1386_v18  ;;  %v1389_v31 = vadd.f32 %v4349_v19, %v1005_v14  ;;  %v1390_v32 = vadd.f32 %v4350_v20, %v1006_v16 }
  0xfa   : > { %v4357_v33 = vunpack.c.l.bf16 %v4743_v29  ;;  %v4358_v34 = vunpack.c.h.bf16 %v4743_v29  ;;  %v1011_v35 = vld [vmem:[#allocation2 + $0x2a0] sm:$0xff]  ;;  %v4744_v36 = vld [vmem:[%s5493_s29 + $0x150] sm:$0xff]   ;;  %v1012_v37 = vld [vmem:[#allocation2 + $0x2a8] sm:$0xff]  ;;  %1515 = vst [vmem:[#allocation2 + $0x260] sm:$0xff] %v1387_v24 }
  0xfb   : > { %1516 = vst [vmem:[#allocation2 + $0x268] sm:$0xff] %v1388_v25  ;;  %v1391_v38 = vadd.f32 %v4353_v26, %v1007_v21  ;;  %v1392_v39 = vadd.f32 %v4354_v27, %v1008_v23  ;;  %v4361_v40 = vunpack.c.l.bf16 %v4744_v36  ;;  %v4362_v41 = vunpack.c.h.bf16 %v4744_v36  ;;  %v1013_v42 = vld [vmem:[#allocation2 + $0x2b0] sm:$0xff]  ;;  %v4745_v43 = vld [vmem:[%s5493_s29 + $0x158] sm:$0xff]   ;;  %1517 = vst [vmem:[#allocation2 + $0x270] sm:$0xff] %v1389_v31 }
  0xfc   : > { %v1014_v44 = vld [vmem:[#allocation2 + $0x2b8] sm:$0xff]  ;;  %1518 = vst [vmem:[#allocation2 + $0x278] sm:$0xff] %v1390_v32  ;;  %v1393_v45 = vadd.f32 %v4357_v33, %v1009_v28  ;;  %v1394_v46 = vadd.f32 %v4358_v34, %v1010_v30  ;;  %v4365_v47 = vunpack.c.l.bf16 %v4745_v43  ;;  %v4366_v48 = vunpack.c.h.bf16 %v4745_v43  ;;  %v1015_v49 = vld [vmem:[#allocation2 + $0x2c0] sm:$0xff]  ;;  %v1016_v51 = vld [vmem:[#allocation2 + $0x2c8] sm:$0xff] }
  0xfd   : > { %v4746_v50 = vld [vmem:[%s5493_s29 + $0x160] sm:$0xff]   ;;  %1519 = vst [vmem:[#allocation2 + $0x280] sm:$0xff] %v1391_v38  ;;  %1520 = vst [vmem:[#allocation2 + $0x288] sm:$0xff] %v1392_v39  ;;  %v1395_v52 = vadd.f32 %v4361_v40, %v1011_v35  ;;  %v1396_v53 = vadd.f32 %v4362_v41, %v1012_v37  ;;  %v1017_v56 = vld [vmem:[#allocation2 + $0x2d0] sm:$0xff] }
  0xfe   : > { %v4369_v54 = vunpack.c.l.bf16 %v4746_v50  ;;  %v4370_v55 = vunpack.c.h.bf16 %v4746_v50  ;;  %v4747_v57 = vld [vmem:[%s5493_s29 + $0x168] sm:$0xff]   ;;  %v1018_v58 = vld [vmem:[#allocation2 + $0x2d8] sm:$0xff]  ;;  %1521 = vst [vmem:[#allocation2 + $0x290] sm:$0xff] %v1393_v45  ;;  %1522 = vst [vmem:[#allocation2 + $0x298] sm:$0xff] %v1394_v46  ;;  %v1397_v59 = vadd.f32 %v4365_v47, %v1013_v42  ;;  %v1398_v60 = vadd.f32 %v4366_v48, %v1014_v44 }
  0xff   : > { %v4373_v61 = vunpack.c.l.bf16 %v4747_v57  ;;  %v4374_v62 = vunpack.c.h.bf16 %v4747_v57  ;;  %v1019_v63 = vld [vmem:[#allocation2 + $0x2e0] sm:$0xff]  ;;  %v4748_v0 = vld [vmem:[%s5493_s29 + $0x170] sm:$0xff]   ;;  %v1020_v1 = vld [vmem:[#allocation2 + $0x2e8] sm:$0xff]  ;;  %1523 = vst [vmem:[#allocation2 + $0x2a0] sm:$0xff] %v1395_v52 }
 0x100   : > { %1524 = vst [vmem:[#allocation2 + $0x2a8] sm:$0xff] %v1396_v53  ;;  %v1399_v2 = vadd.f32 %v4369_v54, %v1015_v49  ;;  %v1400_v3 = vadd.f32 %v4370_v55, %v1016_v51  ;;  %v4377_v4 = vunpack.c.l.bf16 %v4748_v0  ;;  %v4378_v5 = vunpack.c.h.bf16 %v4748_v0  ;;  %v1021_v6 = vld [vmem:[#allocation2 + $0x2f0] sm:$0xff]  ;;  %v4749_v7 = vld [vmem:[%s5493_s29 + $0x178] sm:$0xff]   ;;  %1525 = vst [vmem:[#allocation2 + $0x2b0] sm:$0xff] %v1397_v59 }
 0x101   : > { %v1022_v8 = vld [vmem:[#allocation2 + $0x2f8] sm:$0xff]  ;;  %1526 = vst [vmem:[#allocation2 + $0x2b8] sm:$0xff] %v1398_v60  ;;  %v1401_v9 = vadd.f32 %v4373_v61, %v1017_v56  ;;  %v1402_v10 = vadd.f32 %v4374_v62, %v1018_v58  ;;  %v4381_v11 = vunpack.c.l.bf16 %v4749_v7  ;;  %v4382_v12 = vunpack.c.h.bf16 %v4749_v7  ;;  %v1023_v13 = vld [vmem:[#allocation2 + $0x300] sm:$0xff]  ;;  %v1024_v15 = vld [vmem:[#allocation2 + $0x308] sm:$0xff] }
 0x102   : > { %v4750_v14 = vld [vmem:[%s5493_s29 + $0x180] sm:$0xff]   ;;  %1527 = vst [vmem:[#allocation2 + $0x2c0] sm:$0xff] %v1399_v2  ;;  %1528 = vst [vmem:[#allocation2 + $0x2c8] sm:$0xff] %v1400_v3  ;;  %v1403_v16 = vadd.f32 %v4377_v4, %v1019_v63  ;;  %v1404_v17 = vadd.f32 %v4378_v5, %v1020_v1  ;;  %v1025_v20 = vld [vmem:[#allocation2 + $0x310] sm:$0xff] }
 0x103   : > { %v4385_v18 = vunpack.c.l.bf16 %v4750_v14  ;;  %v4386_v19 = vunpack.c.h.bf16 %v4750_v14  ;;  %v4751_v21 = vld [vmem:[%s5493_s29 + $0x188] sm:$0xff]   ;;  %v1026_v22 = vld [vmem:[#allocation2 + $0x318] sm:$0xff]  ;;  %1529 = vst [vmem:[#allocation2 + $0x2d0] sm:$0xff] %v1401_v9  ;;  %1530 = vst [vmem:[#allocation2 + $0x2d8] sm:$0xff] %v1402_v10  ;;  %v1405_v23 = vadd.f32 %v4381_v11, %v1021_v6  ;;  %v1406_v24 = vadd.f32 %v4382_v12, %v1022_v8 }
 0x104   : > { %v4389_v25 = vunpack.c.l.bf16 %v4751_v21  ;;  %v4390_v26 = vunpack.c.h.bf16 %v4751_v21  ;;  %v1027_v27 = vld [vmem:[#allocation2 + $0x320] sm:$0xff]  ;;  %v4752_v28 = vld [vmem:[%s5493_s29 + $0x190] sm:$0xff]   ;;  %v1028_v29 = vld [vmem:[#allocation2 + $0x328] sm:$0xff]  ;;  %1531 = vst [vmem:[#allocation2 + $0x2e0] sm:$0xff] %v1403_v16 }
 0x105   : > { %1532 = vst [vmem:[#allocation2 + $0x2e8] sm:$0xff] %v1404_v17  ;;  %v1407_v30 = vadd.f32 %v4385_v18, %v1023_v13  ;;  %v1408_v31 = vadd.f32 %v4386_v19, %v1024_v15  ;;  %v4393_v32 = vunpack.c.l.bf16 %v4752_v28  ;;  %v4394_v33 = vunpack.c.h.bf16 %v4752_v28  ;;  %v1029_v34 = vld [vmem:[#allocation2 + $0x330] sm:$0xff]  ;;  %v4753_v35 = vld [vmem:[%s5493_s29 + $0x198] sm:$0xff]   ;;  %1533 = vst [vmem:[#allocation2 + $0x2f0] sm:$0xff] %v1405_v23 }
 0x106   : > { %v1030_v36 = vld [vmem:[#allocation2 + $0x338] sm:$0xff]  ;;  %1534 = vst [vmem:[#allocation2 + $0x2f8] sm:$0xff] %v1406_v24  ;;  %v1409_v37 = vadd.f32 %v4389_v25, %v1025_v20  ;;  %v1410_v38 = vadd.f32 %v4390_v26, %v1026_v22  ;;  %v4397_v39 = vunpack.c.l.bf16 %v4753_v35  ;;  %v4398_v40 = vunpack.c.h.bf16 %v4753_v35  ;;  %v1031_v41 = vld [vmem:[#allocation2 + $0x340] sm:$0xff]  ;;  %v1032_v43 = vld [vmem:[#allocation2 + $0x348] sm:$0xff] }
 0x107   : > { %v4754_v42 = vld [vmem:[%s5493_s29 + $0x1a0] sm:$0xff]   ;;  %1535 = vst [vmem:[#allocation2 + $0x300] sm:$0xff] %v1407_v30  ;;  %1536 = vst [vmem:[#allocation2 + $0x308] sm:$0xff] %v1408_v31  ;;  %v1411_v44 = vadd.f32 %v4393_v32, %v1027_v27  ;;  %v1412_v45 = vadd.f32 %v4394_v33, %v1028_v29  ;;  %v1033_v48 = vld [vmem:[#allocation2 + $0x350] sm:$0xff] }
 0x108   : > { %v4401_v46 = vunpack.c.l.bf16 %v4754_v42  ;;  %v4402_v47 = vunpack.c.h.bf16 %v4754_v42  ;;  %v4755_v49 = vld [vmem:[%s5493_s29 + $0x1a8] sm:$0xff]   ;;  %v1034_v50 = vld [vmem:[#allocation2 + $0x358] sm:$0xff]  ;;  %1537 = vst [vmem:[#allocation2 + $0x310] sm:$0xff] %v1409_v37  ;;  %1538 = vst [vmem:[#allocation2 + $0x318] sm:$0xff] %v1410_v38  ;;  %v1413_v51 = vadd.f32 %v4397_v39, %v1029_v34  ;;  %v1414_v52 = vadd.f32 %v4398_v40, %v1030_v36 }
 0x109   : > { %v4405_v53 = vunpack.c.l.bf16 %v4755_v49  ;;  %v4406_v54 = vunpack.c.h.bf16 %v4755_v49  ;;  %v1035_v55 = vld [vmem:[#allocation2 + $0x360] sm:$0xff]  ;;  %v4756_v56 = vld [vmem:[%s5493_s29 + $0x1b0] sm:$0xff]   ;;  %v1036_v57 = vld [vmem:[#allocation2 + $0x368] sm:$0xff]  ;;  %1539 = vst [vmem:[#allocation2 + $0x320] sm:$0xff] %v1411_v44 }
 0x10a   : > { %1540 = vst [vmem:[#allocation2 + $0x328] sm:$0xff] %v1412_v45  ;;  %v1415_v58 = vadd.f32 %v4401_v46, %v1031_v41  ;;  %v1416_v59 = vadd.f32 %v4402_v47, %v1032_v43  ;;  %v4409_v60 = vunpack.c.l.bf16 %v4756_v56  ;;  %v4410_v61 = vunpack.c.h.bf16 %v4756_v56  ;;  %v1037_v62 = vld [vmem:[#allocation2 + $0x370] sm:$0xff]  ;;  %v4757_v63 = vld [vmem:[%s5493_s29 + $0x1b8] sm:$0xff]   ;;  %1541 = vst [vmem:[#allocation2 + $0x330] sm:$0xff] %v1413_v51 }
 0x10b   : > { %v1038_v0 = vld [vmem:[#allocation2 + $0x378] sm:$0xff]  ;;  %1542 = vst [vmem:[#allocation2 + $0x338] sm:$0xff] %v1414_v52  ;;  %v1417_v1 = vadd.f32 %v4405_v53, %v1033_v48  ;;  %v1418_v2 = vadd.f32 %v4406_v54, %v1034_v50  ;;  %v4413_v3 = vunpack.c.l.bf16 %v4757_v63  ;;  %v4414_v4 = vunpack.c.h.bf16 %v4757_v63  ;;  %v1039_v5 = vld [vmem:[#allocation2 + $0x380] sm:$0xff]  ;;  %v1040_v7 = vld [vmem:[#allocation2 + $0x388] sm:$0xff] }
 0x10c   : > { %v4758_v6 = vld [vmem:[%s5493_s29 + $0x1c0] sm:$0xff]   ;;  %1543 = vst [vmem:[#allocation2 + $0x340] sm:$0xff] %v1415_v58  ;;  %1544 = vst [vmem:[#allocation2 + $0x348] sm:$0xff] %v1416_v59  ;;  %v1419_v8 = vadd.f32 %v4409_v60, %v1035_v55  ;;  %v1420_v9 = vadd.f32 %v4410_v61, %v1036_v57  ;;  %v1041_v12 = vld [vmem:[#allocation2 + $0x390] sm:$0xff] }
 0x10d   : > { %v4417_v10 = vunpack.c.l.bf16 %v4758_v6  ;;  %v4418_v11 = vunpack.c.h.bf16 %v4758_v6  ;;  %v4759_v13 = vld [vmem:[%s5493_s29 + $0x1c8] sm:$0xff]   ;;  %v1042_v14 = vld [vmem:[#allocation2 + $0x398] sm:$0xff]  ;;  %1545 = vst [vmem:[#allocation2 + $0x350] sm:$0xff] %v1417_v1  ;;  %1546 = vst [vmem:[#allocation2 + $0x358] sm:$0xff] %v1418_v2  ;;  %v1421_v15 = vadd.f32 %v4413_v3, %v1037_v62  ;;  %v1422_v16 = vadd.f32 %v4414_v4, %v1038_v0 }
 0x10e   : > { %v4421_v17 = vunpack.c.l.bf16 %v4759_v13  ;;  %v4422_v18 = vunpack.c.h.bf16 %v4759_v13  ;;  %v1043_v19 = vld [vmem:[#allocation2 + $0x3a0] sm:$0xff]  ;;  %v4760_v20 = vld [vmem:[%s5493_s29 + $0x1d0] sm:$0xff]   ;;  %v1044_v21 = vld [vmem:[#allocation2 + $0x3a8] sm:$0xff]  ;;  %1547 = vst [vmem:[#allocation2 + $0x360] sm:$0xff] %v1419_v8 }
 0x10f   : > { %1548 = vst [vmem:[#allocation2 + $0x368] sm:$0xff] %v1420_v9  ;;  %v1423_v22 = vadd.f32 %v4417_v10, %v1039_v5  ;;  %v1424_v23 = vadd.f32 %v4418_v11, %v1040_v7  ;;  %v4425_v24 = vunpack.c.l.bf16 %v4760_v20  ;;  %v4426_v25 = vunpack.c.h.bf16 %v4760_v20  ;;  %v1045_v26 = vld [vmem:[#allocation2 + $0x3b0] sm:$0xff]  ;;  %v4761_v27 = vld [vmem:[%s5493_s29 + $0x1d8] sm:$0xff]   ;;  %1549 = vst [vmem:[#allocation2 + $0x370] sm:$0xff] %v1421_v15 }
 0x110   : > { %v1046_v28 = vld [vmem:[#allocation2 + $0x3b8] sm:$0xff]  ;;  %1550 = vst [vmem:[#allocation2 + $0x378] sm:$0xff] %v1422_v16  ;;  %v1425_v29 = vadd.f32 %v4421_v17, %v1041_v12  ;;  %v1426_v30 = vadd.f32 %v4422_v18, %v1042_v14  ;;  %v4429_v31 = vunpack.c.l.bf16 %v4761_v27  ;;  %v4430_v32 = vunpack.c.h.bf16 %v4761_v27  ;;  %v1047_v33 = vld [vmem:[#allocation2 + $0x3c0] sm:$0xff]  ;;  %v1048_v35 = vld [vmem:[#allocation2 + $0x3c8] sm:$0xff] }
 0x111   : > { %v4762_v34 = vld [vmem:[%s5493_s29 + $0x1e0] sm:$0xff]   ;;  %1551 = vst [vmem:[#allocation2 + $0x380] sm:$0xff] %v1423_v22  ;;  %1552 = vst [vmem:[#allocation2 + $0x388] sm:$0xff] %v1424_v23  ;;  %v1427_v36 = vadd.f32 %v4425_v24, %v1043_v19  ;;  %v1428_v37 = vadd.f32 %v4426_v25, %v1044_v21  ;;  %v1049_v40 = vld [vmem:[#allocation2 + $0x3d0] sm:$0xff] }
 0x112   : > { %v4433_v38 = vunpack.c.l.bf16 %v4762_v34  ;;  %v4434_v39 = vunpack.c.h.bf16 %v4762_v34  ;;  %v4763_v41 = vld [vmem:[%s5493_s29 + $0x1e8] sm:$0xff]   ;;  %v1050_v42 = vld [vmem:[#allocation2 + $0x3d8] sm:$0xff]  ;;  %1553 = vst [vmem:[#allocation2 + $0x390] sm:$0xff] %v1425_v29  ;;  %1554 = vst [vmem:[#allocation2 + $0x398] sm:$0xff] %v1426_v30  ;;  %v1429_v43 = vadd.f32 %v4429_v31, %v1045_v26  ;;  %v1430_v44 = vadd.f32 %v4430_v32, %v1046_v28 }
 0x113   : > { %v4437_v45 = vunpack.c.l.bf16 %v4763_v41  ;;  %v4438_v46 = vunpack.c.h.bf16 %v4763_v41  ;;  %v1051_v47 = vld [vmem:[#allocation2 + $0x3e0] sm:$0xff]  ;;  %v4764_v48 = vld [vmem:[%s5493_s29 + $0x1f0] sm:$0xff]   ;;  %v1052_v49 = vld [vmem:[#allocation2 + $0x3e8] sm:$0xff]  ;;  %1555 = vst [vmem:[#allocation2 + $0x3a0] sm:$0xff] %v1427_v36 }
 0x114   : > { %1556 = vst [vmem:[#allocation2 + $0x3a8] sm:$0xff] %v1428_v37  ;;  %v1431_v50 = vadd.f32 %v4433_v38, %v1047_v33  ;;  %v1432_v51 = vadd.f32 %v4434_v39, %v1048_v35  ;;  %v4441_v52 = vunpack.c.l.bf16 %v4764_v48  ;;  %v4442_v53 = vunpack.c.h.bf16 %v4764_v48  ;;  %v1053_v54 = vld [vmem:[#allocation2 + $0x3f0] sm:$0xff]  ;;  %v4765_v55 = vld [vmem:[%s5493_s29 + $0x1f8] sm:$0xff]   ;;  %1557 = vst [vmem:[#allocation2 + $0x3b0] sm:$0xff] %v1429_v43 }
 0x115   : > { %v1054_v56 = vld [vmem:[#allocation2 + $0x3f8] sm:$0xff]  ;;  %1558 = vst [vmem:[#allocation2 + $0x3b8] sm:$0xff] %v1430_v44  ;;  %v1433_v57 = vadd.f32 %v4437_v45, %v1049_v40  ;;  %v1434_v58 = vadd.f32 %v4438_v46, %v1050_v42  ;;  %v4445_v59 = vunpack.c.l.bf16 %v4765_v55  ;;  %v4446_v60 = vunpack.c.h.bf16 %v4765_v55 }
 0x116   : > { %1559 = vst [vmem:[#allocation2 + $0x3c0] sm:$0xff] %v1431_v50  ;;  %1560 = vst [vmem:[#allocation2 + $0x3c8] sm:$0xff] %v1432_v51  ;;  %v1435_v61 = vadd.f32 %v4441_v52, %v1051_v47  ;;  %v1436_v62 = vadd.f32 %v4442_v53, %v1052_v49 }
 0x117   : > { %1561 = vst [vmem:[#allocation2 + $0x3d0] sm:$0xff] %v1433_v57  ;;  %1562 = vst [vmem:[#allocation2 + $0x3d8] sm:$0xff] %v1434_v58  ;;  %v1437_v63 = vadd.f32 %v4445_v59, %v1053_v54  ;;  %v1438_v0 = vadd.f32 %v4446_v60, %v1054_v56 }
 0x118   : > { %1563 = vst [vmem:[#allocation2 + $0x3e0] sm:$0xff] %v1435_v61  ;;  %1564 = vst [vmem:[#allocation2 + $0x3e8] sm:$0xff] %v1436_v62 }
 0x119   : > { %1565 = vst [vmem:[#allocation2 + $0x3f0] sm:$0xff] %v1437_v63  ;;  %1566 = vst [vmem:[#allocation2 + $0x3f8] sm:$0xff] %v1438_v0 }
 0x11a PF: > { %p4158_p5 = scmp.ne.s32.totalorder %s5075_s23, 1 }
 0x11c   : > { %1570 = sbr.rel (%p4158_p5) target bundleno = 1141 (0x475), region = 93 }
 0x123   : > { %v4773_v1 = vld [vmem:[%s5493_s29 + $0x40] sm:$0xff]   ;;  %v7101_v2 = vlaneseq  ;;  %v4766_v11 = vld [vmem:[%s5493_s29 + $0x8] sm:$0xff]   ;;  %v1574_v17 = vld [vmem:[#allocation2 + $0x18] sm:$0xff]  ;;  %vm3142_vm1 = vcmask 130112   ;;  %vm3149_vm2 = vcmask 195712   ;;  %vm3156_vm3 = vcmask 261312  }
 0x124   : > { %v4481_v3 = vunpack.c.l.bf16 %v4773_v1  ;;  %v4448_v4 = vld [vmem:[%s5493_s29] sm:$0xff]   ;;  %v4482_v5 = vunpack.c.h.bf16 %v4773_v1  ;;  %v1588_v12 = vld [vmem:[#allocation2 + $0x88] sm:$0xff]  ;;  %v4454_v14 = vunpack.c.h.bf16 %v4766_v11  ;;  %v4453_v15 = vunpack.c.l.bf16 %v4766_v11  ;;  %v1573_v18 = vld [vmem:[#allocation2 + $0x10] sm:$0xff] }
 0x125   : > { %v1587_v6 = vld [vmem:[#allocation2 + $0x80] sm:$0xff]  ;;  %v5695_v7 = vand.u32 127, %v7101_v2  ;;  %v4449_v9 = vunpack.c.l.bf16 %v4448_v4  ;;  %v4450_v10 = vunpack.c.h.bf16 %v4448_v4  ;;  %v1572_v13 = vld [vmem:[#allocation2 + $0x8] sm:$0xff]  ;;  %v1590_v25 = vld [vmem:[#allocation2 + $0x98] sm:$0xff]  ;;  %vm3163_vm4 = vcmask 326912  }
 0x126   : > { %v1571_v8 = vld [vmem:[#allocation2] sm:$0xff]  ;;  %v4774_v16 = vld [vmem:[%s5493_s29 + $0x48] sm:$0xff]   ;;  %v1589_v31 = vld [vmem:[#allocation2 + $0x90] sm:$0xff]  ;;  %vm3170_vm5 = vcmask 392512   ;;  %vm3177_vm6 = vcmask 458112   ;;  %vm3184_vm7 = vcmask 523712  }
 0x127   : > { %vm1957_vm0 = vcmp.lt.s32.totalorder %v5695_v7, 97  ;;  %v4486_v19 = vunpack.c.h.bf16 %v4774_v16  ;;  %v4485_v20 = vunpack.c.l.bf16 %v4774_v16  ;;  %v4781_v26 = vld [vmem:[%s5493_s29 + $0x80] sm:$0xff]   ;;  %v4782_v32 = vld [vmem:[%s5493_s29 + $0x88] sm:$0xff]   ;;  %v4767_v43 = vld [vmem:[%s5493_s29 + $0x10] sm:$0xff]   ;;  %vm3191_vm8 = vcmask 589312  }
 0x128   : > { %v1974_v21 = vsel %vm1957_vm0, %v4481_v3, 0.0  ;;  %v1958_v22 = vsel %vm1957_vm0, %v4449_v9, 0.0  ;;  %v1975_v23 = vsel %vm1957_vm0, %v4482_v5, 0.0  ;;  %v1959_v24 = vsel %vm1957_vm0, %v4450_v10, 0.0  ;;  %v4789_v37 = vld [vmem:[%s5493_s29 + $0xc0] sm:$0xff]   ;;  %v1604_v41 = vld [vmem:[#allocation2 + $0x108] sm:$0xff] }
 0x129   : > { %v2102_v27 = vadd.f32 %v1974_v21, %v1587_v6  ;;  %v2086_v28 = vadd.f32 %v1958_v22, %v1571_v8  ;;  %v2103_v29 = vadd.f32 %v1975_v23, %v1588_v12  ;;  %v2087_v30 = vadd.f32 %v1959_v24, %v1572_v13  ;;  %v1603_v45 = vld [vmem:[#allocation2 + $0x100] sm:$0xff]  ;;  %v1606_v47 = vld [vmem:[#allocation2 + $0x118] sm:$0xff]  ;;  %v1605_v49 = vld [vmem:[#allocation2 + $0x110] sm:$0xff] }
 0x12a   : > { %v1961_v33 = vsel %vm1957_vm0, %v4454_v14, 0.0  ;;  %v1960_v34 = vsel %vm1957_vm0, %v4453_v15, 0.0  ;;  %v1977_v35 = vsel %vm1957_vm0, %v4486_v19, 0.0  ;;  %v1976_v36 = vsel %vm1957_vm0, %v4485_v20, 0.0  ;;  %v1620_v52 = vld [vmem:[#allocation2 + $0x188] sm:$0xff]  ;;  %v1619_v60 = vld [vmem:[#allocation2 + $0x180] sm:$0xff] }
 0x12b   : > { %2230 = vst [vmem:[#allocation2 + $0x80] sm:$0xff] %v2102_v27  ;;  %2502 = vadd.xlane.f32.xlu1 %v2102_v27  ;;  %2214 = vst [vmem:[#allocation2] sm:$0xff] %v2086_v28  ;;  %2470 = vadd.xlane.f32.xlu0 %v2086_v28  ;;  %v2089_v38 = vadd.f32 %v1961_v33, %v1574_v17  ;;  %v2088_v39 = vadd.f32 %v1960_v34, %v1573_v18  ;;  %v4514_v42 = vunpack.c.h.bf16 %v4781_v26  ;;  %v1576_v61 = vld [vmem:[#allocation2 + $0x28] sm:$0xff]  ;;  %v4775_v62 = vld [vmem:[%s5493_s29 + $0x50] sm:$0xff]   ;;  %vm3198_vm9 = vcmask 654912  }
 0x12c   : > { %2231 = vst [vmem:[#allocation2 + $0x88] sm:$0xff] %v2103_v29  ;;  %2215 = vst [vmem:[#allocation2 + $0x8] sm:$0xff] %v2087_v30  ;;  %v5719_v40 = vadd.f32 %v1977_v35, %v1590_v25  ;;  %v5722_v44 = vadd.f32 %v1976_v36, %v1589_v31  ;;  %v4513_v46 = vunpack.c.l.bf16 %v4781_v26  ;;  %v4518_v48 = vunpack.c.h.bf16 %v4782_v32  ;;  %v4790_v4 = vld [vmem:[%s5493_s29 + $0xc8] sm:$0xff]   ;;  %v4797_v5 = vld [vmem:[%s5493_s29 + $0x100] sm:$0xff]  }
 0x12d   : > { %v4517_v50 = vunpack.c.l.bf16 %v4782_v32  ;;  %2217 = vst [vmem:[#allocation2 + $0x18] sm:$0xff] %v2089_v38  ;;  %2216 = vst [vmem:[#allocation2 + $0x10] sm:$0xff] %v2088_v39  ;;  %v1991_v51 = vsel %vm1957_vm0, %v4514_v42, 0.0  ;;  %v4546_v53 = vunpack.c.h.bf16 %v4789_v37  ;;  %v4545_v54 = vunpack.c.l.bf16 %v4789_v37  ;;  %v1575_v10 = vld [vmem:[#allocation2 + $0x20] sm:$0xff]  ;;  %v1592_v14 = vld [vmem:[#allocation2 + $0xa8] sm:$0xff] }
 0x12e   : > { %2233 = vst [vmem:[#allocation2 + $0x98] sm:$0xff] %v5719_v40  ;;  %v4458_v55 = vunpack.c.h.bf16 %v4767_v43  ;;  %2232 = vst [vmem:[#allocation2 + $0x90] sm:$0xff] %v5722_v44  ;;  %v5728_v56 = vadd.f32 %v1991_v51, %v1604_v41  ;;  %v1990_v57 = vsel %vm1957_vm0, %v4513_v46, 0.0  ;;  %v1993_v58 = vsel %vm1957_vm0, %v4518_v48, 0.0  ;;  %v1591_v16 = vld [vmem:[#allocation2 + $0xa0] sm:$0xff]  ;;  %v1622_v19 = vld [vmem:[#allocation2 + $0x198] sm:$0xff] }
 0x12f   : > { %v1992_v59 = vsel %vm1957_vm0, %v4517_v50, 0.0  ;;  %2504 = vadd.xlane.f32.xlu1 %v2103_v29  ;;  %2472 = vadd.xlane.f32.xlu0 %v2087_v30  ;;  %v5737_v63 = vadd.f32 %v1990_v57, %v1603_v45  ;;  %v5739_v0 = vadd.f32 %v1993_v58, %v1606_v47  ;;  %v2007_v3 = vsel %vm1957_vm0, %v4546_v53, 0.0  ;;  %v1621_v21 = vld [vmem:[#allocation2 + $0x190] sm:$0xff]  ;;  %v1636_v27 = vld [vmem:[#allocation2 + $0x208] sm:$0xff]  ;;  %v1635_v28 = vld [vmem:[#allocation2 + $0x200] sm:$0xff] }
 0x130   : > { %v5741_v1 = vadd.f32 %v1992_v59, %v1605_v49  ;;  %2247 = vst [vmem:[#allocation2 + $0x108] sm:$0xff] %v5728_v56  ;;  %v5748_v6 = vadd.f32 %v2007_v3, %v1620_v52  ;;  %v2006_v8 = vsel %vm1957_vm0, %v4545_v54, 0.0  ;;  %v1963_v9 = vsel %vm1957_vm0, %v4458_v55, 0.0  ;;  %v4783_v30 = vld [vmem:[%s5493_s29 + $0x90] sm:$0xff]   ;;  %v4798_v35 = vld [vmem:[%s5493_s29 + $0x108] sm:$0xff]   ;;  %v4805_v36 = vld [vmem:[%s5493_s29 + $0x140] sm:$0xff]  }
 0x131   : > { %v4457_v11 = vunpack.c.l.bf16 %v4767_v43  ;;  %2246 = vst [vmem:[#allocation2 + $0x100] sm:$0xff] %v5737_v63  ;;  %2249 = vst [vmem:[#allocation2 + $0x118] sm:$0xff] %v5739_v0  ;;  %v5757_v12 = vadd.f32 %v2006_v8, %v1619_v60  ;;  %v5759_v13 = vadd.f32 %v1963_v9, %v1576_v61  ;;  %v4490_v15 = vunpack.c.h.bf16 %v4775_v62  ;;  %v4768_v42 = vld [vmem:[%s5493_s29 + $0x18] sm:$0xff]   ;;  %v1608_v46 = vld [vmem:[#allocation2 + $0x128] sm:$0xff] }
 0x132   : > { %2248 = vst [vmem:[#allocation2 + $0x110] sm:$0xff] %v5741_v1  ;;  %v4489_v17 = vunpack.c.l.bf16 %v4775_v62  ;;  %2263 = vst [vmem:[#allocation2 + $0x188] sm:$0xff] %v5748_v6  ;;  %v4550_v20 = vunpack.c.h.bf16 %v4790_v4  ;;  %v4549_v22 = vunpack.c.l.bf16 %v4790_v4  ;;  %v4578_v23 = vunpack.c.h.bf16 %v4797_v5  ;;  %v1607_v48 = vld [vmem:[#allocation2 + $0x120] sm:$0xff]  ;;  %v1638_v50 = vld [vmem:[#allocation2 + $0x218] sm:$0xff] }
 0x133   : > { %v1962_v18 = vsel %vm1957_vm0, %v4457_v11, 0.0  ;;  %2476 = vadd.xlane.f32.xlu1 %v2089_v38  ;;  %2474 = vadd.xlane.f32.xlu0 %v2088_v39  ;;  %2262 = vst [vmem:[#allocation2 + $0x180] sm:$0xff] %v5757_v12  ;;  %2219 = vst [vmem:[#allocation2 + $0x28] sm:$0xff] %v5759_v13  ;;  %v1979_v25 = vsel %vm1957_vm0, %v4490_v15, 0.0  ;;  %v4577_v29 = vunpack.c.l.bf16 %v4797_v5  ;;  %v4522_v47 = vunpack.c.h.bf16 %v4783_v30  ;;  %v1637_v52 = vld [vmem:[#allocation2 + $0x210] sm:$0xff]  ;;  %v1652_v57 = vld [vmem:[#allocation2 + $0x288] sm:$0xff] }
 0x134   : > { %v5766_v24 = vadd.f32 %v1962_v18, %v1575_v10  ;;  %v1978_v26 = vsel %vm1957_vm0, %v4489_v17, 0.0  ;;  %v5773_v31 = vadd.f32 %v1979_v25, %v1592_v14  ;;  %v2009_v33 = vsel %vm1957_vm0, %v4550_v20, 0.0  ;;  %v1651_v58 = vld [vmem:[#allocation2 + $0x280] sm:$0xff]  ;;  %v1578_v5 = vld [vmem:[#allocation2 + $0x38] sm:$0xff]  ;;  %v1577_v8 = vld [vmem:[#allocation2 + $0x30] sm:$0xff] }
 0x135   : > { %v5775_v32 = vadd.f32 %v1978_v26, %v1591_v16  ;;  %v2008_v34 = vsel %vm1957_vm0, %v4549_v22, 0.0  ;;  %v5784_v37 = vadd.f32 %v2009_v33, %v1622_v19  ;;  %v2023_v39 = vsel %vm1957_vm0, %v4578_v23, 0.0  ;;  %v4776_v9 = vld [vmem:[%s5493_s29 + $0x58] sm:$0xff]   ;;  %v4791_v16 = vld [vmem:[%s5493_s29 + $0xd0] sm:$0xff]   ;;  %v4806_v17 = vld [vmem:[%s5493_s29 + $0x148] sm:$0xff]  }
 0x136   : > { %2218 = vst [vmem:[#allocation2 + $0x20] sm:$0xff] %v5766_v24  ;;  %v5786_v38 = vadd.f32 %v2008_v34, %v1621_v21  ;;  %v2022_v41 = vsel %vm1957_vm0, %v4577_v29, 0.0  ;;  %2235 = vst [vmem:[#allocation2 + $0xa8] sm:$0xff] %v5773_v31  ;;  %v5795_v43 = vadd.f32 %v2023_v39, %v1636_v27  ;;  %v4521_v49 = vunpack.c.l.bf16 %v4783_v30  ;;  %v4813_v22 = vld [vmem:[%s5493_s29 + $0x180] sm:$0xff]   ;;  %v1594_v23 = vld [vmem:[#allocation2 + $0xb8] sm:$0xff] }
 0x137   : > { %2234 = vst [vmem:[#allocation2 + $0xa0] sm:$0xff] %v5775_v32  ;;  %v5797_v45 = vadd.f32 %v2022_v41, %v1635_v28  ;;  %2508 = vadd.xlane.f32.xlu1 %v5719_v40  ;;  %2506 = vadd.xlane.f32.xlu0 %v5722_v44  ;;  %2265 = vst [vmem:[#allocation2 + $0x198] sm:$0xff] %v5784_v37  ;;  %v4582_v51 = vunpack.c.h.bf16 %v4798_v35  ;;  %v4581_v53 = vunpack.c.l.bf16 %v4798_v35  ;;  %v4610_v54 = vunpack.c.h.bf16 %v4805_v36  ;;  %v1593_v26 = vld [vmem:[#allocation2 + $0xb0] sm:$0xff]  ;;  %v1624_v28 = vld [vmem:[#allocation2 + $0x1a8] sm:$0xff] }
 0x138   : > { %2264 = vst [vmem:[#allocation2 + $0x190] sm:$0xff] %v5786_v38  ;;  %v4609_v55 = vunpack.c.l.bf16 %v4805_v36  ;;  %2279 = vst [vmem:[#allocation2 + $0x208] sm:$0xff] %v5795_v43  ;;  %v1995_v40 = vsel %vm1957_vm0, %v4522_v47, 0.0  ;;  %v1994_v44 = vsel %vm1957_vm0, %v4521_v49, 0.0  ;;  %v4462_v59 = vunpack.c.h.bf16 %v4768_v42  ;;  %v1623_v30 = vld [vmem:[#allocation2 + $0x1a0] sm:$0xff]  ;;  %v1654_v41 = vld [vmem:[#allocation2 + $0x298] sm:$0xff] }
 0x139   : > { %2278 = vst [vmem:[#allocation2 + $0x200] sm:$0xff] %v5797_v45  ;;  %v4461_v60 = vunpack.c.l.bf16 %v4768_v42  ;;  %v5809_v61 = vadd.f32 %v1995_v40, %v1608_v46  ;;  %v5811_v62 = vadd.f32 %v1994_v44, %v1607_v48  ;;  %v2025_v3 = vsel %vm1957_vm0, %v4582_v51, 0.0  ;;  %v1653_v42 = vld [vmem:[#allocation2 + $0x290] sm:$0xff] }
 0x13a   : > { %v2024_v4 = vsel %vm1957_vm0, %v4581_v53, 0.0  ;;  %v5818_v10 = vadd.f32 %v2025_v3, %v1638_v50  ;;  %v2039_v14 = vsel %vm1957_vm0, %v4610_v54, 0.0  ;;  %v2038_v15 = vsel %vm1957_vm0, %v4609_v55, 0.0  ;;  %v1667_v53 = vld [vmem:[#allocation2 + $0x300] sm:$0xff]  ;;  %v4784_v54 = vld [vmem:[%s5493_s29 + $0x98] sm:$0xff]   ;;  %v4799_v44 = vld [vmem:[%s5493_s29 + $0x110] sm:$0xff]  }
 0x13b   : > { %v5820_v11 = vadd.f32 %v2024_v4, %v1637_v52  ;;  %2536 = vadd.xlane.f32.xlu1 %v5728_v56  ;;  %2534 = vadd.xlane.f32.xlu0 %v5737_v63  ;;  %2251 = vst [vmem:[#allocation2 + $0x128] sm:$0xff] %v5809_v61  ;;  %2250 = vst [vmem:[#allocation2 + $0x120] sm:$0xff] %v5811_v62  ;;  %v5832_v18 = vadd.f32 %v2039_v14, %v1652_v57  ;;  %v1965_v20 = vsel %vm1957_vm0, %v4462_v59, 0.0  ;;  %v1668_v52 = vld [vmem:[#allocation2 + $0x308] sm:$0xff]  ;;  %v4821_v4 = vld [vmem:[%s5493_s29 + $0x1c0] sm:$0xff]   ;;  %vm3205_vm10 = vcmask 720512  }
 0x13c   : > { %v5834_v19 = vadd.f32 %v2038_v15, %v1651_v58  ;;  %v1964_v21 = vsel %vm1957_vm0, %v4461_v60, 0.0  ;;  %2281 = vst [vmem:[#allocation2 + $0x218] sm:$0xff] %v5818_v10  ;;  %v5843_v56 = vadd.f32 %v1965_v20, %v1578_v5  ;;  %v4494_v25 = vunpack.c.h.bf16 %v4776_v9  ;;  %v4814_v57 = vld [vmem:[%s5493_s29 + $0x188] sm:$0xff]   ;;  %v1609_v15 = vld [vmem:[#allocation2 + $0x130] sm:$0xff] }
 0x13d   : > { %2280 = vst [vmem:[#allocation2 + $0x210] sm:$0xff] %v5820_v11  ;;  %v5845_v63 = vadd.f32 %v1964_v21, %v1577_v8  ;;  %v4493_v27 = vunpack.c.l.bf16 %v4776_v9  ;;  %2295 = vst [vmem:[#allocation2 + $0x288] sm:$0xff] %v5832_v18  ;;  %v4554_v29 = vunpack.c.h.bf16 %v4791_v16  ;;  %v4553_v33 = vunpack.c.l.bf16 %v4791_v16  ;;  %v1610_v9 = vld [vmem:[#allocation2 + $0x138] sm:$0xff]  ;;  %v1639_v21 = vld [vmem:[#allocation2 + $0x220] sm:$0xff] }
 0x13e   : > { %2294 = vst [vmem:[#allocation2 + $0x280] sm:$0xff] %v5834_v19  ;;  %v4614_v34 = vunpack.c.h.bf16 %v4806_v17  ;;  %v4613_v35 = vunpack.c.l.bf16 %v4806_v17  ;;  %2221 = vst [vmem:[#allocation2 + $0x38] sm:$0xff] %v5843_v56  ;;  %v1981_v36 = vsel %vm1957_vm0, %v4494_v25, 0.0  ;;  %v4642_v46 = vunpack.c.h.bf16 %v4813_v22  ;;  %v1640_v17 = vld [vmem:[#allocation2 + $0x228] sm:$0xff]  ;;  %v4823_v2 = vld [vmem:[%s5493_s29 + $0x1d0] sm:$0xff]  }
 0x13f   : > { %2220 = vst [vmem:[#allocation2 + $0x30] sm:$0xff] %v5845_v63  ;;  %v1980_v39 = vsel %vm1957_vm0, %v4493_v27, 0.0  ;;  %v4641_v47 = vunpack.c.l.bf16 %v4813_v22  ;;  %2540 = vadd.xlane.f32.xlu1 %v5739_v0  ;;  %2538 = vadd.xlane.f32.xlu0 %v5741_v1  ;;  %v5857_v48 = vadd.f32 %v1981_v36, %v1594_v23  ;;  %v2011_v50 = vsel %vm1957_vm0, %v4554_v29, 0.0  ;;  %v1669_v27 = vld [vmem:[#allocation2 + $0x310] sm:$0xff]  ;;  %v1684_v36 = vld [vmem:[#allocation2 + $0x388] sm:$0xff] }
 0x140   : > { %v5859_v49 = vadd.f32 %v1980_v39, %v1593_v26  ;;  %v2010_v51 = vsel %vm1957_vm0, %v4553_v33, 0.0  ;;  %v5866_v55 = vadd.f32 %v2011_v50, %v1624_v28  ;;  %v2041_v0 = vsel %vm1957_vm0, %v4614_v34, 0.0  ;;  %v1670_v26 = vld [vmem:[#allocation2 + $0x318] sm:$0xff]  ;;  %v1683_v39 = vld [vmem:[#allocation2 + $0x380] sm:$0xff] }
 0x141   : > { %v5868_v40 = vadd.f32 %v2010_v51, %v1623_v30  ;;  %v2040_v1 = vsel %vm1957_vm0, %v4613_v35, 0.0  ;;  %2237 = vst [vmem:[#allocation2 + $0xb8] sm:$0xff] %v5857_v48  ;;  %v5878_v58 = vadd.f32 %v2041_v0, %v1654_v41  ;;  %v2055_v60 = vsel %vm1957_vm0, %v4642_v46, 0.0  ;;  %v4769_v41 = vld [vmem:[%s5493_s29 + $0x20] sm:$0xff]  }
 0x142   : > { %2236 = vst [vmem:[#allocation2 + $0xb0] sm:$0xff] %v5859_v49  ;;  %v5880_v59 = vadd.f32 %v2040_v1, %v1653_v42  ;;  %v2054_v3 = vsel %vm1957_vm0, %v4641_v47, 0.0  ;;  %2267 = vst [vmem:[#allocation2 + $0x1a8] sm:$0xff] %v5866_v55  ;;  %v5889_v5 = vadd.f32 %v2055_v60, %v1668_v52  ;;  %v4526_v14 = vunpack.c.h.bf16 %v4784_v54  ;;  %v4777_v51 = vld [vmem:[%s5493_s29 + $0x60] sm:$0xff]   ;;  %v4792_v52 = vld [vmem:[%s5493_s29 + $0xd8] sm:$0xff]  }
 0x143   : > { %2266 = vst [vmem:[#allocation2 + $0x1a0] sm:$0xff] %v5868_v40  ;;  %v5891_v8 = vadd.f32 %v2054_v3, %v1667_v53  ;;  %v4525_v16 = vunpack.c.l.bf16 %v4784_v54  ;;  %2568 = vadd.xlane.f32.xlu1 %v5748_v6  ;;  %2566 = vadd.xlane.f32.xlu0 %v5757_v12  ;;  %2297 = vst [vmem:[#allocation2 + $0x298] sm:$0xff] %v5878_v58  ;;  %v4586_v20 = vunpack.c.h.bf16 %v4799_v44  ;;  %v4585_v22 = vunpack.c.l.bf16 %v4799_v44  ;;  %v4807_v44 = vld [vmem:[%s5493_s29 + $0x150] sm:$0xff]   ;;  %v1579_v3 = vld [vmem:[#allocation2 + $0x40] sm:$0xff] }
 0x144   : > { %2296 = vst [vmem:[#allocation2 + $0x290] sm:$0xff] %v5880_v59  ;;  %v4646_v23 = vunpack.c.h.bf16 %v4814_v57  ;;  %v4645_v25 = vunpack.c.l.bf16 %v4814_v57  ;;  %2311 = vst [vmem:[#allocation2 + $0x308] sm:$0xff] %v5889_v5  ;;  %v1997_v6 = vsel %vm1957_vm0, %v4526_v14, 0.0  ;;  %v4674_v28 = vunpack.c.h.bf16 %v4821_v4  ;;  %v1580_v57 = vld [vmem:[#allocation2 + $0x48] sm:$0xff] }
 0x145   : > { %2310 = vst [vmem:[#allocation2 + $0x300] sm:$0xff] %v5891_v8  ;;  %v1996_v12 = vsel %vm1957_vm0, %v4525_v16, 0.0  ;;  %v4673_v29 = vunpack.c.l.bf16 %v4821_v4  ;;  %v5903_v30 = vadd.f32 %v1997_v6, %v1610_v9  ;;  %v2027_v34 = vsel %vm1957_vm0, %v4586_v20, 0.0  ;;  %v1596_v9 = vld [vmem:[#allocation2 + $0xc8] sm:$0xff] }
 0x146   : > { %v5905_v33 = vadd.f32 %v1996_v12, %v1609_v15  ;;  %v2026_v35 = vsel %vm1957_vm0, %v4585_v22, 0.0  ;;  %v5912_v42 = vadd.f32 %v2027_v34, %v1640_v17  ;;  %v2057_v47 = vsel %vm1957_vm0, %v4646_v23, 0.0  ;;  %v1595_v15 = vld [vmem:[#allocation2 + $0xc0] sm:$0xff]  ;;  %v1626_v23 = vld [vmem:[#allocation2 + $0x1b8] sm:$0xff]  ;;  %v1656_v34 = vld [vmem:[#allocation2 + $0x2a8] sm:$0xff] }
 0x147   : > { %v5914_v46 = vadd.f32 %v2026_v35, %v1639_v21  ;;  %v2056_v50 = vsel %vm1957_vm0, %v4645_v25, 0.0  ;;  %2480 = vadd.xlane.f32.xlu1 %v5759_v13  ;;  %2478 = vadd.xlane.f32.xlu0 %v5766_v24  ;;  %2253 = vst [vmem:[#allocation2 + $0x138] sm:$0xff] %v5903_v30  ;;  %v5926_v53 = vadd.f32 %v2057_v47, %v1670_v26  ;;  %v2071_v0 = vsel %vm1957_vm0, %v4674_v28, 0.0  ;;  %v1625_v25 = vld [vmem:[#allocation2 + $0x1b0] sm:$0xff]  ;;  %v1655_v35 = vld [vmem:[#allocation2 + $0x2a0] sm:$0xff]  ;;  %v1686_v47 = vld [vmem:[#allocation2 + $0x398] sm:$0xff] }
 0x148   : > { %2252 = vst [vmem:[#allocation2 + $0x130] sm:$0xff] %v5905_v33  ;;  %v5928_v54 = vadd.f32 %v2056_v50, %v1669_v27  ;;  %v2070_v1 = vsel %vm1957_vm0, %v4673_v29, 0.0  ;;  %2283 = vst [vmem:[#allocation2 + $0x228] sm:$0xff] %v5912_v42  ;;  %v5937_v13 = vadd.f32 %v2071_v0, %v1684_v36  ;;  %v4466_v60 = vunpack.c.h.bf16 %v4769_v41  ;;  %v4822_v36 = vld [vmem:[%s5493_s29 + $0x1c8] sm:$0xff]   ;;  %v1685_v50 = vld [vmem:[#allocation2 + $0x390] sm:$0xff] }
 0x149   : > { %2282 = vst [vmem:[#allocation2 + $0x220] sm:$0xff] %v5914_v46  ;;  %v5939_v24 = vadd.f32 %v2070_v1, %v1683_v39  ;;  %v4465_v4 = vunpack.c.l.bf16 %v4769_v41  ;;  %2313 = vst [vmem:[#allocation2 + $0x318] sm:$0xff] %v5926_v53  ;;  %v4498_v14 = vunpack.c.h.bf16 %v4777_v51  ;;  %v4497_v16 = vunpack.c.l.bf16 %v4777_v51  ;;  %v4785_v51 = vld [vmem:[%s5493_s29 + $0xa0] sm:$0xff]  }
 0x14a   : > { %2312 = vst [vmem:[#allocation2 + $0x310] sm:$0xff] %v5928_v54  ;;  %v4558_v17 = vunpack.c.h.bf16 %v4792_v52  ;;  %v4557_v20 = vunpack.c.l.bf16 %v4792_v52  ;;  %2327 = vst [vmem:[#allocation2 + $0x388] sm:$0xff] %v5937_v13  ;;  %v1967_v21 = vsel %vm1957_vm0, %v4466_v60, 0.0  ;;  %v4618_v6 = vunpack.c.h.bf16 %v4807_v44  ;;  %v4800_v52 = vld [vmem:[%s5493_s29 + $0x118] sm:$0xff]   ;;  %v1612_v60 = vld [vmem:[#allocation2 + $0x148] sm:$0xff] }
 0x14b   : > { %2326 = vst [vmem:[#allocation2 + $0x380] sm:$0xff] %v5939_v24  ;;  %v1966_v22 = vsel %vm1957_vm0, %v4465_v4, 0.0  ;;  %v4617_v12 = vunpack.c.l.bf16 %v4807_v44  ;;  %2512 = vadd.xlane.f32.xlu1 %v5773_v31  ;;  %2510 = vadd.xlane.f32.xlu0 %v5775_v32  ;;  %v5951_v26 = vadd.f32 %v1967_v21, %v1580_v57  ;;  %v1983_v28 = vsel %vm1957_vm0, %v4498_v14, 0.0  ;;  %v4815_v4 = vld [vmem:[%s5493_s29 + $0x190] sm:$0xff]  }
 0x14c   : > { %v5953_v27 = vadd.f32 %v1966_v22, %v1579_v3  ;;  %v1982_v29 = vsel %vm1957_vm0, %v4497_v16, 0.0  ;;  %v5960_v39 = vadd.f32 %v1983_v28, %v1596_v9  ;;  %v2013_v32 = vsel %vm1957_vm0, %v4558_v17, 0.0  ;;  %v1611_v3 = vld [vmem:[#allocation2 + $0x140] sm:$0xff]  ;;  %v1642_v17 = vld [vmem:[#allocation2 + $0x238] sm:$0xff]  ;;  %v4770_v28 = vld [vmem:[%s5493_s29 + $0x28] sm:$0xff]  }
 0x14d   : > { %v5962_v31 = vadd.f32 %v1982_v29, %v1595_v15  ;;  %v2012_v41 = vsel %vm1957_vm0, %v4557_v20, 0.0  ;;  %2223 = vst [vmem:[#allocation2 + $0x48] sm:$0xff] %v5951_v26  ;;  %v5972_v0 = vadd.f32 %v2013_v32, %v1626_v23  ;;  %v2043_v44 = vsel %vm1957_vm0, %v4618_v6, 0.0  ;;  %v1641_v20 = vld [vmem:[#allocation2 + $0x230] sm:$0xff]  ;;  %v1672_v6 = vld [vmem:[#allocation2 + $0x328] sm:$0xff] }
 0x14e   : > { %2222 = vst [vmem:[#allocation2 + $0x40] sm:$0xff] %v5953_v27  ;;  %v5974_v1 = vadd.f32 %v2012_v41, %v1625_v25  ;;  %v2042_v57 = vsel %vm1957_vm0, %v4617_v12, 0.0  ;;  %2239 = vst [vmem:[#allocation2 + $0xc8] sm:$0xff] %v5960_v39  ;;  %v5983_v9 = vadd.f32 %v2043_v44, %v1656_v34  ;;  %v4678_v15 = vunpack.c.h.bf16 %v4822_v36  ;;  %v1671_v12 = vld [vmem:[#allocation2 + $0x320] sm:$0xff] }
 0x14f   : > { %2238 = vst [vmem:[#allocation2 + $0xc0] sm:$0xff] %v5962_v31  ;;  %v5985_v14 = vadd.f32 %v2042_v57, %v1655_v35  ;;  %v4677_v16 = vunpack.c.l.bf16 %v4822_v36  ;;  %2572 = vadd.xlane.f32.xlu1 %v5784_v37  ;;  %2570 = vadd.xlane.f32.xlu0 %v5786_v38  ;;  %2269 = vst [vmem:[#allocation2 + $0x1b8] sm:$0xff] %v5972_v0  ;;  %v4530_v21 = vunpack.c.h.bf16 %v4785_v51  ;;  %v4529_v22 = vunpack.c.l.bf16 %v4785_v51  ;;  %v4778_v51 = vld [vmem:[%s5493_s29 + $0x68] sm:$0xff]  }
 0x150   : > { %2268 = vst [vmem:[#allocation2 + $0x1b0] sm:$0xff] %v5974_v1  ;;  %v4590_v23 = vunpack.c.h.bf16 %v4800_v52  ;;  %v4589_v25 = vunpack.c.l.bf16 %v4800_v52  ;;  %2299 = vst [vmem:[#allocation2 + $0x2a8] sm:$0xff] %v5983_v9  ;;  %v2073_v37 = vsel %vm1957_vm0, %v4678_v15, 0.0  ;;  %v4650_v29 = vunpack.c.h.bf16 %v4815_v4  ;;  %v4793_v52 = vld [vmem:[%s5493_s29 + $0xe0] sm:$0xff]  }
 0x151   : > { %2298 = vst [vmem:[#allocation2 + $0x2a0] sm:$0xff] %v5985_v14  ;;  %v2072_v38 = vsel %vm1957_vm0, %v4677_v16, 0.0  ;;  %v4649_v34 = vunpack.c.l.bf16 %v4815_v4  ;;  %v5998_v35 = vadd.f32 %v2073_v37, %v1686_v47  ;;  %v1999_v32 = vsel %vm1957_vm0, %v4530_v21, 0.0  ;;  %v1581_v4 = vld [vmem:[#allocation2 + $0x50] sm:$0xff]  ;;  %v4808_v16 = vld [vmem:[%s5493_s29 + $0x158] sm:$0xff]   ;;  %v1628_v37 = vld [vmem:[#allocation2 + $0x1c8] sm:$0xff] }
 0x152   : > { %v6000_v36 = vadd.f32 %v2072_v38, %v1685_v50  ;;  %v1998_v41 = vsel %vm1957_vm0, %v4529_v22, 0.0  ;;  %v6008_v44 = vadd.f32 %v1999_v32, %v1612_v60  ;;  %v2029_v15 = vsel %vm1957_vm0, %v4590_v23, 0.0  ;;  %v1582_v50 = vld [vmem:[#allocation2 + $0x58] sm:$0xff]  ;;  %v1627_v38 = vld [vmem:[#allocation2 + $0x1c0] sm:$0xff] }
 0x153   : > { %v6010_v57 = vadd.f32 %v1998_v41, %v1611_v3  ;;  %v2028_v47 = vsel %vm1957_vm0, %v4589_v25, 0.0  ;;  %2600 = vadd.xlane.f32.xlu1 %v5795_v43  ;;  %2598 = vadd.xlane.f32.xlu0 %v5797_v45  ;;  %2329 = vst [vmem:[#allocation2 + $0x398] sm:$0xff] %v5998_v35  ;;  %v6021_v60 = vadd.f32 %v2029_v15, %v1642_v17  ;;  %v2059_v21 = vsel %vm1957_vm0, %v4650_v29, 0.0  ;;  %v1598_v23 = vld [vmem:[#allocation2 + $0xd8] sm:$0xff]  ;;  %v1597_v25 = vld [vmem:[#allocation2 + $0xd0] sm:$0xff] }
 0x154   : > { %2328 = vst [vmem:[#allocation2 + $0x390] sm:$0xff] %v6000_v36  ;;  %v6023_v3 = vadd.f32 %v2028_v47, %v1641_v20  ;;  %v2058_v22 = vsel %vm1957_vm0, %v4649_v34, 0.0  ;;  %2255 = vst [vmem:[#allocation2 + $0x148] sm:$0xff] %v6008_v44  ;;  %v6031_v43 = vadd.f32 %v2059_v21, %v1672_v6  ;;  %v4470_v17 = vunpack.c.h.bf16 %v4770_v28  ;;  %v1658_v15 = vld [vmem:[#allocation2 + $0x2b8] sm:$0xff]  ;;  %v1657_v47 = vld [vmem:[#allocation2 + $0x2b0] sm:$0xff] }
 0x155   : > { %2254 = vst [vmem:[#allocation2 + $0x140] sm:$0xff] %v6010_v57  ;;  %v6033_v45 = vadd.f32 %v2058_v22, %v1671_v12  ;;  %v4469_v20 = vunpack.c.l.bf16 %v4770_v28  ;;  %2285 = vst [vmem:[#allocation2 + $0x238] sm:$0xff] %v6021_v60  ;;  %v4502_v29 = vunpack.c.h.bf16 %v4778_v51  ;;  %v4501_v34 = vunpack.c.l.bf16 %v4778_v51  ;;  %v4786_v22 = vld [vmem:[%s5493_s29 + $0xa8] sm:$0xff]  }
 0x156   : > { %7125 = vst [vmem:[#allocation8_spill] sm:$0xff] %v6031_v43  ;;  %2284 = vst [vmem:[#allocation2 + $0x230] sm:$0xff] %v6023_v3  ;;  %v4562_v32 = vunpack.c.h.bf16 %v4793_v52  ;;  %v4561_v41 = vunpack.c.l.bf16 %v4793_v52  ;;  %v1969_v6 = vsel %vm1957_vm0, %v4470_v17, 0.0  ;;  %v4622_v28 = vunpack.c.h.bf16 %v4808_v16 }
 0x157   : > { %7126 = vst [vmem:[#allocation9_spill] sm:$0xff] %v6033_v45  ;;  %2315 = vst [vmem:[#allocation2 + $0x328] sm:$0xff] %v6031_v43  ;;  %v1968_v12 = vsel %vm1957_vm0, %v4469_v20, 0.0  ;;  %v4621_v21 = vunpack.c.l.bf16 %v4808_v16  ;;  %2544 = vadd.xlane.f32.xlu1 %v5809_v61  ;;  %2542 = vadd.xlane.f32.xlu0 %v5811_v62  ;;  %v6047_v51 = vadd.f32 %v1969_v6, %v1582_v50  ;;  %v1984_v17 = vsel %vm1957_vm0, %v4501_v34, 0.0  ;;  %v1688_v50 = vld [vmem:[#allocation2 + $0x3a8] sm:$0xff]  ;;  %v4801_v34 = vld [vmem:[%s5493_s29 + $0x120] sm:$0xff]  }
 0x158   : > { %2314 = vst [vmem:[#allocation2 + $0x320] sm:$0xff] %v6033_v45  ;;  %v6049_v52 = vadd.f32 %v1968_v12, %v1581_v4  ;;  %v1985_v45 = vsel %vm1957_vm0, %v4502_v29, 0.0  ;;  %v6057_v20 = vadd.f32 %v1984_v17, %v1597_v25  ;;  %v2015_v61 = vsel %vm1957_vm0, %v4562_v32, 0.0  ;;  %v1687_v4 = vld [vmem:[#allocation2 + $0x3a0] sm:$0xff]  ;;  %v1644_v17 = vld [vmem:[#allocation2 + $0x248] sm:$0xff] }
 0x159   : > { %v6055_v43 = vadd.f32 %v1985_v45, %v1598_v23  ;;  %v2014_v62 = vsel %vm1957_vm0, %v4561_v41, 0.0  ;;  %2225 = vst [vmem:[#allocation2 + $0x58] sm:$0xff] %v6047_v51  ;;  %v6065_v16 = vadd.f32 %v2015_v61, %v1628_v37  ;;  %v2045_v23 = vsel %vm1957_vm0, %v4622_v28, 0.0  ;;  %v1614_v45 = vld [vmem:[#allocation2 + $0x158] sm:$0xff] }
 0x15a   : > { %2224 = vst [vmem:[#allocation2 + $0x50] sm:$0xff] %v6049_v52  ;;  %v6067_v29 = vadd.f32 %v2014_v62, %v1627_v38  ;;  %v2044_v25 = vsel %vm1957_vm0, %v4621_v21, 0.0  ;;  %2240 = vst [vmem:[#allocation2 + $0xd0] sm:$0xff] %v6057_v20  ;;  %v6076_v32 = vadd.f32 %v2045_v23, %v1658_v15  ;;  %v4682_v37 = vunpack.c.h.bf16 %v4823_v2  ;;  %v1613_v38 = vld [vmem:[#allocation2 + $0x150] sm:$0xff]  ;;  %v4816_v61 = vld [vmem:[%s5493_s29 + $0x198] sm:$0xff]  }
 0x15b   : > { %2241 = vst [vmem:[#allocation2 + $0xd8] sm:$0xff] %v6055_v43  ;;  %v6078_v41 = vadd.f32 %v2044_v25, %v1657_v47  ;;  %v4681_v6 = vunpack.c.l.bf16 %v4823_v2  ;;  %2604 = vadd.xlane.f32.xlu1 %v5818_v10  ;;  %2602 = vadd.xlane.f32.xlu0 %v5820_v11  ;;  %2271 = vst [vmem:[#allocation2 + $0x1c8] sm:$0xff] %v6065_v16  ;;  %v4534_v12 = vunpack.c.h.bf16 %v4786_v22  ;;  %v4533_v28 = vunpack.c.l.bf16 %v4786_v22  ;;  %v4771_v25 = vld [vmem:[%s5493_s29 + $0x30] sm:$0xff]  }
 0x15c   : > { %2270 = vst [vmem:[#allocation2 + $0x1c0] sm:$0xff] %v6067_v29  ;;  %2301 = vst [vmem:[#allocation2 + $0x2b8] sm:$0xff] %v6076_v32  ;;  %v2075_v2 = vsel %vm1957_vm0, %v4682_v37, 0.0  ;;  %v4594_v15 = vunpack.c.h.bf16 %v4801_v34  ;;  %v4593_v37 = vunpack.c.l.bf16 %v4801_v34  ;;  %vm3212_vm11 = vcmask 786112  }
 0x15d   : > { %2300 = vst [vmem:[#allocation2 + $0x2b0] sm:$0xff] %v6078_v41  ;;  %v2074_v10 = vsel %vm1957_vm0, %v4681_v6, 0.0  ;;  %v6090_v47 = vadd.f32 %v2075_v2, %v1688_v50  ;;  %v2001_v21 = vsel %vm1957_vm0, %v4534_v12, 0.0  ;;  %v2000_v22 = vsel %vm1957_vm0, %v4533_v28, 0.0  ;;  %v1674_v6 = vld [vmem:[#allocation2 + $0x338] sm:$0xff]  ;;  %v1673_v12 = vld [vmem:[#allocation2 + $0x330] sm:$0xff] }
 0x15e   : > { %v6092_v11 = vadd.f32 %v2074_v10, %v1687_v4  ;;  %v6099_v62 = vadd.f32 %v2001_v21, %v1614_v45  ;;  %v6101_v23 = vadd.f32 %v2000_v22, %v1613_v38  ;;  %v2031_v50 = vsel %vm1957_vm0, %v4594_v15, 0.0  ;;  %v1643_v4 = vld [vmem:[#allocation2 + $0x240] sm:$0xff]  ;;  %v4779_v38 = vld [vmem:[%s5493_s29 + $0x70] sm:$0xff]   ;;  %v1584_v2 = vld [vmem:[#allocation2 + $0x68] sm:$0xff] }
 0x15f   : > { %2632 = vadd.xlane.f32.xlu1 %v5832_v18  ;;  %2630 = vadd.xlane.f32.xlu0 %v5834_v19  ;;  %2331 = vst [vmem:[#allocation2 + $0x3a8] sm:$0xff] %v6090_v47  ;;  %v6112_v45 = vadd.f32 %v2031_v50, %v1644_v17  ;;  %v4654_v18 = vunpack.c.h.bf16 %v4816_v61  ;;  %v2030_v19 = vsel %vm1957_vm0, %v4593_v37, 0.0  ;;  %v4653_v28 = vunpack.c.l.bf16 %v4816_v61  ;;  %v1583_v21 = vld [vmem:[#allocation2 + $0x60] sm:$0xff]  ;;  %v4794_v17 = vld [vmem:[%s5493_s29 + $0xe8] sm:$0xff]  }
 0x160   : > { %7127 = vst [vmem:[#allocation10_spill] sm:$0xff] %v6099_v62  ;;  %7128 = vst [vmem:[#allocation11_spill] sm:$0xff] %v6101_v23  ;;  %v4474_v10 = vunpack.c.h.bf16 %v4771_v25  ;;  %v6118_v34 = vadd.f32 %v2030_v19, %v1643_v4  ;;  %v4473_v22 = vunpack.c.l.bf16 %v4771_v25  ;;  %v1600_v4 = vld [vmem:[#allocation2 + $0xe8] sm:$0xff]  ;;  %v4506_v19 = vunpack.c.h.bf16 %v4779_v38 }
 0x161   : > { %2330 = vst [vmem:[#allocation2 + $0x3a0] sm:$0xff] %v6092_v11  ;;  %2257 = vst [vmem:[#allocation2 + $0x158] sm:$0xff] %v6099_v62  ;;  %v2061_v15 = vsel %vm1957_vm0, %v4654_v18, 0.0  ;;  %v2060_v61 = vsel %vm1957_vm0, %v4653_v28, 0.0  ;;  %v1629_v62 = vld [vmem:[#allocation2 + $0x1d0] sm:$0xff]  ;;  %vm5095_vm12 = vmmov 0  }
 0x162   : > { %2256 = vst [vmem:[#allocation2 + $0x150] sm:$0xff] %v6101_v23  ;;  %7129 = vst [vmem:[#allocation12_spill] sm:$0xff] %v6112_v45  ;;  %v6125_v50 = vadd.f32 %v2061_v15, %v1674_v6  ;;  %v1971_v37 = vsel %vm1957_vm0, %v4474_v10, 0.0  ;;  %v6133_v18 = vadd.f32 %v2060_v61, %v1673_v12  ;;  %v4505_v6 = vunpack.c.l.bf16 %v4779_v38  ;;  %v1630_v15 = vld [vmem:[#allocation2 + $0x1d8] sm:$0xff]  ;;  %v1659_v61 = vld [vmem:[#allocation2 + $0x2c0] sm:$0xff] }
 0x163   : > { %2287 = vst [vmem:[#allocation2 + $0x248] sm:$0xff] %v6112_v45  ;;  %2484 = vadd.xlane.f32.xlu1 %v5843_v56  ;;  %2482 = vadd.xlane.f32.xlu0 %v5845_v63  ;;  %v4809_v45 = vld [vmem:[%s5493_s29 + $0x160] sm:$0xff]   ;;  %2286 = vst [vmem:[#allocation2 + $0x240] sm:$0xff] %v6118_v34  ;;  %v6135_v25 = vadd.f32 %v1971_v37, %v1584_v2  ;;  %v1970_v56 = vsel %vm1957_vm0, %v4473_v22, 0.0  ;;  %v1987_v10 = vsel %vm1957_vm0, %v4506_v19, 0.0  ;;  %v4566_v23 = vunpack.c.h.bf16 %v4794_v17  ;;  %v1660_v22 = vld [vmem:[#allocation2 + $0x2c8] sm:$0xff] }
 0x164   : > { %v1599_v63 = vld [vmem:[#allocation2 + $0xe0] sm:$0xff]  ;;  %2317 = vst [vmem:[#allocation2 + $0x338] sm:$0xff] %v6125_v50  ;;  %v6140_v28 = vadd.f32 %v1970_v56, %v1583_v21  ;;  %v4565_v12 = vunpack.c.l.bf16 %v4794_v17  ;;  %2316 = vst [vmem:[#allocation2 + $0x330] sm:$0xff] %v6133_v18  ;;  %v6146_v2 = vadd.f32 %v1987_v10, %v1600_v4  ;;  %v1986_v38 = vsel %vm1957_vm0, %v4505_v6, 0.0  ;;  %v4824_v56 = vld [vmem:[%s5493_s29 + $0x1d8] sm:$0xff]  }
 0x165   : > { %7130 = vst [vmem:[#allocation13_spill] sm:$0xff] %v6135_v25  ;;  %2227 = vst [vmem:[#allocation2 + $0x68] sm:$0xff] %v6135_v25  ;;  %v4626_v21 = vunpack.c.h.bf16 %v4809_v45  ;;  %v4625_v37 = vunpack.c.l.bf16 %v4809_v45  ;;  %v6153_v17 = vadd.f32 %v1986_v38, %v1599_v63  ;;  %v2017_v4 = vsel %vm1957_vm0, %v4566_v23, 0.0  ;;  %v4787_v63 = vld [vmem:[%s5493_s29 + $0xb0] sm:$0xff]   ;;  %v4802_v10 = vld [vmem:[%s5493_s29 + $0x128] sm:$0xff]  }
 0x166   : > { %7131 = vst [vmem:[#allocation14_spill] sm:$0xff] %v6140_v28  ;;  %7132 = vst [vmem:[#allocation15_spill] sm:$0xff] %v6146_v2  ;;  %v2016_v19 = vsel %vm1957_vm0, %v4565_v12, 0.0  ;;  %v6161_v6 = vadd.f32 %v2017_v4, %v1630_v15  ;;  %v4817_v38 = vld [vmem:[%s5493_s29 + $0x1a0] sm:$0xff]   ;;  %v4686_v15 = vunpack.c.h.bf16 %v4824_v56  ;;  %v1689_v4 = vld [vmem:[#allocation2 + $0x3b0] sm:$0xff]  ;;  %vm3219_vm13 = vcmask 851712  }
 0x167   : > { %2516 = vadd.xlane.f32.xlu1 %v5857_v48  ;;  %2514 = vadd.xlane.f32.xlu0 %v5859_v49  ;;  %2226 = vst [vmem:[#allocation2 + $0x60] sm:$0xff] %v6140_v28  ;;  %7133 = vst [vmem:[#allocation16_spill] sm:$0xff] %v6153_v17  ;;  %v6163_v45 = vadd.f32 %v2016_v19, %v1629_v62  ;;  %v2047_v48 = vsel %vm1957_vm0, %v4626_v21, 0.0  ;;  %v2046_v49 = vsel %vm1957_vm0, %v4625_v37, 0.0  ;;  %v1690_v62 = vld [vmem:[#allocation2 + $0x3b8] sm:$0xff]  ;;  %v4685_v21 = vunpack.c.l.bf16 %v4824_v56  ;;  %v1615_v37 = vld [vmem:[#allocation2 + $0x160] sm:$0xff] }
 0x168   : > { %2243 = vst [vmem:[#allocation2 + $0xe8] sm:$0xff] %v6146_v2  ;;  %7134 = vst [vmem:[#allocation17_spill] sm:$0xff] %v6161_v6  ;;  %v6172_v23 = vadd.f32 %v2047_v48, %v1660_v22  ;;  %v6174_v12 = vadd.f32 %v2046_v49, %v1659_v61  ;;  %v1616_v22 = vld [vmem:[#allocation2 + $0x168] sm:$0xff]  ;;  %v4538_v61 = vunpack.c.h.bf16 %v4787_v63  ;;  %v4537_v19 = vunpack.c.l.bf16 %v4787_v63  ;;  %v1645_v56 = vld [vmem:[#allocation2 + $0x250] sm:$0xff] }
 0x169   : > { %7135 = vst [vmem:[#allocation18_spill] sm:$0xff] %v6163_v45  ;;  %2242 = vst [vmem:[#allocation2 + $0xe0] sm:$0xff] %v6153_v17  ;;  %v4598_v48 = vunpack.c.h.bf16 %v4802_v10  ;;  %v4597_v49 = vunpack.c.l.bf16 %v4802_v10  ;;  %v1676_v10 = vld [vmem:[#allocation2 + $0x348] sm:$0xff]  ;;  %v4772_v2 = vld [vmem:[%s5493_s29 + $0x38] sm:$0xff]   ;;  %vm3226_vm14 = vcmask 917312   ;;  %vm3233_vm15 = vcmask 982912  }
 0x16a   : > { %7136 = vst [vmem:[#allocation19_spill] sm:$0xff] %v6172_v23  ;;  %7137 = vst [vmem:[#allocation20_spill] sm:$0xff] %v6174_v12  ;;  %v2003_v17 = vsel %vm1957_vm0, %v4538_v61, 0.0  ;;  %v2002_v63 = vsel %vm1957_vm0, %v4537_v19, 0.0  ;;  %v1675_v61 = vld [vmem:[#allocation2 + $0x340] sm:$0xff]  ;;  %v4478_v19 = vunpack.c.h.bf16 %v4772_v2 }
 0x16b   : > { %2273 = vst [vmem:[#allocation2 + $0x1d8] sm:$0xff] %v6161_v6  ;;  %2272 = vst [vmem:[#allocation2 + $0x1d0] sm:$0xff] %v6163_v45  ;;  %2576 = vadd.xlane.f32.xlu1 %v5866_v55  ;;  %2574 = vadd.xlane.f32.xlu0 %v5868_v40  ;;  %v2077_v45 = vsel %vm1957_vm0, %v4686_v15, 0.0  ;;  %v2076_v55 = vsel %vm1957_vm0, %v4685_v21, 0.0  ;;  %v1646_v40 = vld [vmem:[#allocation2 + $0x258] sm:$0xff]  ;;  %v6197_v28 = vadd.f32 %v2003_v17, %v1616_v22  ;;  %v2033_v21 = vsel %vm1957_vm0, %v4598_v48, 0.0 }
 0x16c   : > { %2303 = vst [vmem:[#allocation2 + $0x2c8] sm:$0xff] %v6172_v23  ;;  %2302 = vst [vmem:[#allocation2 + $0x2c0] sm:$0xff] %v6174_v12  ;;  %v4658_v23 = vunpack.c.h.bf16 %v4817_v38  ;;  %v6187_v6 = vadd.f32 %v2077_v45, %v1690_v62  ;;  %v6189_v12 = vadd.f32 %v2076_v55, %v1689_v4  ;;  %v4780_v15 = vld [vmem:[%s5493_s29 + $0x78] sm:$0xff]   ;;  %v6199_v25 = vadd.f32 %v2002_v63, %v1615_v37  ;;  %v4795_v62 = vld [vmem:[%s5493_s29 + $0xf0] sm:$0xff]  }
 0x16d   : > { %v2032_v45 = vsel %vm1957_vm0, %v4597_v49, 0.0  ;;  %v6210_v4 = vadd.f32 %v2033_v21, %v1646_v40  ;;  %v4657_v37 = vunpack.c.l.bf16 %v4817_v38  ;;  %2259 = vst [vmem:[#allocation2 + $0x168] sm:$0xff] %v6197_v28  ;;  %v1585_v48 = vld [vmem:[#allocation2 + $0x70] sm:$0xff]  ;;  %v4477_v49 = vunpack.c.l.bf16 %v4772_v2  ;;  %v1602_v55 = vld [vmem:[#allocation2 + $0xf8] sm:$0xff] }
 0x16e   : > { %2333 = vst [vmem:[#allocation2 + $0x3b8] sm:$0xff] %v6187_v6  ;;  %2332 = vst [vmem:[#allocation2 + $0x3b0] sm:$0xff] %v6189_v12  ;;  %v6212_v17 = vadd.f32 %v2032_v45, %v1645_v56  ;;  %v2063_v22 = vsel %vm1957_vm0, %v4658_v23, 0.0  ;;  %v4510_v40 = vunpack.c.h.bf16 %v4780_v15  ;;  %v1601_v38 = vld [vmem:[#allocation2 + $0xf0] sm:$0xff]  ;;  %v4509_v56 = vunpack.c.l.bf16 %v4780_v15 }
 0x16f   : > { %2636 = vadd.xlane.f32.xlu1 %v5878_v58  ;;  %2634 = vadd.xlane.f32.xlu0 %v5880_v59  ;;  %2258 = vst [vmem:[#allocation2 + $0x160] sm:$0xff] %v6199_v25  ;;  %v6218_v58 = vadd.f32 %v2063_v22, %v1676_v10  ;;  %v1586_v59 = vld [vmem:[#allocation2 + $0x78] sm:$0xff]  ;;  %2289 = vst [vmem:[#allocation2 + $0x258] sm:$0xff] %v6210_v4  ;;  %v2062_v23 = vsel %vm1957_vm0, %v4657_v37, 0.0  ;;  %v4570_v63 = vunpack.c.h.bf16 %v4795_v62  ;;  %v4569_v21 = vunpack.c.l.bf16 %v4795_v62  ;;  %v1632_v37 = vld [vmem:[#allocation2 + $0x1e8] sm:$0xff] }
 0x170   : > { %7138 = vst [vmem:[#allocation21_spill] sm:$0xff] %v6212_v17  ;;  %2288 = vst [vmem:[#allocation2 + $0x250] sm:$0xff] %v6212_v17  ;;  %v6225_v10 = vadd.f32 %v2062_v23, %v1675_v61  ;;  %v1973_v2 = vsel %vm1957_vm0, %v4478_v19, 0.0  ;;  %v1972_v45 = vsel %vm1957_vm0, %v4477_v49, 0.0  ;;  %v1989_v22 = vsel %vm1957_vm0, %v4510_v40, 0.0  ;;  %v1631_v17 = vld [vmem:[#allocation2 + $0x1e0] sm:$0xff] }
 0x171   : > { %2319 = vst [vmem:[#allocation2 + $0x348] sm:$0xff] %v6218_v58  ;;  %v6235_v15 = vadd.f32 %v1973_v2, %v1586_v59  ;;  %v6237_v62 = vadd.f32 %v1972_v45, %v1585_v48  ;;  %v6239_v61 = vadd.f32 %v1989_v22, %v1602_v55  ;;  %v1988_v19 = vsel %vm1957_vm0, %v4509_v56, 0.0  ;;  %v4810_v23 = vld [vmem:[%s5493_s29 + $0x168] sm:$0xff]   ;;  %v4825_v59 = vld [vmem:[%s5493_s29 + $0x1e0] sm:$0xff]   ;;  %v1662_v40 = vld [vmem:[#allocation2 + $0x2d8] sm:$0xff] }
 0x172   : > { %2318 = vst [vmem:[#allocation2 + $0x340] sm:$0xff] %v6225_v10  ;;  %v6245_v49 = vadd.f32 %v1988_v19, %v1601_v38  ;;  %v4630_v38 = vunpack.c.h.bf16 %v4810_v23  ;;  %v1661_v56 = vld [vmem:[#allocation2 + $0x2d0] sm:$0xff]  ;;  %v4788_v2 = vld [vmem:[%s5493_s29 + $0xb8] sm:$0xff]   ;;  %v4690_v45 = vunpack.c.h.bf16 %v4825_v59  ;;  %v1691_v22 = vld [vmem:[#allocation2 + $0x3c0] sm:$0xff] }
 0x173   : > { %2664 = vadd.xlane.f32.xlu1 %v5889_v5  ;;  %2662 = vadd.xlane.f32.xlu0 %v5891_v8  ;;  %7139 = vst [vmem:[#allocation22_spill] sm:$0xff] %v6239_v61  ;;  %v2019_v5 = vsel %vm1957_vm0, %v4570_v63, 0.0  ;;  %v2018_v8 = vsel %vm1957_vm0, %v4569_v21, 0.0  ;;  %2229 = vst [vmem:[#allocation2 + $0x78] sm:$0xff] %v6235_v15  ;;  %v4629_v63 = vunpack.c.l.bf16 %v4810_v23  ;;  %v1692_v21 = vld [vmem:[#allocation2 + $0x3c8] sm:$0xff] }
 0x174   : > { %7140 = vst [vmem:[#allocation23_spill] sm:$0xff] %v6245_v49  ;;  %2228 = vst [vmem:[#allocation2 + $0x70] sm:$0xff] %v6237_v62  ;;  %v6255_v48 = vadd.f32 %v2019_v5, %v1632_v37  ;;  %v6257_v55 = vadd.f32 %v2018_v8, %v1631_v17  ;;  %v4689_v17 = vunpack.c.l.bf16 %v4825_v59  ;;  %v4542_v37 = vunpack.c.h.bf16 %v4788_v2  ;;  %v1617_v59 = vld [vmem:[#allocation2 + $0x170] sm:$0xff] }
 0x175   : > { %2245 = vst [vmem:[#allocation2 + $0xf8] sm:$0xff] %v6239_v61  ;;  %2244 = vst [vmem:[#allocation2 + $0xf0] sm:$0xff] %v6245_v49  ;;  %v2049_v19 = vsel %vm1957_vm0, %v4630_v38, 0.0  ;;  %v2048_v23 = vsel %vm1957_vm0, %v4629_v63, 0.0  ;;  %v4541_v5 = vunpack.c.l.bf16 %v4788_v2  ;;  %v2079_v8 = vsel %vm1957_vm0, %v4690_v45, 0.0  ;;  %v1647_v45 = vld [vmem:[#allocation2 + $0x260] sm:$0xff] }
 0x176   : > { %7141 = vst [vmem:[#allocation24_spill] sm:$0xff] %v6255_v48  ;;  %7142 = vst [vmem:[#allocation25_spill] sm:$0xff] %v6257_v55  ;;  %v6277_v49 = vadd.f32 %v2079_v8, %v1692_v21  ;;  %v2005_v38 = vsel %vm1957_vm0, %v4542_v37, 0.0  ;;  %v4818_v37 = vld [vmem:[%s5493_s29 + $0x1a8] sm:$0xff]  }
 0x177   : > { %2548 = vadd.xlane.f32.xlu1 %v5903_v30  ;;  %2546 = vadd.xlane.f32.xlu0 %v5905_v33  ;;  %2275 = vst [vmem:[#allocation2 + $0x1e8] sm:$0xff] %v6255_v48  ;;  %2274 = vst [vmem:[#allocation2 + $0x1e0] sm:$0xff] %v6257_v55  ;;  %v6269_v30 = vadd.f32 %v2049_v19, %v1662_v40  ;;  %v6271_v33 = vadd.f32 %v2048_v23, %v1661_v56  ;;  %v2078_v55 = vsel %vm1957_vm0, %v4689_v17, 0.0  ;;  %v1618_v48 = vld [vmem:[#allocation2 + $0x178] sm:$0xff]  ;;  %v4803_v56 = vld [vmem:[%s5493_s29 + $0x130] sm:$0xff]  }
 0x178   : > { %v6279_v61 = vadd.f32 %v2078_v55, %v1691_v22  ;;  %v2004_v40 = vsel %vm1957_vm0, %v4541_v5, 0.0  ;;  %v6290_v63 = vadd.f32 %v2005_v38, %v1618_v48  ;;  %v4602_v2 = vunpack.c.h.bf16 %v4803_v56  ;;  %2335 = vst [vmem:[#allocation2 + $0x3c8] sm:$0xff] %v6277_v49  ;;  %v1678_v5 = vld [vmem:[#allocation2 + $0x358] sm:$0xff] }
 0x179   : > { %2305 = vst [vmem:[#allocation2 + $0x2d8] sm:$0xff] %v6269_v30  ;;  %2304 = vst [vmem:[#allocation2 + $0x2d0] sm:$0xff] %v6271_v33  ;;  %v6292_v55 = vadd.f32 %v2004_v40, %v1617_v59  ;;  %v4601_v21 = vunpack.c.l.bf16 %v4803_v56  ;;  %v4662_v19 = vunpack.c.h.bf16 %v4818_v37  ;;  %v4661_v23 = vunpack.c.l.bf16 %v4818_v37  ;;  %v1677_v59 = vld [vmem:[#allocation2 + $0x350] sm:$0xff] }
 0x17a   : > { %2334 = vst [vmem:[#allocation2 + $0x3c0] sm:$0xff] %v6279_v61  ;;  %2261 = vst [vmem:[#allocation2 + $0x178] sm:$0xff] %v6290_v63 }
 0x17b   : > { %2608 = vadd.xlane.f32.xlu1 %v5912_v42  ;;  %2606 = vadd.xlane.f32.xlu0 %v5914_v46  ;;  %2260 = vst [vmem:[#allocation2 + $0x170] sm:$0xff] %v6292_v55  ;;  %v1648_v42 = vld [vmem:[#allocation2 + $0x268] sm:$0xff]  ;;  %v2035_v46 = vsel %vm1957_vm0, %v4602_v2, 0.0  ;;  %v2034_v48 = vsel %vm1957_vm0, %v4601_v21, 0.0  ;;  %v2065_v8 = vsel %vm1957_vm0, %v4662_v19, 0.0  ;;  %v2064_v38 = vsel %vm1957_vm0, %v4661_v23, 0.0 }
 0x17c   : > { %v6302_v22 = vadd.f32 %v2035_v46, %v1648_v42  ;;  %v6304_v17 = vadd.f32 %v2034_v48, %v1647_v45  ;;  %v6315_v40 = vadd.f32 %v2065_v8, %v1678_v5  ;;  %v1634_v21 = vld [vmem:[#allocation2 + $0x1f8] sm:$0xff]  ;;  %v1633_v46 = vld [vmem:[#allocation2 + $0x1f0] sm:$0xff]  ;;  %v1664_v23 = vld [vmem:[#allocation2 + $0x2e8] sm:$0xff] }
 0x17d   : > { %v1663_v8 = vld [vmem:[#allocation2 + $0x2e0] sm:$0xff] }
 0x17e   : > { %2291 = vst [vmem:[#allocation2 + $0x268] sm:$0xff] %v6302_v22  ;;  %2290 = vst [vmem:[#allocation2 + $0x260] sm:$0xff] %v6304_v17 }
 0x17f   : > { %2668 = vadd.xlane.f32.xlu1 %v5926_v53  ;;  %2666 = vadd.xlane.f32.xlu0 %v5928_v54  ;;  %v6317_v53 = vadd.f32 %v2064_v38, %v1677_v59  ;;  %v4796_v54 = vld [vmem:[%s5493_s29 + $0xf8] sm:$0xff]   ;;  %2321 = vst [vmem:[#allocation2 + $0x358] sm:$0xff] %v6315_v40 }
 0x180   : > { %v4574_v56 = vunpack.c.h.bf16 %v4796_v54  ;;  %v4573_v2 = vunpack.c.l.bf16 %v4796_v54 }
 0x181   : > { %2320 = vst [vmem:[#allocation2 + $0x350] sm:$0xff] %v6317_v53 }
 0x182   : > { %v2021_v42 = vsel %vm1957_vm0, %v4574_v56, 0.0  ;;  %v2020_v45 = vsel %vm1957_vm0, %v4573_v2, 0.0  ;;  %v1694_v2 = vld [vmem:[#allocation2 + $0x3d8] sm:$0xff] }
 0x183   : > { %2696 = vadd.xlane.f32.xlu1 %v5937_v13  ;;  %2694 = vadd.xlane.f32.xlu0 %v5939_v24  ;;  %v6328_v48 = vadd.f32 %v2021_v42, %v1634_v21  ;;  %v6330_v13 = vadd.f32 %v2020_v45, %v1633_v46  ;;  %v4811_v24 = vld [vmem:[%s5493_s29 + $0x170] sm:$0xff]  }
 0x184   : > { %v4634_v37 = vunpack.c.h.bf16 %v4811_v24  ;;  %v4633_v19 = vunpack.c.l.bf16 %v4811_v24  ;;  %v1693_v42 = vld [vmem:[#allocation2 + $0x3d0] sm:$0xff] }
 0x185   : > { %2277 = vst [vmem:[#allocation2 + $0x1f8] sm:$0xff] %v6328_v48  ;;  %2276 = vst [vmem:[#allocation2 + $0x1f0] sm:$0xff] %v6330_v13 }
 0x186   : > { %v2051_v5 = vsel %vm1957_vm0, %v4634_v37, 0.0  ;;  %v2050_v59 = vsel %vm1957_vm0, %v4633_v19, 0.0  ;;  %v1650_v19 = vld [vmem:[#allocation2 + $0x278] sm:$0xff] }
 0x187   : > { %2488 = vadd.xlane.f32.xlu1 %v5951_v26  ;;  %2486 = vadd.xlane.f32.xlu0 %v5953_v27  ;;  %v6341_v38 = vadd.f32 %v2051_v5, %v1664_v23  ;;  %v6343_v26 = vadd.f32 %v2050_v59, %v1663_v8  ;;  %v4826_v27 = vld [vmem:[%s5493_s29 + $0x1e8] sm:$0xff]   ;;  %v1649_v5 = vld [vmem:[#allocation2 + $0x270] sm:$0xff] }
 0x188   : > { %v4694_v54 = vunpack.c.h.bf16 %v4826_v27  ;;  %v4693_v56 = vunpack.c.l.bf16 %v4826_v27 }
 0x189   : > { %2307 = vst [vmem:[#allocation2 + $0x2e8] sm:$0xff] %v6341_v38  ;;  %2306 = vst [vmem:[#allocation2 + $0x2e0] sm:$0xff] %v6343_v26 }
 0x18a   : > { %v2081_v21 = vsel %vm1957_vm0, %v4694_v54, 0.0  ;;  %v2080_v46 = vsel %vm1957_vm0, %v4693_v56, 0.0  ;;  %v1680_v56 = vld [vmem:[#allocation2 + $0x368] sm:$0xff] }
 0x18b   : > { %2520 = vadd.xlane.f32.xlu1 %v5960_v39  ;;  %2518 = vadd.xlane.f32.xlu0 %v5962_v31  ;;  %v6354_v45 = vadd.f32 %v2081_v21, %v1694_v2  ;;  %v6356_v39 = vadd.f32 %v2080_v46, %v1693_v42  ;;  %v4804_v31 = vld [vmem:[%s5493_s29 + $0x138] sm:$0xff]   ;;  %v1679_v21 = vld [vmem:[#allocation2 + $0x360] sm:$0xff] }
 0x18c   : > { %v4606_v24 = vunpack.c.h.bf16 %v4804_v31  ;;  %v4605_v37 = vunpack.c.l.bf16 %v4804_v31 }
 0x18d   : > { %2337 = vst [vmem:[#allocation2 + $0x3d8] sm:$0xff] %v6354_v45  ;;  %2336 = vst [vmem:[#allocation2 + $0x3d0] sm:$0xff] %v6356_v39 }
 0x18e   : > { %v2037_v23 = vsel %vm1957_vm0, %v4606_v24, 0.0  ;;  %v2036_v8 = vsel %vm1957_vm0, %v4605_v37, 0.0  ;;  %v1666_v37 = vld [vmem:[#allocation2 + $0x2f8] sm:$0xff] }
 0x18f   : > { %2580 = vadd.xlane.f32.xlu1 %v5972_v0  ;;  %2578 = vadd.xlane.f32.xlu0 %v5974_v1  ;;  %v6367_v59 = vadd.f32 %v2037_v23, %v1650_v19  ;;  %v6369_v0 = vadd.f32 %v2036_v8, %v1649_v5  ;;  %v4819_v1 = vld [vmem:[%s5493_s29 + $0x1b0] sm:$0xff]  }
 0x190   : > { %v4666_v27 = vunpack.c.h.bf16 %v4819_v1  ;;  %v4665_v54 = vunpack.c.l.bf16 %v4819_v1  ;;  %v1665_v23 = vld [vmem:[#allocation2 + $0x2f0] sm:$0xff] }
 0x191   : > { %2293 = vst [vmem:[#allocation2 + $0x278] sm:$0xff] %v6367_v59  ;;  %2292 = vst [vmem:[#allocation2 + $0x270] sm:$0xff] %v6369_v0 }
 0x192   : > { %v2067_v2 = vsel %vm1957_vm0, %v4666_v27, 0.0  ;;  %v2066_v42 = vsel %vm1957_vm0, %v4665_v54, 0.0  ;;  %v1696_v54 = vld [vmem:[#allocation2 + $0x3e8] sm:$0xff] }
 0x193   : > { %2640 = vadd.xlane.f32.xlu1 %v5983_v9  ;;  %2638 = vadd.xlane.f32.xlu0 %v5985_v14  ;;  %v6380_v46 = vadd.f32 %v2067_v2, %v1680_v56  ;;  %v6382_v9 = vadd.f32 %v2066_v42, %v1679_v21  ;;  %v4812_v14 = vld [vmem:[%s5493_s29 + $0x178] sm:$0xff]   ;;  %v1695_v2 = vld [vmem:[#allocation2 + $0x3e0] sm:$0xff] }
 0x194   : > { %v4638_v31 = vunpack.c.h.bf16 %v4812_v14  ;;  %v4637_v24 = vunpack.c.l.bf16 %v4812_v14 }
 0x195   : > { %2323 = vst [vmem:[#allocation2 + $0x368] sm:$0xff] %v6380_v46  ;;  %2322 = vst [vmem:[#allocation2 + $0x360] sm:$0xff] %v6382_v9 }
 0x196   : > { %v2053_v19 = vsel %vm1957_vm0, %v4638_v31, 0.0  ;;  %v2052_v5 = vsel %vm1957_vm0, %v4637_v24, 0.0  ;;  %v1682_v24 = vld [vmem:[#allocation2 + $0x378] sm:$0xff] }
 0x197   : > { %2700 = vadd.xlane.f32.xlu1 %v5998_v35  ;;  %2698 = vadd.xlane.f32.xlu0 %v6000_v36  ;;  %v6393_v8 = vadd.f32 %v2053_v19, %v1666_v37  ;;  %v6395_v35 = vadd.f32 %v2052_v5, %v1665_v23  ;;  %v4827_v36 = vld [vmem:[%s5493_s29 + $0x1f0] sm:$0xff]  }
 0x198   : > { %v4698_v1 = vunpack.c.h.bf16 %v4827_v36  ;;  %v4697_v27 = vunpack.c.l.bf16 %v4827_v36  ;;  %v1681_v19 = vld [vmem:[#allocation2 + $0x370] sm:$0xff] }
 0x199   : > { %2309 = vst [vmem:[#allocation2 + $0x2f8] sm:$0xff] %v6393_v8  ;;  %2308 = vst [vmem:[#allocation2 + $0x2f0] sm:$0xff] %v6395_v35 }
 0x19a   : > { %v2083_v56 = vsel %vm1957_vm0, %v4698_v1, 0.0  ;;  %v2082_v21 = vsel %vm1957_vm0, %v4697_v27, 0.0  ;;  %v7144_v1 = vld [vmem:[#allocation9_spill] sm:$0xff] }
 0x19b   : > { %2552 = vadd.xlane.f32.xlu1 %v6008_v44  ;;  %2550 = vadd.xlane.f32.xlu0 %v6010_v57  ;;  %v6406_v42 = vadd.f32 %v2083_v56, %v1696_v54  ;;  %v6408_v44 = vadd.f32 %v2082_v21, %v1695_v2  ;;  %v4820_v57 = vld [vmem:[%s5493_s29 + $0x1b8] sm:$0xff]   ;;  %v1697_v21 = vld [vmem:[#allocation2 + $0x3f0] sm:$0xff] }
 0x19c   : > { %v4670_v14 = vunpack.c.h.bf16 %v4820_v57  ;;  %v4669_v31 = vunpack.c.l.bf16 %v4820_v57  ;;  %v1698_v56 = vld [vmem:[#allocation2 + $0x3f8] sm:$0xff] }
 0x19d   : > { %2339 = vst [vmem:[#allocation2 + $0x3e8] sm:$0xff] %v6406_v42  ;;  %2338 = vst [vmem:[#allocation2 + $0x3e0] sm:$0xff] %v6408_v44 }
 0x19e   : > { %v2069_v37 = vsel %vm1957_vm0, %v4670_v14, 0.0  ;;  %v2068_v23 = vsel %vm1957_vm0, %v4669_v31, 0.0 }
 0x19f   : > { %2612 = vadd.xlane.f32.xlu1 %v6021_v60  ;;  %2610 = vadd.xlane.f32.xlu0 %v6023_v3  ;;  %v6419_v5 = vadd.f32 %v2069_v37, %v1682_v24  ;;  %v6421_v36 = vadd.f32 %v2068_v23, %v1681_v19  ;;  %v4828_v60 = vld [vmem:[%s5493_s29 + $0x1f8] sm:$0xff]   ;;  %v7143_v3 = vld [vmem:[#allocation8_spill] sm:$0xff]  ;;  %v7146_v24 = vld [vmem:[#allocation10_spill] sm:$0xff] }
 0x1a0   : > { %v4702_v27 = vunpack.c.h.bf16 %v4828_v60  ;;  %v4701_v54 = vunpack.c.l.bf16 %v4828_v60  ;;  %v7147_v37 = vld [vmem:[#allocation11_spill] sm:$0xff] }
 0x1a1   : > { %2325 = vst [vmem:[#allocation2 + $0x378] sm:$0xff] %v6419_v5  ;;  %2324 = vst [vmem:[#allocation2 + $0x370] sm:$0xff] %v6421_v36 }
 0x1a2   : > { %v2085_v2 = vsel %vm1957_vm0, %v4702_v27, 0.0  ;;  %v2084_v57 = vsel %vm1957_vm0, %v4701_v54, 0.0  ;;  %v3151_v27 = vadd.s32 4294967272, %v5695_v7  ;;  %vm3240_vm0 = vcmask 1048512  }
 0x1a3   : > { %2672 = vadd.xlane.f32.xlu1 %v7143_v3  ;;  %2670 = vadd.xlane.f32.xlu0 %v7144_v1  ;;  %v6432_v14 = vadd.f32 %v2085_v2, %v1698_v56  ;;  %v6434_v31 = vadd.f32 %v2084_v57, %v1697_v21  ;;  %v3144_v1 = vadd.s32 4294967280, %v5695_v7 }
 0x1a5   : > { %7145 = vst [vmem:[#allocation8_spill] sm:$0xff] %v6434_v31  ;;  %2341 = vst [vmem:[#allocation2 + $0x3f8] sm:$0xff] %v6432_v14 }
 0x1a6   : > { %2340 = vst [vmem:[#allocation2 + $0x3f0] sm:$0xff] %v6434_v31  ;;  %v7156_v31 = vld [vmem:[#allocation19_spill] sm:$0xff] }
 0x1a7   : > { %2492 = vadd.xlane.f32.xlu1 %v6047_v51  ;;  %2490 = vadd.xlane.f32.xlu0 %v6049_v52 }
 0x1ab   : > { %2524 = vadd.xlane.f32.xlu1 %v6055_v43  ;;  %2522 = vadd.xlane.f32.xlu0 %v6057_v20  ;;  %v7148_v20 = vlaneseq }
 0x1ad   : > { %v6451_v19 = vshrl.u32 %v7148_v20, 7 }
 0x1af   : > { %2584 = vadd.xlane.f32.xlu1 %v6065_v16  ;;  %2582 = vadd.xlane.f32.xlu0 %v6067_v29  ;;  %v3137_v16 = vadd.s32 4294967288, %v5695_v7  ;;  %v6460_v54 = vsub.s32 %v5695_v7, %v6451_v19 }
 0x1b1   : > { %v6463_v56 = vsub.s32 %v3137_v16, %v6451_v19 }
 0x1b3   : > { %2644 = vadd.xlane.f32.xlu1 %v6076_v32  ;;  %2642 = vadd.xlane.f32.xlu0 %v6078_v41 }
 0x1b7   : > { %2704 = vadd.xlane.f32.xlu1 %v6090_v47  ;;  %2702 = vadd.xlane.f32.xlu0 %v6092_v11  ;;  %v7149_v11 = vld [vmem:[#allocation12_spill] sm:$0xff] }
 0x1b8   : > { %v2503_v51 = vpop.xlane.xlu1 %2502  ;;  %v2471_v52 = vpop.xlane.xlu0 %2470 }
 0x1b9   : > { %v2742_v43 = vmul.f32 0.0044444446, %v2503_v51  ;;  %v2726_v23 = vmul.f32 0.0044444446, %v2471_v52 }
 0x1bb   : > { %2556 = vadd.xlane.f32.xlu1 %v7146_v24  ;;  %2554 = vadd.xlane.f32.xlu0 %v7147_v37 }
 0x1bc   : > { %v2505_v29 = vpop.xlane.xlu1 %2504  ;;  %v2473_v32 = vpop.xlane.xlu0 %2472 }
 0x1bd   : > { %v2743_v41 = vmul.f32 0.0044444446, %v2505_v29  ;;  %v2727_v60 = vmul.f32 0.0044444446, %v2473_v32 }
 0x1bf   : > { %v2862_v47 = vpack.c.bf16 %v2743_v41, %v2742_v43  ;;  %v2854_v3 = vpack.c.bf16 %v2727_v60, %v2726_v23  ;;  %2616 = vadd.xlane.f32.xlu1 %v7149_v11  ;;  %2614 = vadd.xlane.f32.xlu0 %v6118_v34  ;;  %v6466_v34 = vsub.s32 %v3144_v1, %v6451_v19 }
 0x1c0   : > { %v2477_v2 = vpop.xlane.xlu1 %2476  ;;  %v2475_v21 = vpop.xlane.xlu0 %2474  ;;  %v6469_v43 = vsub.s32 %v3151_v27, %v6451_v19 }
 0x1c1   : > { %v3005_v57 = vunpack.c.l.b16 %v2854_v3  ;;  %v3006_v51 = vunpack.c.h.b16 %v2854_v3  ;;  %v2729_v52 = vmul.f32 0.0044444446, %v2477_v2  ;;  %v2728_v24 = vmul.f32 0.0044444446, %v2475_v21 }
 0x1c2   : > { %v3021_v37 = vunpack.c.l.b16 %v2862_v47  ;;  %v3022_v20 = vunpack.c.h.b16 %v2862_v47  ;;  %v7150_v47 = vld [vmem:[#allocation13_spill] sm:$0xff] }
 0x1c3   : > { %2676 = vadd.xlane.f32.xlu1 %v6125_v50  ;;  %v3136_v29 = vrot.slane %v3005_v57, %v6460_v54  ;;  %v3141_v16 = vrot.slane %v3006_v51, %v6463_v56  ;;  %v2855_v32 = vpack.c.bf16 %v2729_v52, %v2728_v24  ;;  %2674 = vadd.xlane.f32.xlu0 %v6133_v18  ;;  %v7151_v51 = vld [vmem:[#allocation14_spill] sm:$0xff] }
 0x1c4   : > { %v2509_v23 = vpop.xlane.xlu1 %2508  ;;  %v2507_v41 = vpop.xlane.xlu0 %2506  ;;  %v3245_v27 = vrot.slane %v3021_v37, %v6460_v54  ;;  %v3249_v2 = vrot.slane %v3022_v20, %v6463_v56 }
 0x1c5   : > { %v2745_v60 = vmul.f32 0.0044444446, %v2509_v23  ;;  %v2744_v3 = vmul.f32 0.0044444446, %v2507_v41  ;;  %v3007_v11 = vunpack.c.l.b16 %v2855_v32  ;;  %v3008_v1 = vunpack.c.h.b16 %v2855_v32 }
 0x1c6   : > { %v3143_v21 = vsel %vm3142_vm1, %v3141_v16, %v3136_v29 }
 0x1c7   : > { %v2863_v50 = vpack.c.bf16 %v2745_v60, %v2744_v3  ;;  %2496 = vadd.xlane.f32.xlu1 %v7150_v47  ;;  %v3148_v18 = vrot.slane %v3007_v11, %v6466_v34  ;;  %v3155_v57 = vrot.slane %v3008_v1, %v6469_v43  ;;  %2494 = vadd.xlane.f32.xlu0 %v7151_v51  ;;  %v7152_v11 = vld [vmem:[#allocation15_spill] sm:$0xff]  ;;  %v7153_v47 = vld [vmem:[#allocation16_spill] sm:$0xff] }
 0x1c8   : > { %v2537_v52 = vpop.xlane.xlu1 %2536  ;;  %v2535_v24 = vpop.xlane.xlu0 %2534  ;;  %v3250_v1 = vsel %vm3142_vm1, %v3249_v2, %v3245_v27 }
 0x1c9   : > { %v3023_v32 = vunpack.c.l.b16 %v2863_v50  ;;  %v3024_v23 = vunpack.c.h.b16 %v2863_v50  ;;  %v2759_v37 = vmul.f32 0.0044444446, %v2537_v52  ;;  %v2758_v41 = vmul.f32 0.0044444446, %v2535_v24 }
 0x1ca   : > { %v3150_v60 = vsel %vm3149_vm2, %v3148_v18, %v3143_v21 }
 0x1cb   : > { %v6484_v3 = vsel %vm3156_vm3, %v3155_v57, %v3150_v60  ;;  %v3254_v20 = vrot.slane %v3023_v32, %v6466_v34  ;;  %v3259_v29 = vrot.slane %v3024_v23, %v6469_v43  ;;  %v2870_v16 = vpack.c.bf16 %v2759_v37, %v2758_v41  ;;  %2528 = vadd.xlane.f32.xlu1 %v7152_v11  ;;  %v7154_v60 = vld [vmem:[#allocation17_spill] sm:$0xff]  ;;  %v7155_v37 = vld [vmem:[#allocation18_spill] sm:$0xff] }
 0x1cc   : > { %2526 = vadd.xlane.f32.xlu0 %v7153_v47  ;;  %v2541_v51 = vpop.xlane.xlu1 %2540  ;;  %v2539_v50 = vpop.xlane.xlu0 %2538 }
 0x1cd   : > { %v3255_v52 = vsel %vm3149_vm2, %v3254_v20, %v3250_v1  ;;  %v3037_v24 = vunpack.c.l.b16 %v2870_v16  ;;  %v3038_v21 = vunpack.c.h.b16 %v2870_v16  ;;  %v2761_v18 = vmul.f32 0.0044444446, %v2541_v51 }
 0x1ce   : > { %v6493_v57 = vsel %vm3156_vm3, %v3259_v29, %v3255_v52  ;;  %v2760_v32 = vmul.f32 0.0044444446, %v2539_v50  ;;  %v3158_v29 = vadd.s32 4294967264, %v5695_v7  ;;  %v3165_v50 = vadd.s32 4294967256, %v5695_v7 }
 0x1cf   : > { %2588 = vadd.xlane.f32.xlu1 %v7154_v60  ;;  %v3324_v2 = vrot.slane %v3037_v24, %v6460_v54  ;;  %v3328_v11 = vrot.slane %v3038_v21, %v6463_v56 }
 0x1d0   : > { %v2871_v23 = vpack.c.bf16 %v2761_v18, %v2760_v32  ;;  %2586 = vadd.xlane.f32.xlu0 %v7155_v37  ;;  %v2569_v41 = vpop.xlane.xlu1 %2568  ;;  %v2567_v27 = vpop.xlane.xlu0 %2566  ;;  %v7157_v32 = vld [vmem:[#allocation20_spill] sm:$0xff] }
 0x1d1   : > { %v2775_v47 = vmul.f32 0.0044444446, %v2569_v41  ;;  %v2774_v20 = vmul.f32 0.0044444446, %v2567_v27  ;;  %v3329_v21 = vsel %vm3142_vm1, %v3328_v11, %v3324_v2  ;;  %v6511_v27 = vsub.s32 %v3158_v29, %v6451_v19 }
 0x1d2   : > { %v3039_v1 = vunpack.c.l.b16 %v2871_v23  ;;  %v3040_v16 = vunpack.c.h.b16 %v2871_v23 }
 0x1d3   : > { %v2878_v51 = vpack.c.bf16 %v2775_v47, %v2774_v20  ;;  %2648 = vadd.xlane.f32.xlu1 %v7156_v31  ;;  %v6514_v47 = vsub.s32 %v3165_v50, %v6451_v19 }
 0x1d4   : > { %v3333_v52 = vrot.slane %v3039_v1, %v6466_v34  ;;  %v3338_v18 = vrot.slane %v3040_v16, %v6469_v43  ;;  %2646 = vadd.xlane.f32.xlu0 %v7157_v32  ;;  %v2481_v24 = vpop.xlane.xlu1 %2480  ;;  %v2479_v60 = vpop.xlane.xlu0 %2478 }
 0x1d5   : > { %v2731_v37 = vmul.f32 0.0044444446, %v2481_v24  ;;  %v2730_v41 = vmul.f32 0.0044444446, %v2479_v60  ;;  %v3053_v50 = vunpack.c.l.b16 %v2878_v51  ;;  %v3054_v24 = vunpack.c.h.b16 %v2878_v51 }
 0x1d6   : > { %v3334_v23 = vsel %vm3149_vm2, %v3333_v52, %v3329_v21 }
 0x1d7   : > { %v6508_v31 = vsel %vm3156_vm3, %v3338_v18, %v3334_v23  ;;  %v2856_v20 = vpack.c.bf16 %v2731_v37, %v2730_v41  ;;  %2708 = vadd.xlane.f32.xlu1 %v6187_v6  ;;  %v3407_v51 = vrot.slane %v3054_v24, %v6463_v56 }
 0x1d8   : > { %2706 = vadd.xlane.f32.xlu0 %v6189_v12  ;;  %v2513_v1 = vpop.xlane.xlu1 %2512  ;;  %v2511_v2 = vpop.xlane.xlu0 %2510 }
 0x1d9   : > { %v3009_v11 = vunpack.c.l.b16 %v2856_v20  ;;  %v3010_v16 = vunpack.c.h.b16 %v2856_v20  ;;  %v2747_v32 = vmul.f32 0.0044444446, %v2513_v1  ;;  %v2746_v52 = vmul.f32 0.0044444446, %v2511_v2 }
 0x1db   : > { %v3162_v18 = vrot.slane %v3009_v11, %v6511_v27  ;;  %v3169_v29 = vrot.slane %v3010_v16, %v6514_v47  ;;  %2560 = vadd.xlane.f32.xlu1 %v6197_v28  ;;  %v2864_v60 = vpack.c.bf16 %v2747_v32, %v2746_v52  ;;  %v3403_v28 = vrot.slane %v3053_v50, %v6460_v54  ;;  %v7158_v16 = vld [vmem:[#allocation21_spill] sm:$0xff] }
 0x1dc   : > { %2558 = vadd.xlane.f32.xlu0 %v6199_v25  ;;  %v2573_v6 = vpop.xlane.xlu1 %2572  ;;  %v2571_v12 = vpop.xlane.xlu0 %2570 }
 0x1dd   : > { %v3164_v21 = vsel %vm3163_vm4, %v3162_v18, %v6484_v3  ;;  %v2777_v37 = vmul.f32 0.0044444446, %v2573_v6  ;;  %v2776_v41 = vmul.f32 0.0044444446, %v2571_v12  ;;  %v3025_v20 = vunpack.c.l.b16 %v2864_v60 }
 0x1de   : > { %v6525_v23 = vsel %vm3170_vm5, %v3169_v29, %v3164_v21  ;;  %v3026_v1 = vunpack.c.h.b16 %v2864_v60  ;;  %v3408_v21 = vsel %vm3142_vm1, %v3407_v51, %v3403_v28 }
 0x1df   : > { %v2879_v2 = vpack.c.bf16 %v2777_v37, %v2776_v41  ;;  %2620 = vadd.xlane.f32.xlu1 %v6210_v4  ;;  %v3264_v25 = vrot.slane %v3025_v20, %v6511_v27 }
 0x1e0   : > { %v3269_v11 = vrot.slane %v3026_v1, %v6514_v47  ;;  %2618 = vadd.xlane.f32.xlu0 %v7158_v16  ;;  %v2601_v3 = vpop.xlane.xlu1 %2600  ;;  %v2599_v32 = vpop.xlane.xlu0 %2598 }
 0x1e1   : > { %v3055_v52 = vunpack.c.l.b16 %v2879_v2  ;;  %v3056_v18 = vunpack.c.h.b16 %v2879_v2  ;;  %v2791_v29 = vmul.f32 0.0044444446, %v2601_v3  ;;  %v2790_v6 = vmul.f32 0.0044444446, %v2599_v32 }
 0x1e2   : > { %v3265_v60 = vsel %vm3163_vm4, %v3264_v25, %v6493_v57 }
 0x1e3   : > { %v6536_v4 = vsel %vm3170_vm5, %v3269_v11, %v3265_v60  ;;  %v3412_v50 = vrot.slane %v3055_v52, %v6466_v34  ;;  %v3417_v24 = vrot.slane %v3056_v18, %v6469_v43  ;;  %v2886_v12 = vpack.c.bf16 %v2791_v29, %v2790_v6  ;;  %2680 = vadd.xlane.f32.xlu1 %v6218_v58  ;;  %v7159_v18 = vld [vmem:[#allocation22_spill] sm:$0xff] }
 0x1e4   : > { %2678 = vadd.xlane.f32.xlu0 %v6225_v10  ;;  %v2545_v37 = vpop.xlane.xlu1 %2544  ;;  %v2543_v41 = vpop.xlane.xlu0 %2542 }
 0x1e5   : > { %v3413_v20 = vsel %vm3149_vm2, %v3412_v50, %v3408_v21  ;;  %v2763_v1 = vmul.f32 0.0044444446, %v2545_v37  ;;  %v2762_v2 = vmul.f32 0.0044444446, %v2543_v41  ;;  %v3069_v25 = vunpack.c.l.b16 %v2886_v12  ;;  %v7160_v50 = vld [vmem:[#allocation23_spill] sm:$0xff] }
 0x1e6   : > { %v6545_v57 = vsel %vm3156_vm3, %v3417_v24, %v3413_v20  ;;  %v3070_v11 = vunpack.c.h.b16 %v2886_v12 }
 0x1e7   : > { %2500 = vadd.xlane.f32.xlu1 %v6235_v15  ;;  %v2872_v16 = vpack.c.bf16 %v2763_v1, %v2762_v2  ;;  %v3482_v29 = vrot.slane %v3069_v25, %v6460_v54 }
 0x1e8   : > { %2498 = vadd.xlane.f32.xlu0 %v6237_v62  ;;  %v2605_v58 = vpop.xlane.xlu1 %2604  ;;  %v2603_v28 = vpop.xlane.xlu0 %2602  ;;  %v3486_v6 = vrot.slane %v3070_v11, %v6463_v56 }
 0x1e9   : > { %v2793_v51 = vmul.f32 0.0044444446, %v2605_v58  ;;  %v2792_v10 = vmul.f32 0.0044444446, %v2603_v28  ;;  %v3041_v3 = vunpack.c.l.b16 %v2872_v16  ;;  %v3042_v32 = vunpack.c.h.b16 %v2872_v16  ;;  %v7161_v16 = vld [vmem:[#allocation24_spill] sm:$0xff]  ;;  %v7162_v28 = vld [vmem:[#allocation25_spill] sm:$0xff] }
 0x1ea   : > { %v3487_v58 = vsel %vm3142_vm1, %v3486_v6, %v3482_v29 }
 0x1eb   : > { %v2887_v52 = vpack.c.bf16 %v2793_v51, %v2792_v10  ;;  %2532 = vadd.xlane.f32.xlu1 %v7159_v18  ;;  %v3343_v15 = vrot.slane %v3041_v3, %v6511_v27  ;;  %v3348_v60 = vrot.slane %v3042_v32, %v6514_v47  ;;  %v3172_v10 = vadd.s32 4294967248, %v5695_v7 }
 0x1ec   : > { %2530 = vadd.xlane.f32.xlu0 %v7160_v50  ;;  %v2633_v62 = vpop.xlane.xlu1 %2632  ;;  %v2631_v24 = vpop.xlane.xlu0 %2630  ;;  %v3179_v3 = vadd.s32 4294967240, %v5695_v7 }
 0x1ed   : > { %v3071_v12 = vunpack.c.l.b16 %v2887_v52  ;;  %v3072_v21 = vunpack.c.h.b16 %v2887_v52  ;;  %v2807_v37 = vmul.f32 0.0044444446, %v2633_v62  ;;  %v2806_v41 = vmul.f32 0.0044444446, %v2631_v24 }
 0x1ee   : > { %v3344_v20 = vsel %vm3163_vm4, %v3343_v15, %v6508_v31  ;;  %v6576_v29 = vsub.s32 %v3179_v3, %v6451_v19 }
 0x1ef   : > { %v6558_v1 = vsel %vm3170_vm5, %v3348_v60, %v3344_v20  ;;  %v3491_v2 = vrot.slane %v3071_v12, %v6466_v34  ;;  %v3496_v25 = vrot.slane %v3072_v21, %v6469_v43  ;;  %v2894_v11 = vpack.c.bf16 %v2807_v37, %v2806_v41  ;;  %2592 = vadd.xlane.f32.xlu1 %v7161_v16 }
 0x1f0   : > { %2590 = vadd.xlane.f32.xlu0 %v7162_v28  ;;  %v2485_v51 = vpop.xlane.xlu1 %2484  ;;  %v2483_v31 = vpop.xlane.xlu0 %2482  ;;  %v6573_v60 = vsub.s32 %v3172_v10, %v6451_v19 }
 0x1f1   : > { %v3492_v32 = vsel %vm3149_vm2, %v3491_v2, %v3487_v58  ;;  %v2733_v52 = vmul.f32 0.0044444446, %v2485_v51  ;;  %v2732_v15 = vmul.f32 0.0044444446, %v2483_v31 }
 0x1f2   : > { %v6569_v18 = vsel %vm3156_vm3, %v3496_v25, %v3492_v32  ;;  %v3086_v32 = vunpack.c.h.b16 %v2894_v11 }
 0x1f3   : > { %2652 = vadd.xlane.f32.xlu1 %v6269_v30  ;;  %v2857_v6 = vpack.c.bf16 %v2733_v52, %v2732_v15 }
 0x1f4   : > { %2650 = vadd.xlane.f32.xlu0 %v6271_v33  ;;  %v2517_v50 = vpop.xlane.xlu1 %2516  ;;  %v2515_v62 = vpop.xlane.xlu0 %2514 }
 0x1f5   : > { %v2749_v24 = vmul.f32 0.0044444446, %v2517_v50  ;;  %v2748_v12 = vmul.f32 0.0044444446, %v2515_v62  ;;  %v3011_v21 = vunpack.c.l.b16 %v2857_v6  ;;  %v3012_v37 = vunpack.c.h.b16 %v2857_v6 }
 0x1f7   : > { %v2865_v41 = vpack.c.bf16 %v2749_v24, %v2748_v12  ;;  %2712 = vadd.xlane.f32.xlu1 %v6277_v49  ;;  %v3176_v30 = vrot.slane %v3011_v21, %v6573_v60  ;;  %v3183_v20 = vrot.slane %v3012_v37, %v6576_v29 }
 0x1f8   : > { %2710 = vadd.xlane.f32.xlu0 %v6279_v61  ;;  %v2577_v2 = vpop.xlane.xlu1 %2576  ;;  %v2575_v25 = vpop.xlane.xlu0 %2574  ;;  %v3085_v61 = vunpack.c.l.b16 %v2894_v11 }
 0x1f9   : > { %v3027_v33 = vunpack.c.l.b16 %v2865_v41  ;;  %v3028_v16 = vunpack.c.h.b16 %v2865_v41  ;;  %v2779_v58 = vmul.f32 0.0044444446, %v2577_v2  ;;  %v2778_v28 = vmul.f32 0.0044444446, %v2575_v25 }
 0x1fa   : > { %v3178_v51 = vsel %vm3177_vm6, %v3176_v30, %v6525_v23  ;;  %v3565_v41 = vrot.slane %v3086_v32, %v6463_v56 }
 0x1fb   : > { %v6586_v10 = vsel %vm3184_vm7, %v3183_v20, %v3178_v51  ;;  %v3274_v49 = vrot.slane %v3027_v33, %v6573_v60  ;;  %v3279_v3 = vrot.slane %v3028_v16, %v6576_v29  ;;  %v2880_v31 = vpack.c.bf16 %v2779_v58, %v2778_v28  ;;  %2564 = vadd.xlane.f32.xlu1 %v6290_v63 }
 0x1fc   : > { %2562 = vadd.xlane.f32.xlu0 %v6292_v55  ;;  %v2637_v52 = vpop.xlane.xlu1 %2636  ;;  %v2635_v15 = vpop.xlane.xlu0 %2634  ;;  %v3561_v55 = vrot.slane %v3085_v61, %v6460_v54 }
 0x1fd   : > { %v3275_v6 = vsel %vm3177_vm6, %v3274_v49, %v6536_v4  ;;  %v3057_v23 = vunpack.c.l.b16 %v2880_v31  ;;  %v3058_v50 = vunpack.c.h.b16 %v2880_v31  ;;  %v2809_v62 = vmul.f32 0.0044444446, %v2637_v52 }
 0x1fe   : > { %v6595_v24 = vsel %vm3184_vm7, %v3279_v3, %v3275_v6  ;;  %v2808_v12 = vmul.f32 0.0044444446, %v2635_v15 }
 0x1ff   : > { %v3422_v21 = vrot.slane %v3057_v23, %v6511_v27  ;;  %v3427_v63 = vrot.slane %v3058_v50, %v6514_v47  ;;  %2624 = vadd.xlane.f32.xlu1 %v6302_v22 }
 0x200   : > { %v2895_v11 = vpack.c.bf16 %v2809_v62, %v2808_v12  ;;  %2622 = vadd.xlane.f32.xlu0 %v6304_v17  ;;  %v2665_v37 = vpop.xlane.xlu1 %2664  ;;  %v2663_v4 = vpop.xlane.xlu0 %2662 }
 0x201   : > { %v3423_v30 = vsel %vm3163_vm4, %v3422_v21, %v6545_v57  ;;  %v2823_v20 = vmul.f32 0.0044444446, %v2665_v37  ;;  %v2822_v2 = vmul.f32 0.0044444446, %v2663_v4  ;;  %v3566_v57 = vsel %vm3142_vm1, %v3565_v41, %v3561_v55 }
 0x202   : > { %v6606_v25 = vsel %vm3170_vm5, %v3427_v63, %v3423_v30  ;;  %v3087_v33 = vunpack.c.l.b16 %v2895_v11  ;;  %v3088_v16 = vunpack.c.h.b16 %v2895_v11 }
 0x203   : > { %v2902_v22 = vpack.c.bf16 %v2823_v20, %v2822_v2  ;;  %2684 = vadd.xlane.f32.xlu1 %v6315_v40 }
 0x204   : > { %v3570_v58 = vrot.slane %v3087_v33, %v6466_v34  ;;  %v3575_v17 = vrot.slane %v3088_v16, %v6469_v43  ;;  %2682 = vadd.xlane.f32.xlu0 %v6317_v53  ;;  %v2549_v28 = vpop.xlane.xlu1 %2548  ;;  %v2547_v51 = vpop.xlane.xlu0 %2546 }
 0x205   : > { %v2765_v49 = vmul.f32 0.0044444446, %v2549_v28  ;;  %v2764_v3 = vmul.f32 0.0044444446, %v2547_v51  ;;  %v3101_v12 = vunpack.c.l.b16 %v2902_v22  ;;  %v3102_v21 = vunpack.c.h.b16 %v2902_v22 }
 0x206   : > { %v3571_v31 = vsel %vm3149_vm2, %v3570_v58, %v3566_v57 }
 0x207   : > { %v6615_v61 = vsel %vm3156_vm3, %v3575_v17, %v3571_v31  ;;  %v2873_v32 = vpack.c.bf16 %v2765_v49, %v2764_v3  ;;  %2596 = vadd.xlane.f32.xlu1 %v6328_v48  ;;  %v3644_v2 = vrot.slane %v3102_v21, %v6463_v56 }
 0x208   : > { %2594 = vadd.xlane.f32.xlu0 %v6330_v13  ;;  %v2609_v40 = vpop.xlane.xlu1 %2608  ;;  %v2607_v52 = vpop.xlane.xlu0 %2606 }
 0x209   : > { %v3043_v15 = vunpack.c.l.b16 %v2873_v32  ;;  %v3044_v53 = vunpack.c.h.b16 %v2873_v32  ;;  %v2795_v6 = vmul.f32 0.0044444446, %v2609_v40  ;;  %v2794_v23 = vmul.f32 0.0044444446, %v2607_v52 }
 0x20a   : > { %v3186_v32 = vadd.s32 4294967232, %v5695_v7 }
 0x20b   : > { %v3353_v50 = vrot.slane %v3043_v15, %v6573_v60  ;;  %v3358_v62 = vrot.slane %v3044_v53, %v6576_v29  ;;  %2656 = vadd.xlane.f32.xlu1 %v6341_v38  ;;  %v2888_v63 = vpack.c.bf16 %v2795_v6, %v2794_v23  ;;  %v3640_v38 = vrot.slane %v3101_v12, %v6460_v54 }
 0x20c   : > { %2654 = vadd.xlane.f32.xlu0 %v6343_v26  ;;  %v2669_v48 = vpop.xlane.xlu1 %2668  ;;  %v2667_v55 = vpop.xlane.xlu0 %2666 }
 0x20d   : > { %v3354_v13 = vsel %vm3177_vm6, %v3353_v50, %v6558_v1  ;;  %v2825_v11 = vmul.f32 0.0044444446, %v2669_v48  ;;  %v2824_v37 = vmul.f32 0.0044444446, %v2667_v55  ;;  %v3073_v41 = vunpack.c.l.b16 %v2888_v63 }
 0x20e   : > { %v6626_v4 = vsel %vm3184_vm7, %v3358_v62, %v3354_v13  ;;  %v3074_v30 = vunpack.c.h.b16 %v2888_v63 }
 0x20f   : > { %v2903_v20 = vpack.c.bf16 %v2825_v11, %v2824_v37  ;;  %2716 = vadd.xlane.f32.xlu1 %v6354_v45  ;;  %v3501_v26 = vrot.slane %v3073_v41, %v6511_v27 }
 0x210   : > { %v3506_v33 = vrot.slane %v3074_v30, %v6514_v47  ;;  %2714 = vadd.xlane.f32.xlu0 %v6356_v39  ;;  %v2697_v1 = vpop.xlane.xlu1 %2696  ;;  %v2695_v16 = vpop.xlane.xlu0 %2694  ;;  %v3645_v39 = vsel %vm3142_vm1, %v3644_v2, %v3640_v38 }
 0x211   : > { %v3103_v22 = vunpack.c.l.b16 %v2903_v20  ;;  %v3104_v58 = vunpack.c.h.b16 %v2903_v20  ;;  %v2839_v17 = vmul.f32 0.0044444446, %v2697_v1  ;;  %v2838_v28 = vmul.f32 0.0044444446, %v2695_v16 }
 0x212   : > { %v3502_v51 = vsel %vm3163_vm4, %v3501_v26, %v6569_v18  ;;  %v3193_v18 = vadd.s32 4294967224, %v5695_v7 }
 0x213   : > { %v6637_v45 = vsel %vm3170_vm5, %v3506_v33, %v3502_v51  ;;  %v3649_v57 = vrot.slane %v3103_v22, %v6466_v34  ;;  %v3654_v49 = vrot.slane %v3104_v58, %v6469_v43  ;;  %v6641_v3 = vpack.c.bf16 %v2839_v17, %v2838_v28  ;;  %2628 = vadd.xlane.f32.xlu1 %v6367_v59  ;;  %v4949_v51 = vld [vmem:[%s7095_s1] sm:$0xff]  }
 0x214   : > { %2626 = vadd.xlane.f32.xlu0 %v6369_v0  ;;  %v2489_v31 = vpop.xlane.xlu1 %2488  ;;  %v2487_v40 = vpop.xlane.xlu0 %2486  ;;  %v6654_v59 = vsub.s32 %v3186_v32, %v6451_v19  ;;  %v6657_v0 = vsub.s32 %v3193_v18, %v6451_v19 }
 0x215   : > { %v3650_v52 = vsel %vm3149_vm2, %v3649_v57, %v3645_v39  ;;  %v2735_v15 = vmul.f32 0.0044444446, %v2489_v31  ;;  %v2734_v6 = vmul.f32 0.0044444446, %v2487_v40 }
 0x216   : > { %v6650_v53 = vsel %vm3156_vm3, %v3654_v49, %v3650_v52  ;;  %v3118_v49 = vunpack.c.h.b16 %v6641_v3 }
 0x217   : > { %2688 = vadd.xlane.f32.xlu1 %v6380_v46  ;;  %v2858_v23 = vpack.c.bf16 %v2735_v15, %v2734_v6 }
 0x218   : > { %2686 = vadd.xlane.f32.xlu0 %v6382_v9  ;;  %v2521_v50 = vpop.xlane.xlu1 %2520  ;;  %v2519_v62 = vpop.xlane.xlu0 %2518 }
 0x219   : > { %v2751_v12 = vmul.f32 0.0044444446, %v2521_v50  ;;  %v2750_v21 = vmul.f32 0.0044444446, %v2519_v62  ;;  %v3013_v63 = vunpack.c.l.b16 %v2858_v23  ;;  %v3014_v48 = vunpack.c.h.b16 %v2858_v23 }
 0x21b   : > { %v2866_v55 = vpack.c.bf16 %v2751_v12, %v2750_v21  ;;  %2660 = vadd.xlane.f32.xlu1 %v6393_v8  ;;  %v3190_v46 = vrot.slane %v3013_v63, %v6654_v59  ;;  %v3197_v13 = vrot.slane %v3014_v48, %v6657_v0  ;;  %v7163_v12 = vld [vmem:[#allocation8_spill] sm:$0xff] }
 0x21c   : > { %2658 = vadd.xlane.f32.xlu0 %v6395_v35  ;;  %v2581_v11 = vpop.xlane.xlu1 %2580  ;;  %v2579_v37 = vpop.xlane.xlu0 %2578 }
 0x21d   : > { %v3029_v9 = vunpack.c.l.b16 %v2866_v55  ;;  %v3030_v41 = vunpack.c.h.b16 %v2866_v55  ;;  %v2781_v30 = vmul.f32 0.0044444446, %v2581_v11  ;;  %v2780_v20 = vmul.f32 0.0044444446, %v2579_v37 }
 0x21e   : > { %v3192_v38 = vsel %vm3191_vm8, %v3190_v46, %v6586_v10 }
 0x21f   : > { %v6667_v2 = vsel %vm3198_vm9, %v3197_v13, %v3192_v38  ;;  %v3284_v8 = vrot.slane %v3029_v9, %v6654_v59  ;;  %v3289_v26 = vrot.slane %v3030_v41, %v6657_v0  ;;  %v2881_v33 = vpack.c.bf16 %v2781_v30, %v2780_v20  ;;  %2720 = vadd.xlane.f32.xlu1 %v6406_v42 }
 0x220   : > { %2718 = vadd.xlane.f32.xlu0 %v6408_v44  ;;  %v2641_v35 = vpop.xlane.xlu1 %2640  ;;  %v2639_v1 = vpop.xlane.xlu0 %2638  ;;  %v3117_v42 = vunpack.c.l.b16 %v6641_v3  ;;  %v4950_v3 = vld [vmem:[%s7095_s1 + $0x8] sm:$0xff]  }
 0x221   : > { %v3285_v16 = vsel %vm3191_vm8, %v3284_v8, %v6595_v24  ;;  %v3059_v22 = vunpack.c.l.b16 %v2881_v33  ;;  %v3060_v58 = vunpack.c.h.b16 %v2881_v33  ;;  %v2811_v10 = vmul.f32 0.0044444446, %v2641_v35 }
 0x222   : > { %v6676_v17 = vsel %vm3198_vm9, %v3289_v26, %v3285_v16  ;;  %v2810_v28 = vmul.f32 0.0044444446, %v2639_v1  ;;  %v5094_v24 = vmov 0.0  }
 0x223   : > { %v3432_v44 = vrot.slane %v3059_v22, %v6573_v60  ;;  %v3437_v57 = vrot.slane %v3060_v58, %v6576_v29  ;;  %2692 = vadd.xlane.f32.xlu1 %v6419_v5  ;;  %4838 = vmatprep.subr.bf16.mxu0 %v5094_v24 }
 0x224   : > { %v2896_v39 = vpack.c.bf16 %v2811_v10, %v2810_v28  ;;  %2690 = vadd.xlane.f32.xlu0 %v6421_v36  ;;  %v2701_v31 = vpop.xlane.xlu1 %2700  ;;  %v2699_v32 = vpop.xlane.xlu0 %2698  ;;  %4839 = vmatpush3.bf16.msra.mxu0 %v4949_v51  ;;  %v3719_v36 = vrot.slane %v3117_v42, %v6460_v54  ;;  %v4951_v54 = vld [vmem:[%s7095_s1 + $0x10] sm:$0xff]   ;;  %v3200_v42 = vadd.s32 4294967216, %v5695_v7 }
 0x225   : > { %v3433_v18 = vsel %vm3177_vm6, %v3432_v44, %v6606_v25  ;;  %v2841_v40 = vmul.f32 0.0044444446, %v2701_v31  ;;  %v2840_v52 = vmul.f32 0.0044444446, %v2699_v32  ;;  %4840 = vmatprep.subr.bf16.mxu0 %v5094_v24  ;;  %v3723_v25 = vrot.slane %v3118_v49, %v6463_v56  ;;  %v4953_v31 = vld [vmem:[%s7095_s1 + $0x20] sm:$0xff]   ;;  %4854 = vmatprep.mubr.msk.bf16.mxu0 %vm5095_vm12, %v5094_v24 }
 0x226   : > { %v6692_v5 = vsel %vm3184_vm7, %v3437_v57, %v3433_v18  ;;  %v3089_v15 = vunpack.c.l.b16 %v2896_v39  ;;  %v3090_v6 = vunpack.c.h.b16 %v2896_v39  ;;  %v3207_v39 = vadd.s32 4294967208, %v5695_v7 }
 0x227   : > { %v2911_v23 = vpack.c.bf16 %v2841_v40, %v2840_v52  ;;  %2724 = vadd.xlane.f32.xlu1 %v6432_v14  ;;  %v3724_v41 = vsel %vm3142_vm1, %v3723_v25, %v3719_v36  ;;  %v6742_v25 = vsub.s32 %v3200_v42, %v6451_v19  ;;  %vm3795_vm1 = vcmask 1041409  }
 0x228   : > { %v3580_v50 = vrot.slane %v3089_v15, %v6511_v27  ;;  %v3585_v62 = vrot.slane %v3090_v6, %v6514_v47  ;;  %2722 = vadd.xlane.f32.xlu0 %v7163_v12  ;;  %v2553_v21 = vpop.xlane.xlu1 %2552  ;;  %v2551_v63 = vpop.xlane.xlu0 %2550  ;;  %4841 = vmatpush3.bf16.msra.mxu0 %v4950_v3 }
 0x229   : > { %v3119_v48 = vunpack.c.l.b16 %v2911_v23  ;;  %v3120_v55 = vunpack.c.h.b16 %v2911_v23  ;;  %v2767_v46 = vmul.f32 0.0044444446, %v2553_v21  ;;  %v2766_v13 = vmul.f32 0.0044444446, %v2551_v63  ;;  %4842 = vmatprep.subr.bf16.mxu0 %v5094_v24 }
 0x22a   : > { %v3581_v14 = vsel %vm3163_vm4, %v3580_v50, %v6615_v61  ;;  %v6745_v50 = vsub.s32 %v3207_v39, %v6451_v19 }
 0x22b   : > { %v6710_v56 = vsel %vm3170_vm5, %v3585_v62, %v3581_v14  ;;  %v3728_v11 = vrot.slane %v3119_v48, %v6466_v34  ;;  %v3733_v37 = vrot.slane %v3120_v55, %v6469_v43  ;;  %v2874_v9 = vpack.c.bf16 %v2767_v46, %v2766_v13  ;;  %v4952_v34 = vld [vmem:[%s7095_s1 + $0x18] sm:$0xff]   ;;  %v4954_v62 = vld [vmem:[%s7095_s1 + $0x28] sm:$0xff]  }
 0x22c   : > { %v2613_v30 = vpop.xlane.xlu1 %2612  ;;  %v2611_v20 = vpop.xlane.xlu0 %2610  ;;  %4843 = vmatpush3.bf16.msra.mxu0 %v4951_v54 }
 0x22d   : > { %v3729_v38 = vsel %vm3149_vm2, %v3728_v11, %v3724_v41  ;;  %v3045_v61 = vunpack.c.l.b16 %v2874_v9  ;;  %v3046_v8 = vunpack.c.h.b16 %v2874_v9  ;;  %v2797_v26 = vmul.f32 0.0044444446, %v2613_v30  ;;  %4844 = vmatprep.subr.bf16.mxu0 %v5094_v24  ;;  %v4955_v9 = vld [vmem:[%s7095_s1 + $0x30] sm:$0xff]  }
 0x22e   : > { %v6718_v33 = vsel %vm3156_vm3, %v3733_v37, %v3729_v38  ;;  %v2796_v35 = vmul.f32 0.0044444446, %v2611_v20  ;;  %vm3797_vm2 = vcmask 1042434   ;;  %vm3799_vm3 = vcmask 1043459  }
 0x22f   : > { %v3363_v43 = vrot.slane %v3045_v61, %v6654_v59  ;;  %v3368_v1 = vrot.slane %v3046_v8, %v6657_v0  ;;  %v4956_v61 = vld [vmem:[%s7095_s1 + $0x38] sm:$0xff]  }
 0x230   : > { %v2889_v16 = vpack.c.bf16 %v2797_v26, %v2796_v35  ;;  %v2673_v22 = vpop.xlane.xlu1 %2672  ;;  %v2671_v58 = vpop.xlane.xlu0 %2670  ;;  %4845 = vmatpush3.bf16.msra.mxu0 %v4952_v34 }
 0x231   : > { %v3364_v10 = vsel %vm3191_vm8, %v3363_v43, %v6626_v4  ;;  %v2827_v28 = vmul.f32 0.0044444446, %v2673_v22  ;;  %v2826_v51 = vmul.f32 0.0044444446, %v2671_v58  ;;  %4846 = vmatprep.subr.bf16.mxu0 %v5094_v24 }
 0x232   : > { %v6730_v44 = vsel %vm3198_vm9, %v3368_v1, %v3364_v10  ;;  %v3075_v57 = vunpack.c.l.b16 %v2889_v16  ;;  %v3076_v49 = vunpack.c.h.b16 %v2889_v16 }
 0x233   : > { %v2904_v32 = vpack.c.bf16 %v2827_v28, %v2826_v51 }
 0x234   : > { %v3511_v4 = vrot.slane %v3075_v57, %v6573_v60  ;;  %v3516_v18 = vrot.slane %v3076_v49, %v6576_v29  ;;  %v2493_v40 = vpop.xlane.xlu1 %2492  ;;  %v2491_v52 = vpop.xlane.xlu0 %2490  ;;  %4847 = vmatpush3.bf16.msra.mxu0 %v4953_v31 }
 0x235   : > { %v3105_v15 = vunpack.c.l.b16 %v2904_v32  ;;  %v3106_v6 = vunpack.c.h.b16 %v2904_v32  ;;  %v2737_v3 = vmul.f32 0.0044444446, %v2493_v40  ;;  %v2736_v36 = vmul.f32 0.0044444446, %v2491_v52  ;;  %4848 = vmatprep.subr.bf16.mxu0 %v5094_v24 }
 0x236   : > { %v3512_v23 = vsel %vm3177_vm6, %v3511_v4, %v6637_v45  ;;  %v4957_v4 = vld [vmem:[%s7097_s3 + $0x4] ss:$8 sps:$4 sm:$0xff]  }
 0x237   : > { %v6751_v12 = vsel %vm3184_vm7, %v3516_v18, %v3512_v23  ;;  %v3659_v21 = vrot.slane %v3105_v15, %v6511_v27  ;;  %v3664_v63 = vrot.slane %v3106_v6, %v6514_v47  ;;  %v2859_v48 = vpack.c.bf16 %v2737_v3, %v2736_v36  ;;  %v4959_v18 = vld [vmem:[%s7097_s3] ss:$8 sps:$4 sm:$0xff]   ;;  %4009 = vmatprep.subr.bf16.mxu1 %v4957_v4 }
 0x238   : > { %v2525_v55 = vpop.xlane.xlu1 %2524  ;;  %v2523_v45 = vpop.xlane.xlu0 %2522  ;;  %4849 = vmatpush3.bf16.msra.mxu0 %v4954_v62  ;;  %4010 = vmatpush1.bf16.msra.mxu1 %v4959_v18 }
 0x239   : > { %v3660_v46 = vsel %vm3163_vm4, %v3659_v21, %v6650_v53  ;;  %v3015_v13 = vunpack.c.l.b16 %v2859_v48  ;;  %v3016_v14 = vunpack.c.h.b16 %v2859_v48  ;;  %v2753_v54 = vmul.f32 0.0044444446, %v2525_v55  ;;  %4850 = vmatprep.subr.bf16.mxu0 %v5094_v24  ;;  %v4962_v21 = vld [vmem:[%s7097_s3 + $0x10] ss:$8 sps:$4 sm:$0xff]  }
 0x23a   : > { %v6759_v11 = vsel %vm3170_vm5, %v3664_v63, %v3660_v46  ;;  %v2752_v37 = vmul.f32 0.0044444446, %v2523_v45 }
 0x23b   : > { %v3204_v41 = vrot.slane %v3015_v13, %v6742_v25  ;;  %v3211_v30 = vrot.slane %v3016_v14, %v6745_v50 }
 0x23c   : > { %v2867_v53 = vpack.c.bf16 %v2753_v54, %v2752_v37  ;;  %v2585_v20 = vpop.xlane.xlu1 %2584  ;;  %v2583_v38 = vpop.xlane.xlu0 %2582  ;;  %4851 = vmatpush3.bf16.msra.mxu0 %v4955_v9 }
 0x23d   : > { %v3206_v8 = vsel %vm3205_vm10, %v3204_v41, %v6667_v2  ;;  %v2783_v26 = vmul.f32 0.0044444446, %v2585_v20  ;;  %v2782_v35 = vmul.f32 0.0044444446, %v2583_v38  ;;  %4852 = vmatprep.subr.bf16.mxu0 %v5094_v24  ;;  %v4966_v20 = vld [vmem:[%s7097_s3 + $0x34] ss:$8 sps:$4 sm:$0xff]  }
 0x23e   : > { %v6774_v34 = vsel %vm3212_vm11, %v3211_v30, %v3206_v8  ;;  %v3031_v43 = vunpack.c.l.b16 %v2867_v53  ;;  %v3032_v1 = vunpack.c.h.b16 %v2867_v53  ;;  %v4965_v30 = vld [vmem:[%s7097_s3 + $0x20] ss:$8 sps:$4 sm:$0xff]  }
 0x23f   : > { %v2882_v16 = vpack.c.bf16 %v2783_v26, %v2782_v35 }
 0x240   : > { %v3294_v22 = vrot.slane %v3031_v43, %v6742_v25  ;;  %v3299_v58 = vrot.slane %v3032_v1, %v6745_v50  ;;  %v2645_v10 = vpop.xlane.xlu1 %2644  ;;  %v2643_v28 = vpop.xlane.xlu0 %2642  ;;  %4853 = vmatpush3.bf16.msra.mxu0 %v4956_v61 }
 0x241   : > { %v3061_v2 = vunpack.c.l.b16 %v2882_v16  ;;  %v3062_v51 = vunpack.c.h.b16 %v2882_v16  ;;  %v2813_v42 = vmul.f32 0.0044444446, %v2645_v10  ;;  %v2812_v57 = vmul.f32 0.0044444446, %v2643_v28  ;;  %v4969_v28 = vld [vmem:[%s7097_s3 + $0x44] ss:$8 sps:$4 sm:$0xff]  }
 0x242   : > { %v3295_v24 = vsel %vm3205_vm10, %v3294_v22, %v6676_v17  ;;  %v4960_v17 = vld [vmem:[%s7097_s3 + $0x14] ss:$8 sps:$4 sm:$0xff]   ;;  %v4968_v22 = vld [vmem:[%s7097_s3 + $0x30] ss:$8 sps:$4 sm:$0xff]  }
 0x243   : > { %v6781_v49 = vsel %vm3212_vm11, %v3299_v58, %v3295_v24  ;;  %v3442_v39 = vrot.slane %v3061_v2, %v6654_v59  ;;  %v3447_v31 = vrot.slane %v3062_v51, %v6657_v0  ;;  %v2897_v32 = vpack.c.bf16 %v2813_v42, %v2812_v57  ;;  %4011 = vmatprep.subr.bf16.mxu1 %v4960_v17 }
 0x244   : > { %v2705_v40 = vpop.xlane.xlu1 %2704  ;;  %v2703_v52 = vpop.xlane.xlu0 %2702  ;;  %4012 = vmatpush1.bf16.msra.mxu1 %v4962_v21  ;;  %v3214_v17 = vadd.s32 4294967200, %v5695_v7 }
 0x245   : > { %v3443_v15 = vsel %vm3191_vm8, %v3442_v39, %v6692_v5  ;;  %v3091_v6 = vunpack.c.l.b16 %v2897_v32  ;;  %v3092_v3 = vunpack.c.h.b16 %v2897_v32  ;;  %v2843_v36 = vmul.f32 0.0044444446, %v2705_v40  ;;  %v4963_v5 = vld [vmem:[%s7097_s3 + $0x24] ss:$8 sps:$4 sm:$0xff]   ;;  %v4971_v32 = vld [vmem:[%s7097_s3 + $0x40] ss:$8 sps:$4 sm:$0xff]  }
 0x246   : > { %v6797_v23 = vsel %vm3198_vm9, %v3447_v31, %v3443_v15  ;;  %v2842_v62 = vmul.f32 0.0044444446, %v2703_v52  ;;  %4013 = vmatprep.subr.bf16.mxu1 %v4963_v5  ;;  %v3221_v15 = vadd.s32 4294967192, %v5695_v7  ;;  %v4974_v5 = vld [vmem:[%s7097_s3 + $0x50] ss:$8 sps:$4 sm:$0xff]  }
 0x247   : > { %v3590_v63 = vrot.slane %v3091_v6, %v6573_v60  ;;  %v3595_v48 = vrot.slane %v3092_v3, %v6576_v29 }
 0x248   : > { %v2912_v55 = vpack.c.bf16 %v2843_v36, %v2842_v62  ;;  %v2557_v45 = vpop.xlane.xlu1 %2556  ;;  %v2555_v46 = vpop.xlane.xlu0 %2554  ;;  %4014 = vmatpush1.bf16.msra.mxu1 %v4965_v30 }
 0x249   : > { %v3591_v13 = vsel %vm3177_vm6, %v3590_v63, %v6710_v56  ;;  %v2769_v14 = vmul.f32 0.0044444446, %v2557_v45  ;;  %v2768_v54 = vmul.f32 0.0044444446, %v2555_v46  ;;  %4015 = vmatprep.subr.bf16.mxu1 %v4966_v20 }
 0x24a   : > { %v6810_v37 = vsel %vm3184_vm7, %v3595_v48, %v3591_v13  ;;  %v3121_v9 = vunpack.c.l.b16 %v2912_v55  ;;  %v3122_v41 = vunpack.c.h.b16 %v2912_v55  ;;  %v6857_v55 = vsub.s32 %v3214_v17, %v6451_v19 }
 0x24b   : > { %v2875_v53 = vpack.c.bf16 %v2769_v14, %v2768_v54  ;;  %v6865_v13 = vsub.s32 %v3221_v15, %v6451_v19 }
 0x24c   : > { %v3738_v56 = vrot.slane %v3121_v9, %v6511_v27  ;;  %v3743_v38 = vrot.slane %v3122_v41, %v6514_v47  ;;  %v2617_v61 = vpop.xlane.xlu1 %2616  ;;  %v2615_v8 = vpop.xlane.xlu0 %2614  ;;  %4016 = vmatpush1.bf16.msra.mxu1 %v4968_v22 }
 0x24d   : > { %v3047_v26 = vunpack.c.l.b16 %v2875_v53  ;;  %v3048_v35 = vunpack.c.h.b16 %v2875_v53  ;;  %v2799_v43 = vmul.f32 0.0044444446, %v2617_v61  ;;  %v2798_v1 = vmul.f32 0.0044444446, %v2615_v8  ;;  %4017 = vmatprep.subr.bf16.mxu1 %v4969_v28 }
 0x24e   : > { %v3739_v16 = vsel %vm3163_vm4, %v3738_v56, %v6718_v33  ;;  %vm3801_vm4 = vcmask 1044484  }
 0x24f   : > { %v6826_v58 = vsel %vm3170_vm5, %v3743_v38, %v3739_v16  ;;  %v3373_v27 = vrot.slane %v3047_v26, %v6742_v25  ;;  %v3378_v47 = vrot.slane %v3048_v35, %v6745_v50  ;;  %v2890_v10 = vpack.c.bf16 %v2799_v43, %v2798_v1 }
 0x250   : > { %v2677_v2 = vpop.xlane.xlu1 %2676  ;;  %v2675_v24 = vpop.xlane.xlu0 %2674  ;;  %4018 = vmatpush1.bf16.msra.mxu1 %v4971_v32  ;;  %vm3803_vm5 = vcmask 1045509  }
 0x251   : > { %v3374_v33 = vsel %vm3205_vm10, %v3373_v27, %v6730_v44  ;;  %v3077_v51 = vunpack.c.l.b16 %v2890_v10  ;;  %v3078_v42 = vunpack.c.h.b16 %v2890_v10  ;;  %v2829_v57 = vmul.f32 0.0044444446, %v2677_v2  ;;  %v4972_v44 = vld [vmem:[%s7097_s3 + $0x54] ss:$8 sps:$4 sm:$0xff]  }
 0x252   : > { %v6836_v39 = vsel %vm3212_vm11, %v3378_v47, %v3374_v33  ;;  %v2828_v31 = vmul.f32 0.0044444446, %v2675_v24  ;;  %4019 = vmatprep.subr.bf16.mxu1 %v4972_v44 }
 0x253   : > { %v3521_v4 = vrot.slane %v3077_v51, %v6654_v59  ;;  %v3526_v18 = vrot.slane %v3078_v42, %v6657_v0 }
 0x254   : > { %v2905_v40 = vpack.c.bf16 %v2829_v57, %v2828_v31  ;;  %v2497_v52 = vpop.xlane.xlu1 %2496  ;;  %v2495_v36 = vpop.xlane.xlu0 %2494  ;;  %4020 = vmatpush1.bf16.msra.mxu1 %v4974_v5 }
 0x255   : > { %v3522_v6 = vsel %vm3191_vm8, %v3521_v4, %v6751_v12  ;;  %v2739_v3 = vmul.f32 0.0044444446, %v2497_v52  ;;  %v2738_v48 = vmul.f32 0.0044444446, %v2495_v36  ;;  %v4975_v12 = vld [vmem:[%s7097_s3 + $0x64] ss:$8 sps:$4 sm:$0xff]  }
 0x256   : > { %v6851_v62 = vsel %vm3198_vm9, %v3526_v18, %v3522_v6  ;;  %v3107_v21 = vunpack.c.l.b16 %v2905_v40  ;;  %v3108_v63 = vunpack.c.h.b16 %v2905_v40  ;;  %4021 = vmatprep.subr.bf16.mxu1 %v4975_v12 }
 0x257   : > { %v2860_v14 = vpack.c.bf16 %v2739_v3, %v2738_v48 }
 0x258   : > { %v3669_v45 = vrot.slane %v3107_v21, %v6573_v60  ;;  %v3674_v46 = vrot.slane %v3108_v63, %v6576_v29  ;;  %v2529_v54 = vpop.xlane.xlu1 %2528 }
 0x259   : > { %v2755_v9 = vmul.f32 0.0044444446, %v2529_v54  ;;  %v2527_v41 = vpop.xlane.xlu0 %2526  ;;  %v3017_v53 = vunpack.c.l.b16 %v2860_v14  ;;  %v3018_v20 = vunpack.c.h.b16 %v2860_v14 }
 0x25a   : > { %v3670_v30 = vsel %vm3177_vm6, %v3669_v45, %v6759_v11  ;;  %v2754_v56 = vmul.f32 0.0044444446, %v2527_v41 }
 0x25b   : > { %v6870_v38 = vsel %vm3184_vm7, %v3674_v46, %v3670_v30  ;;  %v3218_v61 = vrot.slane %v3017_v53, %v6857_v55  ;;  %v3225_v8 = vrot.slane %v3018_v20, %v6865_v13 }
 0x25c   : > { %v2868_v26 = vpack.c.bf16 %v2755_v9, %v2754_v56  ;;  %v2589_v35 = vpop.xlane.xlu1 %2588 }
 0x25d   : > { %v2785_v43 = vmul.f32 0.0044444446, %v2589_v35  ;;  %v2587_v1 = vpop.xlane.xlu0 %2586  ;;  %v3220_v11 = vsel %vm3219_vm13, %v3218_v61, %v6774_v34 }
 0x25e   : > { %v3033_v16 = vunpack.c.l.b16 %v2868_v26  ;;  %v3034_v22 = vunpack.c.h.b16 %v2868_v26  ;;  %v2784_v27 = vmul.f32 0.0044444446, %v2587_v1  ;;  %v6877_v47 = vsel %vm3226_vm14, %v3225_v8, %v3220_v11 }
 0x260   : > { %v3304_v10 = vrot.slane %v3033_v16, %v6857_v55  ;;  %v3309_v28 = vrot.slane %v3034_v22, %v6865_v13  ;;  %v2883_v2 = vpack.c.bf16 %v2785_v43, %v2784_v27  ;;  %v2649_v33 = vpop.xlane.xlu1 %2648 }
 0x261   : > { %v2815_v51 = vmul.f32 0.0044444446, %v2649_v33  ;;  %v2647_v42 = vpop.xlane.xlu0 %2646 }
 0x262   : > { %v3305_v57 = vsel %vm3219_vm13, %v3304_v10, %v6781_v49  ;;  %v3063_v24 = vunpack.c.l.b16 %v2883_v2  ;;  %v3064_v31 = vunpack.c.h.b16 %v2883_v2  ;;  %v2814_v34 = vmul.f32 0.0044444446, %v2647_v42 }
 0x263   : > { %v6884_v32 = vsel %vm3226_vm14, %v3309_v28, %v3305_v57 }
 0x264   : > { %v3452_v4 = vrot.slane %v3063_v24, %v6742_v25  ;;  %v3457_v18 = vrot.slane %v3064_v31, %v6745_v50  ;;  %v2898_v17 = vpack.c.bf16 %v2815_v51, %v2814_v34  ;;  %v2709_v44 = vpop.xlane.xlu1 %2708  ;;  %v3228_v51 = vadd.s32 4294967184, %v5695_v7 }
 0x265   : > { %v2845_v40 = vmul.f32 0.0044444446, %v2709_v44  ;;  %v2707_v52 = vpop.xlane.xlu0 %2706 }
 0x266   : > { %v3453_v15 = vsel %vm3205_vm10, %v3452_v4, %v6797_v23  ;;  %v3093_v6 = vunpack.c.l.b16 %v2898_v17  ;;  %v3094_v3 = vunpack.c.h.b16 %v2898_v17  ;;  %v2844_v49 = vmul.f32 0.0044444446, %v2707_v52 }
 0x267   : > { %v6891_v36 = vsel %vm3212_vm11, %v3457_v18, %v3453_v15  ;;  %v6926_v4 = vsub.s32 %v3228_v51, %v6451_v19 }
 0x268   : > { %v3600_v21 = vrot.slane %v3093_v6, %v6654_v59  ;;  %v3605_v63 = vrot.slane %v3094_v3, %v6657_v0  ;;  %v2913_v48 = vpack.c.bf16 %v2845_v40, %v2844_v49  ;;  %v2561_v5 = vpop.xlane.xlu1 %2560 }
 0x269   : > { %v2771_v12 = vmul.f32 0.0044444446, %v2561_v5  ;;  %v2559_v45 = vpop.xlane.xlu0 %2558 }
 0x26a   : > { %v3601_v46 = vsel %vm3191_vm8, %v3600_v21, %v6810_v37  ;;  %v3123_v14 = vunpack.c.l.b16 %v2913_v48  ;;  %v3124_v54 = vunpack.c.h.b16 %v2913_v48  ;;  %v2770_v23 = vmul.f32 0.0044444446, %v2559_v45 }
 0x26b   : > { %v6898_v9 = vsel %vm3198_vm9, %v3605_v63, %v3601_v46 }
 0x26c   : > { %v3748_v41 = vrot.slane %v3123_v14, %v6573_v60  ;;  %v3753_v30 = vrot.slane %v3124_v54, %v6576_v29  ;;  %v2876_v53 = vpack.c.bf16 %v2771_v12, %v2770_v23  ;;  %v2621_v20 = vpop.xlane.xlu1 %2620 }
 0x26d   : > { %v2801_v56 = vmul.f32 0.0044444446, %v2621_v20  ;;  %v2619_v61 = vpop.xlane.xlu0 %2618 }
 0x26e   : > { %v3749_v8 = vsel %vm3177_vm6, %v3748_v41, %v6826_v58  ;;  %v3049_v26 = vunpack.c.l.b16 %v2876_v53  ;;  %v3050_v35 = vunpack.c.h.b16 %v2876_v53  ;;  %v2800_v37 = vmul.f32 0.0044444446, %v2619_v61 }
 0x26f   : > { %v6905_v43 = vsel %vm3184_vm7, %v3753_v30, %v3749_v8  ;;  %vm3805_vm6 = vcmask 1046534   ;;  %vm3807_vm7 = vcmask 1047559  }
 0x270   : > { %v3383_v1 = vrot.slane %v3049_v26, %v6857_v55  ;;  %v3388_v11 = vrot.slane %v3050_v35, %v6865_v13  ;;  %v2891_v60 = vpack.c.bf16 %v2801_v56, %v2800_v37  ;;  %v6909_v16 = vpop.xlane.xlu1 %2680 }
 0x271   : > { %v6911_v29 = vpop.xlane.xlu0 %2678 }
 0x272   : > { %v3384_v22 = vsel %vm3219_vm13, %v3383_v1, %v6836_v39  ;;  %v3079_v27 = vunpack.c.l.b16 %v2891_v60  ;;  %v3080_v58 = vunpack.c.h.b16 %v2891_v60  ;;  %v3235_v39 = vadd.s32 4294967176, %v5695_v7 }
 0x273   : > { %v3389_v10 = vsel %vm3226_vm14, %v3388_v11, %v3384_v22 }
 0x274   : > { %v3531_v28 = vrot.slane %v3079_v27, %v6742_v25  ;;  %v3536_v2 = vrot.slane %v3080_v58, %v6745_v50  ;;  %v2501_v33 = vpop.xlane.xlu1 %2500  ;;  %v6929_v6 = vsub.s32 %v3235_v39, %v6451_v19 }
 0x275   : > { %v2741_v42 = vmul.f32 0.0044444446, %v2501_v33  ;;  %v2499_v57 = vpop.xlane.xlu0 %2498 }
 0x276   : > { %v3532_v24 = vsel %vm3205_vm10, %v3531_v28, %v6851_v62  ;;  %v2740_v31 = vmul.f32 0.0044444446, %v2499_v57 }
 0x277   : > { %v6922_v34 = vsel %vm3212_vm11, %v3536_v2, %v3532_v24  ;;  %v2831_v24 = vmul.f32 0.0044444446, %v6909_v16 }
 0x278   : > { %v2861_v18 = vpack.c.bf16 %v2741_v42, %v2740_v31  ;;  %v2533_v17 = vpop.xlane.xlu1 %2532  ;;  %v2830_v31 = vmul.f32 0.0044444446, %v6911_v29 }
 0x279   : > { %v2757_v44 = vmul.f32 0.0044444446, %v2533_v17  ;;  %v2531_v40 = vpop.xlane.xlu0 %2530 }
 0x27a   : > { %v3019_v52 = vunpack.c.l.b16 %v2861_v18  ;;  %v2756_v15 = vmul.f32 0.0044444446, %v2531_v40  ;;  %v3020_v3 = vunpack.c.h.b16 %v2861_v18 }
 0x27c   : > { %v3232_v62 = vrot.slane %v3019_v52, %v6926_v4  ;;  %v2869_v49 = vpack.c.bf16 %v2757_v44, %v2756_v15  ;;  %v2593_v21 = vpop.xlane.xlu1 %2592  ;;  %v3239_v5 = vrot.slane %v3020_v3, %v6929_v6 }
 0x27d   : > { %v2591_v63 = vpop.xlane.xlu0 %2590  ;;  %v2787_v26 = vmul.f32 0.0044444446, %v2593_v21 }
 0x27e   : > { %v3035_v7 = vunpack.c.l.b16 %v2869_v49  ;;  %v3036_v48 = vunpack.c.h.b16 %v2869_v49  ;;  %v3234_v12 = vsel %vm3233_vm15, %v3232_v62, %v6877_v47  ;;  %v2786_v35 = vmul.f32 0.0044444446, %v2591_v63 }
 0x27f   : > { %v3241_v41 = vsel %vm3240_vm0, %v3239_v5, %v3234_v12 }
 0x280   : > { %v3314_v45 = vrot.slane %v3035_v7, %v6926_v4  ;;  %v3319_v46 = vrot.slane %v3036_v48, %v6929_v6  ;;  %v2653_v14 = vpop.xlane.xlu1 %2652  ;;  %v2884_v22 = vpack.c.bf16 %v2787_v26, %v2786_v35  ;;  %v2906_v7 = vpack.c.bf16 %v2831_v24, %v2830_v31 }
 0x281   : > { %v2651_v54 = vpop.xlane.xlu0 %2650  ;;  %v2817_v62 = vmul.f32 0.0044444446, %v2653_v14 }
 0x282   : > { %v3315_v23 = vsel %vm3233_vm15, %v3314_v45, %v6884_v32  ;;  %v3065_v51 = vunpack.c.l.b16 %v2884_v22  ;;  %v3066_v17 = vunpack.c.h.b16 %v2884_v22  ;;  %v2816_v49 = vmul.f32 0.0044444446, %v2651_v54 }
 0x283   : > { %v3320_v30 = vsel %vm3240_vm0, %v3319_v46, %v3315_v23  ;;  %v3109_v54 = vunpack.c.l.b16 %v2906_v7  ;;  %v3110_v22 = vunpack.c.h.b16 %v2906_v7 }
 0x284   : > { %v3796_v53 = vsel %vm3795_vm1, %v3320_v30, %v3241_v41  ;;  %v2713_v20 = vpop.xlane.xlu1 %2712  ;;  %v3462_v3 = vrot.slane %v3065_v51, %v6857_v55  ;;  %v3467_v48 = vrot.slane %v3066_v17, %v6865_v13  ;;  %v2899_v12 = vpack.c.bf16 %v2817_v62, %v2816_v49 }
 0x285   : > { %v2711_v56 = vpop.xlane.xlu0 %2710 }
 0x286   : > { %v3463_v29 = vsel %vm3219_vm13, %v3462_v3, %v6891_v36  ;;  %v3096_v31 = vunpack.c.h.b16 %v2899_v12 }
 0x287   : > { %v3468_v30 = vsel %vm3226_vm14, %v3467_v48, %v3463_v29 }
 0x288   : > { %v2565_v61 = vpop.xlane.xlu1 %2564 }
 0x289   : > { %v2773_v8 = vmul.f32 0.0044444446, %v2565_v61  ;;  %v2563_v47 = vpop.xlane.xlu0 %2562 }
 0x28a   : > { %v2772_v37 = vmul.f32 0.0044444446, %v2563_v47  ;;  %v3095_v47 = vunpack.c.l.b16 %v2899_v12 }
 0x28c   : > { %v2877_v1 = vpack.c.bf16 %v2773_v8, %v2772_v37  ;;  %v2625_v11 = vpop.xlane.xlu1 %2624  ;;  %v2846_v37 = vmul.f32 0.0044444446, %v2711_v56  ;;  %v3610_v56 = vrot.slane %v3095_v47, %v6742_v25 }
 0x28d   : > { %v2623_v60 = vpop.xlane.xlu0 %2622  ;;  %v2803_v44 = vmul.f32 0.0044444446, %v2625_v11 }
 0x28e   : > { %v3051_v27 = vunpack.c.l.b16 %v2877_v1  ;;  %v3052_v58 = vunpack.c.h.b16 %v2877_v1  ;;  %v2802_v40 = vmul.f32 0.0044444446, %v2623_v60  ;;  %v3611_v48 = vsel %vm3205_vm10, %v3610_v56, %v6898_v9 }
 0x290   : > { %v3393_v32 = vrot.slane %v3051_v27, %v6926_v4  ;;  %v3398_v28 = vrot.slane %v3052_v58, %v6929_v6  ;;  %v2685_v2 = vpop.xlane.xlu1 %2684  ;;  %v2892_v16 = vpack.c.bf16 %v2803_v44, %v2802_v40 }
 0x291   : > { %v2683_v33 = vpop.xlane.xlu0 %2682  ;;  %v2833_v1 = vmul.f32 0.0044444446, %v2685_v2 }
 0x292   : > { %v3394_v42 = vsel %vm3233_vm15, %v3393_v32, %v3389_v10  ;;  %v3081_v61 = vunpack.c.l.b16 %v2892_v16  ;;  %v2832_v11 = vmul.f32 0.0044444446, %v2683_v33  ;;  %v3679_v32 = vrot.slane %v3109_v54, %v6654_v59 }
 0x293   : > { %v3399_v57 = vsel %vm3240_vm0, %v3398_v28, %v3394_v42  ;;  %v3082_v28 = vunpack.c.h.b16 %v2892_v16  ;;  %v3615_v16 = vrot.slane %v3096_v31, %v6745_v50 }
 0x294   : > { %v3798_v39 = vsel %vm3797_vm2, %v3399_v57, %v3796_v53  ;;  %v2597_v18 = vpop.xlane.xlu1 %2596  ;;  %v2847_v53 = vmul.f32 0.0044444446, %v2713_v20  ;;  %v3541_v20 = vrot.slane %v3081_v61, %v6857_v55  ;;  %v2907_v33 = vpack.c.bf16 %v2833_v1, %v2832_v11 }
 0x295   : > { %v2789_v52 = vmul.f32 0.0044444446, %v2597_v18  ;;  %v2595_v15 = vpop.xlane.xlu0 %2594  ;;  %v3684_v18 = vrot.slane %v3110_v22, %v6657_v0  ;;  %v3546_v3 = vrot.slane %v3082_v28, %v6865_v13 }
 0x296   : > { %v2788_v21 = vmul.f32 0.0044444446, %v2595_v15  ;;  %v2914_v2 = vpack.c.bf16 %v2847_v53, %v2846_v37  ;;  %v3542_v15 = vsel %vm3219_vm13, %v3541_v20, %v6922_v34  ;;  %v3111_v29 = vunpack.c.l.b16 %v2907_v33 }
 0x297   : > { %v3616_v37 = vsel %vm3212_vm11, %v3615_v16, %v3611_v48 }
 0x298   : > { %v2885_v63 = vpack.c.bf16 %v2789_v52, %v2788_v21  ;;  %v2657_v10 = vpop.xlane.xlu1 %2656  ;;  %v3680_v52 = vsel %vm3191_vm8, %v3679_v32, %v6870_v38  ;;  %v3126_v12 = vunpack.c.h.b16 %v2914_v2 }
 0x299   : > { %v2655_v5 = vpop.xlane.xlu0 %2654  ;;  %v2819_v35 = vmul.f32 0.0044444446, %v2657_v10  ;;  %v3685_v9 = vsel %vm3198_vm9, %v3684_v18, %v3680_v52 }
 0x29a   : > { %v3067_v45 = vunpack.c.l.b16 %v2885_v63  ;;  %v3068_v46 = vunpack.c.h.b16 %v2885_v63  ;;  %v2818_v36 = vmul.f32 0.0044444446, %v2655_v5  ;;  %v3125_v5 = vunpack.c.l.b16 %v2914_v2 }
 0x29c   : > { %v3472_v23 = vrot.slane %v3067_v45, %v6926_v4  ;;  %v3477_v41 = vrot.slane %v3068_v46, %v6929_v6  ;;  %v2717_v14 = vpop.xlane.xlu1 %2716  ;;  %v2900_v57 = vpack.c.bf16 %v2819_v35, %v2818_v36  ;;  %v3758_v47 = vrot.slane %v3125_v5, %v6654_v59 }
 0x29d   : > { %v2715_v8 = vpop.xlane.xlu0 %2714  ;;  %v2849_v17 = vmul.f32 0.0044444446, %v2717_v14  ;;  %v3689_v35 = vrot.slane %v3111_v29, %v6742_v25 }
 0x29e   : > { %v3473_v26 = vsel %vm3233_vm15, %v3472_v23, %v3468_v30  ;;  %v2848_v44 = vmul.f32 0.0044444446, %v2715_v8  ;;  %v3097_v21 = vunpack.c.l.b16 %v2900_v57  ;;  %v3547_v23 = vsel %vm3226_vm14, %v3546_v3, %v3542_v15 }
 0x29f   : > { %v3478_v60 = vsel %vm3240_vm0, %v3477_v41, %v3473_v26  ;;  %v3098_v41 = vunpack.c.h.b16 %v2900_v57  ;;  %v3112_v26 = vunpack.c.h.b16 %v2907_v33  ;;  %v3759_v31 = vsel %vm3191_vm8, %v3758_v47, %v6905_v43 }
 0x2a0   : > { %v2629_v27 = vpop.xlane.xlu1 %2628  ;;  %v3800_v58 = vsel %vm3799_vm3, %v3478_v60, %v3798_v39  ;;  %v2915_v38 = vpack.c.bf16 %v2849_v17, %v2848_v44  ;;  %v3620_v53 = vrot.slane %v3097_v21, %v6857_v55  ;;  %v3690_v56 = vsel %vm3205_vm10, %v3689_v35, %v3685_v9 }
 0x2a1   : > { %v2805_v51 = vmul.f32 0.0044444446, %v2629_v27  ;;  %v2627_v42 = vpop.xlane.xlu0 %2626  ;;  %v3763_v27 = vrot.slane %v3126_v12, %v6657_v0  ;;  %v3625_v32 = vrot.slane %v3098_v41, %v6865_v13  ;;  %v3694_v2 = vrot.slane %v3112_v26, %v6745_v50 }
 0x2a2   : > { %v2804_v24 = vmul.f32 0.0044444446, %v2627_v42  ;;  %v3127_v1 = vunpack.c.l.b16 %v2915_v38  ;;  %v3621_v59 = vsel %vm3219_vm13, %v3620_v53, %v3616_v37 }
 0x2a3   : > { %v3764_v21 = vsel %vm3198_vm9, %v3763_v27, %v3759_v31 }
 0x2a4   : > { %v2893_v39 = vpack.c.bf16 %v2805_v51, %v2804_v24  ;;  %v2689_v40 = vpop.xlane.xlu1 %2688  ;;  %v3768_v0 = vrot.slane %v3127_v1, %v6742_v25  ;;  %v3695_v25 = vsel %vm3212_vm11, %v3694_v2, %v3690_v56  ;;  %v3921_v2 = vsub.s32 0, %v6451_v19 }
 0x2a5   : > { %v2835_v62 = vmul.f32 0.0044444446, %v2689_v40  ;;  %v2687_v49 = vpop.xlane.xlu0 %2686 }
 0x2a6   : > { %v3083_v63 = vunpack.c.l.b16 %v2893_v39  ;;  %v3084_v10 = vunpack.c.h.b16 %v2893_v39  ;;  %v2834_v7 = vmul.f32 0.0044444446, %v2687_v49  ;;  %v3626_v39 = vsel %vm3226_vm14, %v3625_v32, %v3621_v59  ;;  %v4977_v32 = vld [vmem:[%s7097_s3 + $0x60] ss:$8 sps:$4 sm:$0xff]  }
 0x2a7   : > { %4022 = vmatpush1.bf16.msra.mxu1 %v4977_v32 }
 0x2a8   : > { %v3551_v45 = vrot.slane %v3083_v63, %v6926_v4  ;;  %v3556_v34 = vrot.slane %v3084_v10, %v6929_v6  ;;  %v2661_v46 = vpop.xlane.xlu1 %2660  ;;  %v2908_v14 = vpack.c.bf16 %v2835_v62, %v2834_v7  ;;  %v3769_v10 = vsel %vm3205_vm10, %v3768_v0, %v3764_v21 }
 0x2a9   : > { %v2821_v54 = vmul.f32 0.0044444446, %v2661_v46  ;;  %v2659_v30 = vpop.xlane.xlu0 %2658  ;;  %v3925_v0 = vsub.s32 1, %v6451_v19 }
 0x2aa   : > { %v3552_v61 = vsel %vm3233_vm15, %v3551_v45, %v3547_v23  ;;  %v2820_v8 = vmul.f32 0.0044444446, %v2659_v30  ;;  %v3113_v28 = vunpack.c.l.b16 %v2908_v14  ;;  %v3114_v40 = vunpack.c.h.b16 %v2908_v14 }
 0x2ab   : > { %v3557_v36 = vsel %vm3240_vm0, %v3556_v34, %v3552_v61 }
 0x2ac   : > { %v2901_v11 = vpack.c.bf16 %v2821_v54, %v2820_v8  ;;  %v2721_v60 = vpop.xlane.xlu1 %2720  ;;  %v3802_v22 = vsel %vm3801_vm4, %v3557_v36, %v3800_v58  ;;  %v3128_v58 = vunpack.c.h.b16 %v2915_v38  ;;  %v3699_v52 = vrot.slane %v3113_v28, %v6857_v55 }
 0x2ad   : > { %v2851_v20 = vmul.f32 0.0044444446, %v2721_v60  ;;  %v2719_v51 = vpop.xlane.xlu0 %2718  ;;  %v3704_v12 = vrot.slane %v3114_v40, %v6865_v13  ;;  %v5096_v28 = vmov 0  }
 0x2ae   : > { %v3099_v42 = vunpack.c.l.b16 %v2901_v11  ;;  %v3100_v57 = vunpack.c.h.b16 %v2901_v11  ;;  %v2850_v24 = vmul.f32 0.0044444446, %v2719_v51  ;;  %v3773_v7 = vrot.slane %v3128_v58, %v6745_v50  ;;  %4041 = vmatprep.mubr.bf16.mxu1 %v5096_v28  ;;  %v3917_v58 = vld [vmem:[%s7098_s4] sm:$0x3] }
 0x2af   : > { %v3700_v29 = vsel %vm3219_vm13, %v3699_v52, %v3695_v25 }
 0x2b0   : > { %v3630_v33 = vrot.slane %v3099_v42, %v6926_v4  ;;  %v3635_v18 = vrot.slane %v3100_v57, %v6929_v6  ;;  %v2916_v17 = vpack.c.bf16 %v2851_v20, %v2850_v24  ;;  %v2693_v44 = vpop.xlane.xlu1 %2692  ;;  %v3774_v9 = vsel %vm3212_vm11, %v3773_v7, %v3769_v10  ;;  %v4159_v20 = vld [vmem:[%s7096_s2] ss:$0 sm:$0xff] }
 0x2b1   : > { %v2837_v15 = vmul.f32 0.0044444446, %v2693_v44  ;;  %v2691_v43 = vpop.xlane.xlu0 %2690  ;;  %v3705_v53 = vsel %vm3226_vm14, %v3704_v12, %v3700_v29 }
 0x2b2   : > { %v3631_v3 = vsel %vm3233_vm15, %v3630_v33, %v3626_v39  ;;  %v3129_v62 = vunpack.c.l.b16 %v2916_v17  ;;  %v2836_v49 = vmul.f32 0.0044444446, %v2691_v43  ;;  %v3130_v38 = vunpack.c.h.b16 %v2916_v17 }
 0x2b3   : > { %v3636_v63 = vsel %vm3240_vm0, %v3635_v18, %v3631_v3  ;;  %v3922_v33 = vrot.slane %v3917_v58, %v3921_v2  ;;  %v3926_v18 = vrot.slane %v3917_v58, %v3925_v0 }
 0x2b4   : > { %v2909_v48 = vpack.c.bf16 %v2837_v15, %v2836_v49  ;;  %v2725_v16 = vpop.xlane.xlu1 %2724  ;;  %v3804_v5 = vsel %vm3803_vm5, %v3636_v63, %v3802_v22  ;;  %v3778_v46 = vrot.slane %v3129_v62, %v6857_v55  ;;  %v3783_v61 = vrot.slane %v3130_v38, %v6865_v13 }
 0x2b5   : > { %v2853_v45 = vmul.f32 0.0044444446, %v2725_v16  ;;  %v2723_v34 = vpop.xlane.xlu0 %2722 }
 0x2b6   : > { %v3115_v23 = vunpack.c.l.b16 %v2909_v48  ;;  %v3116_v41 = vunpack.c.h.b16 %v2909_v48  ;;  %v2852_v14 = vmul.f32 0.0044444446, %v2723_v34  ;;  %v3779_v8 = vsel %vm3219_vm13, %v3778_v46, %v3774_v9 }
 0x2b7   : > { %v3784_v11 = vsel %vm3226_vm14, %v3783_v61, %v3779_v8 }
 0x2b8   : > { %v3709_v54 = vrot.slane %v3115_v23, %v6926_v4  ;;  %v3714_v50 = vrot.slane %v3116_v41, %v6929_v6  ;;  %v2917_v30 = vpack.c.bf16 %v2853_v45, %v2852_v14 }
 0x2ba   : > { %v3131_v47 = vunpack.c.l.b16 %v2917_v30  ;;  %v3132_v26 = vunpack.c.h.b16 %v2917_v30  ;;  %v3710_v55 = vsel %vm3233_vm15, %v3709_v54, %v3705_v53 }
 0x2bb   : > { %v3715_v35 = vsel %vm3240_vm0, %v3714_v50, %v3710_v55 }
 0x2bc   : > { %v3788_v36 = vrot.slane %v3131_v47, %v6926_v4  ;;  %v3793_v37 = vrot.slane %v3132_v26, %v6929_v6  ;;  %v3806_v1 = vsel %vm3805_vm6, %v3715_v35, %v3804_v5  ;;  %v4978_v4 = vld [vmem:[%s7097_s3 + $0x74] ss:$8 sps:$4 sm:$0xff]   ;;  %v4980_v6 = vld [vmem:[%s7097_s3 + $0x70] ss:$8 sps:$4 sm:$0xff]  }
 0x2bd   : > { %4023 = vmatprep.subr.bf16.mxu1 %v4978_v4 }
 0x2be   : > { %v3789_v60 = vsel %vm3233_vm15, %v3788_v36, %v3784_v11  ;;  %4024 = vmatpush1.bf16.msra.mxu1 %v4980_v6 }
 0x2bf   : > { %v3794_v13 = vsel %vm3240_vm0, %v3793_v37, %v3789_v60 }
 0x2c0   : > { %v3808_v22 = vsel %vm3807_vm7, %v3794_v13, %v3806_v1 }
 0x2c1   : > { %v3809_v27 = vpack.c.b16 %v3808_v22, %v3808_v22 }
 0x2c3   : > { %4855 = vmatmul.mubr.bf16.vlgmr.msra.gmra.mrb[0].mxu0 %v3809_v27 }
 0x396   : > { %v3893_v51 = vpop.f32.mrb[0].mxu0 }
 0x397   : > { %v3894_v59 = vadd.f32 %v4159_v20, %v3893_v51  ;;  %v4856_v42 = vpop.f32.mrb[1].mxu0 }
 0x398   : > { %v3896_v57 = vpop.f32.mrb[2].mxu0 }
 0x399   : > { %v3899_v24 = vmax.f32 %v3894_v59, 0.0  ;;  %v4857_v31 = vpop.f32.mrb[3].mxu0 }
 0x39b   : > { %v3900_v56 = vpack.c.bf16 %v3899_v24, %v3899_v24 }
 0x39d   : > { %4042 = vmatmul.mubr.bf16.vlgmr.msra.gmra.mrb[0].mxu1 %v3900_v56 }
 0x470   : > { %v4043_v17 = vpop.f32.mrb[0].mxu1 }
 0x471   : > { %v4044_v44 = vadd.f32 %v4043_v17, %v3922_v33  ;;  %v4045_v39 = vpop.f32.mrb[1].mxu1 }
 0x472   : > { %v4046_v40 = vadd.f32 %v4045_v39, %v3926_v18  ;;  %v4047_v52 = vpop.f32.mrb[2].mxu1 }
 0x473   : > { %4050 = vst [vmem:[%s5495_s8] sm:$0xff] %v4044_v44  ;;  %v4048_v15 = vpop.f32.mrb[3].mxu1 }
 0x474   : > { %4051 = vst [vmem:[%s5495_s8 + $0x8] sm:$0xff] %v4046_v40 }
 0x475 PF: > { %s4190_s12 = sshll.u32 %s5079_s24, 8  ;;  %s4067_s6 = sshll.u32 %s5495_s8, 4  ;;  %s4068_s6 = int_to_ptr.vmem [resolvable:$true] %s4067_s6 }
 0x476   : > { %s7038_s7 = scalar_lea.hbm %s7099_s5, %s4190_s12  ;;  %s4053_s17 = scalar_lea.sflag [#allocation5], %s786_s9 }
 0x477   : > { %s4981_s28 = scalar_lea.vmem %s4068_s6, 256  ;;  %s5097_s29 = smov [#allocation4]  }
 0x478   : > { %p4982_p6 = scmp.ne.s32.totalorder %s4068_s6, %s4981_s28  ;;  %s4985_s21 = sshll.u32 %s5097_s29, 4  ;;  %s4986_s21 = int_to_ptr.vmem [resolvable:$false] %s4985_s21 }
 0x479   : > { %s4987_s23 = scalar_lea.vmem %s4986_s21, 512  ;;  %p4988_p10 = scmp.lt.s32.totalorder %s4068_s6, %s4986_s21 }
 0x47a   : > { %p4983_p8 = pnand %p4982_p6, %p5200_p7  ;;  %p4989_p11 = scmp.lt.s32.totalorder %s4987_s23, %s4981_s28 }
 0x47c   : > { %p4984_p9 = pneg %p4983_p8  ;;  %p4990_p13 = por %p4989_p11, %p4988_p10 }
 0x47e   : > { %p4991_p0 = pnand %p4990_p13, %p4984_p9 }
 0x480   : > { %4994 = shalt.err (!%p4991_p0)
}
 0x481   : > { %s4995_s24 = scalar_lea.hbm %s7038_s7, 256  ;;  %s4999_s12 = scalar_lea.hbm %s7099_s5, 512 }
 0x482   : > { %p4996_p1 = scmp.ne.s32.totalorder %s7038_s7, %s4995_s24  ;;  %p5000_p4 = scmp.lt.u32.totalorder %s7038_s7, %s7099_s5 }
 0x483   : > { %p5001_p5 = scmp.lt.u32.totalorder %s4999_s12, %s4995_s24  ;;  %p5003_p8 = scmp.lt.u32.totalorder %s4995_s24, %s7038_s7 }
 0x484   : > { %p4997_p2 = pnand %p4996_p1, %p5200_p7 }
 0x485   : > { %p5002_p6 = por %p5001_p5, %p5000_p4 }
 0x486   : > { %p4998_p3 = pneg %p4997_p2 }
 0x487   : > { %p5004_p9 = por %p5003_p8, %p5002_p6 }
 0x489   : > { %p5005_p10 = pnand %p5004_p9, %p4998_p3 }
 0x48b   : > { %5008 = shalt.err (!%p5005_p10)
}
 0x48c   : > { %4858 = dma.vmem_to_hbm [thread:$0]  (%p5200_p7), %s4068_s6, 256, %s7038_s7, %s4053_s17  }
 0x48d PF: > { %p4864_p11 = scmp.ge.s32.totalorder %s5091_s27, 2  ;;  %s4079_s28 = sand.u32 1, %s5055_s18  }
 0x48e   : > { %s4080_s29 = scalar_lea.sflag [#allocation5], %s4079_s28 }
 0x48f   : > { %p4861_p13 = pnand %p4864_p11, %p5208_p12 }
 0x491   : > { %5050 = dma.done.wait (!%p4861_p13), %s4080_s29, 256  }
 0x492   : > { %5052 = vsyncadd (!%p4861_p13), %s4080_s29, 4294967040  ;;  %s18_s27 = sadd.s32 1, %s5091_s27   ;;  %s7164_s11 = sld [smem:[#allocation7_spill]] }
 0x493   : > { %p15_p0 = scmp.ge.s32.totalorder %s18_s27, 6   ;;  %s7165_s18 = smov %s5059_s19 }
 0x494   : > { %s7166_s19 = smov %s5063_s20  ;;  %s7167_s20 = smov %s5213_s15 }
 0x495   : > { %s7168_s21 = smov %s5071_s22  ;;  %s7169_s22 = smov %s5216_s16 }
 0x496   : > { %s7170_s23 = smov %s5083_s25  ;;  %s7171_s24 = smov %s5087_s26 }
 0x497   : > { %s7172_s25 = smov %s7175_s30  ;;  %17 = sbr.rel (!%p15_p0) target bundleno = 6 (0x6), region = 133 }
 0x498   : > { %s7173_s26 = smov %s7164_s11 }
 0x49e   :  { %4085 = vsyncpa [#allocation5], 1 }
 0x49f   :  { %4087 = vsyncpa [#allocation5 + $0x1], 1 }

</bundles_post_ra>
